<compile_context>
chip_gen: v5e
topology: v5e:2x2
jax: 0.10.0
libtpu: 0.0.40
codegen_flags: <defaults>
</compile_context>

<pallas_src>
import functools

import jax
import jax.numpy as jnp
from jax.experimental import pallas as pl
from jax.experimental.pallas import tpu as pltpu


# ---------------------------------------------------------------------------
# Model constants
# ---------------------------------------------------------------------------
CLASSES = 10
CHANNELS = 1
IMG_SIZE = 28
LATENT_DIM = 100
IMG_PROD = CHANNELS * IMG_SIZE * IMG_SIZE            # 784
BN_EPS = 1e-5

LANE = 128
Z_IN_PAD = 128                                        # 100 z + 10 one-hot + 18 pad
IMG_PAD = ((IMG_PROD + CLASSES + LANE - 1) // LANE) * LANE   # 794 -> 896
GEN_OUT_PAD = ((IMG_PROD + LANE - 1) // LANE) * LANE  # 784 -> 896
DISC_OUT_PAD = LANE                                   # 1 -> 128

GEN_ACTS = ("leaky", "leaky", "leaky", "leaky", "tanh")
DISC_ACTS = ("leaky", "leaky", "leaky", "none", "sigmoid")


def _apply_act(y, act):
    if act == "leaky":
        return jnp.where(y > 0, y, 0.2 * y)
    if act == "tanh":
        return jnp.tanh(y)
    if act == "sigmoid":
        return jax.nn.sigmoid(y)
    return y  # "none"


# ---------------------------------------------------------------------------
# Fused MLP kernel: whole path in one pallas_call, weights streamed HBM->VMEM
# with per-layer DMAs that overlap the previous layer's compute.
# ---------------------------------------------------------------------------
def _fused_mlp_kernel(labels_ref, x_ref, *refs, acts, emb_offset):
    """Argument layout (after labels_ref, x_ref):
         refs[0:n]        bias refs (VMEM, f32, (1, N_i))
         refs[n:2n]       weight refs (HBM via pl.ANY, bf16, (K_i, N_i))
         refs[2n]         output ref (VMEM, f32)
         refs[2n+1:3n+1]  per-layer VMEM weight buffers (scratch)
         refs[3n+1]       DMA semaphore array, one slot per layer
    """
    n = len(acts)
    b_refs = refs[:n]
    w_hbm_refs = refs[n:2 * n]
    o_ref = refs[2 * n]
    w_bufs = refs[2 * n + 1:3 * n + 1]
    sem = refs[3 * n + 1]

    # Kick off every weight copy immediately; layer i only waits on its own copy,
    # so the fetch of layers i+1..n overlaps layer i's matmul.
    copies = []
    for i in range(n):
        cp = pltpu.make_async_copy(w_hbm_refs[i], w_bufs[i], sem.at[i])
        cp.start()
        copies.append(cp)

    # Layer-1 input: f32 zero-padded x with the one-hot label scattered into lanes
    # [emb_offset, emb_offset + 10).  The embedding matrix was folded into those rows
    # of the layer-1 weight slab, so no separate embedding matmul is needed.
    B, K = x_ref.shape
    lab = labels_ref[...]                                        # (B, 1) int32
    iota = jax.lax.broadcasted_iota(jnp.int32, (B, K), 1)        # (B, K)
    h = jnp.where(iota == lab + emb_offset, 1.0, x_ref[...])     # f32

    for li in range(n):
        copies[li].wait()
        w = w_bufs[li][...]                                      # bf16 (K_i, N_i)
        b = b_refs[li][...]                                      # f32  (1, N_i)
        h = jnp.dot(h.astype(jnp.bfloat16), w,
                    preferred_element_type=jnp.float32) + b
        h = _apply_act(h, acts[li])

    o_ref[...] = h.astype(o_ref.dtype)


def _fused_mlp(labels2d, x, layers, acts, out_dim, emb_offset):
    """Single pallas_call over the whole MLP path (weights streamed per layer)."""
    B = x.shape[0]
    n = len(layers)
    weights = [w for (w, _) in layers]
    biases = [b for (_, b) in layers]

    vmem = pl.BlockSpec(memory_space=pltpu.MemorySpace.VMEM)
    hbm = pl.BlockSpec(memory_space=pl.ANY)

    return pl.pallas_call(
        functools.partial(_fused_mlp_kernel, acts=acts, emb_offset=emb_offset),
        out_shape=jax.ShapeDtypeStruct((B, out_dim), jnp.float32),
        in_specs=[vmem, vmem] + [vmem] * n + [hbm] * n,
        out_specs=vmem,
        scratch_shapes=[pltpu.VMEM(w.shape, w.dtype) for w in weights]
                       + [pltpu.SemaphoreType.DMA((n,))],
        compiler_params=pltpu.CompilerParams(vmem_limit_bytes=16 * 1024 * 1024),
    )(labels2d, x, *biases, *weights)


# ---------------------------------------------------------------------------
# Parameter construction (PyTorch-equivalent shapes -> folded / padded / bf16)
# ---------------------------------------------------------------------------
def _init_linear(key, size_in, size_out):
    kw, kb = jax.random.split(key)
    std = (2.0 / (size_in + size_out)) ** 0.5     # Xavier-normal-ish deterministic init
    w = std * jax.random.normal(kw, (size_in, size_out), jnp.float32)  # stored (in, out)
    b = 0.01 * jax.random.normal(kb, (1, size_out), jnp.float32)
    return w, b


def _pad2d(x, rows, cols):
    return jnp.pad(x, ((0, rows - x.shape[0]), (0, cols - x.shape[1])))


def init_cgan_params(key):
    keys = jax.random.split(key, 12)
    E = jax.random.normal(keys[0], (CLASSES, CLASSES), jnp.float32)   # label embedding

    # --- raw generator params (unpadded, eval-BN folded) ---
    gen_dims = [(LATENT_DIM + CLASSES, 128, False),
                (128, 256, True),
                (256, 512, True),
                (512, 1024, True),
                (1024, IMG_PROD, False)]
    raw_gen = []
    for i, (din, dout, has_bn) in enumerate(gen_dims):
        w, b = _init_linear(keys[1 + i], din, dout)
        if has_bn:  # eval-mode BN, fresh stats: gamma=1, beta=0, mean=0, var=1
            s = 1.0 / jnp.sqrt(1.0 + BN_EPS)
            w, b = w * s, b * s
        raw_gen.append((w, b))

    # --- raw discriminator params ---
    disc_dims = [(CLASSES + IMG_PROD, 1024), (1024, 512), (512, 256), (256, 128), (128, 1)]
    raw_disc = [_init_linear(keys[6 + i], din, dout)
                for i, (din, dout) in enumerate(disc_dims)]

    params = {}

    # Generator layer 1: PyTorch input is cat(emb(l), z) with W1:(110,128).
    # Folded slab rows: [0..99] = W1[10:110] (z part), [100..109] = E @ W1[0:10]
    # (embedding part), [110..127] = 0.
    w1, b1 = raw_gen[0]
    w1_fold = jnp.zeros((Z_IN_PAD, 128), jnp.float32)
    w1_fold = w1_fold.at[:LATENT_DIM].set(w1[CLASSES:])
    w1_fold = w1_fold.at[LATENT_DIM:LATENT_DIM + CLASSES].set(E @ w1[:CLASSES])
    gen_layers = [(w1_fold.astype(jnp.bfloat16), b1)]
    for w, b in raw_gen[1:-1]:
        gen_layers.append((w.astype(jnp.bfloat16), b))
    w5, b5 = raw_gen[-1]                # (1024, 784) -> pad output lanes to 896
    gen_layers.append((_pad2d(w5, 1024, GEN_OUT_PAD).astype(jnp.bfloat16),
                       _pad2d(b5, 1, GEN_OUT_PAD)))
    params["gen_layers"] = gen_layers

    # Discriminator layer 1: PyTorch input is cat(flat(img), emb(l)) with Wd1:(794,1024).
    # Folded slab rows: [0..783] = Wd1[0:784], [784..793] = E @ Wd1[784:794], rest 0.
    wd1, bd1 = raw_disc[0]
    wd1_fold = jnp.zeros((IMG_PAD, 1024), jnp.float32)
    wd1_fold = wd1_fold.at[:IMG_PROD].set(wd1[:IMG_PROD])
    wd1_fold = wd1_fold.at[IMG_PROD:IMG_PROD + CLASSES].set(E @ wd1[IMG_PROD:])
    disc_layers = [(wd1_fold.astype(jnp.bfloat16), bd1)]
    for w, b in raw_disc[1:-1]:
        disc_layers.append((w.astype(jnp.bfloat16), b))
    wd5, bd5 = raw_disc[-1]             # (128, 1) -> pad output lanes to 128
    disc_layers.append((_pad2d(wd5, 128, DISC_OUT_PAD).astype(jnp.bfloat16),
                        _pad2d(bd5, 1, DISC_OUT_PAD)))
    params["disc_layers"] = disc_layers
    return params


# ---------------------------------------------------------------------------
# Forward (mirrors CGAN.forward dispatch on input.dim())
# ---------------------------------------------------------------------------
def cgan_forward(params, inp, labels):
    labels2d = labels.astype(jnp.int32).reshape(-1, 1)               # (B, 1)

    if inp.ndim == 2:
        # Generator: z = cat(embed(labels), input) -> MLP -> Tanh -> (B,1,28,28)
        B = inp.shape[0]
        x = jnp.pad(inp, ((0, 0), (0, Z_IN_PAD - LATENT_DIM)))       # f32, zero pad
        out = _fused_mlp(labels2d, x, params["gen_layers"], GEN_ACTS,
                         GEN_OUT_PAD, emb_offset=LATENT_DIM)
        return out[:, :IMG_PROD].reshape(B, CHANNELS, IMG_SIZE, IMG_SIZE)

    elif inp.ndim == 4:
        # Discriminator: x = cat(flatten(input), embed(labels)) -> MLP -> Sigmoid -> (B,1)
        B = inp.shape[0]
        flat = inp.reshape(B, -1)
        flat = jnp.pad(flat, ((0, 0), (0, IMG_PAD - IMG_PROD)))      # f32, zero pad
        out = _fused_mlp(labels2d, flat, params["disc_layers"], DISC_ACTS,
                         DISC_OUT_PAD, emb_offset=IMG_PROD)
        return out[:, :1]

    raise ValueError(f"unsupported input ndim {inp.ndim}")


# ---------------------------------------------------------------------------
# Pure-JAX reference mirroring the kernel's numerics (for in-script validation)
# ---------------------------------------------------------------------------
def _mlp_reference(labels2d, x, layers, acts, emb_offset):
    B, K = x.shape
    iota = jnp.arange(K, dtype=jnp.int32)[None, :]
    h = jnp.where(iota == labels2d + emb_offset, 1.0, x)
    for (w, b), act in zip(layers, acts):
        h = jnp.dot(h.astype(jnp.bfloat16).astype(jnp.float32),
                    w.astype(jnp.float32),
                    precision=jax.lax.Precision.HIGHEST) + b
        h = _apply_act(h, act)
    return h


# ---------------------------------------------------------------------------
# Main
# ---------------------------------------------------------------------------
if __name__ == "__main__":
    key = jax.random.PRNGKey(0)
    kp, kz, kl, ki = jax.random.split(key, 4)

    params = init_cgan_params(kp)

    B = 16
    z = jax.random.normal(kz, (B, LATENT_DIM), jnp.float32)            # (16, 100)
    labels = jax.random.randint(kl, (B,), 0, CLASSES, jnp.int32)       # (16,)
    img = jax.random.normal(ki, (B, CHANNELS, IMG_SIZE, IMG_SIZE), jnp.float32)

    fwd = jax.jit(cgan_forward)

    # Generator path (input.dim() == 2)
    gen_out = jax.block_until_ready(fwd(params, z, labels))
    assert gen_out.shape == (B, CHANNELS, IMG_SIZE, IMG_SIZE)
    assert bool(jnp.all(jnp.abs(gen_out) <= 1.0 + 1e-6))               # tanh range

    # Discriminator path (input.dim() == 4)
    disc_out = jax.block_until_ready(fwd(params, img, labels))
    assert disc_out.shape == (B, 1)
    assert bool(jnp.all((disc_out >= 0.0) & (disc_out <= 1.0)))        # sigmoid range

    # Numerics check against a pure-JAX reference that uses the same folded bf16
    # weights and bf16 activation casts (tolerance covers accumulation-order noise).
    labels2d = labels.reshape(-1, 1)
    zp = jnp.pad(z, ((0, 0), (0, Z_IN_PAD - LATENT_DIM)))
    ref_gen = _mlp_reference(labels2d, zp, params["gen_layers"], GEN_ACTS, LATENT_DIM)
    ref_gen = ref_gen[:, :IMG_PROD].reshape(B, CHANNELS, IMG_SIZE, IMG_SIZE)
    assert jnp.allclose(gen_out, ref_gen, rtol=2e-2, atol=2e-2)

    flat = jnp.pad(img.reshape(B, -1), ((0, 0), (0, IMG_PAD - IMG_PROD)))
    ref_disc = _mlp_reference(labels2d, flat, params["disc_layers"], DISC_ACTS, IMG_PROD)
    assert jnp.allclose(disc_out, ref_disc[:, :1], rtol=2e-2, atol=2e-2)

    print("KERNEL_OK")
</pallas_src>

<mosaic_0001>
module attributes {stable_mosaic.version = 11 : i64} {
  func.func @_fused_mlp_kernel(%arg0: memref<16x1xi32, #tpu.memory_space<vmem>>, %arg1: memref<16x128xf32, #tpu.memory_space<vmem>>, %arg2: memref<1x128xf32, #tpu.memory_space<vmem>>, %arg3: memref<1x256xf32, #tpu.memory_space<vmem>>, %arg4: memref<1x512xf32, #tpu.memory_space<vmem>>, %arg5: memref<1x1024xf32, #tpu.memory_space<vmem>>, %arg6: memref<1x896xf32, #tpu.memory_space<vmem>>, %arg7: memref<128x128xbf16, #tpu.memory_space<any>>, %arg8: memref<128x256xbf16, #tpu.memory_space<any>>, %arg9: memref<256x512xbf16, #tpu.memory_space<any>>, %arg10: memref<512x1024xbf16, #tpu.memory_space<any>>, %arg11: memref<1024x896xbf16, #tpu.memory_space<any>>, %arg12: memref<16x896xf32, #tpu.memory_space<vmem>>, %arg13: memref<128x128xbf16, #tpu.memory_space<vmem>>, %arg14: memref<128x256xbf16, #tpu.memory_space<vmem>>, %arg15: memref<256x512xbf16, #tpu.memory_space<vmem>>, %arg16: memref<512x1024xbf16, #tpu.memory_space<vmem>>, %arg17: memref<1024x896xbf16, #tpu.memory_space<vmem>>, %arg18: memref<5x!tpu.dma_semaphore, #tpu.memory_space<semaphore_mem>>) attributes {dimension_semantics = [], scalar_prefetch = 0 : i64, scratch_operands = 6 : i64, tpu.core_type = #tpu.core_type<tc>} {
    %c0_i32 = arith.constant 0 : i32
    %0 = tpu.memref_slice %arg18[%c0_i32] : memref<5x!tpu.dma_semaphore, #tpu.memory_space<semaphore_mem>> -> memref<1x!tpu.dma_semaphore, #tpu.memory_space<semaphore_mem>>
    %1 = tpu.memref_squeeze %0 : memref<1x!tpu.dma_semaphore, #tpu.memory_space<semaphore_mem>> -> memref<!tpu.dma_semaphore, #tpu.memory_space<semaphore_mem>>
    tpu.enqueue_dma source(%arg7 : memref<128x128xbf16, #tpu.memory_space<any>>) target(%arg13 : memref<128x128xbf16, #tpu.memory_space<vmem>>) target_semaphore(%1 : memref<!tpu.dma_semaphore, #tpu.memory_space<semaphore_mem>>)
    %c1_i32 = arith.constant 1 : i32
    %2 = tpu.memref_slice %arg18[%c1_i32] : memref<5x!tpu.dma_semaphore, #tpu.memory_space<semaphore_mem>> -> memref<1x!tpu.dma_semaphore, #tpu.memory_space<semaphore_mem>>
    %3 = tpu.memref_squeeze %2 : memref<1x!tpu.dma_semaphore, #tpu.memory_space<semaphore_mem>> -> memref<!tpu.dma_semaphore, #tpu.memory_space<semaphore_mem>>
    tpu.enqueue_dma source(%arg8 : memref<128x256xbf16, #tpu.memory_space<any>>) target(%arg14 : memref<128x256xbf16, #tpu.memory_space<vmem>>) target_semaphore(%3 : memref<!tpu.dma_semaphore, #tpu.memory_space<semaphore_mem>>)
    %c2_i32 = arith.constant 2 : i32
    %4 = tpu.memref_slice %arg18[%c2_i32] : memref<5x!tpu.dma_semaphore, #tpu.memory_space<semaphore_mem>> -> memref<1x!tpu.dma_semaphore, #tpu.memory_space<semaphore_mem>>
    %5 = tpu.memref_squeeze %4 : memref<1x!tpu.dma_semaphore, #tpu.memory_space<semaphore_mem>> -> memref<!tpu.dma_semaphore, #tpu.memory_space<semaphore_mem>>
    tpu.enqueue_dma source(%arg9 : memref<256x512xbf16, #tpu.memory_space<any>>) target(%arg15 : memref<256x512xbf16, #tpu.memory_space<vmem>>) target_semaphore(%5 : memref<!tpu.dma_semaphore, #tpu.memory_space<semaphore_mem>>)
    %c3_i32 = arith.constant 3 : i32
    %6 = tpu.memref_slice %arg18[%c3_i32] : memref<5x!tpu.dma_semaphore, #tpu.memory_space<semaphore_mem>> -> memref<1x!tpu.dma_semaphore, #tpu.memory_space<semaphore_mem>>
    %7 = tpu.memref_squeeze %6 : memref<1x!tpu.dma_semaphore, #tpu.memory_space<semaphore_mem>> -> memref<!tpu.dma_semaphore, #tpu.memory_space<semaphore_mem>>
    tpu.enqueue_dma source(%arg10 : memref<512x1024xbf16, #tpu.memory_space<any>>) target(%arg16 : memref<512x1024xbf16, #tpu.memory_space<vmem>>) target_semaphore(%7 : memref<!tpu.dma_semaphore, #tpu.memory_space<semaphore_mem>>)
    %c4_i32 = arith.constant 4 : i32
    %8 = tpu.memref_slice %arg18[%c4_i32] : memref<5x!tpu.dma_semaphore, #tpu.memory_space<semaphore_mem>> -> memref<1x!tpu.dma_semaphore, #tpu.memory_space<semaphore_mem>>
    %9 = tpu.memref_squeeze %8 : memref<1x!tpu.dma_semaphore, #tpu.memory_space<semaphore_mem>> -> memref<!tpu.dma_semaphore, #tpu.memory_space<semaphore_mem>>
    tpu.enqueue_dma source(%arg11 : memref<1024x896xbf16, #tpu.memory_space<any>>) target(%arg17 : memref<1024x896xbf16, #tpu.memory_space<vmem>>) target_semaphore(%9 : memref<!tpu.dma_semaphore, #tpu.memory_space<semaphore_mem>>)
    %c0 = arith.constant 0 : index
    %c0_0 = arith.constant 0 : index
    %10 = vector.load %arg0[%c0, %c0_0] : memref<16x1xi32, #tpu.memory_space<vmem>>, vector<16x1xi32>
    %11 = tpu.iota {dimensions = array<i32: 1>} : vector<16x128xi32>
    %c100_i32 = arith.constant 100 : i32
    %12 = vector.broadcast %c100_i32 : i32 to vector<16x1xi32>
    %13 = arith.addi %10, %12 : vector<16x1xi32>
    %14 = vector.broadcast %13 : vector<16x1xi32> to vector<16x128xi32>
    %15 = arith.cmpi eq, %11, %14 : vector<16x128xi32>
    %c0_1 = arith.constant 0 : index
    %c0_2 = arith.constant 0 : index
    %16 = vector.load %arg1[%c0_1, %c0_2] : memref<16x128xf32, #tpu.memory_space<vmem>>, vector<16x128xf32>
    %cst = arith.constant 1.000000e+00 : f32
    %17 = vector.broadcast %cst : f32 to vector<16x128xf32>
    %18 = arith.select %15, %17, %16 : vector<16x128xi1>, vector<16x128xf32>
    %c0_i32_3 = arith.constant 0 : i32
    %19 = tpu.memref_slice %arg18[%c0_i32_3] : memref<5x!tpu.dma_semaphore, #tpu.memory_space<semaphore_mem>> -> memref<1x!tpu.dma_semaphore, #tpu.memory_space<semaphore_mem>>
    %20 = tpu.memref_squeeze %19 : memref<1x!tpu.dma_semaphore, #tpu.memory_space<semaphore_mem>> -> memref<!tpu.dma_semaphore, #tpu.memory_space<semaphore_mem>>
    tpu.wait_dma2 semaphore(%20 : memref<!tpu.dma_semaphore, #tpu.memory_space<semaphore_mem>>) src(%arg7 : memref<128x128xbf16, #tpu.memory_space<any>>) dst(%arg13 : memref<128x128xbf16, #tpu.memory_space<vmem>>)
    %c0_4 = arith.constant 0 : index
    %c0_5 = arith.constant 0 : index
    %21 = vector.load %arg13[%c0_4, %c0_5] : memref<128x128xbf16, #tpu.memory_space<vmem>>, vector<128x128xbf16>
    %c0_6 = arith.constant 0 : index
    %c0_7 = arith.constant 0 : index
    %22 = vector.load %arg2[%c0_6, %c0_7] : memref<1x128xf32, #tpu.memory_space<vmem>>, vector<1x128xf32>
    %23 = arith.truncf %18 : vector<16x128xf32> to vector<16x128xbf16>
    %cst_8 = arith.constant dense<0.000000e+00> : vector<16x128xf32>
    %24 = tpu.matmul %23, %21, %cst_8 {dimension_numbers = #tpu.dot_dimension_numbers<[1], [0], [0], [1], [0, 0, 1, 1], [], []>} : vector<16x128xbf16>, vector<128x128xbf16>, vector<16x128xf32> -> vector<16x128xf32>
    %25 = vector.broadcast %22 : vector<1x128xf32> to vector<16x128xf32>
    %26 = arith.addf %24, %25 : vector<16x128xf32>
    %cst_9 = arith.constant 0.000000e+00 : f32
    %27 = vector.broadcast %cst_9 : f32 to vector<16x128xf32>
    %28 = arith.cmpf ogt, %26, %27 : vector<16x128xf32>
    %cst_10 = arith.constant 2.000000e-01 : f32
    %29 = vector.broadcast %cst_10 : f32 to vector<16x128xf32>
    %30 = arith.mulf %29, %26 : vector<16x128xf32>
    %31 = arith.select %28, %26, %30 : vector<16x128xi1>, vector<16x128xf32>
    %c1_i32_11 = arith.constant 1 : i32
    %32 = tpu.memref_slice %arg18[%c1_i32_11] : memref<5x!tpu.dma_semaphore, #tpu.memory_space<semaphore_mem>> -> memref<1x!tpu.dma_semaphore, #tpu.memory_space<semaphore_mem>>
    %33 = tpu.memref_squeeze %32 : memref<1x!tpu.dma_semaphore, #tpu.memory_space<semaphore_mem>> -> memref<!tpu.dma_semaphore, #tpu.memory_space<semaphore_mem>>
    tpu.wait_dma2 semaphore(%33 : memref<!tpu.dma_semaphore, #tpu.memory_space<semaphore_mem>>) src(%arg8 : memref<128x256xbf16, #tpu.memory_space<any>>) dst(%arg14 : memref<128x256xbf16, #tpu.memory_space<vmem>>)
    %c0_12 = arith.constant 0 : index
    %c0_13 = arith.constant 0 : index
    %34 = vector.load %arg14[%c0_12, %c0_13] : memref<128x256xbf16, #tpu.memory_space<vmem>>, vector<128x256xbf16>
    %c0_14 = arith.constant 0 : index
    %c0_15 = arith.constant 0 : index
    %35 = vector.load %arg3[%c0_14, %c0_15] : memref<1x256xf32, #tpu.memory_space<vmem>>, vector<1x256xf32>
    %36 = arith.truncf %31 : vector<16x128xf32> to vector<16x128xbf16>
    %cst_16 = arith.constant dense<0.000000e+00> : vector<16x256xf32>
    %37 = tpu.matmul %36, %34, %cst_16 {dimension_numbers = #tpu.dot_dimension_numbers<[1], [0], [0], [1], [0, 0, 1, 1], [], []>} : vector<16x128xbf16>, vector<128x256xbf16>, vector<16x256xf32> -> vector<16x256xf32>
    %38 = vector.broadcast %35 : vector<1x256xf32> to vector<16x256xf32>
    %39 = arith.addf %37, %38 : vector<16x256xf32>
    %cst_17 = arith.constant 0.000000e+00 : f32
    %40 = vector.broadcast %cst_17 : f32 to vector<16x256xf32>
    %41 = arith.cmpf ogt, %39, %40 : vector<16x256xf32>
    %cst_18 = arith.constant 2.000000e-01 : f32
    %42 = vector.broadcast %cst_18 : f32 to vector<16x256xf32>
    %43 = arith.mulf %42, %39 : vector<16x256xf32>
    %44 = arith.select %41, %39, %43 : vector<16x256xi1>, vector<16x256xf32>
    %c2_i32_19 = arith.constant 2 : i32
    %45 = tpu.memref_slice %arg18[%c2_i32_19] : memref<5x!tpu.dma_semaphore, #tpu.memory_space<semaphore_mem>> -> memref<1x!tpu.dma_semaphore, #tpu.memory_space<semaphore_mem>>
    %46 = tpu.memref_squeeze %45 : memref<1x!tpu.dma_semaphore, #tpu.memory_space<semaphore_mem>> -> memref<!tpu.dma_semaphore, #tpu.memory_space<semaphore_mem>>
    tpu.wait_dma2 semaphore(%46 : memref<!tpu.dma_semaphore, #tpu.memory_space<semaphore_mem>>) src(%arg9 : memref<256x512xbf16, #tpu.memory_space<any>>) dst(%arg15 : memref<256x512xbf16, #tpu.memory_space<vmem>>)
    %c0_20 = arith.constant 0 : index
    %c0_21 = arith.constant 0 : index
    %47 = vector.load %arg15[%c0_20, %c0_21] : memref<256x512xbf16, #tpu.memory_space<vmem>>, vector<256x512xbf16>
    %c0_22 = arith.constant 0 : index
    %c0_23 = arith.constant 0 : index
    %48 = vector.load %arg4[%c0_22, %c0_23] : memref<1x512xf32, #tpu.memory_space<vmem>>, vector<1x512xf32>
    %49 = arith.truncf %44 : vector<16x256xf32> to vector<16x256xbf16>
    %cst_24 = arith.constant dense<0.000000e+00> : vector<16x512xf32>
    %50 = tpu.matmul %49, %47, %cst_24 {dimension_numbers = #tpu.dot_dimension_numbers<[1], [0], [0], [1], [0, 0, 1, 1], [], []>} : vector<16x256xbf16>, vector<256x512xbf16>, vector<16x512xf32> -> vector<16x512xf32>
    %51 = vector.broadcast %48 : vector<1x512xf32> to vector<16x512xf32>
    %52 = arith.addf %50, %51 : vector<16x512xf32>
    %cst_25 = arith.constant 0.000000e+00 : f32
    %53 = vector.broadcast %cst_25 : f32 to vector<16x512xf32>
    %54 = arith.cmpf ogt, %52, %53 : vector<16x512xf32>
    %cst_26 = arith.constant 2.000000e-01 : f32
    %55 = vector.broadcast %cst_26 : f32 to vector<16x512xf32>
    %56 = arith.mulf %55, %52 : vector<16x512xf32>
    %57 = arith.select %54, %52, %56 : vector<16x512xi1>, vector<16x512xf32>
    %c3_i32_27 = arith.constant 3 : i32
    %58 = tpu.memref_slice %arg18[%c3_i32_27] : memref<5x!tpu.dma_semaphore, #tpu.memory_space<semaphore_mem>> -> memref<1x!tpu.dma_semaphore, #tpu.memory_space<semaphore_mem>>
    %59 = tpu.memref_squeeze %58 : memref<1x!tpu.dma_semaphore, #tpu.memory_space<semaphore_mem>> -> memref<!tpu.dma_semaphore, #tpu.memory_space<semaphore_mem>>
    tpu.wait_dma2 semaphore(%59 : memref<!tpu.dma_semaphore, #tpu.memory_space<semaphore_mem>>) src(%arg10 : memref<512x1024xbf16, #tpu.memory_space<any>>) dst(%arg16 : memref<512x1024xbf16, #tpu.memory_space<vmem>>)
    %c0_28 = arith.constant 0 : index
    %c0_29 = arith.constant 0 : index
    %60 = vector.load %arg16[%c0_28, %c0_29] : memref<512x1024xbf16, #tpu.memory_space<vmem>>, vector<512x1024xbf16>
    %c0_30 = arith.constant 0 : index
    %c0_31 = arith.constant 0 : index
    %61 = vector.load %arg5[%c0_30, %c0_31] : memref<1x1024xf32, #tpu.memory_space<vmem>>, vector<1x1024xf32>
    %62 = arith.truncf %57 : vector<16x512xf32> to vector<16x512xbf16>
    %cst_32 = arith.constant dense<0.000000e+00> : vector<16x1024xf32>
    %63 = tpu.matmul %62, %60, %cst_32 {dimension_numbers = #tpu.dot_dimension_numbers<[1], [0], [0], [1], [0, 0, 1, 1], [], []>} : vector<16x512xbf16>, vector<512x1024xbf16>, vector<16x1024xf32> -> vector<16x1024xf32>
    %64 = vector.broadcast %61 : vector<1x1024xf32> to vector<16x1024xf32>
    %65 = arith.addf %63, %64 : vector<16x1024xf32>
    %cst_33 = arith.constant 0.000000e+00 : f32
    %66 = vector.broadcast %cst_33 : f32 to vector<16x1024xf32>
    %67 = arith.cmpf ogt, %65, %66 : vector<16x1024xf32>
    %cst_34 = arith.constant 2.000000e-01 : f32
    %68 = vector.broadcast %cst_34 : f32 to vector<16x1024xf32>
    %69 = arith.mulf %68, %65 : vector<16x1024xf32>
    %70 = arith.select %67, %65, %69 : vector<16x1024xi1>, vector<16x1024xf32>
    %c4_i32_35 = arith.constant 4 : i32
    %71 = tpu.memref_slice %arg18[%c4_i32_35] : memref<5x!tpu.dma_semaphore, #tpu.memory_space<semaphore_mem>> -> memref<1x!tpu.dma_semaphore, #tpu.memory_space<semaphore_mem>>
    %72 = tpu.memref_squeeze %71 : memref<1x!tpu.dma_semaphore, #tpu.memory_space<semaphore_mem>> -> memref<!tpu.dma_semaphore, #tpu.memory_space<semaphore_mem>>
    tpu.wait_dma2 semaphore(%72 : memref<!tpu.dma_semaphore, #tpu.memory_space<semaphore_mem>>) src(%arg11 : memref<1024x896xbf16, #tpu.memory_space<any>>) dst(%arg17 : memref<1024x896xbf16, #tpu.memory_space<vmem>>)
    %c0_36 = arith.constant 0 : index
    %c0_37 = arith.constant 0 : index
    %73 = vector.load %arg17[%c0_36, %c0_37] : memref<1024x896xbf16, #tpu.memory_space<vmem>>, vector<1024x896xbf16>
    %c0_38 = arith.constant 0 : index
    %c0_39 = arith.constant 0 : index
    %74 = vector.load %arg6[%c0_38, %c0_39] : memref<1x896xf32, #tpu.memory_space<vmem>>, vector<1x896xf32>
    %75 = arith.truncf %70 : vector<16x1024xf32> to vector<16x1024xbf16>
    %cst_40 = arith.constant dense<0.000000e+00> : vector<16x896xf32>
    %76 = tpu.matmul %75, %73, %cst_40 {dimension_numbers = #tpu.dot_dimension_numbers<[1], [0], [0], [1], [0, 0, 1, 1], [], []>} : vector<16x1024xbf16>, vector<1024x896xbf16>, vector<16x896xf32> -> vector<16x896xf32>
    %77 = vector.broadcast %74 : vector<1x896xf32> to vector<16x896xf32>
    %78 = arith.addf %76, %77 : vector<16x896xf32>
    %79 = math.tanh %78 : vector<16x896xf32>
    %c0_41 = arith.constant 0 : index
    %c0_42 = arith.constant 0 : index
    %80 = vector.load %arg12[%c0_41, %c0_42] : memref<16x896xf32, #tpu.memory_space<vmem>>, vector<16x896xf32>
    tpu.vector_store %arg12[%c0_41, %c0_42], %79 {strides = array<i32>} : memref<16x896xf32, #tpu.memory_space<vmem>>, vector<16x896xf32>,
    return
  }
}

</mosaic_0001>

<bundles_post_ra>
// kernel: cgan_forward.1
= control target key start
LH: loop header
LB: loop body
LE: loop exit
PB: predicated region body
PF: predicated region fallthrough
CT: control target
= control target key end

     0   :  { %17 = vsyncpa [#allocation9], 0  ;;  %s11437_s0 = inlined_call_operand.vmem [shape: s32[16,1], index: 0, kind: input, shape index: {}]   ;;  %s11438_s1 = inlined_call_operand.vmem [shape: f32[16,128], index: 1, kind: input, shape index: {}]   ;;  %s11439_s2 = inlined_call_operand.hbm [shape: f32[1,128], index: 2, kind: input, shape index: {}]   ;;  %s11440_s3 = inlined_call_operand.hbm [shape: f32[1,256], index: 3, kind: input, shape index: {}]   ;;  %s11441_s4 = inlined_call_operand.hbm [shape: f32[1,512], index: 4, kind: input, shape index: {}]   ;;  %s11442_s5 = inlined_call_operand.hbm [shape: f32[1,1024], index: 5, kind: input, shape index: {}]   ;;  %s11443_s6 = inlined_call_operand.hbm [shape: f32[1,896], index: 6, kind: input, shape index: {}]   ;;  %s11444_s7 = inlined_call_operand.hbm [shape: bf16[128,128], index: 7, kind: input, shape index: {}]   ;;  %s11445_s8 = inlined_call_operand.hbm [shape: bf16[128,256], index: 8, kind: input, shape index: {}]   ;;  %s11446_s9 = inlined_call_operand.hbm [shape: bf16[256,512], index: 9, kind: input, shape index: {}]   ;;  %s11447_s10 = inlined_call_operand.hbm [shape: bf16[512,1024], index: 10, kind: input, shape index: {}]   ;;  %s11448_s11 = inlined_call_operand.hbm [shape: bf16[1024,896], index: 11, kind: input, shape index: {}]   ;;  %s11449_s12 = inlined_call_operand.vmem [shape: f32[16,896], index: 12, kind: output, shape index: {}]  }
   0x1   :  { %18 = vsyncpa [#allocation11], 0  ;;  %s40_s23 = sshll.u32 %s11440_s3, 4  ;;  %s41_s23 = int_to_ptr.hbm [resolvable:$true] %s40_s23 }
   0x2   :  { %19 = vsyncpa [#allocation14], 0  ;;  %s10980_s24 = smov [#allocation10]   ;;  %s62_s28 = sshll.u32 %s11442_s5, 4  ;;  %s63_s28 = int_to_ptr.hbm [resolvable:$true] %s62_s28 }
   0x3   :  { %s42_s25 = sshll.u32 %s10980_s24, 4  ;;  %s10981_s29 = smov [#allocation13]   ;;  %s43_s25 = int_to_ptr.vmem [resolvable:$true] %s42_s25 }
   0x4   :  { %45 = dma.hbm_to_vmem [thread:$0]  %s41_s23, 32, %s43_s25, [#allocation11]  }
   0x5   :  { %s64_s30 = sshll.u32 %s10981_s29, 4  ;;  %s29_s15 = sshll.u32 %s11439_s2, 4  ;;  %s65_s30 = int_to_ptr.vmem [resolvable:$true] %s64_s30  ;;  %s30_s15 = int_to_ptr.hbm [resolvable:$true] %s29_s15 }
   0x6   :  { %67 = dma.hbm_to_vmem [thread:$0]  %s63_s28, 128, %s65_s30, [#allocation14]  }
   0x7   :  { %s51_s17 = sshll.u32 %s11441_s4, 4  ;;  %s10982_s18 = smov [#allocation8]   ;;  %s52_s17 = int_to_ptr.hbm [resolvable:$true] %s51_s17 }
   0x8   :  { %s31_s19 = sshll.u32 %s10982_s18, 4  ;;  %s10983_s5 = smov [#allocation12]   ;;  %s32_s19 = int_to_ptr.vmem [resolvable:$true] %s31_s19 }
   0x9   :  { %34 = dma.hbm_to_vmem [thread:$0]  %s30_s15, 16, %s32_s19, [#allocation9]  }
   0xa   :  { %s53_s20 = sshll.u32 %s10983_s5, 4  ;;  %s73_s23 = sshll.u32 %s11443_s6, 4  ;;  %s54_s20 = int_to_ptr.vmem [resolvable:$true] %s53_s20  ;;  %s74_s23 = int_to_ptr.hbm [resolvable:$true] %s73_s23 }
   0xb   :  { %56 = dma.hbm_to_vmem [thread:$0]  %s52_s17, 64, %s54_s20, [#allocation11]  }
   0xc   :  { %s10984_s2 = smov [#allocation15]  }
   0xd   :  { %s75_s24 = sshll.u32 %s10984_s2, 4  ;;  %s76_s24 = int_to_ptr.vmem [resolvable:$true] %s75_s24 }
   0xe   :  { %78 = dma.hbm_to_vmem [thread:$0]  %s74_s23, 112, %s76_s24, [#allocation14]  }
   0xf   :  { %10964 = dma.done.wait [#allocation9], 16  }
  0x10   :  { %10965 = vsyncadd [#allocation9], 4294967280 }
  0x11   :  { %10966 = dma.done.wait [#allocation11], 96  }
  0x12   :  { %10967 = vsyncadd [#allocation11], 4294967200 }
  0x13   :  { %10968 = dma.done.wait [#allocation14], 240  }
  0x14   :  { %10969 = vsyncadd [#allocation14], 4294967056  ;;  %s106_s26 = sshll.u32 %s11444_s7, 4  ;;  %v10985_v0 = vmov 0   ;;  %s10986_s6 = smov [#allocation2]   ;;  %v168_v1 = vld [vmem:[%s11437_s0] sm:$0xff]  ;;  %v170_v5 = vlaneseq  ;;  %s107_s26 = int_to_ptr.hbm [resolvable:$true] %s106_s26 }
  0x15   :  { %10692 = vset.pattern.permute.xlu0 %v10985_v0  ;;  %s108_s27 = sshll.u32 %s10986_s6, 4  ;;  %s120_s30 = sshll.u32 %s11445_s8, 4  ;;  %v172_v2 = vadd.s32 100, %v168_v1  ;;  %v169_v3 = vld [vmem:[%s11437_s0 + $0x8] sm:$0xff]  ;;  %v182_v7 = vld [vmem:[%s11438_s1] sm:$0xff]  ;;  %s109_s27 = int_to_ptr.vmem [resolvable:$true] %s108_s27  ;;  %s121_s30 = int_to_ptr.hbm [resolvable:$true] %s120_s30 }
  0x16   :  { %111 = dma.hbm_to_vmem [thread:$0]  %s107_s26, 1024, %s109_s27, [#allocation7]  ;;  %v173_v4 = vadd.s32 100, %v169_v3  ;;  %v171_v6 = vand.u32 127, %v170_v5  ;;  %v183_v10 = vld [vmem:[%s11438_s1 + $0x8] sm:$0xff] }
  0x17   :  { %s10987_s13 = smov [#allocation3]   ;;  %s134_s16 = sshll.u32 %s11446_s9, 4  ;;  %175 = vperm.xlu0 %10692, %v172_v2   ;;  %s135_s16 = int_to_ptr.hbm [resolvable:$true] %s134_s16 }
  0x18   :  { %s122_s14 = sshll.u32 %s10987_s13, 4  ;;  %s148_s8 = sshll.u32 %s11447_s10, 4  ;;  %s123_s14 = int_to_ptr.vmem [resolvable:$true] %s122_s14  ;;  %s149_s8 = int_to_ptr.hbm [resolvable:$true] %s148_s8 }
  0x19   :  { %125 = dma.hbm_to_vmem [thread:$0]  %s121_s30, 2048, %s123_s14, [#allocation7 + $0x1] }
  0x1a   :  { %s10988_s5 = smov [#allocation4]   ;;  %s10989_s9 = smov [#allocation5]  }
  0x1b   :  { %s136_s20 = sshll.u32 %s10988_s5, 4  ;;  %s150_s23 = sshll.u32 %s10989_s9, 4  ;;  %s137_s20 = int_to_ptr.vmem [resolvable:$true] %s136_s20  ;;  %s151_s23 = int_to_ptr.vmem [resolvable:$true] %s150_s23 }
  0x1c   :  { %139 = dma.hbm_to_vmem [thread:$0]  %s135_s16, 8192, %s137_s20, [#allocation7 + $0x2] }
  0x1d   :  { %s162_s4 = sshll.u32 %s11448_s11, 4  ;;  %s10990_s10 = smov [#allocation6]   ;;  %s163_s4 = int_to_ptr.hbm [resolvable:$true] %s162_s4 }
  0x1e   :  { %153 = dma.hbm_to_vmem [thread:$0]  %s149_s8, 32768, %s151_s23, [#allocation7 + $0x3] }
  0x1f   :  { %s164_s25 = sshll.u32 %s10990_s10, 4  ;;  %178 = vperm.xlu0 %10692, %v173_v4   ;;  %s165_s25 = int_to_ptr.vmem [resolvable:$true] %s164_s25 }
  0x20   :  { %167 = dma.hbm_to_vmem [thread:$0]  %s163_s4, 57344, %s165_s25, [#allocation7 + $0x4] }
  0x89   :  { %v176_v8 = vpop.permute.xlu0 %175 }
  0x8a   :  { %vm180_vm0 = vcmp.eq.s32.totalorder %v171_v6, %v176_v8 }
  0x8b   :  { %v184_v9 = vsel %vm180_vm0, 1.0, %v182_v7 }
  0x91   :  { %v179_v11 = vpop.permute.xlu0 %178 }
  0x92   :  { %vm181_vm1 = vcmp.eq.s32.totalorder %v171_v6, %v179_v11 }
  0x93   :  { %v185_v12 = vsel %vm181_vm1, 1.0, %v183_v10 }
  0x94   :  { %10970 = dma.done.wait [#allocation7], 1024 }
  0x95   :  { %10971 = vsyncadd [#allocation7], 4294966272  ;;  %v9896_v13 = vld [vmem:[#allocation2 + $0x38] sm:$0xff]  ;;  %v9895_v14 = vld [vmem:[#allocation2 + $0x30] sm:$0xff]  ;;  %v207_v21 = vpack.c.bf16 %v185_v12, %v184_v9 }
  0x96   :  { %259 = vmatpush.bf16.msra.mxu0 %v9896_v13  ;;  %v9894_v15 = vld [vmem:[#allocation2 + $0x28] sm:$0xff]  ;;  %v9893_v16 = vld [vmem:[#allocation2 + $0x20] sm:$0xff]  ;;  %v9892_v17 = vld [vmem:[#allocation2 + $0x18] sm:$0xff] }
  0x97   :  { %v9891_v18 = vld [vmem:[#allocation2 + $0x10] sm:$0xff]  ;;  %v9890_v19 = vld [vmem:[#allocation2 + $0x8] sm:$0xff]  ;;  %v9889_v20 = vld [vmem:[#allocation2] sm:$0xff] }
  0x98   :  { %v10693_v22 = vld [vmem:[#allocation8] ss:$0 sm:$0xff] }
  0x9a   :  { %260 = vmatpush.bf16.msra.mxu0 %v9895_v14 }
  0x9e   :  { %261 = vmatpush.bf16.msra.mxu0 %v9894_v15 }
  0xa2   :  { %262 = vmatpush.bf16.msra.mxu0 %v9893_v16 }
  0xa6   :  { %263 = vmatpush.bf16.msra.mxu0 %v9892_v17 }
  0xaa   :  { %264 = vmatpush.bf16.msra.mxu0 %v9891_v18 }
  0xae   :  { %265 = vmatpush.bf16.msra.mxu0 %v9890_v19 }
  0xb2   :  { %266 = vmatpush.bf16.msra.mxu0 %v9889_v20 }
  0xb5   :  { %267 = vmatmul.bf16.vlgmr.msra.gmra.mxu0 %v207_v21 }
 0x132   :  { %v268_v23 = vpop.f32.mrf.mxu0 }
 0x133   :  { %v269_v24 = vadd.f32 %v10693_v22, %v268_v23 }
 0x135   :  { %vm273_vm2 = vcmp.gt.f32.partialorder %v269_v24, 0.0  ;;  %v275_v25 = vmul.f32 0.2, %v269_v24 }
 0x137   :  { %v11098_v26 = vsel %vm273_vm2, %v269_v24, %v275_v25 }
 0x13a   :  { %v270_v27 = vpop.f32.mrf.mxu0 }
 0x13b   :  { %v271_v28 = vadd.f32 %v10693_v22, %v270_v27 }
 0x13d   :  { %vm274_vm3 = vcmp.gt.f32.partialorder %v271_v28, 0.0  ;;  %v276_v29 = vmul.f32 0.2, %v271_v28 }
 0x13f   :  { %v11100_v30 = vsel %vm274_vm3, %v271_v28, %v276_v29 }
 0x140   :  { %10972 = dma.done.wait [#allocation7 + $0x1], 2048 }
 0x141   :  { %10973 = vsyncadd [#allocation7 + $0x1], 4294965248  ;;  %v6806_v31 = vld [vmem:[#allocation3 + $0x70] sm:$0xf]  ;;  %v9912_v32 = vld [vmem:[#allocation3 + $0x74] sm:$0xf0]  ;;  %v299_v15 = vpack.c.bf16 %v11100_v30, %v11098_v26 }
 0x142   :  { %v9911_v33 = vld [vmem:[#allocation3 + $0x74] sm:$0xf]  ;;  %v6807_v34 = vor.u32 %v9912_v32, %v6806_v31  ;;  %v6808_v35 = vld [vmem:[#allocation3 + $0x78] sm:$0xf0]  ;;  %v6798_v36 = vld [vmem:[#allocation3 + $0x60] sm:$0xf] }
 0x143   :  { %v9910_v37 = vld [vmem:[#allocation3 + $0x64] sm:$0xf0]  ;;  %v6811_v38 = vor.u32 %v9911_v33, %v6808_v35  ;;  %v9909_v39 = vld [vmem:[#allocation3 + $0x64] sm:$0xf]  ;;  %v6800_v40 = vld [vmem:[#allocation3 + $0x68] sm:$0xf0] }
 0x144   :  { %385 = vmatpush.bf16.msra.mxu1 %v6807_v34  ;;  %v6799_v41 = vor.u32 %v9910_v37, %v6798_v36  ;;  %v6803_v42 = vor.u32 %v9909_v39, %v6800_v40  ;;  %v6790_v43 = vld [vmem:[#allocation3 + $0x50] sm:$0xf]  ;;  %v9908_v44 = vld [vmem:[#allocation3 + $0x54] sm:$0xf0]  ;;  %v9907_v45 = vld [vmem:[#allocation3 + $0x54] sm:$0xf] }
 0x145   :  { %399 = vmatpush.bf16.msra.mxu2 %v6811_v38  ;;  %v6792_v46 = vld [vmem:[#allocation3 + $0x58] sm:$0xf0]  ;;  %v6791_v47 = vor.u32 %v9908_v44, %v6790_v43  ;;  %v6782_v49 = vld [vmem:[#allocation3 + $0x40] sm:$0xf]  ;;  %v9906_v50 = vld [vmem:[#allocation3 + $0x44] sm:$0xf0] }
 0x146   :  { %v6795_v48 = vor.u32 %v9907_v45, %v6792_v46  ;;  %v9905_v51 = vld [vmem:[#allocation3 + $0x44] sm:$0xf]  ;;  %v6784_v52 = vld [vmem:[#allocation3 + $0x48] sm:$0xf0]  ;;  %v6783_v53 = vor.u32 %v9906_v50, %v6782_v49  ;;  %v6774_v55 = vld [vmem:[#allocation3 + $0x30] sm:$0xf] }
 0x147   :  { %v6787_v54 = vor.u32 %v9905_v51, %v6784_v52  ;;  %v9904_v56 = vld [vmem:[#allocation3 + $0x34] sm:$0xf0]  ;;  %v9903_v57 = vld [vmem:[#allocation3 + $0x34] sm:$0xf]  ;;  %v6776_v58 = vld [vmem:[#allocation3 + $0x38] sm:$0xf0] }
 0x148   :  { %386 = vmatpush.bf16.msra.mxu1 %v6799_v41  ;;  %v6775_v59 = vor.u32 %v9904_v56, %v6774_v55  ;;  %v6779_v60 = vor.u32 %v9903_v57, %v6776_v58  ;;  %v6766_v61 = vld [vmem:[#allocation3 + $0x20] sm:$0xf]  ;;  %v9902_v62 = vld [vmem:[#allocation3 + $0x24] sm:$0xf0]  ;;  %v9901_v63 = vld [vmem:[#allocation3 + $0x24] sm:$0xf] }
 0x149   :  { %400 = vmatpush.bf16.msra.mxu2 %v6803_v42  ;;  %v6768_v0 = vld [vmem:[#allocation3 + $0x28] sm:$0xf0]  ;;  %v6767_v1 = vor.u32 %v9902_v62, %v6766_v61  ;;  %v6758_v3 = vld [vmem:[#allocation3 + $0x10] sm:$0xf]  ;;  %v9900_v4 = vld [vmem:[#allocation3 + $0x14] sm:$0xf0] }
 0x14a   :  { %v6771_v2 = vor.u32 %v9901_v63, %v6768_v0  ;;  %v9899_v5 = vld [vmem:[#allocation3 + $0x14] sm:$0xf]  ;;  %v6760_v6 = vld [vmem:[#allocation3 + $0x18] sm:$0xf0]  ;;  %v6759_v7 = vor.u32 %v9900_v4, %v6758_v3  ;;  %v6750_v9 = vld [vmem:[#allocation3] sm:$0xf] }
 0x14b   :  { %v6763_v8 = vor.u32 %v9899_v5, %v6760_v6  ;;  %v9898_v10 = vld [vmem:[#allocation3 + $0x4] sm:$0xf0]  ;;  %v9897_v11 = vld [vmem:[#allocation3 + $0x4] sm:$0xf]  ;;  %v6752_v12 = vld [vmem:[#allocation3 + $0x8] sm:$0xf0] }
 0x14c   :  { %387 = vmatpush.bf16.msra.mxu1 %v6791_v47  ;;  %v6751_v13 = vor.u32 %v9898_v10, %v6750_v9  ;;  %v6755_v14 = vor.u32 %v9897_v11, %v6752_v12  ;;  %v298_v16 = vld [vmem:[#allocation10] sm:$0x3] }
 0x14d   :  { %401 = vmatpush.bf16.msra.mxu2 %v6795_v48  ;;  %v301_v17 = vperm.slane %v298_v16, 0  ;;  %v302_v21 = vperm.slane %v298_v16, 1 }
 0x150   :  { %388 = vmatpush.bf16.msra.mxu1 %v6783_v53 }
 0x151   :  { %402 = vmatpush.bf16.msra.mxu2 %v6787_v54 }
 0x154   :  { %389 = vmatpush.bf16.msra.mxu1 %v6775_v59 }
 0x155   :  { %403 = vmatpush.bf16.msra.mxu2 %v6779_v60 }
 0x158   :  { %390 = vmatpush.bf16.msra.mxu1 %v6767_v1 }
 0x159   :  { %404 = vmatpush.bf16.msra.mxu2 %v6771_v2 }
 0x15c   :  { %391 = vmatpush.bf16.msra.mxu1 %v6759_v7 }
 0x15d   :  { %405 = vmatpush.bf16.msra.mxu2 %v6763_v8 }
 0x160   :  { %392 = vmatpush.bf16.msra.mxu1 %v6751_v13 }
 0x161   :  { %406 = vmatpush.bf16.msra.mxu2 %v6755_v14 }
 0x163   :  { %393 = vmatmul.bf16.vlgmr.msra.gmra.mxu1 %v299_v15 }
 0x164   :  { %407 = vmatmul.bf16.vlgmr.msra.gmra.mxu2 %v299_v15 }
 0x1e0   :  { %v394_v18 = vpop.f32.mrf.mxu1 }
 0x1e1   :  { %v395_v19 = vadd.f32 %v394_v18, %v301_v17 }
 0x1e3   :  { %vm413_vm4 = vcmp.gt.f32.partialorder %v395_v19, 0.0  ;;  %v417_v20 = vmul.f32 0.2, %v395_v19 }
 0x1e5   :  { %v11104_v22 = vsel %vm413_vm4, %v395_v19, %v417_v20 }
 0x1e7   :  { %v408_v23 = vpop.f32.mrf.mxu2 }
 0x1e8   :  { %v409_v24 = vadd.f32 %v408_v23, %v302_v21  ;;  %v396_v25 = vpop.f32.mrf.mxu1 }
 0x1e9   :  { %v397_v27 = vadd.f32 %v396_v25, %v301_v17 }
 0x1ea   :  { %vm414_vm5 = vcmp.gt.f32.partialorder %v409_v24, 0.0  ;;  %v418_v28 = vmul.f32 0.2, %v409_v24 }
 0x1eb   :  { %vm415_vm6 = vcmp.gt.f32.partialorder %v397_v27, 0.0  ;;  %v419_v26 = vmul.f32 0.2, %v397_v27 }
 0x1ec   :  { %v11106_v29 = vsel %vm414_vm5, %v409_v24, %v418_v28 }
 0x1ed   :  { %v11108_v30 = vsel %vm415_vm6, %v397_v27, %v419_v26 }
 0x1ef   :  { %v410_v31 = vpop.f32.mrf.mxu2 }
 0x1f0   :  { %v411_v32 = vadd.f32 %v410_v31, %v302_v21 }
 0x1f2   :  { %vm416_vm7 = vcmp.gt.f32.partialorder %v411_v32, 0.0  ;;  %v420_v33 = vmul.f32 0.2, %v411_v32 }
 0x1f4   :  { %v11110_v34 = vsel %vm416_vm7, %v411_v32, %v420_v33 }
 0x1f5   :  { %10974 = dma.done.wait [#allocation7 + $0x2], 8192 }
 0x1f6   :  { %10975 = vsyncadd [#allocation7 + $0x2], 4294959104  ;;  %v6926_v35 = vld [vmem:[#allocation4 + $0xe0] sm:$0xf]  ;;  %v9943_v36 = vld [vmem:[#allocation4 + $0xec] sm:$0xf0] }
 0x1f7   :  { %v7054_v37 = vld [vmem:[#allocation4 + $0x1e0] sm:$0xf]  ;;  %v6927_v38 = vor.u32 %v9943_v36, %v6926_v35  ;;  %v9975_v39 = vld [vmem:[#allocation4 + $0x1ec] sm:$0xf0]  ;;  %v9941_v40 = vld [vmem:[#allocation4 + $0xe4] sm:$0xf] }
 0x1f8   :  { %v6928_v41 = vld [vmem:[#allocation4 + $0xf0] sm:$0xf0]  ;;  %v7055_v42 = vor.u32 %v9975_v39, %v7054_v37  ;;  %v9973_v44 = vld [vmem:[#allocation4 + $0x1e4] sm:$0xf]  ;;  %v6910_v46 = vld [vmem:[#allocation4 + $0xc0] sm:$0xf] }
 0x1f9   :  { %v6931_v43 = vor.u32 %v9941_v40, %v6928_v41  ;;  %v7056_v45 = vld [vmem:[#allocation4 + $0x1f0] sm:$0xf0]  ;;  %825 = vmatpush.bf16.msra.mxu3 %v6927_v38  ;;  %v9939_v48 = vld [vmem:[#allocation4 + $0xcc] sm:$0xf0]  ;;  %v7038_v49 = vld [vmem:[#allocation4 + $0x1c0] sm:$0xf] }
 0x1fa   :  { %v7059_v47 = vor.u32 %v9973_v44, %v7056_v45  ;;  %v9971_v50 = vld [vmem:[#allocation4 + $0x1cc] sm:$0xf0]  ;;  %839 = vmatpush.bf16.msrb.mxu0 %v7055_v42  ;;  %v6911_v51 = vor.u32 %v9939_v48, %v6910_v46  ;;  %v9937_v53 = vld [vmem:[#allocation4 + $0xc4] sm:$0xf]  ;;  %v6912_v54 = vld [vmem:[#allocation4 + $0xd0] sm:$0xf0] }
 0x1fb   :  { %853 = vmatpush.bf16.msrb.mxu1 %v6931_v43  ;;  %v7039_v52 = vor.u32 %v9971_v50, %v7038_v49  ;;  %v9969_v55 = vld [vmem:[#allocation4 + $0x1c4] sm:$0xf]  ;;  %v6915_v56 = vor.u32 %v9937_v53, %v6912_v54  ;;  %v7040_v57 = vld [vmem:[#allocation4 + $0x1d0] sm:$0xf0]  ;;  %v6894_v58 = vld [vmem:[#allocation4 + $0xa0] sm:$0xf] }
 0x1fc   :  { %867 = vmatpush.bf16.msrb.mxu2 %v7059_v47  ;;  %v9935_v59 = vld [vmem:[#allocation4 + $0xac] sm:$0xf0]  ;;  %v7043_v60 = vor.u32 %v9969_v55, %v7040_v57  ;;  %v7022_v61 = vld [vmem:[#allocation4 + $0x1a0] sm:$0xf]  ;;  %v9933_v63 = vld [vmem:[#allocation4 + $0xa4] sm:$0xf] }
 0x1fd   :  { %v9967_v62 = vld [vmem:[#allocation4 + $0x1ac] sm:$0xf0]  ;;  %826 = vmatpush.bf16.msra.mxu3 %v6911_v51  ;;  %v6895_v0 = vor.u32 %v9935_v59, %v6894_v58  ;;  %v6896_v1 = vld [vmem:[#allocation4 + $0xb0] sm:$0xf0]  ;;  %v9965_v2 = vld [vmem:[#allocation4 + $0x1a4] sm:$0xf] }
 0x1fe   :  { %v7024_v3 = vld [vmem:[#allocation4 + $0x1b0] sm:$0xf0]  ;;  %840 = vmatpush.bf16.msrb.mxu0 %v7039_v52  ;;  %v7023_v4 = vor.u32 %v9967_v62, %v7022_v61  ;;  %v6899_v5 = vor.u32 %v9933_v63, %v6896_v1  ;;  %v6878_v6 = vld [vmem:[#allocation4 + $0x80] sm:$0xf]  ;;  %v9931_v7 = vld [vmem:[#allocation4 + $0x8c] sm:$0xf0] }
 0x1ff   :  { %854 = vmatpush.bf16.msrb.mxu1 %v6915_v56  ;;  %v7006_v8 = vld [vmem:[#allocation4 + $0x180] sm:$0xf]  ;;  %v7027_v9 = vor.u32 %v9965_v2, %v7024_v3  ;;  %v9963_v10 = vld [vmem:[#allocation4 + $0x18c] sm:$0xf0]  ;;  %v9929_v11 = vld [vmem:[#allocation4 + $0x84] sm:$0xf]  ;;  %v6879_v15 = vor.u32 %v9931_v7, %v6878_v6 }
 0x200   :  { %868 = vmatpush.bf16.msrb.mxu2 %v7043_v60  ;;  %v6880_v12 = vld [vmem:[#allocation4 + $0x90] sm:$0xf0]  ;;  %v9961_v13 = vld [vmem:[#allocation4 + $0x184] sm:$0xf]  ;;  %v7007_v16 = vor.u32 %v9963_v10, %v7006_v8  ;;  %v6862_v18 = vld [vmem:[#allocation4 + $0x60] sm:$0xf] }
 0x201   :  { %v7008_v14 = vld [vmem:[#allocation4 + $0x190] sm:$0xf0]  ;;  %827 = vmatpush.bf16.msra.mxu3 %v6895_v0  ;;  %v6883_v17 = vor.u32 %v9929_v11, %v6880_v12  ;;  %v9927_v19 = vld [vmem:[#allocation4 + $0x6c] sm:$0xf0]  ;;  %v6990_v20 = vld [vmem:[#allocation4 + $0x160] sm:$0xf] }
 0x202   :  { %841 = vmatpush.bf16.msrb.mxu0 %v7023_v4  ;;  %v7011_v21 = vor.u32 %v9961_v13, %v7008_v14  ;;  %v9959_v23 = vld [vmem:[#allocation4 + $0x16c] sm:$0xf0]  ;;  %v9925_v24 = vld [vmem:[#allocation4 + $0x64] sm:$0xf]  ;;  %v6864_v25 = vld [vmem:[#allocation4 + $0x70] sm:$0xf0]  ;;  %v6863_v26 = vor.u32 %v9927_v19, %v6862_v18 }
 0x203   :  { %855 = vmatpush.bf16.msrb.mxu1 %v6899_v5  ;;  %v9957_v27 = vld [vmem:[#allocation4 + $0x164] sm:$0xf]  ;;  %v6992_v28 = vld [vmem:[#allocation4 + $0x170] sm:$0xf0]  ;;  %v6991_v31 = vor.u32 %v9959_v23, %v6990_v20  ;;  %v6867_v32 = vor.u32 %v9925_v24, %v6864_v25  ;;  %v6846_v33 = vld [vmem:[#allocation4 + $0x40] sm:$0xf] }
 0x204   :  { %869 = vmatpush.bf16.msrb.mxu2 %v7027_v9  ;;  %v9923_v35 = vld [vmem:[#allocation4 + $0x4c] sm:$0xf0]  ;;  %v6974_v36 = vld [vmem:[#allocation4 + $0x140] sm:$0xf]  ;;  %v6995_v37 = vor.u32 %v9957_v27, %v6992_v28  ;;  %v9921_v39 = vld [vmem:[#allocation4 + $0x44] sm:$0xf]  ;;  %v11114_v27 = vpack.c.bf16 %v11108_v30, %v11104_v22 }
 0x205   :  { %828 = vmatpush.bf16.msra.mxu3 %v6879_v15  ;;  %v9955_v38 = vld [vmem:[#allocation4 + $0x14c] sm:$0xf0]  ;;  %v6848_v40 = vld [vmem:[#allocation4 + $0x50] sm:$0xf0]  ;;  %v9953_v41 = vld [vmem:[#allocation4 + $0x144] sm:$0xf]  ;;  %v6847_v43 = vor.u32 %v9923_v35, %v6846_v33 }
 0x206   :  { %842 = vmatpush.bf16.msrb.mxu0 %v7007_v16  ;;  %v6976_v42 = vld [vmem:[#allocation4 + $0x150] sm:$0xf0]  ;;  %v6975_v44 = vor.u32 %v9955_v38, %v6974_v36  ;;  %v6851_v45 = vor.u32 %v9921_v39, %v6848_v40  ;;  %v6830_v46 = vld [vmem:[#allocation4 + $0x20] sm:$0xf]  ;;  %v9919_v47 = vld [vmem:[#allocation4 + $0x2c] sm:$0xf0] }
 0x207   :  { %856 = vmatpush.bf16.msrb.mxu1 %v6883_v17  ;;  %v6958_v48 = vld [vmem:[#allocation4 + $0x120] sm:$0xf]  ;;  %v6979_v49 = vor.u32 %v9953_v41, %v6976_v42  ;;  %v9951_v50 = vld [vmem:[#allocation4 + $0x12c] sm:$0xf0]  ;;  %v9917_v51 = vld [vmem:[#allocation4 + $0x24] sm:$0xf]  ;;  %v6831_v55 = vor.u32 %v9919_v47, %v6830_v46 }
 0x208   :  { %870 = vmatpush.bf16.msrb.mxu2 %v7011_v21  ;;  %v6832_v52 = vld [vmem:[#allocation4 + $0x30] sm:$0xf0]  ;;  %v9949_v53 = vld [vmem:[#allocation4 + $0x124] sm:$0xf]  ;;  %v6814_v56 = vld [vmem:[#allocation4] sm:$0xf]  ;;  %v6959_v58 = vor.u32 %v9951_v50, %v6958_v48 }
 0x209   :  { %829 = vmatpush.bf16.msra.mxu3 %v6863_v26  ;;  %v6960_v54 = vld [vmem:[#allocation4 + $0x130] sm:$0xf0]  ;;  %v9915_v57 = vld [vmem:[#allocation4 + $0xc] sm:$0xf0]  ;;  %v6835_v59 = vor.u32 %v9917_v51, %v6832_v52  ;;  %v6942_v60 = vld [vmem:[#allocation4 + $0x100] sm:$0xf] }
 0x20a   :  { %843 = vmatpush.bf16.msrb.mxu0 %v6991_v31  ;;  %v9947_v61 = vld [vmem:[#allocation4 + $0x10c] sm:$0xf0]  ;;  %v9913_v62 = vld [vmem:[#allocation4 + $0x4] sm:$0xf]  ;;  %v6963_v63 = vor.u32 %v9949_v53, %v6960_v54  ;;  %v6816_v0 = vld [vmem:[#allocation4 + $0x10] sm:$0xf0]  ;;  %v6815_v6 = vor.u32 %v9915_v57, %v6814_v56  ;;  %v11118_v31 = vpack.c.bf16 %v11110_v34, %v11106_v29 }
 0x20b   :  { %857 = vmatpush.bf16.msrb.mxu1 %v6867_v32  ;;  %v9945_v1 = vld [vmem:[#allocation4 + $0x104] sm:$0xf]  ;;  %v6944_v2 = vld [vmem:[#allocation4 + $0x110] sm:$0xf0]  ;;  %v6934_v3 = vld [vmem:[#allocation4 + $0xe8] sm:$0xf]  ;;  %v6943_v10 = vor.u32 %v9947_v61, %v6942_v60  ;;  %v6819_v11 = vor.u32 %v9913_v62, %v6816_v0 }
 0x20c   :  { %871 = vmatpush.bf16.msrb.mxu2 %v6995_v37  ;;  %v9944_v4 = vld [vmem:[#allocation4 + $0xf4] sm:$0xf0]  ;;  %v7062_v5 = vld [vmem:[#allocation4 + $0x1e8] sm:$0xf]  ;;  %v9942_v8 = vld [vmem:[#allocation4 + $0xec] sm:$0xf]  ;;  %v6947_v14 = vor.u32 %v9945_v1, %v6944_v2 }
 0x20d   :  { %830 = vmatpush.bf16.msra.mxu3 %v6847_v43  ;;  %v9976_v7 = vld [vmem:[#allocation4 + $0x1f4] sm:$0xf0]  ;;  %v6936_v9 = vld [vmem:[#allocation4 + $0xf8] sm:$0xf0]  ;;  %v9974_v12 = vld [vmem:[#allocation4 + $0x1ec] sm:$0xf]  ;;  %v6935_v15 = vor.u32 %v9944_v4, %v6934_v3 }
 0x20e   :  { %844 = vmatpush.bf16.msrb.mxu0 %v6975_v44  ;;  %v7064_v13 = vld [vmem:[#allocation4 + $0x1f8] sm:$0xf0]  ;;  %v7063_v16 = vor.u32 %v9976_v7, %v7062_v5  ;;  %v6939_v17 = vor.u32 %v9942_v8, %v6936_v9  ;;  %v6918_v18 = vld [vmem:[#allocation4 + $0xc8] sm:$0xf]  ;;  %v9940_v19 = vld [vmem:[#allocation4 + $0xd4] sm:$0xf0] }
 0x20f   :  { %858 = vmatpush.bf16.msrb.mxu1 %v6851_v45  ;;  %v7046_v20 = vld [vmem:[#allocation4 + $0x1c8] sm:$0xf]  ;;  %v7067_v21 = vor.u32 %v9974_v12, %v7064_v13  ;;  %v9972_v23 = vld [vmem:[#allocation4 + $0x1d4] sm:$0xf0]  ;;  %v9938_v24 = vld [vmem:[#allocation4 + $0xcc] sm:$0xf]  ;;  %v6919_v32 = vor.u32 %v9940_v19, %v6918_v18 }
 0x210   :  { %872 = vmatpush.bf16.msrb.mxu2 %v6979_v49  ;;  %v6920_v25 = vld [vmem:[#allocation4 + $0xd8] sm:$0xf0]  ;;  %v9970_v28 = vld [vmem:[#allocation4 + $0x1cc] sm:$0xf]  ;;  %v7047_v33 = vor.u32 %v9972_v23, %v7046_v20  ;;  %v6902_v36 = vld [vmem:[#allocation4 + $0xa8] sm:$0xf] }
 0x211   :  { %831 = vmatpush.bf16.msra.mxu3 %v6831_v55  ;;  %v7048_v26 = vld [vmem:[#allocation4 + $0x1d8] sm:$0xf0]  ;;  %v6923_v35 = vor.u32 %v9938_v24, %v6920_v25  ;;  %v9936_v37 = vld [vmem:[#allocation4 + $0xb4] sm:$0xf0]  ;;  %v7030_v38 = vld [vmem:[#allocation4 + $0x1a8] sm:$0xf] }
 0x212   :  { %845 = vmatpush.bf16.msrb.mxu0 %v6959_v58  ;;  %v7051_v22 = vor.u32 %v9970_v28, %v7048_v26  ;;  %v9968_v30 = vld [vmem:[#allocation4 + $0x1b4] sm:$0xf0]  ;;  %v9934_v39 = vld [vmem:[#allocation4 + $0xac] sm:$0xf]  ;;  %v6904_v40 = vld [vmem:[#allocation4 + $0xb8] sm:$0xf0]  ;;  %v6903_v41 = vor.u32 %v9936_v37, %v6902_v36 }
 0x213   :  { %859 = vmatpush.bf16.msrb.mxu1 %v6835_v59  ;;  %v9966_v29 = vld [vmem:[#allocation4 + $0x1ac] sm:$0xf]  ;;  %v7032_v34 = vld [vmem:[#allocation4 + $0x1b8] sm:$0xf0]  ;;  %v7031_v42 = vor.u32 %v9968_v30, %v7030_v38  ;;  %v6907_v43 = vor.u32 %v9934_v39, %v6904_v40  ;;  %v6886_v44 = vld [vmem:[#allocation4 + $0x88] sm:$0xf] }
 0x214   :  { %873 = vmatpush.bf16.msrb.mxu2 %v6963_v63  ;;  %v9932_v45 = vld [vmem:[#allocation4 + $0x94] sm:$0xf0]  ;;  %v7014_v46 = vld [vmem:[#allocation4 + $0x188] sm:$0xf]  ;;  %v7035_v47 = vor.u32 %v9966_v29, %v7032_v34  ;;  %v9930_v49 = vld [vmem:[#allocation4 + $0x8c] sm:$0xf] }
 0x215   :  { %832 = vmatpush.bf16.msra.mxu3 %v6815_v6  ;;  %v9964_v48 = vld [vmem:[#allocation4 + $0x194] sm:$0xf0]  ;;  %v6888_v50 = vld [vmem:[#allocation4 + $0x98] sm:$0xf0]  ;;  %v9962_v51 = vld [vmem:[#allocation4 + $0x18c] sm:$0xf]  ;;  %v6887_v53 = vor.u32 %v9932_v45, %v6886_v44 }
 0x216   :  { %846 = vmatpush.bf16.msrb.mxu0 %v6943_v10  ;;  %v7016_v52 = vld [vmem:[#allocation4 + $0x198] sm:$0xf0]  ;;  %v7015_v54 = vor.u32 %v9964_v48, %v7014_v46  ;;  %v6891_v55 = vor.u32 %v9930_v49, %v6888_v50  ;;  %v6870_v56 = vld [vmem:[#allocation4 + $0x68] sm:$0xf]  ;;  %v9928_v57 = vld [vmem:[#allocation4 + $0x74] sm:$0xf0] }
 0x217   :  { %860 = vmatpush.bf16.msrb.mxu1 %v6819_v11  ;;  %v6998_v58 = vld [vmem:[#allocation4 + $0x168] sm:$0xf]  ;;  %v7019_v59 = vor.u32 %v9962_v51, %v7016_v52  ;;  %v9960_v60 = vld [vmem:[#allocation4 + $0x174] sm:$0xf0]  ;;  %v9926_v61 = vld [vmem:[#allocation4 + $0x6c] sm:$0xf]  ;;  %v6871_v1 = vor.u32 %v9928_v57, %v6870_v56 }
 0x218   :  { %874 = vmatpush.bf16.msrb.mxu2 %v6947_v14  ;;  %833 = vmatmul.bf16.vlgmr.msra.gmra.mxu3 %v11114_v27  ;;  %v6872_v62 = vld [vmem:[#allocation4 + $0x78] sm:$0xf0]  ;;  %v9958_v63 = vld [vmem:[#allocation4 + $0x16c] sm:$0xf]  ;;  %v6999_v2 = vor.u32 %v9960_v60, %v6998_v58  ;;  %v6854_v4 = vld [vmem:[#allocation4 + $0x48] sm:$0xf] }
 0x219   :  { %881 = vmatpush.bf16.msrb.mxu3 %v6935_v15  ;;  %847 = vmatmul.bf16.vlgmr.msrb.gmra.mxu0 %v11118_v31  ;;  %v7000_v0 = vld [vmem:[#allocation4 + $0x178] sm:$0xf0]  ;;  %v6875_v3 = vor.u32 %v9926_v61, %v6872_v62  ;;  %v9924_v5 = vld [vmem:[#allocation4 + $0x54] sm:$0xf0]  ;;  %v6982_v6 = vld [vmem:[#allocation4 + $0x148] sm:$0xf] }
 0x21a   :  { %895 = vmatpush.bf16.msra.mxu0 %v7063_v16  ;;  %861 = vmatmul.bf16.vlgmr.msrb.gmra.mxu1 %v11114_v27  ;;  %v7003_v7 = vor.u32 %v9958_v63, %v7000_v0  ;;  %v9956_v8 = vld [vmem:[#allocation4 + $0x154] sm:$0xf0]  ;;  %v9922_v9 = vld [vmem:[#allocation4 + $0x4c] sm:$0xf]  ;;  %v6856_v10 = vld [vmem:[#allocation4 + $0x58] sm:$0xf0]  ;;  %v6855_v13 = vor.u32 %v9924_v5, %v6854_v4 }
 0x21b   :  { %909 = vmatpush.bf16.msra.mxu1 %v6939_v17  ;;  %875 = vmatmul.bf16.vlgmr.msrb.gmra.mxu2 %v11118_v31  ;;  %v9954_v11 = vld [vmem:[#allocation4 + $0x14c] sm:$0xf]  ;;  %v6984_v12 = vld [vmem:[#allocation4 + $0x158] sm:$0xf0]  ;;  %v6983_v14 = vor.u32 %v9956_v8, %v6982_v6  ;;  %v6859_v15 = vor.u32 %v9922_v9, %v6856_v10  ;;  %v6838_v16 = vld [vmem:[#allocation4 + $0x28] sm:$0xf] }
 0x21c   :  { %923 = vmatpush.bf16.msra.mxu2 %v7067_v21  ;;  %v9920_v17 = vld [vmem:[#allocation4 + $0x34] sm:$0xf0]  ;;  %v6966_v18 = vld [vmem:[#allocation4 + $0x128] sm:$0xf]  ;;  %v6987_v19 = vor.u32 %v9954_v11, %v6984_v12  ;;  %v9918_v21 = vld [vmem:[#allocation4 + $0x2c] sm:$0xf] }
 0x21d   :  { %882 = vmatpush.bf16.msrb.mxu3 %v6919_v32  ;;  %v9952_v20 = vld [vmem:[#allocation4 + $0x134] sm:$0xf0]  ;;  %v6840_v23 = vld [vmem:[#allocation4 + $0x38] sm:$0xf0]  ;;  %v9950_v24 = vld [vmem:[#allocation4 + $0x12c] sm:$0xf]  ;;  %v6839_v28 = vor.u32 %v9920_v17, %v6838_v16 }
 0x21e   :  { %896 = vmatpush.bf16.msra.mxu0 %v7047_v33  ;;  %v6968_v25 = vld [vmem:[#allocation4 + $0x138] sm:$0xf0]  ;;  %v6967_v26 = vor.u32 %v9952_v20, %v6966_v18  ;;  %v6843_v32 = vor.u32 %v9918_v21, %v6840_v23  ;;  %v6822_v33 = vld [vmem:[#allocation4 + $0x8] sm:$0xf]  ;;  %v9948_v38 = vld [vmem:[#allocation4 + $0x114] sm:$0xf0] }
 0x21f   :  { %910 = vmatpush.bf16.msra.mxu1 %v6923_v35  ;;  %v9916_v35 = vld [vmem:[#allocation4 + $0x14] sm:$0xf0]  ;;  %v6950_v36 = vld [vmem:[#allocation4 + $0x108] sm:$0xf]  ;;  %v6971_v37 = vor.u32 %v9950_v24, %v6968_v25  ;;  %v6824_v30 = vld [vmem:[#allocation4 + $0x18] sm:$0xf0] }
 0x220   :  { %924 = vmatpush.bf16.msra.mxu2 %v7051_v22  ;;  %v9914_v22 = vld [vmem:[#allocation4 + $0xc] sm:$0xf]  ;;  %v6952_v40 = vld [vmem:[#allocation4 + $0x118] sm:$0xf0]  ;;  %v6823_v29 = vor.u32 %v9916_v35, %v6822_v33  ;;  %v6951_v34 = vor.u32 %v9948_v38, %v6950_v36 }
 0x221   :  { %883 = vmatpush.bf16.msrb.mxu3 %v6903_v41  ;;  %v9946_v39 = vld [vmem:[#allocation4 + $0x10c] sm:$0xf]  ;;  %v6827_v41 = vor.u32 %v9914_v22, %v6824_v30 }
 0x222   :  { %897 = vmatpush.bf16.msra.mxu0 %v7031_v42  ;;  %v6955_v42 = vor.u32 %v9946_v39, %v6952_v40 }
 0x223   :  { %911 = vmatpush.bf16.msra.mxu1 %v6907_v43  ;;  %v493_v43 = vld [vmem:[#allocation12] sm:$0xf] }
 0x224   :  { %925 = vmatpush.bf16.msra.mxu2 %v7035_v47  ;;  %v498_v44 = vperm.slane %v493_v43, 1  ;;  %v497_v46 = vperm.slane %v493_v43, 0  ;;  %v500_v4 = vperm.slane %v493_v43, 3  ;;  %v499_v6 = vperm.slane %v493_v43, 2 }
 0x225   :  { %884 = vmatpush.bf16.msrb.mxu3 %v6887_v53 }
 0x226   :  { %898 = vmatpush.bf16.msra.mxu0 %v7015_v54 }
 0x227   :  { %912 = vmatpush.bf16.msra.mxu1 %v6891_v55 }
 0x228   :  { %926 = vmatpush.bf16.msra.mxu2 %v7019_v59 }
 0x229   :  { %885 = vmatpush.bf16.msrb.mxu3 %v6871_v1 }
 0x22a   :  { %899 = vmatpush.bf16.msra.mxu0 %v6999_v2 }
 0x22b   :  { %913 = vmatpush.bf16.msra.mxu1 %v6875_v3 }
 0x22c   :  { %927 = vmatpush.bf16.msra.mxu2 %v7003_v7 }
 0x22d   :  { %886 = vmatpush.bf16.msrb.mxu3 %v6855_v13 }
 0x22e   :  { %900 = vmatpush.bf16.msra.mxu0 %v6983_v14 }
 0x22f   :  { %914 = vmatpush.bf16.msra.mxu1 %v6859_v15 }
 0x230   :  { %928 = vmatpush.bf16.msra.mxu2 %v6987_v19 }
 0x231   :  { %887 = vmatpush.bf16.msrb.mxu3 %v6839_v28 }
 0x232   :  { %901 = vmatpush.bf16.msra.mxu0 %v6967_v26 }
 0x233   :  { %915 = vmatpush.bf16.msra.mxu1 %v6843_v32 }
 0x234   :  { %929 = vmatpush.bf16.msra.mxu2 %v6971_v37 }
 0x235   :  { %888 = vmatpush.bf16.msrb.mxu3 %v6823_v29 }
 0x236   :  { %902 = vmatpush.bf16.msra.mxu0 %v6951_v34 }
 0x237   :  { %916 = vmatpush.bf16.msra.mxu1 %v6827_v41 }
 0x238   :  { %930 = vmatpush.bf16.msra.mxu2 %v6955_v42  ;;  %889 = vmatmul.bf16.vlgmr.msrb.gmra.mxu3 %v11114_v27 }
 0x239   :  { %903 = vmatmul.bf16.vlgmr.msra.gmra.mxu0 %v11118_v31 }
 0x23a   :  { %917 = vmatmul.bf16.vlgmr.msra.gmra.mxu1 %v11114_v27 }
 0x23b   :  { %931 = vmatmul.bf16.vlgmr.msra.gmra.mxu2 %v11118_v31 }
 0x296   :  { %v848_v48 = vpop.f32.mrf.mxu0 }
 0x297   :  { %v862_v45 = vpop.f32.mrf.mxu1 }
 0x298   :  { %v863_v47 = vadd.f32 %v862_v45, %v498_v44 }
 0x29b   :  { %v834_v49 = vpop.f32.mrf.mxu3 }
 0x29c   :  { %v835_v50 = vadd.f32 %v834_v49, %v497_v46 }
 0x29e   :  { %v876_v51 = vpop.f32.mrf.mxu2  ;;  %v849_v53 = vadd.f32 %v848_v48, %v835_v50  ;;  %v850_v59 = vpop.f32.mrf.mxu0 }
 0x29f   :  { %v877_v52 = vadd.f32 %v876_v51, %v863_v47  ;;  %v864_v54 = vpop.f32.mrf.mxu1 }
 0x2a0   :  { %vm937_vm9 = vcmp.gt.f32.partialorder %v849_v53, 0.0  ;;  %v945_v56 = vmul.f32 0.2, %v849_v53  ;;  %v865_v27 = vadd.f32 %v864_v54, %v498_v44 }
 0x2a1   :  { %vm938_vm8 = vcmp.gt.f32.partialorder %v877_v52, 0.0  ;;  %v946_v55 = vmul.f32 0.2, %v877_v52 }
 0x2a2   :  { %v11130_v31 = vsel %vm937_vm9, %v849_v53, %v945_v56 }
 0x2a3   :  { %v11128_v57 = vsel %vm938_vm8, %v877_v52, %v946_v55  ;;  %v836_v58 = vpop.f32.mrf.mxu3 }
 0x2a4   :  { %v837_v60 = vadd.f32 %v836_v58, %v497_v46 }
 0x2a6   :  { %v878_v61 = vpop.f32.mrf.mxu2  ;;  %v851_v63 = vadd.f32 %v850_v59, %v837_v60 }
 0x2a7   :  { %v879_v62 = vadd.f32 %v878_v61, %v865_v27 }
 0x2a8   :  { %vm941_vm11 = vcmp.gt.f32.partialorder %v851_v63, 0.0  ;;  %v949_v1 = vmul.f32 0.2, %v851_v63 }
 0x2a9   :  { %vm942_vm10 = vcmp.gt.f32.partialorder %v879_v62, 0.0  ;;  %v950_v0 = vmul.f32 0.2, %v879_v62 }
 0x2aa   :  { %v11134_v3 = vsel %vm941_vm11, %v851_v63, %v949_v1 }
 0x2ab   :  { %v11132_v2 = vsel %vm942_vm10, %v879_v62, %v950_v0 }
 0x2b6   :  { %v904_v8 = vpop.f32.mrf.mxu0 }
 0x2b7   :  { %v918_v5 = vpop.f32.mrf.mxu1 }
 0x2b8   :  { %v919_v7 = vadd.f32 %v918_v5, %v500_v4 }
 0x2bb   :  { %v890_v9 = vpop.f32.mrf.mxu3 }
 0x2bc   :  { %v891_v10 = vadd.f32 %v890_v9, %v499_v6 }
 0x2be   :  { %v932_v11 = vpop.f32.mrf.mxu2  ;;  %v905_v12 = vadd.f32 %v904_v8, %v891_v10  ;;  %v906_v23 = vpop.f32.mrf.mxu0 }
 0x2bf   :  { %v933_v13 = vadd.f32 %v932_v11, %v919_v7  ;;  %v920_v16 = vpop.f32.mrf.mxu1 }
 0x2c0   :  { %vm939_vm12 = vcmp.gt.f32.partialorder %v905_v12, 0.0  ;;  %v947_v14 = vmul.f32 0.2, %v905_v12  ;;  %v921_v20 = vadd.f32 %v920_v16, %v500_v4 }
 0x2c1   :  { %vm940_vm13 = vcmp.gt.f32.partialorder %v933_v13, 0.0  ;;  %v948_v15 = vmul.f32 0.2, %v933_v13 }
 0x2c2   :  { %v11136_v17 = vsel %vm939_vm12, %v905_v12, %v947_v14 }
 0x2c3   :  { %v11138_v18 = vsel %vm940_vm13, %v933_v13, %v948_v15  ;;  %v892_v19 = vpop.f32.mrf.mxu3 }
 0x2c4   :  { %v893_v21 = vadd.f32 %v892_v19, %v499_v6 }
 0x2c6   :  { %v934_v24 = vpop.f32.mrf.mxu2  ;;  %v907_v25 = vadd.f32 %v906_v23, %v893_v21 }
 0x2c7   :  { %v935_v28 = vadd.f32 %v934_v24, %v921_v20 }
 0x2c8   :  { %vm943_vm14 = vcmp.gt.f32.partialorder %v907_v25, 0.0  ;;  %v951_v26 = vmul.f32 0.2, %v907_v25 }
 0x2c9   :  { %vm944_vm15 = vcmp.gt.f32.partialorder %v935_v28, 0.0  ;;  %v952_v32 = vmul.f32 0.2, %v935_v28 }
 0x2ca   :  { %v11140_v33 = vsel %vm943_vm14, %v907_v25, %v951_v26 }
 0x2cb   :  { %v11142_v35 = vsel %vm944_vm15, %v935_v28, %v952_v32 }
 0x2cc   :  { %10976 = dma.done.wait [#allocation7 + $0x3], 32768 }
 0x2cd   :  { %10977 = vsyncadd [#allocation7 + $0x3], 4294934528  ;;  %v7294_v36 = vld [vmem:[#allocation5 + $0x1c0] sm:$0xf] }
 0x2ce   :  { %v10037_v37 = vld [vmem:[#allocation5 + $0x1dc] sm:$0xf0] }
 0x2cf   :  { %v7550_v38 = vld [vmem:[#allocation5 + $0x3c0] sm:$0xf]  ;;  %v7295_v22 = vor.u32 %v10037_v37, %v7294_v36 }
 0x2d0   :  { %v10101_v30 = vld [vmem:[#allocation5 + $0x3dc] sm:$0xf0] }
 0x2d1   :  { %v8062_v39 = vld [vmem:[#allocation5 + $0x7c0] sm:$0xf]  ;;  %v7551_v29 = vor.u32 %v10101_v30, %v7550_v38  ;;  %2523 = vmatpush.bf16.msra.mxu3 %v7295_v22 }
 0x2d2   :  { %v10229_v40 = vld [vmem:[#allocation5 + $0x7dc] sm:$0xf0] }
 0x2d3   :  { %v8063_v34 = vor.u32 %v10229_v40, %v8062_v39  ;;  %v7806_v41 = vld [vmem:[#allocation5 + $0x5c0] sm:$0xf]  ;;  %2537 = vmatpush.bf16.msrb.mxu0 %v7551_v29 }
 0x2d4   :  { %v10165_v42 = vld [vmem:[#allocation5 + $0x5dc] sm:$0xf0] }
 0x2d5   :  { %v7262_v43 = vld [vmem:[#allocation5 + $0x180] sm:$0xf]  ;;  %v7807_v44 = vor.u32 %v10165_v42, %v7806_v41  ;;  %2565 = vmatpush.bf16.msrb.mxu2 %v8063_v34 }
 0x2d6   :  { %v10029_v45 = vld [vmem:[#allocation5 + $0x19c] sm:$0xf0] }
 0x2d7   :  { %v7518_v46 = vld [vmem:[#allocation5 + $0x380] sm:$0xf]  ;;  %v7263_v48 = vor.u32 %v10029_v45, %v7262_v43  ;;  %2551 = vmatpush.bf16.msrb.mxu1 %v7807_v44 }
 0x2d8   :  { %v10093_v47 = vld [vmem:[#allocation5 + $0x39c] sm:$0xf0] }
 0x2d9   :  { %v7519_v49 = vor.u32 %v10093_v47, %v7518_v46  ;;  %v8030_v50 = vld [vmem:[#allocation5 + $0x780] sm:$0xf]  ;;  %2524 = vmatpush.bf16.msra.mxu3 %v7263_v48 }
 0x2da   :  { %v10221_v51 = vld [vmem:[#allocation5 + $0x79c] sm:$0xf0] }
 0x2db   :  { %v7774_v52 = vld [vmem:[#allocation5 + $0x580] sm:$0xf]  ;;  %v8031_v53 = vor.u32 %v10221_v51, %v8030_v50  ;;  %2538 = vmatpush.bf16.msrb.mxu0 %v7519_v49 }
 0x2dc   :  { %v10157_v54 = vld [vmem:[#allocation5 + $0x59c] sm:$0xf0] }
 0x2dd   :  { %v7230_v55 = vld [vmem:[#allocation5 + $0x140] sm:$0xf]  ;;  %v7775_v27 = vor.u32 %v10157_v54, %v7774_v52  ;;  %2566 = vmatpush.bf16.msrb.mxu2 %v8031_v53 }
 0x2de   :  { %v10021_v56 = vld [vmem:[#allocation5 + $0x15c] sm:$0xf0] }
 0x2df   :  { %v7486_v58 = vld [vmem:[#allocation5 + $0x340] sm:$0xf]  ;;  %v7231_v61 = vor.u32 %v10021_v56, %v7230_v55  ;;  %2552 = vmatpush.bf16.msrb.mxu1 %v7775_v27 }
 0x2e0   :  { %v10085_v59 = vld [vmem:[#allocation5 + $0x35c] sm:$0xf0] }
 0x2e1   :  { %v7998_v60 = vld [vmem:[#allocation5 + $0x740] sm:$0xf]  ;;  %v7487_v1 = vor.u32 %v10085_v59, %v7486_v58  ;;  %2525 = vmatpush.bf16.msra.mxu3 %v7231_v61 }
 0x2e2   :  { %v10213_v62 = vld [vmem:[#allocation5 + $0x75c] sm:$0xf0] }
 0x2e3   :  { %v7742_v63 = vld [vmem:[#allocation5 + $0x540] sm:$0xf]  ;;  %v7999_v4 = vor.u32 %v10213_v62, %v7998_v60  ;;  %2539 = vmatpush.bf16.msrb.mxu0 %v7487_v1 }
 0x2e4   :  { %v10149_v0 = vld [vmem:[#allocation5 + $0x55c] sm:$0xf0] }
 0x2e5   :  { %v7198_v5 = vld [vmem:[#allocation5 + $0x100] sm:$0xf]  ;;  %v7743_v8 = vor.u32 %v10149_v0, %v7742_v63  ;;  %2567 = vmatpush.bf16.msrb.mxu2 %v7999_v4  ;;  %v10033_v4 = vld [vmem:[#allocation5 + $0x1c4] sm:$0xf] }
 0x2e6   :  { %v10013_v6 = vld [vmem:[#allocation5 + $0x11c] sm:$0xf0] }
 0x2e7   :  { %v7454_v7 = vld [vmem:[#allocation5 + $0x300] sm:$0xf]  ;;  %v7199_v14 = vor.u32 %v10013_v6, %v7198_v5  ;;  %2553 = vmatpush.bf16.msrb.mxu1 %v7743_v8  ;;  %v7296_v5 = vld [vmem:[#allocation5 + $0x1e0] sm:$0xf0] }
 0x2e8   :  { %v10077_v9 = vld [vmem:[#allocation5 + $0x31c] sm:$0xf0]  ;;  %v10097_v6 = vld [vmem:[#allocation5 + $0x3c4] sm:$0xf] }
 0x2e9   :  { %v7966_v10 = vld [vmem:[#allocation5 + $0x700] sm:$0xf]  ;;  %v7455_v15 = vor.u32 %v10077_v9, %v7454_v7  ;;  %2526 = vmatpush.bf16.msra.mxu3 %v7199_v14  ;;  %v7552_v7 = vld [vmem:[#allocation5 + $0x3e0] sm:$0xf0] }
 0x2ea   :  { %v10205_v11 = vld [vmem:[#allocation5 + $0x71c] sm:$0xf0]  ;;  %v10225_v8 = vld [vmem:[#allocation5 + $0x7c4] sm:$0xf] }
 0x2eb   :  { %v7710_v12 = vld [vmem:[#allocation5 + $0x500] sm:$0xf]  ;;  %v7967_v16 = vor.u32 %v10205_v11, %v7966_v10  ;;  %2540 = vmatpush.bf16.msrb.mxu0 %v7455_v15  ;;  %v8064_v10 = vld [vmem:[#allocation5 + $0x7e0] sm:$0xf0] }
 0x2ec   :  { %v10141_v13 = vld [vmem:[#allocation5 + $0x51c] sm:$0xf0]  ;;  %v10161_v15 = vld [vmem:[#allocation5 + $0x5c4] sm:$0xf] }
 0x2ed   :  { %v7166_v19 = vld [vmem:[#allocation5 + $0xc0] sm:$0xf]  ;;  %v7711_v23 = vor.u32 %v10141_v13, %v7710_v12  ;;  %2568 = vmatpush.bf16.msrb.mxu2 %v7967_v16  ;;  %v7808_v16 = vld [vmem:[#allocation5 + $0x5e0] sm:$0xf0] }
 0x2ee   :  { %v10005_v20 = vld [vmem:[#allocation5 + $0xdc] sm:$0xf0] }
 0x2ef   :  { %v7422_v21 = vld [vmem:[#allocation5 + $0x2c0] sm:$0xf]  ;;  %v7167_v36 = vor.u32 %v10005_v20, %v7166_v19  ;;  %2554 = vmatpush.bf16.msrb.mxu1 %v7711_v23  ;;  %v7299_v19 = vor.u32 %v10033_v4, %v7296_v5  ;;  %v7555_v20 = vor.u32 %v10097_v6, %v7552_v7  ;;  %v8067_v23 = vor.u32 %v10225_v8, %v8064_v10  ;;  %v10129_v4 = vld [vmem:[#allocation5 + $0x4c4] sm:$0xf] }
 0x2f0   :  { %v10069_v24 = vld [vmem:[#allocation5 + $0x2dc] sm:$0xf0]  ;;  %v7680_v5 = vld [vmem:[#allocation5 + $0x4e0] sm:$0xf0] }
 0x2f1   :  { %v7934_v25 = vld [vmem:[#allocation5 + $0x6c0] sm:$0xf]  ;;  %v7423_v37 = vor.u32 %v10069_v24, %v7422_v21  ;;  %2527 = vmatpush.bf16.msra.mxu3 %v7167_v36  ;;  %v10025_v21 = vld [vmem:[#allocation5 + $0x184] sm:$0xf] }
 0x2f2   :  { %v10197_v28 = vld [vmem:[#allocation5 + $0x6dc] sm:$0xf0]  ;;  %v10217_v36 = vld [vmem:[#allocation5 + $0x784] sm:$0xf] }
 0x2f3   :  { %v7678_v26 = vld [vmem:[#allocation5 + $0x4c0] sm:$0xf]  ;;  %v7935_v38 = vor.u32 %v10197_v28, %v7934_v25  ;;  %2541 = vmatpush.bf16.msrb.mxu0 %v7423_v37  ;;  %v7264_v25 = vld [vmem:[#allocation5 + $0x1a0] sm:$0xf0] }
 0x2f4   :  { %v10133_v32 = vld [vmem:[#allocation5 + $0x4dc] sm:$0xf0]  ;;  %v10089_v28 = vld [vmem:[#allocation5 + $0x384] sm:$0xf] }
 0x2f5   :  { %v7134_v22 = vld [vmem:[#allocation5 + $0x80] sm:$0xf]  ;;  %v7679_v40 = vor.u32 %v10133_v32, %v7678_v26  ;;  %2569 = vmatpush.bf16.msrb.mxu2 %v7935_v38  ;;  %v7520_v26 = vld [vmem:[#allocation5 + $0x3a0] sm:$0xf0]  ;;  %v7811_v32 = vor.u32 %v10161_v15, %v7808_v16  ;;  %v11146_v38 = vpack.c.bf16 %v11134_v3, %v11130_v31 }
 0x2f6   :  { %v9997_v30 = vld [vmem:[#allocation5 + $0x9c] sm:$0xf0]  ;;  %v8032_v37 = vld [vmem:[#allocation5 + $0x7a0] sm:$0xf0] }
 0x2f7   :  { %v7390_v39 = vld [vmem:[#allocation5 + $0x280] sm:$0xf]  ;;  %v7135_v44 = vor.u32 %v9997_v30, %v7134_v22  ;;  %2555 = vmatpush.bf16.msrb.mxu1 %v7679_v40  ;;  %v10153_v22 = vld [vmem:[#allocation5 + $0x584] sm:$0xf]  ;;  %v11154_v40 = vpack.c.bf16 %v11132_v2, %v11128_v57  ;;  %v8035_v31 = vor.u32 %v10217_v36, %v8032_v37 }
 0x2f8   :  { %v10061_v29 = vld [vmem:[#allocation5 + $0x29c] sm:$0xf0]  ;;  %v7776_v30 = vld [vmem:[#allocation5 + $0x5a0] sm:$0xf0] }
 0x2f9   :  { %v7902_v34 = vld [vmem:[#allocation5 + $0x680] sm:$0xf]  ;;  %v7391_v45 = vor.u32 %v10061_v29, %v7390_v39  ;;  %2528 = vmatpush.bf16.msra.mxu3 %v7135_v44  ;;  %v11150_v39 = vpack.c.bf16 %v11142_v35, %v11138_v18  ;;  %v7267_v29 = vor.u32 %v10025_v21, %v7264_v25  ;;  %v7232_v3 = vld [vmem:[#allocation5 + $0x160] sm:$0xf0]  ;;  %v11158_v44 = vpack.c.bf16 %v11140_v33, %v11136_v17 }
 0x2fa   :  { %v10189_v41 = vld [vmem:[#allocation5 + $0x69c] sm:$0xf0]  ;;  %v7779_v18 = vor.u32 %v10153_v22, %v7776_v30  ;;  %v10209_v35 = vld [vmem:[#allocation5 + $0x744] sm:$0xf] }
 0x2fb   :  { %v7646_v42 = vld [vmem:[#allocation5 + $0x480] sm:$0xf]  ;;  %v7903_v46 = vor.u32 %v10189_v41, %v7902_v34  ;;  %2542 = vmatpush.bf16.msrb.mxu0 %v7391_v45  ;;  %v7523_v34 = vor.u32 %v10089_v28, %v7520_v26  ;;  %v10017_v41 = vld [vmem:[#allocation5 + $0x144] sm:$0xf] }
 0x2fc   :  { %v10125_v43 = vld [vmem:[#allocation5 + $0x49c] sm:$0xf0]  ;;  %v8000_v57 = vld [vmem:[#allocation5 + $0x760] sm:$0xf0] }
 0x2fd   :  { %v7102_v47 = vld [vmem:[#allocation5 + $0x40] sm:$0xf]  ;;  %v7647_v50 = vor.u32 %v10125_v43, %v7646_v42  ;;  %2570 = vmatpush.bf16.msrb.mxu2 %v7903_v46  ;;  %v10081_v42 = vld [vmem:[#allocation5 + $0x344] sm:$0xf]  ;;  %v7235_v46 = vor.u32 %v10017_v41, %v7232_v3  ;;  %v8003_v17 = vor.u32 %v10209_v35, %v8000_v57 }
 0x2fe   :  { %v9989_v48 = vld [vmem:[#allocation5 + $0x5c] sm:$0xf0]  ;;  %v7488_v43 = vld [vmem:[#allocation5 + $0x360] sm:$0xf0] }
 0x2ff   :  { %v7358_v49 = vld [vmem:[#allocation5 + $0x240] sm:$0xf]  ;;  %v7103_v56 = vor.u32 %v9989_v48, %v7102_v47  ;;  %2556 = vmatpush.bf16.msrb.mxu1 %v7647_v50  ;;  %v10145_v2 = vld [vmem:[#allocation5 + $0x544] sm:$0xf]  ;;  %v7491_v47 = vor.u32 %v10081_v42, %v7488_v43 }
 0x300   :  { %v10053_v51 = vld [vmem:[#allocation5 + $0x25c] sm:$0xf0]  ;;  %v7744_v45 = vld [vmem:[#allocation5 + $0x560] sm:$0xf0] }
 0x301   :  { %v7870_v52 = vld [vmem:[#allocation5 + $0x640] sm:$0xf]  ;;  %v7359_v59 = vor.u32 %v10053_v51, %v7358_v49  ;;  %2529 = vmatpush.bf16.msra.mxu3 %v7103_v56  ;;  %v10009_v48 = vld [vmem:[#allocation5 + $0x104] sm:$0xf]  ;;  %v7747_v51 = vor.u32 %v10145_v2, %v7744_v45  ;;  %v7302_v2 = vld [vmem:[#allocation5 + $0x1c8] sm:$0xf] }
 0x302   :  { %v10181_v53 = vld [vmem:[#allocation5 + $0x65c] sm:$0xf0]  ;;  %v7200_v33 = vld [vmem:[#allocation5 + $0x120] sm:$0xf0]  ;;  %v10038_v45 = vld [vmem:[#allocation5 + $0x1e4] sm:$0xf0] }
 0x303   :  { %v7614_v54 = vld [vmem:[#allocation5 + $0x440] sm:$0xf]  ;;  %v7871_v60 = vor.u32 %v10181_v53, %v7870_v52  ;;  %2543 = vmatpush.bf16.msrb.mxu0 %v7359_v59  ;;  %v10073_v49 = vld [vmem:[#allocation5 + $0x304] sm:$0xf]  ;;  %v7203_v56 = vor.u32 %v10009_v48, %v7200_v33  ;;  %v8070_v48 = vld [vmem:[#allocation5 + $0x7c8] sm:$0xf] }
 0x304   :  { %v10117_v55 = vld [vmem:[#allocation5 + $0x45c] sm:$0xf0]  ;;  %v7456_v50 = vld [vmem:[#allocation5 + $0x320] sm:$0xf0] }
 0x305   :  { %v7070_v27 = vld [vmem:[#allocation5] sm:$0xf]  ;;  %v7615_v0 = vor.u32 %v10117_v55, %v7614_v54  ;;  %2571 = vmatpush.bf16.msrb.mxu2 %v7871_v60  ;;  %v10201_v52 = vld [vmem:[#allocation5 + $0x704] sm:$0xf] }
 0x306   :  { %v9981_v58 = vld [vmem:[#allocation5 + $0x1c] sm:$0xf0]  ;;  %v7968_v53 = vld [vmem:[#allocation5 + $0x720] sm:$0xf0] }
 0x307   :  { %v7326_v61 = vld [vmem:[#allocation5 + $0x200] sm:$0xf]  ;;  %v7071_v9 = vor.u32 %v9981_v58, %v7070_v27  ;;  %2557 = vmatpush.bf16.msrb.mxu1 %v7615_v0  ;;  %v10137_v54 = vld [vmem:[#allocation5 + $0x504] sm:$0xf]  ;;  %v7459_v27 = vor.u32 %v10073_v49, %v7456_v50  ;;  %v7971_v59 = vor.u32 %v10201_v52, %v7968_v53  ;;  %v7303_v53 = vor.u32 %v10038_v45, %v7302_v2  ;;  %v7686_v45 = vld [vmem:[#allocation5 + $0x4c8] sm:$0xf] }
 0x308   :  { %v10045_v62 = vld [vmem:[#allocation5 + $0x21c] sm:$0xf0]  ;;  %v7712_v55 = vld [vmem:[#allocation5 + $0x520] sm:$0xf0] }
 0x309   :  { %v7838_v63 = vld [vmem:[#allocation5 + $0x600] sm:$0xf]  ;;  %v7327_v13 = vor.u32 %v10045_v62, %v7326_v61  ;;  %2530 = vmatpush.bf16.msra.mxu3 %v7071_v9  ;;  %v10001_v58 = vld [vmem:[#allocation5 + $0xc4] sm:$0xf] }
 0x30a   :  { %v10173_v1 = vld [vmem:[#allocation5 + $0x61c] sm:$0xf0]  ;;  %v7168_v60 = vld [vmem:[#allocation5 + $0xe0] sm:$0xf0] }
 0x30b   :  { %v7582_v11 = vld [vmem:[#allocation5 + $0x400] sm:$0xf]  ;;  %v7839_v14 = vor.u32 %v10173_v1, %v7838_v63  ;;  %2544 = vmatpush.bf16.msrb.mxu0 %v7327_v13  ;;  %v10065_v61 = vld [vmem:[#allocation5 + $0x2c4] sm:$0xf]  ;;  %v7715_v63 = vor.u32 %v10137_v54, %v7712_v55  ;;  %v7171_v6 = vor.u32 %v10001_v58, %v7168_v60  ;;  %v7683_v13 = vor.u32 %v10129_v4, %v7680_v5  ;;  %v7814_v54 = vld [vmem:[#allocation5 + $0x5c8] sm:$0xf] }
 0x30c   :  { %v10109_v12 = vld [vmem:[#allocation5 + $0x41c] sm:$0xf0]  ;;  %2531 = vmatmul.bf16.vlgmr.msra.gmra.mxu3 %v11146_v38  ;;  %v7424_v62 = vld [vmem:[#allocation5 + $0x2e0] sm:$0xf0]  ;;  %v10166_v55 = vld [vmem:[#allocation5 + $0x5e4] sm:$0xf0] }
 0x30d   :  { %v7583_v24 = vor.u32 %v10109_v12, %v7582_v11  ;;  %2572 = vmatpush.bf16.msrb.mxu2 %v7839_v14  ;;  %2579 = vmatpush.bf16.msrb.mxu3 %v7299_v19  ;;  %v10193_v0 = vld [vmem:[#allocation5 + $0x6c4] sm:$0xf]  ;;  %v7427_v7 = vor.u32 %v10065_v61, %v7424_v62  ;;  %v7270_v58 = vld [vmem:[#allocation5 + $0x188] sm:$0xf] }
 0x30e   :  { %2545 = vmatmul.bf16.vlgmr.msrb.gmra.mxu0 %v11154_v40  ;;  %v7936_v1 = vld [vmem:[#allocation5 + $0x6e0] sm:$0xf0]  ;;  %v7526_v60 = vld [vmem:[#allocation5 + $0x388] sm:$0xf] }
 0x30f   :  { %2593 = vmatpush.bf16.msra.mxu0 %v7555_v20  ;;  %2558 = vmatpush.bf16.msrb.mxu1 %v7583_v24  ;;  %v9993_v8 = vld [vmem:[#allocation5 + $0x84] sm:$0xf]  ;;  %v7939_v9 = vor.u32 %v10193_v0, %v7936_v1  ;;  %v10094_v62 = vld [vmem:[#allocation5 + $0x3a4] sm:$0xf0]  ;;  %v7815_v1 = vor.u32 %v10166_v55, %v7814_v54 }
 0x310   :  { %2573 = vmatmul.bf16.vlgmr.msrb.gmra.mxu2 %v11150_v39  ;;  %v7136_v10 = vld [vmem:[#allocation5 + $0xa0] sm:$0xf0]  ;;  %v10222_v0 = vld [vmem:[#allocation5 + $0x7a4] sm:$0xf0] }
 0x311   :  { %2621 = vmatpush.bf16.msra.mxu2 %v8067_v23  ;;  %2580 = vmatpush.bf16.msrb.mxu3 %v7267_v29  ;;  %v10057_v11 = vld [vmem:[#allocation5 + $0x284] sm:$0xf]  ;;  %v7139_v20 = vor.u32 %v9993_v8, %v7136_v10  ;;  %v7782_v5 = vld [vmem:[#allocation5 + $0x588] sm:$0xf] }
 0x312   :  { %2559 = vmatmul.bf16.vlgmr.msrb.gmra.mxu1 %v11158_v44  ;;  %v7392_v12 = vld [vmem:[#allocation5 + $0x2a0] sm:$0xf0]  ;;  %v10022_v10 = vld [vmem:[#allocation5 + $0x164] sm:$0xf0] }
 0x313   :  { %2607 = vmatpush.bf16.msra.mxu1 %v7811_v32  ;;  %2594 = vmatpush.bf16.msra.mxu0 %v7523_v34  ;;  %v10185_v14 = vld [vmem:[#allocation5 + $0x684] sm:$0xf]  ;;  %v7395_v21 = vor.u32 %v10057_v11, %v7392_v12  ;;  %v7494_v11 = vld [vmem:[#allocation5 + $0x348] sm:$0xf] }
 0x314   :  { %v7904_v15 = vld [vmem:[#allocation5 + $0x6a0] sm:$0xf0]  ;;  %v10086_v12 = vld [vmem:[#allocation5 + $0x364] sm:$0xf0] }
 0x315   :  { %2622 = vmatpush.bf16.msra.mxu2 %v8035_v31  ;;  %2581 = vmatpush.bf16.msrb.mxu3 %v7235_v46  ;;  %v10121_v16 = vld [vmem:[#allocation5 + $0x484] sm:$0xf]  ;;  %v7907_v24 = vor.u32 %v10185_v14, %v7904_v15  ;;  %v7558_v46 = vld [vmem:[#allocation5 + $0x3c8] sm:$0xf] }
 0x316   :  { %v7648_v19 = vld [vmem:[#allocation5 + $0x4a0] sm:$0xf0]  ;;  %v10214_v14 = vld [vmem:[#allocation5 + $0x764] sm:$0xf0] }
 0x317   :  { %2608 = vmatpush.bf16.msra.mxu1 %v7779_v18  ;;  %2595 = vmatpush.bf16.msra.mxu0 %v7491_v47  ;;  %v9985_v23 = vld [vmem:[#allocation5 + $0x44] sm:$0xf]  ;;  %v7651_v32 = vor.u32 %v10121_v16, %v7648_v19  ;;  %v10102_v47 = vld [vmem:[#allocation5 + $0x3e4] sm:$0xf0] }
 0x318   :  { %v7104_v25 = vld [vmem:[#allocation5 + $0x60] sm:$0xf0]  ;;  %v7750_v19 = vld [vmem:[#allocation5 + $0x548] sm:$0xf] }
 0x319   :  { %2623 = vmatpush.bf16.msra.mxu2 %v8003_v17  ;;  %2582 = vmatpush.bf16.msrb.mxu3 %v7203_v56  ;;  %v10049_v28 = vld [vmem:[#allocation5 + $0x244] sm:$0xf]  ;;  %v7107_v29 = vor.u32 %v9985_v23, %v7104_v25  ;;  %v10230_v17 = vld [vmem:[#allocation5 + $0x7e4] sm:$0xf0]  ;;  %v7559_v56 = vor.u32 %v10102_v47, %v7558_v46 }
 0x31a   :  { %v7360_v26 = vld [vmem:[#allocation5 + $0x260] sm:$0xf0]  ;;  %v10014_v25 = vld [vmem:[#allocation5 + $0x124] sm:$0xf0] }
 0x31b   :  { %2609 = vmatpush.bf16.msra.mxu1 %v7747_v51  ;;  %2596 = vmatpush.bf16.msra.mxu0 %v7459_v27  ;;  %v10177_v36 = vld [vmem:[#allocation5 + $0x644] sm:$0xf]  ;;  %v7363_v34 = vor.u32 %v10049_v28, %v7360_v26  ;;  %v8071_v27 = vor.u32 %v10230_v17, %v8070_v48  ;;  %v7462_v28 = vld [vmem:[#allocation5 + $0x308] sm:$0xf] }
 0x31c   :  { %v7872_v37 = vld [vmem:[#allocation5 + $0x660] sm:$0xf0]  ;;  %v10078_v26 = vld [vmem:[#allocation5 + $0x324] sm:$0xf0] }
 0x31d   :  { %2624 = vmatpush.bf16.msra.mxu2 %v7971_v59  ;;  %2583 = vmatpush.bf16.msrb.mxu3 %v7171_v6  ;;  %v10113_v22 = vld [vmem:[#allocation5 + $0x444] sm:$0xf]  ;;  %v7875_v42 = vor.u32 %v10177_v36, %v7872_v37  ;;  %v10030_v59 = vld [vmem:[#allocation5 + $0x1a4] sm:$0xf0] }
 0x31e   :  { %v7616_v30 = vld [vmem:[#allocation5 + $0x460] sm:$0xf0]  ;;  %v7271_v4 = vor.u32 %v10030_v59, %v7270_v58  ;;  %v10158_v6 = vld [vmem:[#allocation5 + $0x5a4] sm:$0xf0] }
 0x31f   :  { %2610 = vmatpush.bf16.msra.mxu1 %v7715_v63  ;;  %2597 = vmatpush.bf16.msra.mxu0 %v7427_v7  ;;  %v9977_v41 = vld [vmem:[#allocation5 + $0x4] sm:$0xf]  ;;  %v7619_v57 = vor.u32 %v10113_v22, %v7616_v30  ;;  %v8038_v63 = vld [vmem:[#allocation5 + $0x788] sm:$0xf]  ;;  %v7527_v7 = vor.u32 %v10094_v62, %v7526_v60  ;;  %v7783_v15 = vor.u32 %v10158_v6, %v7782_v5 }
 0x320   :  { %v7072_v31 = vld [vmem:[#allocation5 + $0x20] sm:$0xf0]  ;;  %v8039_v8 = vor.u32 %v10222_v0, %v8038_v63  ;;  %v10206_v36 = vld [vmem:[#allocation5 + $0x724] sm:$0xf0] }
 0x321   :  { %2625 = vmatpush.bf16.msra.mxu2 %v7939_v9  ;;  %2584 = vmatpush.bf16.msrb.mxu3 %v7139_v20  ;;  %v10041_v3 = vld [vmem:[#allocation5 + $0x204] sm:$0xf]  ;;  %v7075_v33 = vor.u32 %v9977_v41, %v7072_v31  ;;  %v7238_v9 = vld [vmem:[#allocation5 + $0x148] sm:$0xf] }
 0x322   :  { %v7328_v43 = vld [vmem:[#allocation5 + $0x220] sm:$0xf0]  ;;  %v7239_v16 = vor.u32 %v10022_v10, %v7238_v9  ;;  %v10150_v20 = vld [vmem:[#allocation5 + $0x564] sm:$0xf0] }
 0x323   :  { %2611 = vmatpush.bf16.msra.mxu1 %v7683_v13  ;;  %2598 = vmatpush.bf16.msra.mxu0 %v7395_v21  ;;  %v10169_v18 = vld [vmem:[#allocation5 + $0x604] sm:$0xf]  ;;  %v7331_v49 = vor.u32 %v10041_v3, %v7328_v43  ;;  %v8006_v13 = vld [vmem:[#allocation5 + $0x748] sm:$0xf]  ;;  %v7495_v21 = vor.u32 %v10086_v12, %v7494_v11  ;;  %v7751_v37 = vor.u32 %v10150_v20, %v7750_v19  ;;  %v10098_v20 = vld [vmem:[#allocation5 + $0x3cc] sm:$0xf] }
 0x324   :  { %v7840_v35 = vld [vmem:[#allocation5 + $0x620] sm:$0xf0]  ;;  %v8007_v23 = vor.u32 %v10214_v14, %v8006_v13  ;;  %v7718_v30 = vld [vmem:[#allocation5 + $0x508] sm:$0xf] }
 0x325   :  { %2626 = vmatpush.bf16.msra.mxu2 %v7907_v24  ;;  %2585 = vmatpush.bf16.msrb.mxu3 %v7107_v29  ;;  %v10105_v50 = vld [vmem:[#allocation5 + $0x404] sm:$0xf]  ;;  %v7843_v52 = vor.u32 %v10169_v18, %v7840_v35  ;;  %v7206_v24 = vld [vmem:[#allocation5 + $0x108] sm:$0xf] }
 0x326   :  { %v7584_v51 = vld [vmem:[#allocation5 + $0x420] sm:$0xf0]  ;;  %v7207_v22 = vor.u32 %v10014_v25, %v7206_v24  ;;  %v10142_v29 = vld [vmem:[#allocation5 + $0x524] sm:$0xf0]  ;;  %v8072_v25 = vld [vmem:[#allocation5 + $0x7e8] sm:$0xf0] }
 0x327   :  { %2612 = vmatpush.bf16.msra.mxu1 %v7651_v32  ;;  %2599 = vmatpush.bf16.msra.mxu0 %v7363_v34  ;;  %v7587_v61 = vor.u32 %v10105_v50, %v7584_v51  ;;  %v7974_v32 = vld [vmem:[#allocation5 + $0x708] sm:$0xf]  ;;  %v7463_v34 = vor.u32 %v10078_v26, %v7462_v28 }
 0x328   :  { %v7975_v41 = vor.u32 %v10206_v36, %v7974_v32  ;;  %v7174_v31 = vld [vmem:[#allocation5 + $0xc8] sm:$0xf] }
 0x329   :  { %2627 = vmatpush.bf16.msra.mxu2 %v7875_v42  ;;  %2586 = vmatpush.bf16.msrb.mxu3 %v7075_v33  ;;  %v10006_v3 = vld [vmem:[#allocation5 + $0xe4] sm:$0xf0] }
 0x32a   :  { %v7430_v42 = vld [vmem:[#allocation5 + $0x2c8] sm:$0xf]  ;;  %v7175_v2 = vor.u32 %v10006_v3, %v7174_v31  ;;  %v7272_v3 = vld [vmem:[#allocation5 + $0x1a8] sm:$0xf0] }
 0x32b   :  { %2613 = vmatpush.bf16.msra.mxu1 %v7619_v57  ;;  %2600 = vmatpush.bf16.msra.mxu0 %v7331_v49  ;;  %v10070_v43 = vld [vmem:[#allocation5 + $0x2e4] sm:$0xf0]  ;;  %v7719_v57 = vor.u32 %v10142_v29, %v7718_v30 }
 0x32c   :  { %2587 = vmatmul.bf16.vlgmr.msrb.gmra.mxu3 %v11146_v38  ;;  %v7942_v18 = vld [vmem:[#allocation5 + $0x6c8] sm:$0xf]  ;;  %v7431_v47 = vor.u32 %v10070_v43, %v7430_v42  ;;  %v10090_v42 = vld [vmem:[#allocation5 + $0x38c] sm:$0xf] }
 0x32d   :  { %2628 = vmatpush.bf16.msra.mxu2 %v7843_v52  ;;  %2635 = vmatpush.bf16.msra.mxu3 %v7303_v53  ;;  %v10198_v35 = vld [vmem:[#allocation5 + $0x6e4] sm:$0xf0]  ;;  %v7528_v43 = vld [vmem:[#allocation5 + $0x3a8] sm:$0xf0] }
 0x32e   :  { %2601 = vmatmul.bf16.vlgmr.msra.gmra.mxu0 %v11154_v40  ;;  %v10134_v46 = vld [vmem:[#allocation5 + $0x4e4] sm:$0xf0]  ;;  %v7943_v48 = vor.u32 %v10198_v35, %v7942_v18  ;;  %v10218_v35 = vld [vmem:[#allocation5 + $0x78c] sm:$0xf] }
 0x32f   :  { %2649 = vmatpush.bf16.msrb.mxu0 %v7559_v56  ;;  %2614 = vmatpush.bf16.msra.mxu1 %v7587_v61  ;;  %v7142_v17 = vld [vmem:[#allocation5 + $0x88] sm:$0xf]  ;;  %v7687_v53 = vor.u32 %v10134_v46, %v7686_v45  ;;  %v7784_v45 = vld [vmem:[#allocation5 + $0x5a8] sm:$0xf0] }
 0x330   :  { %2629 = vmatmul.bf16.vlgmr.msra.gmra.mxu2 %v11150_v39  ;;  %v9998_v33 = vld [vmem:[#allocation5 + $0xa4] sm:$0xf0] }
 0x331   :  { %2677 = vmatpush.bf16.msrb.mxu2 %v8071_v27  ;;  %2636 = vmatpush.bf16.msra.mxu3 %v7271_v4  ;;  %v7398_v49 = vld [vmem:[#allocation5 + $0x288] sm:$0xf]  ;;  %v7143_v54 = vor.u32 %v9998_v33, %v7142_v17  ;;  %v7240_v33 = vld [vmem:[#allocation5 + $0x168] sm:$0xf0] }
 0x332   :  { %2615 = vmatmul.bf16.vlgmr.msra.gmra.mxu1 %v11158_v44  ;;  %v10062_v50 = vld [vmem:[#allocation5 + $0x2a4] sm:$0xf0] }
 0x333   :  { %2663 = vmatpush.bf16.msrb.mxu1 %v7815_v1  ;;  %2650 = vmatpush.bf16.msrb.mxu0 %v7527_v7  ;;  %v7910_v51 = vld [vmem:[#allocation5 + $0x688] sm:$0xf]  ;;  %v7399_v27 = vor.u32 %v10062_v50, %v7398_v49  ;;  %v10082_v49 = vld [vmem:[#allocation5 + $0x34c] sm:$0xf] }
 0x334   :  { %v10190_v52 = vld [vmem:[#allocation5 + $0x6a4] sm:$0xf0]  ;;  %v7496_v50 = vld [vmem:[#allocation5 + $0x368] sm:$0xf0] }
 0x335   :  { %2678 = vmatpush.bf16.msrb.mxu2 %v8039_v8  ;;  %2637 = vmatpush.bf16.msra.mxu3 %v7239_v16  ;;  %v7654_v55 = vld [vmem:[#allocation5 + $0x488] sm:$0xf]  ;;  %v7911_v58 = vor.u32 %v10190_v52, %v7910_v51  ;;  %v7304_v16 = vld [vmem:[#allocation5 + $0x1e8] sm:$0xf0] }
 0x336   :  { %v10126_v56 = vld [vmem:[#allocation5 + $0x4a4] sm:$0xf0]  ;;  %v10210_v52 = vld [vmem:[#allocation5 + $0x74c] sm:$0xf] }
 0x337   :  { %2664 = vmatpush.bf16.msrb.mxu1 %v7783_v15  ;;  %2651 = vmatpush.bf16.msrb.mxu0 %v7495_v21  ;;  %v7110_v59 = vld [vmem:[#allocation5 + $0x48] sm:$0xf]  ;;  %v7655_v1 = vor.u32 %v10126_v56, %v7654_v55  ;;  %v10034_v15 = vld [vmem:[#allocation5 + $0x1cc] sm:$0xf] }
 0x338   :  { %v9990_v60 = vld [vmem:[#allocation5 + $0x64] sm:$0xf0]  ;;  %v7560_v21 = vld [vmem:[#allocation5 + $0x3e8] sm:$0xf0]  ;;  %v7307_v30 = vor.u32 %v10034_v15, %v7304_v16 }
 0x339   :  { %2679 = vmatpush.bf16.msrb.mxu2 %v8007_v23  ;;  %2638 = vmatpush.bf16.msra.mxu3 %v7207_v22  ;;  %v7366_v61 = vld [vmem:[#allocation5 + $0x248] sm:$0xf]  ;;  %v7111_v5 = vor.u32 %v9990_v60, %v7110_v59  ;;  %v10226_v23 = vld [vmem:[#allocation5 + $0x7cc] sm:$0xf]  ;;  %v7563_v29 = vor.u32 %v10098_v20, %v7560_v21 }
 0x33a   :  { %v10054_v62 = vld [vmem:[#allocation5 + $0x264] sm:$0xf0]  ;;  %v7816_v22 = vld [vmem:[#allocation5 + $0x5e8] sm:$0xf0] }
 0x33b   :  { %2665 = vmatpush.bf16.msrb.mxu1 %v7751_v37  ;;  %2652 = vmatpush.bf16.msrb.mxu0 %v7463_v34  ;;  %v7878_v63 = vld [vmem:[#allocation5 + $0x648] sm:$0xf]  ;;  %v7367_v9 = vor.u32 %v10054_v62, %v7366_v61  ;;  %v10162_v37 = vld [vmem:[#allocation5 + $0x5cc] sm:$0xf] }
 0x33c   :  { %v10182_v0 = vld [vmem:[#allocation5 + $0x664] sm:$0xf0]  ;;  %v10026_v34 = vld [vmem:[#allocation5 + $0x18c] sm:$0xf]  ;;  %v7819_v18 = vor.u32 %v10162_v37, %v7816_v22 }
 0x33d   :  { %2680 = vmatpush.bf16.msrb.mxu2 %v7975_v41  ;;  %2639 = vmatpush.bf16.msra.mxu3 %v7175_v2  ;;  %v7622_v4 = vld [vmem:[#allocation5 + $0x448] sm:$0xf]  ;;  %v7879_v10 = vor.u32 %v10182_v0, %v7878_v63  ;;  %v8075_v41 = vor.u32 %v10226_v23, %v8072_v25  ;;  %v10154_v2 = vld [vmem:[#allocation5 + $0x58c] sm:$0xf]  ;;  %v7275_v46 = vor.u32 %v10026_v34, %v7272_v3 }
 0x33e   :  { %v10118_v6 = vld [vmem:[#allocation5 + $0x464] sm:$0xf0]  ;;  %v7787_v51 = vor.u32 %v10154_v2, %v7784_v45  ;;  %v7752_v55 = vld [vmem:[#allocation5 + $0x568] sm:$0xf0] }
 0x33f   :  { %2666 = vmatpush.bf16.msrb.mxu1 %v7719_v57  ;;  %2653 = vmatpush.bf16.msrb.mxu0 %v7431_v47  ;;  %v7078_v7 = vld [vmem:[#allocation5 + $0x8] sm:$0xf]  ;;  %v7623_v19 = vor.u32 %v10118_v6, %v7622_v4  ;;  %v8040_v57 = vld [vmem:[#allocation5 + $0x7a8] sm:$0xf0]  ;;  %v7531_v47 = vor.u32 %v10090_v42, %v7528_v43 }
 0x340   :  { %v9982_v8 = vld [vmem:[#allocation5 + $0x24] sm:$0xf0]  ;;  %v8043_v17 = vor.u32 %v10218_v35, %v8040_v57  ;;  %v7208_v60 = vld [vmem:[#allocation5 + $0x128] sm:$0xf0] }
 0x341   :  { %2681 = vmatpush.bf16.msrb.mxu2 %v7943_v48  ;;  %2640 = vmatpush.bf16.msra.mxu3 %v7143_v54  ;;  %v7334_v11 = vld [vmem:[#allocation5 + $0x208] sm:$0xf]  ;;  %v7079_v24 = vor.u32 %v9982_v8, %v7078_v7  ;;  %v10018_v48 = vld [vmem:[#allocation5 + $0x14c] sm:$0xf] }
 0x342   :  { %v10046_v12 = vld [vmem:[#allocation5 + $0x224] sm:$0xf0]  ;;  %v10146_v54 = vld [vmem:[#allocation5 + $0x54c] sm:$0xf]  ;;  %v7243_v56 = vor.u32 %v10018_v48, %v7240_v33 }
 0x343   :  { %2667 = vmatpush.bf16.msrb.mxu1 %v7687_v53  ;;  %2654 = vmatpush.bf16.msrb.mxu0 %v7399_v27  ;;  %v7846_v13 = vld [vmem:[#allocation5 + $0x608] sm:$0xf]  ;;  %v7335_v32 = vor.u32 %v10046_v12, %v7334_v11  ;;  %v8008_v53 = vld [vmem:[#allocation5 + $0x768] sm:$0xf0]  ;;  %v7499_v27 = vor.u32 %v10082_v49, %v7496_v50  ;;  %v7755_v63 = vor.u32 %v10146_v54, %v7752_v55  ;;  %v7310_v54 = vld [vmem:[#allocation5 + $0x1d0] sm:$0xf] }
 0x344   :  { %v10174_v14 = vld [vmem:[#allocation5 + $0x624] sm:$0xf0]  ;;  %v8011_v59 = vor.u32 %v10210_v52, %v8008_v53  ;;  %v10074_v61 = vld [vmem:[#allocation5 + $0x30c] sm:$0xf]  ;;  %v10039_v55 = vld [vmem:[#allocation5 + $0x1ec] sm:$0xf0] }
 0x345   :  { %2682 = vmatpush.bf16.msrb.mxu2 %v7911_v58  ;;  %2641 = vmatpush.bf16.msra.mxu3 %v7111_v5  ;;  %v7590_v28 = vld [vmem:[#allocation5 + $0x408] sm:$0xf]  ;;  %v7847_v36 = vor.u32 %v10174_v14, %v7846_v13  ;;  %v10010_v58 = vld [vmem:[#allocation5 + $0x10c] sm:$0xf] }
 0x346   :  { %v10110_v26 = vld [vmem:[#allocation5 + $0x424] sm:$0xf0]  ;;  %v7464_v62 = vld [vmem:[#allocation5 + $0x328] sm:$0xf0]  ;;  %v7211_v6 = vor.u32 %v10010_v58, %v7208_v60  ;;  %v8078_v58 = vld [vmem:[#allocation5 + $0x7d0] sm:$0xf] }
 0x347   :  { %2668 = vmatpush.bf16.msrb.mxu1 %v7655_v1  ;;  %2655 = vmatpush.bf16.msrb.mxu0 %v7367_v9  ;;  %v7591_v31 = vor.u32 %v10110_v26, %v7590_v28  ;;  %v10202_v0 = vld [vmem:[#allocation5 + $0x70c] sm:$0xf]  ;;  %v7467_v7 = vor.u32 %v10074_v61, %v7464_v62 }
 0x348   :  { %v7976_v1 = vld [vmem:[#allocation5 + $0x728] sm:$0xf0] }
 0x349   :  { %2683 = vmatpush.bf16.msrb.mxu2 %v7879_v10  ;;  %2642 = vmatpush.bf16.msra.mxu3 %v7079_v24  ;;  %v10138_v4 = vld [vmem:[#allocation5 + $0x50c] sm:$0xf]  ;;  %v7979_v9 = vor.u32 %v10202_v0, %v7976_v1  ;;  %v7311_v1 = vor.u32 %v10039_v55, %v7310_v54  ;;  %v7694_v55 = vld [vmem:[#allocation5 + $0x4d0] sm:$0xf] }
 0x34a   :  { %v7720_v5 = vld [vmem:[#allocation5 + $0x528] sm:$0xf0] }
 0x34b   :  { %2669 = vmatpush.bf16.msrb.mxu1 %v7623_v19  ;;  %2656 = vmatpush.bf16.msrb.mxu0 %v7335_v32  ;;  %v10002_v8 = vld [vmem:[#allocation5 + $0xcc] sm:$0xf]  ;;  %v7723_v13 = vor.u32 %v10138_v4, %v7720_v5  ;;  %v7822_v4 = vld [vmem:[#allocation5 + $0x5d0] sm:$0xf] }
 0x34c   :  { %2643 = vmatmul.bf16.vlgmr.msra.gmra.mxu3 %v11146_v38  ;;  %v7176_v10 = vld [vmem:[#allocation5 + $0xe8] sm:$0xf0]  ;;  %v10167_v5 = vld [vmem:[#allocation5 + $0x5ec] sm:$0xf0] }
 0x34d   :  { %2684 = vmatpush.bf16.msrb.mxu2 %v7847_v36  ;;  %2691 = vmatpush.bf16.msrb.mxu3 %v7307_v30  ;;  %v10066_v11 = vld [vmem:[#allocation5 + $0x2cc] sm:$0xf]  ;;  %v7179_v20 = vor.u32 %v10002_v8, %v7176_v10  ;;  %v7278_v8 = vld [vmem:[#allocation5 + $0x190] sm:$0xf] }
 0x34e   :  { %2657 = vmatmul.bf16.vlgmr.msrb.gmra.mxu0 %v11154_v40  ;;  %v7432_v12 = vld [vmem:[#allocation5 + $0x2e8] sm:$0xf0]  ;;  %v7534_v10 = vld [vmem:[#allocation5 + $0x390] sm:$0xf] }
 0x34f   :  { %2705 = vmatpush.bf16.msra.mxu0 %v7563_v29  ;;  %2670 = vmatpush.bf16.msrb.mxu1 %v7591_v31  ;;  %v10194_v14 = vld [vmem:[#allocation5 + $0x6cc] sm:$0xf]  ;;  %v7435_v21 = vor.u32 %v10066_v11, %v7432_v12  ;;  %v10095_v12 = vld [vmem:[#allocation5 + $0x3ac] sm:$0xf0] }
 0x350   :  { %2685 = vmatmul.bf16.vlgmr.msrb.gmra.mxu2 %v11150_v39  ;;  %v7944_v15 = vld [vmem:[#allocation5 + $0x6e8] sm:$0xf0] }
 0x351   :  { %2733 = vmatpush.bf16.msra.mxu2 %v8075_v41  ;;  %2692 = vmatpush.bf16.msrb.mxu3 %v7275_v46  ;;  %v10130_v16 = vld [vmem:[#allocation5 + $0x4cc] sm:$0xf]  ;;  %v7947_v24 = vor.u32 %v10194_v14, %v7944_v15  ;;  %v10223_v14 = vld [vmem:[#allocation5 + $0x7ac] sm:$0xf0]  ;;  %v7823_v15 = vor.u32 %v10167_v5, %v7822_v4 }
 0x352   :  { %2671 = vmatmul.bf16.vlgmr.msrb.gmra.mxu1 %v11158_v44  ;;  %v7688_v19 = vld [vmem:[#allocation5 + $0x4e8] sm:$0xf0]  ;;  %v7662_v5 = vld [vmem:[#allocation5 + $0x490] sm:$0xf] }
 0x353   :  { %2719 = vmatpush.bf16.msra.mxu1 %v7819_v18  ;;  %2706 = vmatpush.bf16.msra.mxu0 %v7531_v47  ;;  %v9994_v23 = vld [vmem:[#allocation5 + $0x8c] sm:$0xf]  ;;  %v7691_v32 = vor.u32 %v10130_v16, %v7688_v19  ;;  %v7790_v19 = vld [vmem:[#allocation5 + $0x590] sm:$0xf] }
 0x354   :  { %v7144_v25 = vld [vmem:[#allocation5 + $0xa8] sm:$0xf0] }
 0x355   :  { %2734 = vmatpush.bf16.msra.mxu2 %v8043_v17  ;;  %2693 = vmatpush.bf16.msrb.mxu3 %v7243_v56  ;;  %v10058_v28 = vld [vmem:[#allocation5 + $0x28c] sm:$0xf]  ;;  %v7147_v29 = vor.u32 %v9994_v23, %v7144_v25  ;;  %v7566_v56 = vld [vmem:[#allocation5 + $0x3d0] sm:$0xf] }
 0x356   :  { %v7400_v26 = vld [vmem:[#allocation5 + $0x2a8] sm:$0xf0]  ;;  %v10023_v25 = vld [vmem:[#allocation5 + $0x16c] sm:$0xf0] }
 0x357   :  { %2720 = vmatpush.bf16.msra.mxu1 %v7787_v51  ;;  %2707 = vmatpush.bf16.msra.mxu0 %v7499_v27  ;;  %v10186_v36 = vld [vmem:[#allocation5 + $0x68c] sm:$0xf]  ;;  %v7403_v34 = vor.u32 %v10058_v28, %v7400_v26  ;;  %v10103_v27 = vld [vmem:[#allocation5 + $0x3ec] sm:$0xf0] }
 0x358   :  { %v7912_v37 = vld [vmem:[#allocation5 + $0x6a8] sm:$0xf0]  ;;  %v7502_v28 = vld [vmem:[#allocation5 + $0x350] sm:$0xf] }
 0x359   :  { %2735 = vmatpush.bf16.msra.mxu2 %v8011_v59  ;;  %2694 = vmatpush.bf16.msrb.mxu3 %v7211_v6  ;;  %v10122_v22 = vld [vmem:[#allocation5 + $0x48c] sm:$0xf]  ;;  %v7915_v31 = vor.u32 %v10186_v36, %v7912_v37  ;;  %v10231_v59 = vld [vmem:[#allocation5 + $0x7ec] sm:$0xf0]  ;;  %v7567_v6 = vor.u32 %v10103_v27, %v7566_v56 }
 0x35a   :  { %v7656_v30 = vld [vmem:[#allocation5 + $0x4a8] sm:$0xf0]  ;;  %v10087_v26 = vld [vmem:[#allocation5 + $0x36c] sm:$0xf0] }
 0x35b   :  { %2721 = vmatpush.bf16.msra.mxu1 %v7755_v63  ;;  %2708 = vmatpush.bf16.msra.mxu0 %v7467_v7  ;;  %v9986_v41 = vld [vmem:[#allocation5 + $0x4c] sm:$0xf]  ;;  %v7659_v18 = vor.u32 %v10122_v22, %v7656_v30  ;;  %v8079_v7 = vor.u32 %v10231_v59, %v8078_v58  ;;  %v10215_v36 = vld [vmem:[#allocation5 + $0x76c] sm:$0xf0] }
 0x35c   :  { %v7112_v3 = vld [vmem:[#allocation5 + $0x68] sm:$0xf0]  ;;  %v7758_v30 = vld [vmem:[#allocation5 + $0x550] sm:$0xf] }
 0x35d   :  { %2736 = vmatpush.bf16.msra.mxu2 %v7979_v9  ;;  %2695 = vmatpush.bf16.msrb.mxu3 %v7179_v20  ;;  %v10050_v42 = vld [vmem:[#allocation5 + $0x24c] sm:$0xf]  ;;  %v7115_v46 = vor.u32 %v9986_v41, %v7112_v3  ;;  %v10031_v9 = vld [vmem:[#allocation5 + $0x1ac] sm:$0xf0] }
 0x35e   :  { %v7368_v43 = vld [vmem:[#allocation5 + $0x268] sm:$0xf0]  ;;  %v7279_v16 = vor.u32 %v10031_v9, %v7278_v8  ;;  %v10159_v20 = vld [vmem:[#allocation5 + $0x5ac] sm:$0xf0] }
 0x35f   :  { %2722 = vmatpush.bf16.msra.mxu1 %v7723_v13  ;;  %2709 = vmatpush.bf16.msra.mxu0 %v7435_v21  ;;  %v10178_v35 = vld [vmem:[#allocation5 + $0x64c] sm:$0xf]  ;;  %v7371_v47 = vor.u32 %v10050_v42, %v7368_v43  ;;  %v8046_v13 = vld [vmem:[#allocation5 + $0x790] sm:$0xf]  ;;  %v7535_v21 = vor.u32 %v10095_v12, %v7534_v10  ;;  %v7791_v37 = vor.u32 %v10159_v20, %v7790_v19 }
 0x360   :  { %v7880_v57 = vld [vmem:[#allocation5 + $0x668] sm:$0xf0]  ;;  %v8047_v23 = vor.u32 %v10223_v14, %v8046_v13  ;;  %v10015_v3 = vld [vmem:[#allocation5 + $0x12c] sm:$0xf0] }
 0x361   :  { %2737 = vmatpush.bf16.msra.mxu2 %v7947_v24  ;;  %v10114_v2 = vld [vmem:[#allocation5 + $0x44c] sm:$0xf]  ;;  %2696 = vmatpush.bf16.msrb.mxu3 %v7147_v29  ;;  %v7883_v49 = vor.u32 %v10178_v35, %v7880_v57  ;;  %v7246_v24 = vld [vmem:[#allocation5 + $0x150] sm:$0xf] }
 0x362   :  { %v7624_v45 = vld [vmem:[#allocation5 + $0x468] sm:$0xf0]  ;;  %v7247_v22 = vor.u32 %v10023_v25, %v7246_v24  ;;  %v10151_v29 = vld [vmem:[#allocation5 + $0x56c] sm:$0xf0] }
 0x363   :  { %2723 = vmatpush.bf16.msra.mxu1 %v7691_v32  ;;  %2710 = vmatpush.bf16.msra.mxu0 %v7403_v34  ;;  %v9978_v48 = vld [vmem:[#allocation5 + $0xc] sm:$0xf]  ;;  %v7627_v53 = vor.u32 %v10114_v2, %v7624_v45  ;;  %v8014_v32 = vld [vmem:[#allocation5 + $0x750] sm:$0xf]  ;;  %v7503_v34 = vor.u32 %v10087_v26, %v7502_v28  ;;  %v7759_v57 = vor.u32 %v10151_v29, %v7758_v30  ;;  %v10099_v29 = vld [vmem:[#allocation5 + $0x3d4] sm:$0xf] }
 0x364   :  { %v7080_v17 = vld [vmem:[#allocation5 + $0x28] sm:$0xf0]  ;;  %v8015_v41 = vor.u32 %v10215_v36, %v8014_v32  ;;  %v7470_v42 = vld [vmem:[#allocation5 + $0x310] sm:$0xf] }
 0x365   :  { %v10042_v33 = vld [vmem:[#allocation5 + $0x20c] sm:$0xf]  ;;  %2738 = vmatpush.bf16.msra.mxu2 %v7915_v31  ;;  %2697 = vmatpush.bf16.msrb.mxu3 %v7115_v46  ;;  %v7083_v60 = vor.u32 %v9978_v48, %v7080_v17  ;;  %v7214_v31 = vld [vmem:[#allocation5 + $0x110] sm:$0xf] }
 0x366   :  { %v7336_v50 = vld [vmem:[#allocation5 + $0x228] sm:$0xf0]  ;;  %v10079_v43 = vld [vmem:[#allocation5 + $0x32c] sm:$0xf0]  ;;  %v7215_v2 = vor.u32 %v10015_v3, %v7214_v31  ;;  %v8080_v3 = vld [vmem:[#allocation5 + $0x7f0] sm:$0xf0] }
 0x367   :  { %v10170_v51 = vld [vmem:[#allocation5 + $0x60c] sm:$0xf]  ;;  %2724 = vmatpush.bf16.msra.mxu1 %v7659_v18  ;;  %2711 = vmatpush.bf16.msra.mxu0 %v7371_v47  ;;  %v7339_v61 = vor.u32 %v10042_v33, %v7336_v50  ;;  %v7982_v18 = vld [vmem:[#allocation5 + $0x710] sm:$0xf]  ;;  %v7471_v47 = vor.u32 %v10079_v43, %v7470_v42 }
 0x368   :  { %v7848_v52 = vld [vmem:[#allocation5 + $0x628] sm:$0xf0]  ;;  %v10207_v35 = vld [vmem:[#allocation5 + $0x72c] sm:$0xf0] }
 0x369   :  { %v10106_v62 = vld [vmem:[#allocation5 + $0x40c] sm:$0xf]  ;;  %2739 = vmatpush.bf16.msra.mxu2 %v7883_v49  ;;  %v7851_v0 = vor.u32 %v10170_v51, %v7848_v52  ;;  %2698 = vmatpush.bf16.msrb.mxu3 %v7083_v60  ;;  %v7726_v45 = vld [vmem:[#allocation5 + $0x510] sm:$0xf]  ;;  %v7983_v48 = vor.u32 %v10207_v35, %v7982_v18 }
 0x36a   :  { %v7592_v63 = vld [vmem:[#allocation5 + $0x428] sm:$0xf0]  ;;  %v10143_v46 = vld [vmem:[#allocation5 + $0x52c] sm:$0xf0] }
 0x36b   :  { %2725 = vmatpush.bf16.msra.mxu1 %v7627_v53  ;;  %v7595_v11 = vor.u32 %v10106_v62, %v7592_v63  ;;  %2712 = vmatpush.bf16.msra.mxu0 %v7339_v61  ;;  %v7182_v17 = vld [vmem:[#allocation5 + $0xd0] sm:$0xf]  ;;  %v7727_v53 = vor.u32 %v10143_v46, %v7726_v45 }
 0x36c   :  { %2699 = vmatmul.bf16.vlgmr.msrb.gmra.mxu3 %v11146_v38  ;;  %v10007_v33 = vld [vmem:[#allocation5 + $0xec] sm:$0xf0] }
 0x36d   :  { %2740 = vmatpush.bf16.msra.mxu2 %v7851_v0  ;;  %2747 = vmatpush.bf16.msra.mxu3 %v7311_v1  ;;  %v7438_v49 = vld [vmem:[#allocation5 + $0x2d0] sm:$0xf]  ;;  %v7183_v54 = vor.u32 %v10007_v33, %v7182_v17  ;;  %v7280_v33 = vld [vmem:[#allocation5 + $0x1b0] sm:$0xf0] }
 0x36e   :  { %2713 = vmatmul.bf16.vlgmr.msra.gmra.mxu0 %v11154_v40  ;;  %v10071_v50 = vld [vmem:[#allocation5 + $0x2ec] sm:$0xf0] }
 0x36f   :  { %2761 = vmatpush.bf16.msrb.mxu0 %v7567_v6  ;;  %2726 = vmatpush.bf16.msra.mxu1 %v7595_v11  ;;  %v7950_v51 = vld [vmem:[#allocation5 + $0x6d0] sm:$0xf]  ;;  %v7439_v27 = vor.u32 %v10071_v50, %v7438_v49  ;;  %v10091_v49 = vld [vmem:[#allocation5 + $0x394] sm:$0xf] }
 0x370   :  { %2741 = vmatmul.bf16.vlgmr.msra.gmra.mxu2 %v11150_v39  ;;  %v10199_v52 = vld [vmem:[#allocation5 + $0x6ec] sm:$0xf0]  ;;  %v7536_v50 = vld [vmem:[#allocation5 + $0x3b0] sm:$0xf0] }
 0x371   :  { %2789 = vmatpush.bf16.msrb.mxu2 %v8079_v7  ;;  %2748 = vmatpush.bf16.msra.mxu3 %v7279_v16  ;;  %v10135_v56 = vld [vmem:[#allocation5 + $0x4ec] sm:$0xf0]  ;;  %v7951_v58 = vor.u32 %v10199_v52, %v7950_v51  ;;  %v10219_v52 = vld [vmem:[#allocation5 + $0x794] sm:$0xf] }
 0x372   :  { %2727 = vmatmul.bf16.vlgmr.msra.gmra.mxu1 %v11158_v44  ;;  %v7150_v59 = vld [vmem:[#allocation5 + $0x90] sm:$0xf]  ;;  %v7695_v1 = vor.u32 %v10135_v56, %v7694_v55  ;;  %v7792_v55 = vld [vmem:[#allocation5 + $0x5b0] sm:$0xf0] }
 0x373   :  { %2775 = vmatpush.bf16.msrb.mxu1 %v7823_v15  ;;  %2762 = vmatpush.bf16.msrb.mxu0 %v7535_v21  ;;  %v9999_v60 = vld [vmem:[#allocation5 + $0xac] sm:$0xf0] }
 0x374   :  { %v7406_v61 = vld [vmem:[#allocation5 + $0x290] sm:$0xf]  ;;  %v7151_v4 = vor.u32 %v9999_v60, %v7150_v59  ;;  %v7248_v60 = vld [vmem:[#allocation5 + $0x170] sm:$0xf0] }
 0x375   :  { %2790 = vmatpush.bf16.msrb.mxu2 %v8047_v23  ;;  %2749 = vmatpush.bf16.msra.mxu3 %v7247_v22  ;;  %v10063_v62 = vld [vmem:[#allocation5 + $0x2ac] sm:$0xf0]  ;;  %v7312_v22 = vld [vmem:[#allocation5 + $0x1f0] sm:$0xf0] }
 0x376   :  { %v7918_v63 = vld [vmem:[#allocation5 + $0x690] sm:$0xf]  ;;  %v7407_v7 = vor.u32 %v10063_v62, %v7406_v61  ;;  %v10083_v61 = vld [vmem:[#allocation5 + $0x354] sm:$0xf] }
 0x377   :  { %2776 = vmatpush.bf16.msrb.mxu1 %v7791_v37  ;;  %2763 = vmatpush.bf16.msrb.mxu0 %v7503_v34  ;;  %v10191_v0 = vld [vmem:[#allocation5 + $0x6ac] sm:$0xf0]  ;;  %v10035_v37 = vld [vmem:[#allocation5 + $0x1d4] sm:$0xf] }
 0x378   :  { %v10127_v6 = vld [vmem:[#allocation5 + $0x4ac] sm:$0xf0]  ;;  %v7919_v8 = vor.u32 %v10191_v0, %v7918_v63  ;;  %v7568_v34 = vld [vmem:[#allocation5 + $0x3f0] sm:$0xf0]  ;;  %v7315_v45 = vor.u32 %v10035_v37, %v7312_v22 }
 0x379   :  { %2791 = vmatpush.bf16.msrb.mxu2 %v8015_v41  ;;  %2750 = vmatpush.bf16.msra.mxu3 %v7215_v2  ;;  %v7118_v9 = vld [vmem:[#allocation5 + $0x50] sm:$0xf]  ;;  %v7663_v15 = vor.u32 %v10127_v6, %v7662_v5  ;;  %v10227_v41 = vld [vmem:[#allocation5 + $0x7d4] sm:$0xf]  ;;  %v7571_v46 = vor.u32 %v10099_v29, %v7568_v34 }
 0x37a   :  { %v9991_v10 = vld [vmem:[#allocation5 + $0x6c] sm:$0xf0]  ;;  %v7824_v2 = vld [vmem:[#allocation5 + $0x5f0] sm:$0xf0] }
 0x37b   :  { %2777 = vmatpush.bf16.msrb.mxu1 %v7759_v57  ;;  %2764 = vmatpush.bf16.msrb.mxu0 %v7471_v47  ;;  %v7374_v11 = vld [vmem:[#allocation5 + $0x250] sm:$0xf]  ;;  %v7119_v19 = vor.u32 %v9991_v10, %v7118_v9  ;;  %v10163_v57 = vld [vmem:[#allocation5 + $0x5d4] sm:$0xf] }
 0x37c   :  { %v10055_v12 = vld [vmem:[#allocation5 + $0x26c] sm:$0xf0]  ;;  %v10027_v47 = vld [vmem:[#allocation5 + $0x194] sm:$0xf]  ;;  %v7827_v51 = vor.u32 %v10163_v57, %v7824_v2 }
 0x37d   :  { %2792 = vmatpush.bf16.msrb.mxu2 %v7983_v48  ;;  %2751 = vmatpush.bf16.msra.mxu3 %v7183_v54  ;;  %v7886_v13 = vld [vmem:[#allocation5 + $0x650] sm:$0xf]  ;;  %v7375_v24 = vor.u32 %v10055_v12, %v7374_v11  ;;  %v8083_v48 = vor.u32 %v10227_v41, %v8080_v3  ;;  %v10155_v54 = vld [vmem:[#allocation5 + $0x594] sm:$0xf]  ;;  %v7283_v56 = vor.u32 %v10027_v47, %v7280_v33 }
 0x37e   :  { %v10183_v14 = vld [vmem:[#allocation5 + $0x66c] sm:$0xf0]  ;;  %v7504_v62 = vld [vmem:[#allocation5 + $0x370] sm:$0xf0]  ;;  %v7795_v63 = vor.u32 %v10155_v54, %v7792_v55 }
 0x37f   :  { %2778 = vmatpush.bf16.msrb.mxu1 %v7727_v53  ;;  %2765 = vmatpush.bf16.msrb.mxu0 %v7439_v27  ;;  %v7630_v16 = vld [vmem:[#allocation5 + $0x450] sm:$0xf]  ;;  %v7887_v25 = vor.u32 %v10183_v14, %v7886_v13  ;;  %v8048_v53 = vld [vmem:[#allocation5 + $0x7b0] sm:$0xf0]  ;;  %v7539_v27 = vor.u32 %v10091_v49, %v7536_v50 }
 0x380   :  { %v10119_v20 = vld [vmem:[#allocation5 + $0x46c] sm:$0xf0]  ;;  %v8051_v59 = vor.u32 %v10219_v52, %v8048_v53  ;;  %v10211_v0 = vld [vmem:[#allocation5 + $0x754] sm:$0xf] }
 0x381   :  { %2793 = vmatpush.bf16.msrb.mxu2 %v7951_v58  ;;  %2752 = vmatpush.bf16.msra.mxu3 %v7151_v4  ;;  %v7086_v21 = vld [vmem:[#allocation5 + $0x10] sm:$0xf]  ;;  %v7631_v30 = vor.u32 %v10119_v20, %v7630_v16  ;;  %v10019_v58 = vld [vmem:[#allocation5 + $0x154] sm:$0xf] }
 0x382   :  { %v9983_v23 = vld [vmem:[#allocation5 + $0x2c] sm:$0xf0]  ;;  %v10147_v4 = vld [vmem:[#allocation5 + $0x554] sm:$0xf]  ;;  %v7251_v6 = vor.u32 %v10019_v58, %v7248_v60 }
 0x383   :  { %2779 = vmatpush.bf16.msrb.mxu1 %v7695_v1  ;;  %2766 = vmatpush.bf16.msrb.mxu0 %v7407_v7  ;;  %v7342_v28 = vld [vmem:[#allocation5 + $0x210] sm:$0xf]  ;;  %v7087_v31 = vor.u32 %v9983_v23, %v7086_v21  ;;  %v8016_v1 = vld [vmem:[#allocation5 + $0x770] sm:$0xf0]  ;;  %v7507_v7 = vor.u32 %v10083_v61, %v7504_v62 }
 0x384   :  { %v10047_v26 = vld [vmem:[#allocation5 + $0x22c] sm:$0xf0]  ;;  %v7760_v5 = vld [vmem:[#allocation5 + $0x570] sm:$0xf0]  ;;  %v8019_v9 = vor.u32 %v10211_v0, %v8016_v1 }
 0x385   :  { %2794 = vmatpush.bf16.msrb.mxu2 %v7919_v8  ;;  %v7854_v32 = vld [vmem:[#allocation5 + $0x610] sm:$0xf]  ;;  %2753 = vmatpush.bf16.msra.mxu3 %v7119_v19  ;;  %v7343_v18 = vor.u32 %v10047_v26, %v7342_v28  ;;  %v10011_v8 = vld [vmem:[#allocation5 + $0x114] sm:$0xf]  ;;  %v7763_v13 = vor.u32 %v10147_v4, %v7760_v5 }
 0x386   :  { %v10175_v36 = vld [vmem:[#allocation5 + $0x62c] sm:$0xf0]  ;;  %v7216_v10 = vld [vmem:[#allocation5 + $0x130] sm:$0xf0] }
 0x387   :  { %2780 = vmatpush.bf16.msrb.mxu1 %v7663_v15  ;;  %v7598_v42 = vld [vmem:[#allocation5 + $0x410] sm:$0xf]  ;;  %2767 = vmatpush.bf16.msrb.mxu0 %v7375_v24  ;;  %v7855_v35 = vor.u32 %v10175_v36, %v7854_v32  ;;  %v10075_v11 = vld [vmem:[#allocation5 + $0x314] sm:$0xf]  ;;  %v7219_v20 = vor.u32 %v10011_v8, %v7216_v10  ;;  %v11180_v32 = vld [vmem:[#allocation13] sm:$0xff] }
 0x388   :  { %v10111_v43 = vld [vmem:[#allocation5 + $0x42c] sm:$0xf0]  ;;  %v7472_v12 = vld [vmem:[#allocation5 + $0x330] sm:$0xf0]  ;;  %v1227_v3 = vperm.slane %v11180_v32, 0 }
 0x389   :  { %2795 = vmatpush.bf16.msrb.mxu2 %v7887_v25  ;;  %v7599_v17 = vor.u32 %v10111_v43, %v7598_v42  ;;  %2754 = vmatpush.bf16.msra.mxu3 %v7087_v31  ;;  %v10203_v14 = vld [vmem:[#allocation5 + $0x714] sm:$0xf]  ;;  %v7475_v21 = vor.u32 %v10075_v11, %v7472_v12  ;;  %v7318_v12 = vld [vmem:[#allocation5 + $0x1d8] sm:$0xf] }
 0x38a   :  { %v7984_v15 = vld [vmem:[#allocation5 + $0x730] sm:$0xf0] }
 0x38b   :  { %2781 = vmatpush.bf16.msrb.mxu1 %v7631_v30  ;;  %2768 = vmatpush.bf16.msrb.mxu0 %v7343_v18  ;;  %v10139_v16 = vld [vmem:[#allocation5 + $0x514] sm:$0xf]  ;;  %v7987_v25 = vor.u32 %v10203_v14, %v7984_v15  ;;  %v2546_v57 = vpop.f32.mrf.mxu0  ;;  %v10040_v14 = vld [vmem:[#allocation5 + $0x1f4] sm:$0xf0] }
 0x38c   :  { %2755 = vmatmul.bf16.vlgmr.msra.gmra.mxu3 %v11146_v38  ;;  %v7728_v19 = vld [vmem:[#allocation5 + $0x530] sm:$0xf0]  ;;  %v7574_v15 = vld [vmem:[#allocation5 + $0x3d8] sm:$0xf] }
 0x38d   :  { %2796 = vmatpush.bf16.msrb.mxu2 %v7855_v35  ;;  %2803 = vmatpush.bf16.msrb.mxu3 %v7315_v45  ;;  %v10003_v23 = vld [vmem:[#allocation5 + $0xd4] sm:$0xf]  ;;  %v7731_v36 = vor.u32 %v10139_v16, %v7728_v19  ;;  %v10104_v16 = vld [vmem:[#allocation5 + $0x3f4] sm:$0xf0] }
 0x38e   :  { %2769 = vmatmul.bf16.vlgmr.msrb.gmra.mxu0 %v11154_v40  ;;  %v7184_v24 = vld [vmem:[#allocation5 + $0xf0] sm:$0xf0] }
 0x38f   :  { %2817 = vmatpush.bf16.msra.mxu0 %v7571_v46  ;;  %2782 = vmatpush.bf16.msrb.mxu1 %v7599_v17  ;;  %v10067_v28 = vld [vmem:[#allocation5 + $0x2d4] sm:$0xf]  ;;  %v7187_v34 = vor.u32 %v10003_v23, %v7184_v24  ;;  %v2532_v17 = vpop.f32.mrf.mxu3  ;;  %v2560_v33 = vpop.f32.mrf.mxu1  ;;  %v10232_v23 = vld [vmem:[#allocation5 + $0x7f4] sm:$0xf0] }
 0x390   :  { %2797 = vmatmul.bf16.vlgmr.msrb.gmra.mxu2 %v11150_v39  ;;  %v7440_v26 = vld [vmem:[#allocation5 + $0x2f0] sm:$0xf0]  ;;  %v2533_v52 = vadd.f32 %v2532_v17, %v1227_v3  ;;  %v10224_v17 = vld [vmem:[#allocation5 + $0x7b4] sm:$0xf0] }
 0x391   :  { %2845 = vmatpush.bf16.msra.mxu2 %v8083_v48  ;;  %2804 = vmatpush.bf16.msrb.mxu3 %v7283_v56  ;;  %v10195_v37 = vld [vmem:[#allocation5 + $0x6d4] sm:$0xf]  ;;  %v7443_v41 = vor.u32 %v10067_v28, %v7440_v26 }
 0x392   :  { %2783 = vmatmul.bf16.vlgmr.msrb.gmra.mxu1 %v11158_v44  ;;  %v7952_v22 = vld [vmem:[#allocation5 + $0x6f0] sm:$0xf0]  ;;  %v2547_v61 = vadd.f32 %v2546_v57, %v2533_v52  ;;  %v7542_v57 = vld [vmem:[#allocation5 + $0x398] sm:$0xf] }
 0x393   :  { %2831 = vmatpush.bf16.msra.mxu1 %v7827_v51  ;;  %2818 = vmatpush.bf16.msra.mxu0 %v7539_v27  ;;  %v10131_v30 = vld [vmem:[#allocation5 + $0x4d4] sm:$0xf]  ;;  %v7955_v42 = vor.u32 %v10195_v37, %v7952_v22  ;;  %v2574_v27 = vpop.f32.mrf.mxu2  ;;  %v2548_v28 = vpop.f32.mrf.mxu0  ;;  %v10160_v52 = vld [vmem:[#allocation5 + $0x5b4] sm:$0xf0] }
 0x394   :  { %v7696_v29 = vld [vmem:[#allocation5 + $0x4f0] sm:$0xf0]  ;;  %v2561_v8 = vadd.f32 %v2560_v33, %v2547_v61  ;;  %v10216_v61 = vld [vmem:[#allocation5 + $0x774] sm:$0xf0] }
 0x395   :  { %2846 = vmatpush.bf16.msra.mxu2 %v8051_v59  ;;  %2805 = vmatpush.bf16.msrb.mxu3 %v7251_v6  ;;  %v9995_v31 = vld [vmem:[#allocation5 + $0x94] sm:$0xf]  ;;  %v7699_v2 = vor.u32 %v10131_v30, %v7696_v29  ;;  %v7319_v29 = vor.u32 %v10040_v14, %v7318_v12  ;;  %v7990_v12 = vld [vmem:[#allocation5 + $0x718] sm:$0xf] }
 0x396   :  { %v7152_v43 = vld [vmem:[#allocation5 + $0xb0] sm:$0xf0]  ;;  %v2575_v19 = vadd.f32 %v2574_v27, %v2561_v8  ;;  %v7510_v27 = vld [vmem:[#allocation5 + $0x358] sm:$0xf] }
 0x397   :  { %2832 = vmatpush.bf16.msra.mxu1 %v7795_v63  ;;  %2819 = vmatpush.bf16.msra.mxu0 %v7507_v7  ;;  %v10059_v18 = vld [vmem:[#allocation5 + $0x294] sm:$0xf]  ;;  %v7155_v49 = vor.u32 %v9995_v31, %v7152_v43  ;;  %v2562_v31 = vpop.f32.mrf.mxu1  ;;  %v10016_v8 = vld [vmem:[#allocation5 + $0x134] sm:$0xf0] }
 0x398   :  { %v7408_v35 = vld [vmem:[#allocation5 + $0x2b0] sm:$0xf0]  ;;  %vm2971_vm0 = vcmp.gt.f32.partialorder %v2575_v19, 0.0  ;;  %v2987_v37 = vmul.f32 0.2, %v2575_v19 }
 0x399   :  { %2847 = vmatpush.bf16.msra.mxu2 %v8019_v9  ;;  %2806 = vmatpush.bf16.msrb.mxu3 %v7219_v20  ;;  %v10187_v45 = vld [vmem:[#allocation5 + $0x694] sm:$0xf]  ;;  %v7411_v50 = vor.u32 %v10059_v18, %v7408_v35  ;;  %v7286_v18 = vld [vmem:[#allocation5 + $0x198] sm:$0xf] }
 0x39a   :  { %v7920_v46 = vld [vmem:[#allocation5 + $0x6b0] sm:$0xf0]  ;;  %v10032_v35 = vld [vmem:[#allocation5 + $0x1b4] sm:$0xf0] }
 0x39b   :  { %2833 = vmatpush.bf16.msra.mxu1 %v7763_v13  ;;  %2820 = vmatpush.bf16.msra.mxu0 %v7475_v21  ;;  %v10123_v47 = vld [vmem:[#allocation5 + $0x494] sm:$0xf]  ;;  %v7923_v53 = vor.u32 %v10187_v45, %v7920_v46  ;;  %v8086_v21 = vld [vmem:[#allocation5 + $0x7d8] sm:$0xf] }
 0x39c   :  { %v7664_v48 = vld [vmem:[#allocation5 + $0x4b0] sm:$0xf0]  ;;  %v8087_v43 = vor.u32 %v10232_v23, %v8086_v21  ;;  %v7190_v23 = vld [vmem:[#allocation5 + $0xd8] sm:$0xf] }
 0x39d   :  { %2848 = vmatpush.bf16.msra.mxu2 %v7987_v25  ;;  %2807 = vmatpush.bf16.msrb.mxu3 %v7187_v34  ;;  %v9987_v51 = vld [vmem:[#allocation5 + $0x54] sm:$0xf]  ;;  %v7667_v58 = vor.u32 %v10123_v47, %v7664_v48  ;;  %v2534_v25 = vpop.f32.mrf.mxu3  ;;  %v7830_v34 = vld [vmem:[#allocation5 + $0x5d8] sm:$0xf] }
 0x39e   :  { %v7120_v54 = vld [vmem:[#allocation5 + $0x70] sm:$0xf0]  ;;  %v2535_v22 = vadd.f32 %v2534_v25, %v1227_v3  ;;  %v10096_v47 = vld [vmem:[#allocation5 + $0x3b4] sm:$0xf0]  ;;  %v2576_v3 = vpop.f32.mrf.mxu2 }
 0x39f   :  { %2834 = vmatpush.bf16.msra.mxu1 %v7731_v36  ;;  %2821 = vmatpush.bf16.msra.mxu0 %v7443_v41  ;;  %v10051_v55 = vld [vmem:[#allocation5 + $0x254] sm:$0xf]  ;;  %v7123_v1 = vor.u32 %v9987_v51, %v7120_v54  ;;  %v10168_v41 = vld [vmem:[#allocation5 + $0x5f4] sm:$0xf0] }
 0x3a0   :  { %v7376_v56 = vld [vmem:[#allocation5 + $0x270] sm:$0xf0]  ;;  %v2549_v45 = vadd.f32 %v2548_v28, %v2535_v22  ;;  %v8054_v48 = vld [vmem:[#allocation5 + $0x798] sm:$0xf]  ;;  %v7831_v33 = vor.u32 %v10168_v41, %v7830_v34  ;;  %v1228_v34 = vperm.slane %v11180_v32, 1 }
 0x3a1   :  { %2849 = vmatpush.bf16.msra.mxu2 %v7955_v42  ;;  %v10179_v59 = vld [vmem:[#allocation5 + $0x654] sm:$0xf]  ;;  %2808 = vmatpush.bf16.msrb.mxu3 %v7155_v49  ;;  %v7379_v4 = vor.u32 %v10051_v55, %v7376_v56  ;;  %v7575_v42 = vor.u32 %v10104_v16, %v7574_v15  ;;  %v7798_v51 = vld [vmem:[#allocation5 + $0x598] sm:$0xf]  ;;  %v8055_v54 = vor.u32 %v10224_v17, %v8054_v48 }
 0x3a2   :  { %v7888_v60 = vld [vmem:[#allocation5 + $0x670] sm:$0xf0]  ;;  %v2563_v49 = vadd.f32 %v2562_v31, %v2549_v45  ;;  %v7254_v55 = vld [vmem:[#allocation5 + $0x158] sm:$0xf] }
 0x3a3   :  { %2835 = vmatpush.bf16.msra.mxu1 %v7699_v2  ;;  %v10115_v62 = vld [vmem:[#allocation5 + $0x454] sm:$0xf]  ;;  %2822 = vmatpush.bf16.msra.mxu0 %v7411_v50  ;;  %v7891_v9 = vor.u32 %v10179_v59, %v7888_v60  ;;  %v11187_v2 = vsel %vm2971_vm0, %v2575_v19, %v2987_v37  ;;  %v7287_v50 = vor.u32 %v10032_v35, %v7286_v18  ;;  %v10024_v56 = vld [vmem:[#allocation5 + $0x174] sm:$0xf0] }
 0x3a4   :  { %v7632_v63 = vld [vmem:[#allocation5 + $0x470] sm:$0xf0]  ;;  %v10088_v59 = vld [vmem:[#allocation5 + $0x374] sm:$0xf0] }
 0x3a5   :  { %v9979_v0 = vld [vmem:[#allocation5 + $0x14] sm:$0xf]  ;;  %2850 = vmatpush.bf16.msra.mxu2 %v7923_v53  ;;  %v7635_v13 = vor.u32 %v10115_v62, %v7632_v63  ;;  %2809 = vmatpush.bf16.msrb.mxu3 %v7123_v1  ;;  %v7543_v53 = vor.u32 %v10096_v47, %v7542_v57  ;;  %v8022_v60 = vld [vmem:[#allocation5 + $0x758] sm:$0xf]  ;;  %v7799_v62 = vor.u32 %v10160_v52, %v7798_v51 }
 0x3a6   :  { %v7088_v5 = vld [vmem:[#allocation5 + $0x30] sm:$0xf0]  ;;  %v7766_v1 = vld [vmem:[#allocation5 + $0x558] sm:$0xf] }
 0x3a7   :  { %v10043_v6 = vld [vmem:[#allocation5 + $0x214] sm:$0xf]  ;;  %2836 = vmatpush.bf16.msra.mxu1 %v7667_v58  ;;  %v7091_v20 = vor.u32 %v9979_v0, %v7088_v5  ;;  %2823 = vmatpush.bf16.msra.mxu0 %v7379_v4  ;;  %v2577_v58 = vadd.f32 %v2576_v3, %v2563_v49  ;;  %v7255_v0 = vor.u32 %v10024_v56, %v7254_v55  ;;  %v10152_v4 = vld [vmem:[#allocation5 + $0x574] sm:$0xf0] }
 0x3a8   :  { %v7344_v7 = vld [vmem:[#allocation5 + $0x230] sm:$0xf0]  ;;  %v7511_v5 = vor.u32 %v10088_v59, %v7510_v27  ;;  %v7767_v14 = vor.u32 %v10152_v4, %v7766_v1  ;;  %v7734_v16 = vld [vmem:[#allocation5 + $0x518] sm:$0xf] }
 0x3a9   :  { %v10171_v10 = vld [vmem:[#allocation5 + $0x614] sm:$0xf]  ;;  %v7347_v26 = vor.u32 %v10043_v6, %v7344_v7  ;;  %2851 = vmatpush.bf16.msra.mxu2 %v7891_v9  ;;  %2810 = vmatpush.bf16.msrb.mxu3 %v7091_v20  ;;  %vm2979_vm1 = vcmp.gt.f32.partialorder %v2577_v58, 0.0  ;;  %v2995_v63 = vmul.f32 0.2, %v2577_v58  ;;  %v8023_v6 = vor.u32 %v10216_v61, %v8022_v60 }
 0x3aa   :  { %v7856_v11 = vld [vmem:[#allocation5 + $0x630] sm:$0xf0]  ;;  %v7222_v7 = vld [vmem:[#allocation5 + $0x118] sm:$0xf] }
 0x3ab   :  { %v10107_v24 = vld [vmem:[#allocation5 + $0x414] sm:$0xf]  ;;  %v7859_v30 = vor.u32 %v10171_v10, %v7856_v11  ;;  %2837 = vmatpush.bf16.msra.mxu1 %v7635_v13  ;;  %2824 = vmatpush.bf16.msra.mxu0 %v7347_v26  ;;  %v7478_v9 = vld [vmem:[#allocation5 + $0x318] sm:$0xf]  ;;  %v11192_v10 = vsel %vm2979_vm1, %v2577_v58, %v2995_v63  ;;  %v7223_v15 = vor.u32 %v10016_v8, %v7222_v7  ;;  %v2602_v35 = vpop.f32.mrf.mxu0 }
 0x3ac   :  { %v7600_v36 = vld [vmem:[#allocation5 + $0x430] sm:$0xf0]  ;;  %2811 = vmatmul.bf16.vlgmr.msrb.gmra.mxu3 %v11146_v38  ;;  %v10080_v11 = vld [vmem:[#allocation5 + $0x334] sm:$0xf0] }
 0x3ad   :  { %v7603_v46 = vor.u32 %v10107_v24, %v7600_v36  ;;  %2852 = vmatpush.bf16.msra.mxu2 %v7859_v30  ;;  %2859 = vmatpush.bf16.msra.mxu3 %v7319_v29  ;;  %v10208_v13 = vld [vmem:[#allocation5 + $0x734] sm:$0xf0]  ;;  %v7479_v20 = vor.u32 %v10080_v11, %v7478_v9 }
 0x3ae   :  { %2825 = vmatmul.bf16.vlgmr.msra.gmra.mxu0 %v11154_v40  ;;  %v10144_v19 = vld [vmem:[#allocation5 + $0x534] sm:$0xf0]  ;;  %v7991_v21 = vor.u32 %v10208_v13, %v7990_v12  ;;  %v10036_v13 = vld [vmem:[#allocation5 + $0x1dc] sm:$0xf] }
 0x3af   :  { %2873 = vmatpush.bf16.msrb.mxu0 %v7575_v42  ;;  %2838 = vmatpush.bf16.msra.mxu1 %v7603_v46  ;;  %v10008_v24 = vld [vmem:[#allocation5 + $0xf4] sm:$0xf0]  ;;  %v7735_v37 = vor.u32 %v10144_v19, %v7734_v16  ;;  %v2588_v48 = vpop.f32.mrf.mxu3  ;;  %v2616_v17 = vpop.f32.mrf.mxu1  ;;  %v7576_v16 = vld [vmem:[#allocation5 + $0x3f8] sm:$0xf0] }
 0x3b0   :  { %2853 = vmatmul.bf16.vlgmr.msra.gmra.mxu2 %v11150_v39  ;;  %v7446_v25 = vld [vmem:[#allocation5 + $0x2d8] sm:$0xf]  ;;  %v7191_v22 = vor.u32 %v10008_v24, %v7190_v23  ;;  %v8088_v23 = vld [vmem:[#allocation5 + $0x7f8] sm:$0xf0] }
 0x3b1   :  { %2901 = vmatpush.bf16.msrb.mxu2 %v8087_v43  ;;  %2860 = vmatpush.bf16.msra.mxu3 %v7287_v50  ;;  %v10072_v28 = vld [vmem:[#allocation5 + $0x2f4] sm:$0xf0]  ;;  %v2589_v50 = vadd.f32 %v2588_v48, %v1228_v34  ;;  %v7288_v48 = vld [vmem:[#allocation5 + $0x1b8] sm:$0xf0] }
 0x3b2   :  { %2839 = vmatmul.bf16.vlgmr.msra.gmra.mxu1 %v11158_v44  ;;  %v7958_v26 = vld [vmem:[#allocation5 + $0x6d8] sm:$0xf]  ;;  %v7447_v41 = vor.u32 %v10072_v28, %v7446_v25 }
 0x3b3   :  { %2887 = vmatpush.bf16.msrb.mxu1 %v7831_v33  ;;  %2874 = vmatpush.bf16.msrb.mxu0 %v7543_v53  ;;  %v10200_v36 = vld [vmem:[#allocation5 + $0x6f4] sm:$0xf0]  ;;  %v2630_v56 = vpop.f32.mrf.mxu2  ;;  %v2603_v60 = vadd.f32 %v2602_v35, %v2589_v50  ;;  %v2604_v28 = vpop.f32.mrf.mxu0  ;;  %v10028_v35 = vld [vmem:[#allocation5 + $0x19c] sm:$0xf] }
 0x3b4   :  { %v7702_v30 = vld [vmem:[#allocation5 + $0x4d8] sm:$0xf]  ;;  %v7959_v31 = vor.u32 %v10200_v36, %v7958_v26  ;;  %v8056_v50 = vld [vmem:[#allocation5 + $0x7b8] sm:$0xf0] }
 0x3b5   :  { %2902 = vmatpush.bf16.msrb.mxu2 %v8055_v54  ;;  %2861 = vmatpush.bf16.msra.mxu3 %v7255_v0  ;;  %v10136_v29 = vld [vmem:[#allocation5 + $0x4f4] sm:$0xf0]  ;;  %v2617_v7 = vadd.f32 %v2616_v17, %v2603_v60  ;;  %v10092_v17 = vld [vmem:[#allocation5 + $0x39c] sm:$0xf] }
 0x3b6   :  { %v7158_v42 = vld [vmem:[#allocation5 + $0x98] sm:$0xf]  ;;  %v7703_v47 = vor.u32 %v10136_v29, %v7702_v30  ;;  %v10084_v60 = vld [vmem:[#allocation5 + $0x35c] sm:$0xf] }
 0x3b7   :  { %2888 = vmatpush.bf16.msrb.mxu1 %v7799_v62  ;;  %2875 = vmatpush.bf16.msrb.mxu0 %v7511_v5  ;;  %v10000_v43 = vld [vmem:[#allocation5 + $0xb4] sm:$0xf0]  ;;  %v2631_v19 = vadd.f32 %v2630_v56, %v2617_v7  ;;  %v2590_v25 = vpop.f32.mrf.mxu3  ;;  %v10020_v56 = vld [vmem:[#allocation5 + $0x15c] sm:$0xf] }
 0x3b8   :  { %v7414_v18 = vld [vmem:[#allocation5 + $0x298] sm:$0xf]  ;;  %v7159_v3 = vor.u32 %v10000_v43, %v7158_v42  ;;  %v2618_v42 = vpop.f32.mrf.mxu1 }
 0x3b9   :  { %2903 = vmatpush.bf16.msrb.mxu2 %v8023_v6  ;;  %2862 = vmatpush.bf16.msra.mxu3 %v7223_v15  ;;  %v10064_v57 = vld [vmem:[#allocation5 + $0x2b4] sm:$0xf0]  ;;  %v10100_v15 = vld [vmem:[#allocation5 + $0x3dc] sm:$0xf]  ;;  %vm2972_vm2 = vcmp.gt.f32.partialorder %v2631_v19, 0.0 }
 0x3ba   :  { %v7926_v45 = vld [vmem:[#allocation5 + $0x698] sm:$0xf]  ;;  %v7415_v51 = vor.u32 %v10064_v57, %v7414_v18  ;;  %v7579_v18 = vor.u32 %v10100_v15, %v7576_v16  ;;  %v10204_v16 = vld [vmem:[#allocation5 + $0x71c] sm:$0xf] }
 0x3bb   :  { %2889 = vmatpush.bf16.msrb.mxu1 %v7767_v14  ;;  %2876 = vmatpush.bf16.msrb.mxu0 %v7479_v20  ;;  %v10192_v46 = vld [vmem:[#allocation5 + $0x6b4] sm:$0xf0]  ;;  %v7320_v14 = vld [vmem:[#allocation5 + $0x1f8] sm:$0xf0] }
 0x3bc   :  { %v7670_v33 = vld [vmem:[#allocation5 + $0x498] sm:$0xf]  ;;  %v7927_v52 = vor.u32 %v10192_v46, %v7926_v45  ;;  %v7323_v43 = vor.u32 %v10036_v13, %v7320_v14  ;;  %v10076_v13 = vld [vmem:[#allocation5 + $0x31c] sm:$0xf] }
 0x3bd   :  { %2904 = vmatpush.bf16.msrb.mxu2 %v7991_v21  ;;  %2863 = vmatpush.bf16.msra.mxu3 %v7191_v22  ;;  %v10128_v49 = vld [vmem:[#allocation5 + $0x4b4] sm:$0xf0]  ;;  %v10228_v21 = vld [vmem:[#allocation5 + $0x7dc] sm:$0xf]  ;;  %v2591_v22 = vadd.f32 %v2590_v25, %v1228_v34  ;;  %v2632_v34 = vpop.f32.mrf.mxu2 }
 0x3be   :  { %v7126_v53 = vld [vmem:[#allocation5 + $0x58] sm:$0xf]  ;;  %v7671_v61 = vor.u32 %v10128_v49, %v7670_v33  ;;  %v8091_v46 = vor.u32 %v10228_v21, %v8088_v23  ;;  %v10220_v49 = vld [vmem:[#allocation5 + $0x79c] sm:$0xf] }
 0x3bf   :  { %2890 = vmatpush.bf16.msrb.mxu1 %v7735_v37  ;;  %2877 = vmatpush.bf16.msrb.mxu0 %v7447_v41  ;;  %v9992_v54 = vld [vmem:[#allocation5 + $0x74] sm:$0xf0]  ;;  %v2988_v37 = vmul.f32 0.2, %v2631_v19  ;;  %v10164_v41 = vld [vmem:[#allocation5 + $0x5dc] sm:$0xf]  ;;  %v2605_v45 = vadd.f32 %v2604_v28, %v2591_v22 }
 0x3c0   :  { %v7382_v55 = vld [vmem:[#allocation5 + $0x258] sm:$0xf]  ;;  %v7127_v1 = vor.u32 %v9992_v54, %v7126_v53  ;;  %v7800_v53 = vld [vmem:[#allocation5 + $0x5b8] sm:$0xf0]  ;;  %v7291_v54 = vor.u32 %v10028_v35, %v7288_v48  ;;  %v1229_v35 = vperm.slane %v11180_v32, 2 }
 0x3c1   :  { %2905 = vmatpush.bf16.msrb.mxu2 %v7959_v31  ;;  %v10056_v27 = vld [vmem:[#allocation5 + $0x274] sm:$0xf0]  ;;  %2864 = vmatpush.bf16.msra.mxu3 %v7159_v3  ;;  %v7832_v31 = vld [vmem:[#allocation5 + $0x5f8] sm:$0xf0]  ;;  %v11200_v57 = vsel %vm2972_vm2, %v2631_v19, %v2988_v37 }
 0x3c2   :  { %v7894_v58 = vld [vmem:[#allocation5 + $0x658] sm:$0xf]  ;;  %v7383_v8 = vor.u32 %v10056_v27, %v7382_v55  ;;  %v7544_v3 = vld [vmem:[#allocation5 + $0x3b8] sm:$0xf0]  ;;  %v7835_v33 = vor.u32 %v10164_v41, %v7832_v31 }
 0x3c3   :  { %v10184_v59 = vld [vmem:[#allocation5 + $0x674] sm:$0xf0]  ;;  %2891 = vmatpush.bf16.msrb.mxu1 %v7703_v47  ;;  %2878 = vmatpush.bf16.msrb.mxu0 %v7415_v51  ;;  %v2619_v51 = vadd.f32 %v2618_v42, %v2605_v45  ;;  %v7547_v55 = vor.u32 %v10092_v17, %v7544_v3  ;;  %v7256_v27 = vld [vmem:[#allocation5 + $0x178] sm:$0xf0] }
 0x3c4   :  { %v7638_v62 = vld [vmem:[#allocation5 + $0x458] sm:$0xf]  ;;  %v7895_v9 = vor.u32 %v10184_v59, %v7894_v58  ;;  %v8059_v59 = vor.u32 %v10220_v49, %v8056_v50  ;;  %v7480_v14 = vld [vmem:[#allocation5 + $0x338] sm:$0xf0] }
 0x3c5   :  { %v10120_v63 = vld [vmem:[#allocation5 + $0x474] sm:$0xf0]  ;;  %2906 = vmatpush.bf16.msrb.mxu2 %v7927_v52  ;;  %2865 = vmatpush.bf16.msra.mxu3 %v7127_v1  ;;  %v10156_v52 = vld [vmem:[#allocation5 + $0x59c] sm:$0xf]  ;;  %v2633_v58 = vadd.f32 %v2632_v34, %v2619_v51 }
 0x3c6   :  { %v7094_v0 = vld [vmem:[#allocation5 + $0x18] sm:$0xf]  ;;  %v7639_v20 = vor.u32 %v10120_v63, %v7638_v62  ;;  %v10212_v62 = vld [vmem:[#allocation5 + $0x75c] sm:$0xf]  ;;  %v7803_v63 = vor.u32 %v10156_v52, %v7800_v53 }
 0x3c7   :  { %v9984_v4 = vld [vmem:[#allocation5 + $0x34] sm:$0xf0]  ;;  %2892 = vmatpush.bf16.msrb.mxu1 %v7671_v61  ;;  %2879 = vmatpush.bf16.msrb.mxu0 %v7383_v8  ;;  %v7512_v61 = vld [vmem:[#allocation5 + $0x378] sm:$0xf0]  ;;  %vm2980_vm3 = vcmp.gt.f32.partialorder %v2633_v58, 0.0 }
 0x3c8   :  { %v7350_v5 = vld [vmem:[#allocation5 + $0x218] sm:$0xf]  ;;  %v7095_v26 = vor.u32 %v9984_v4, %v7094_v0  ;;  %v8024_v0 = vld [vmem:[#allocation5 + $0x778] sm:$0xf0]  ;;  %v2996_v1 = vmul.f32 0.2, %v2633_v58  ;;  %v7515_v7 = vor.u32 %v10084_v60, %v7512_v61 }
 0x3c9   :  { %v10048_v6 = vld [vmem:[#allocation5 + $0x234] sm:$0xf0]  ;;  %2907 = vmatpush.bf16.msrb.mxu2 %v7895_v9  ;;  %v10148_v4 = vld [vmem:[#allocation5 + $0x55c] sm:$0xf] }
 0x3ca   :  { %v7862_v11 = vld [vmem:[#allocation5 + $0x618] sm:$0xf]  ;;  %v7351_v30 = vor.u32 %v10048_v6, %v7350_v5  ;;  %2866 = vmatpush.bf16.msra.mxu3 %v7095_v26  ;;  %v7768_v5 = vld [vmem:[#allocation5 + $0x578] sm:$0xf0]  ;;  %v7259_v6 = vor.u32 %v10020_v56, %v7256_v27  ;;  %v11205_v9 = vsel %vm2980_vm3, %v2633_v58, %v2996_v1 }
 0x3cb   :  { %v10176_v12 = vld [vmem:[#allocation5 + $0x634] sm:$0xf0]  ;;  %2893 = vmatpush.bf16.msrb.mxu1 %v7639_v20  ;;  %v10012_v8 = vld [vmem:[#allocation5 + $0x11c] sm:$0xf]  ;;  %v7771_v15 = vor.u32 %v10148_v4, %v7768_v5  ;;  %v2658_v17 = vpop.f32.mrf.mxu0 }
 0x3cc   :  { %v7606_v24 = vld [vmem:[#allocation5 + $0x418] sm:$0xf]  ;;  %v7863_v29 = vor.u32 %v10176_v12, %v7862_v11  ;;  %2880 = vmatpush.bf16.msrb.mxu0 %v7351_v30  ;;  %v8027_v11 = vor.u32 %v10212_v62, %v8024_v0  ;;  %v7224_v12 = vld [vmem:[#allocation5 + $0x138] sm:$0xf0] }
 0x3cd   :  { %v10112_v36 = vld [vmem:[#allocation5 + $0x434] sm:$0xf0]  ;;  %2867 = vmatmul.bf16.vlgmr.msra.gmra.mxu3 %v11146_v38  ;;  %v7992_v19 = vld [vmem:[#allocation5 + $0x738] sm:$0xf0]  ;;  %v7227_v23 = vor.u32 %v10012_v8, %v7224_v12 }
 0x3ce   :  { %v7607_v47 = vor.u32 %v10112_v36, %v7606_v24  ;;  %2908 = vmatpush.bf16.msrb.mxu2 %v7863_v29  ;;  %2915 = vmatpush.bf16.msrb.mxu3 %v7323_v43  ;;  %v10140_v20 = vld [vmem:[#allocation5 + $0x51c] sm:$0xf]  ;;  %v7483_v24 = vor.u32 %v10076_v13, %v7480_v14  ;;  %v7995_v28 = vor.u32 %v10204_v16, %v7992_v19 }
 0x3cf   :  { %2881 = vmatmul.bf16.vlgmr.msrb.gmra.mxu0 %v11154_v40  ;;  %v7736_v21 = vld [vmem:[#allocation5 + $0x538] sm:$0xf0]  ;;  %v2644_v51 = vpop.f32.mrf.mxu3  ;;  %v2672_v52 = vpop.f32.mrf.mxu1 }
 0x3d0   :  { %2929 = vmatpush.bf16.msra.mxu0 %v7579_v18  ;;  %2894 = vmatpush.bf16.msrb.mxu1 %v7607_v47  ;;  %v10004_v25 = vld [vmem:[#allocation5 + $0xdc] sm:$0xf]  ;;  %v7739_v22 = vor.u32 %v10140_v20, %v7736_v21  ;;  %v2645_v56 = vadd.f32 %v2644_v51, %v1229_v35 }
 0x3d1   :  { %2909 = vmatmul.bf16.vlgmr.msrb.gmra.mxu2 %v11150_v39  ;;  %v7192_v26 = vld [vmem:[#allocation5 + $0xf8] sm:$0xf0] }
 0x3d2   :  { %2957 = vmatpush.bf16.msra.mxu2 %v8091_v46  ;;  %2916 = vmatpush.bf16.msrb.mxu3 %v7291_v54  ;;  %v10068_v36 = vld [vmem:[#allocation5 + $0x2dc] sm:$0xf]  ;;  %v7195_v42 = vor.u32 %v10004_v25, %v7192_v26  ;;  %v2659_v1 = vadd.f32 %v2658_v17, %v2645_v56 }
 0x3d3   :  { %2895 = vmatmul.bf16.vlgmr.msrb.gmra.mxu1 %v11158_v44  ;;  %v7448_v37 = vld [vmem:[#allocation5 + $0x2f8] sm:$0xf0]  ;;  %v2686_v61 = vpop.f32.mrf.mxu2  ;;  %v2660_v26 = vpop.f32.mrf.mxu0 }
 0x3d4   :  { %2943 = vmatpush.bf16.msra.mxu1 %v7835_v33  ;;  %2930 = vmatpush.bf16.msra.mxu0 %v7547_v55  ;;  %v10196_v30 = vld [vmem:[#allocation5 + $0x6dc] sm:$0xf]  ;;  %v7451_v43 = vor.u32 %v10068_v36, %v7448_v37  ;;  %v2673_v12 = vadd.f32 %v2672_v52, %v2659_v1 }
 0x3d5   :  { %v7960_v29 = vld [vmem:[#allocation5 + $0x6f8] sm:$0xf0] }
 0x3d6   :  { %2958 = vmatpush.bf16.msra.mxu2 %v8059_v59  ;;  %2917 = vmatpush.bf16.msrb.mxu3 %v7259_v6  ;;  %v10132_v41 = vld [vmem:[#allocation5 + $0x4dc] sm:$0xf]  ;;  %v7963_v45 = vor.u32 %v10196_v30, %v7960_v29  ;;  %v2687_v21 = vadd.f32 %v2686_v61, %v2673_v12 }
 0x3d7   :  { %v7704_v31 = vld [vmem:[#allocation5 + $0x4f8] sm:$0xf0]  ;;  %v2674_v29 = vpop.f32.mrf.mxu1 }
 0x3d8   :  { %2944 = vmatpush.bf16.msra.mxu1 %v7803_v63  ;;  %2931 = vmatpush.bf16.msra.mxu0 %v7515_v7  ;;  %v9996_v18 = vld [vmem:[#allocation5 + $0x9c] sm:$0xf]  ;;  %v7707_v3 = vor.u32 %v10132_v41, %v7704_v31  ;;  %vm2973_vm4 = vcmp.gt.f32.partialorder %v2687_v21, 0.0  ;;  %v2989_v37 = vmul.f32 0.2, %v2687_v21 }
 0x3d9   :  { %v7160_v46 = vld [vmem:[#allocation5 + $0xb8] sm:$0xf0] }
 0x3da   :  { %2959 = vmatpush.bf16.msra.mxu2 %v8027_v11  ;;  %2918 = vmatpush.bf16.msrb.mxu3 %v7227_v23  ;;  %v10060_v47 = vld [vmem:[#allocation5 + $0x29c] sm:$0xf]  ;;  %v7163_v53 = vor.u32 %v9996_v18, %v7160_v46  ;;  %v11209_v31 = vsel %vm2973_vm4, %v2687_v21, %v2989_v37 }
 0x3db   :  { %v7416_v48 = vld [vmem:[#allocation5 + $0x2b8] sm:$0xf0] }
 0x3dc   :  { %2945 = vmatpush.bf16.msra.mxu1 %v7771_v15  ;;  %2932 = vmatpush.bf16.msra.mxu0 %v7483_v24  ;;  %v10188_v34 = vld [vmem:[#allocation5 + $0x69c] sm:$0xf]  ;;  %v7419_v54 = vor.u32 %v10060_v47, %v7416_v48  ;;  %v1230_v47 = vperm.slane %v11180_v32, 3 }
 0x3dd   :  { %v7928_v33 = vld [vmem:[#allocation5 + $0x6b8] sm:$0xf0] }
 0x3de   :  { %2960 = vmatpush.bf16.msra.mxu2 %v7995_v28  ;;  %v10124_v49 = vld [vmem:[#allocation5 + $0x49c] sm:$0xf]  ;;  %2919 = vmatpush.bf16.msrb.mxu3 %v7195_v42  ;;  %v7931_v27 = vor.u32 %v10188_v34, %v7928_v33  ;;  %v2646_v28 = vpop.f32.mrf.mxu3 }
 0x3df   :  { %v7672_v50 = vld [vmem:[#allocation5 + $0x4b8] sm:$0xf0] }
 0x3e0   :  { %2946 = vmatpush.bf16.msra.mxu1 %v7739_v22  ;;  %2933 = vmatpush.bf16.msra.mxu0 %v7451_v43  ;;  %v9988_v55 = vld [vmem:[#allocation5 + $0x5c] sm:$0xf]  ;;  %v7675_v62 = vor.u32 %v10124_v49, %v7672_v50  ;;  %v2647_v22 = vadd.f32 %v2646_v28, %v1229_v35  ;;  %v2688_v43 = vpop.f32.mrf.mxu2 }
 0x3e1   :  { %v7128_v58 = vld [vmem:[#allocation5 + $0x78] sm:$0xf0] }
 0x3e2   :  { %2961 = vmatpush.bf16.msra.mxu2 %v7963_v45  ;;  %v10052_v59 = vld [vmem:[#allocation5 + $0x25c] sm:$0xf]  ;;  %2920 = vmatpush.bf16.msrb.mxu3 %v7163_v53  ;;  %v7131_v6 = vor.u32 %v9988_v55, %v7128_v58  ;;  %v2661_v42 = vadd.f32 %v2660_v26, %v2647_v22 }
 0x3e3   :  { %v7384_v60 = vld [vmem:[#allocation5 + $0x278] sm:$0xf0] }
 0x3e4   :  { %2947 = vmatpush.bf16.msra.mxu1 %v7707_v3  ;;  %v10180_v63 = vld [vmem:[#allocation5 + $0x65c] sm:$0xf]  ;;  %2934 = vmatpush.bf16.msra.mxu0 %v7419_v54  ;;  %v7387_v7 = vor.u32 %v10052_v59, %v7384_v60  ;;  %v2675_v18 = vadd.f32 %v2674_v29, %v2661_v42  ;;  %v1231_v60 = vperm.slane %v11180_v32, 4 }
 0x3e5   :  { %v7896_v0 = vld [vmem:[#allocation5 + $0x678] sm:$0xf0] }
 0x3e6   :  { %v10116_v4 = vld [vmem:[#allocation5 + $0x45c] sm:$0xf]  ;;  %2962 = vmatpush.bf16.msra.mxu2 %v7931_v27  ;;  %v7899_v13 = vor.u32 %v10180_v63, %v7896_v0  ;;  %2921 = vmatpush.bf16.msrb.mxu3 %v7131_v6  ;;  %v2689_v45 = vadd.f32 %v2688_v43, %v2675_v18 }
 0x3e7   :  { %v7640_v5 = vld [vmem:[#allocation5 + $0x478] sm:$0xf0] }
 0x3e8   :  { %v9980_v8 = vld [vmem:[#allocation5 + $0x1c] sm:$0xf]  ;;  %2948 = vmatpush.bf16.msra.mxu1 %v7675_v62  ;;  %v7643_v16 = vor.u32 %v10116_v4, %v7640_v5  ;;  %2935 = vmatpush.bf16.msra.mxu0 %v7387_v7  ;;  %vm2981_vm5 = vcmp.gt.f32.partialorder %v2689_v45, 0.0  ;;  %v2997_v35 = vmul.f32 0.2, %v2689_v45 }
 0x3e9   :  { %v7096_v11 = vld [vmem:[#allocation5 + $0x38] sm:$0xf0] }
 0x3ea   :  { %v10044_v14 = vld [vmem:[#allocation5 + $0x21c] sm:$0xf]  ;;  %v7099_v23 = vor.u32 %v9980_v8, %v7096_v11  ;;  %2963 = vmatpush.bf16.msra.mxu2 %v7899_v13  ;;  %v11215_v46 = vsel %vm2981_vm5, %v2689_v45, %v2997_v35 }
 0x3eb   :  { %v7352_v15 = vld [vmem:[#allocation5 + $0x238] sm:$0xf0]  ;;  %v2714_v48 = vpop.f32.mrf.mxu0 }
 0x3ec   :  { %v10172_v19 = vld [vmem:[#allocation5 + $0x61c] sm:$0xf]  ;;  %v7355_v36 = vor.u32 %v10044_v14, %v7352_v15  ;;  %2949 = vmatpush.bf16.msra.mxu1 %v7643_v16  ;;  %2922 = vmatpush.bf16.msrb.mxu3 %v7099_v23 }
 0x3ed   :  { %v7864_v20 = vld [vmem:[#allocation5 + $0x638] sm:$0xf0] }
 0x3ee   :  { %v10108_v24 = vld [vmem:[#allocation5 + $0x41c] sm:$0xf]  ;;  %v7867_v30 = vor.u32 %v10172_v19, %v7864_v20  ;;  %2936 = vmatpush.bf16.msra.mxu0 %v7355_v36 }
 0x3ef   :  { %v7608_v25 = vld [vmem:[#allocation5 + $0x438] sm:$0xf0]  ;;  %2923 = vmatmul.bf16.vlgmr.msrb.gmra.mxu3 %v11146_v38  ;;  %v2700_v17 = vpop.f32.mrf.mxu3  ;;  %v2728_v3 = vpop.f32.mrf.mxu1 }
 0x3f0   :  { %v7611_v41 = vor.u32 %v10108_v24, %v7608_v25  ;;  %2964 = vmatpush.bf16.msra.mxu2 %v7867_v30  ;;  %v2701_v34 = vadd.f32 %v2700_v17, %v1230_v47  ;;  %v1232_v24 = vperm.slane %v11180_v32, 5 }
 0x3f1   :  { %2937 = vmatmul.bf16.vlgmr.msra.gmra.mxu0 %v11154_v40 }
 0x3f2   :  { %2950 = vmatpush.bf16.msra.mxu1 %v7611_v41  ;;  %v2715_v49 = vadd.f32 %v2714_v48, %v2701_v34 }
 0x3f3   :  { %2965 = vmatmul.bf16.vlgmr.msra.gmra.mxu2 %v11150_v39  ;;  %v2742_v33 = vpop.f32.mrf.mxu2  ;;  %v2716_v40 = vpop.f32.mrf.mxu0 }
 0x3f4   :  { %v2729_v50 = vadd.f32 %v2728_v3, %v2715_v49  ;;  %v1233_v49 = vperm.slane %v11180_v32, 6 }
 0x3f5   :  { %2951 = vmatmul.bf16.vlgmr.msra.gmra.mxu1 %v11158_v44 }
 0x3f6   :  { %v2743_v38 = vadd.f32 %v2742_v33, %v2729_v50 }
 0x3f7   :  { %v2702_v51 = vpop.f32.mrf.mxu3  ;;  %v2730_v53 = vpop.f32.mrf.mxu1 }
 0x3f8   :  { %vm2974_vm6 = vcmp.gt.f32.partialorder %v2743_v38, 0.0  ;;  %v2990_v39 = vmul.f32 0.2, %v2743_v38  ;;  %v2703_v52 = vadd.f32 %v2702_v51, %v1230_v47 }
 0x3fa   :  { %v11218_v54 = vsel %vm2974_vm6, %v2743_v38, %v2990_v39  ;;  %v2717_v44 = vadd.f32 %v2716_v40, %v2703_v52 }
 0x3fb   :  { %v2744_v55 = vpop.f32.mrf.mxu2 }
 0x3fc   :  { %v2731_v56 = vadd.f32 %v2730_v53, %v2717_v44 }
 0x3fe   :  { %v2745_v27 = vadd.f32 %v2744_v55, %v2731_v56 }
 0x400   :  { %vm2982_vm7 = vcmp.gt.f32.partialorder %v2745_v27, 0.0  ;;  %v2998_v58 = vmul.f32 0.2, %v2745_v27 }
 0x402   :  { %v11220_v59 = vsel %vm2982_vm7, %v2745_v27, %v2998_v58 }
 0x40b   :  { %v2770_v61 = vpop.f32.mrf.mxu0 }
 0x40f   :  { %v2756_v62 = vpop.f32.mrf.mxu3  ;;  %v2784_v63 = vpop.f32.mrf.mxu1 }
 0x410   :  { %v2757_v0 = vadd.f32 %v2756_v62, %v1231_v60 }
 0x412   :  { %v2771_v4 = vadd.f32 %v2770_v61, %v2757_v0 }
 0x413   :  { %v2798_v1 = vpop.f32.mrf.mxu2  ;;  %v2772_v8 = vpop.f32.mrf.mxu0 }
 0x414   :  { %v2785_v5 = vadd.f32 %v2784_v63, %v2771_v4 }
 0x416   :  { %v2799_v6 = vadd.f32 %v2798_v1, %v2785_v5 }
 0x417   :  { %v2758_v7 = vpop.f32.mrf.mxu3  ;;  %v2786_v13 = vpop.f32.mrf.mxu1 }
 0x418   :  { %vm2975_vm8 = vcmp.gt.f32.partialorder %v2799_v6, 0.0  ;;  %v2991_v11 = vmul.f32 0.2, %v2799_v6  ;;  %v2759_v12 = vadd.f32 %v2758_v7, %v1231_v60 }
 0x41a   :  { %v11223_v14 = vsel %vm2975_vm8, %v2799_v6, %v2991_v11  ;;  %v2773_v15 = vadd.f32 %v2772_v8, %v2759_v12  ;;  %v1234_v6 = vperm.slane %v11180_v32, 7 }
 0x41b   :  { %v2800_v16 = vpop.f32.mrf.mxu2 }
 0x41c   :  { %v2787_v19 = vadd.f32 %v2786_v13, %v2773_v15 }
 0x41e   :  { %v2801_v20 = vadd.f32 %v2800_v16, %v2787_v19 }
 0x420   :  { %vm2983_vm9 = vcmp.gt.f32.partialorder %v2801_v20, 0.0  ;;  %v2999_v21 = vmul.f32 0.2, %v2801_v20 }
 0x422   :  { %v11225_v23 = vsel %vm2983_vm9, %v2801_v20, %v2999_v21 }
 0x42b   :  { %v2826_v25 = vpop.f32.mrf.mxu0 }
 0x42f   :  { %v2812_v28 = vpop.f32.mrf.mxu3  ;;  %v2840_v26 = vpop.f32.mrf.mxu1 }
 0x430   :  { %v2813_v36 = vadd.f32 %v2812_v28, %v1232_v24 }
 0x432   :  { %v2827_v22 = vadd.f32 %v2826_v25, %v2813_v36 }
 0x433   :  { %v2854_v37 = vpop.f32.mrf.mxu2  ;;  %v2828_v42 = vpop.f32.mrf.mxu0 }
 0x434   :  { %v2841_v30 = vadd.f32 %v2840_v26, %v2827_v22 }
 0x436   :  { %v2855_v29 = vadd.f32 %v2854_v37, %v2841_v30 }
 0x437   :  { %v2814_v41 = vpop.f32.mrf.mxu3  ;;  %v2842_v45 = vpop.f32.mrf.mxu1 }
 0x438   :  { %vm2976_vm10 = vcmp.gt.f32.partialorder %v2855_v29, 0.0  ;;  %v2992_v43 = vmul.f32 0.2, %v2855_v29  ;;  %v2815_v18 = vadd.f32 %v2814_v41, %v1232_v24 }
 0x43a   :  { %v11228_v35 = vsel %vm2976_vm10, %v2855_v29, %v2992_v43  ;;  %v2829_v47 = vadd.f32 %v2828_v42, %v2815_v18 }
 0x43b   :  { %v2856_v48 = vpop.f32.mrf.mxu2 }
 0x43c   :  { %v2843_v17 = vadd.f32 %v2842_v45, %v2829_v47 }
 0x43e   :  { %v2857_v3 = vadd.f32 %v2856_v48, %v2843_v17 }
 0x440   :  { %vm2984_vm11 = vcmp.gt.f32.partialorder %v2857_v3, 0.0  ;;  %v3000_v34 = vmul.f32 0.2, %v2857_v3 }
 0x442   :  { %v11230_v33 = vsel %vm2984_vm11, %v2857_v3, %v3000_v34 }
 0x44c   :  { %v2882_v50 = vpop.f32.mrf.mxu0 }
 0x450   :  { %v2868_v38 = vpop.f32.mrf.mxu3  ;;  %v2896_v51 = vpop.f32.mrf.mxu1 }
 0x451   :  { %v2869_v40 = vadd.f32 %v2868_v38, %v1233_v49 }
 0x453   :  { %v2883_v52 = vadd.f32 %v2882_v50, %v2869_v40 }
 0x454   :  { %v2910_v39 = vpop.f32.mrf.mxu2  ;;  %v2884_v56 = vpop.f32.mrf.mxu0 }
 0x455   :  { %v2897_v53 = vadd.f32 %v2896_v51, %v2883_v52 }
 0x457   :  { %v2911_v44 = vadd.f32 %v2910_v39, %v2897_v53 }
 0x458   :  { %v2870_v55 = vpop.f32.mrf.mxu3  ;;  %v2898_v60 = vpop.f32.mrf.mxu1 }
 0x459   :  { %vm2977_vm12 = vcmp.gt.f32.partialorder %v2911_v44, 0.0  ;;  %v2993_v27 = vmul.f32 0.2, %v2911_v44  ;;  %v2871_v58 = vadd.f32 %v2870_v55, %v1233_v49 }
 0x45b   :  { %v11233_v61 = vsel %vm2977_vm12, %v2911_v44, %v2993_v27  ;;  %v2885_v62 = vadd.f32 %v2884_v56, %v2871_v58 }
 0x45c   :  { %v2912_v63 = vpop.f32.mrf.mxu2 }
 0x45d   :  { %v2899_v0 = vadd.f32 %v2898_v60, %v2885_v62 }
 0x45f   :  { %v2913_v1 = vadd.f32 %v2912_v63, %v2899_v0 }
 0x461   :  { %vm2985_vm13 = vcmp.gt.f32.partialorder %v2913_v1, 0.0  ;;  %v3001_v4 = vmul.f32 0.2, %v2913_v1 }
 0x463   :  { %v11235_v5 = vsel %vm2985_vm13, %v2913_v1, %v3001_v4 }
 0x46e   :  { %v2938_v7 = vpop.f32.mrf.mxu0 }
 0x472   :  { %v2924_v8 = vpop.f32.mrf.mxu3  ;;  %v2952_v12 = vpop.f32.mrf.mxu1 }
 0x473   :  { %v2925_v11 = vadd.f32 %v2924_v8, %v1234_v6 }
 0x475   :  { %v2939_v13 = vadd.f32 %v2938_v7, %v2925_v11 }
 0x476   :  { %v2966_v15 = vpop.f32.mrf.mxu2  ;;  %v2940_v25 = vpop.f32.mrf.mxu0 }
 0x477   :  { %v2953_v16 = vadd.f32 %v2952_v12, %v2939_v13 }
 0x479   :  { %v2967_v19 = vadd.f32 %v2966_v15, %v2953_v16 }
 0x47a   :  { %v2926_v20 = vpop.f32.mrf.mxu3  ;;  %v2954_v36 = vpop.f32.mrf.mxu1 }
 0x47b   :  { %vm2978_vm14 = vcmp.gt.f32.partialorder %v2967_v19, 0.0  ;;  %v2994_v21 = vmul.f32 0.2, %v2967_v19  ;;  %v2927_v24 = vadd.f32 %v2926_v20, %v1234_v6 }
 0x47d   :  { %v11238_v28 = vsel %vm2978_vm14, %v2967_v19, %v2994_v21  ;;  %v2941_v26 = vadd.f32 %v2940_v25, %v2927_v24 }
 0x47e   :  { %v2968_v22 = vpop.f32.mrf.mxu2 }
 0x47f   :  { %v2955_v37 = vadd.f32 %v2954_v36, %v2941_v26 }
 0x481   :  { %v2969_v32 = vadd.f32 %v2968_v22, %v2955_v37 }
 0x483   :  { %vm2986_vm15 = vcmp.gt.f32.partialorder %v2969_v32, 0.0  ;;  %v3002_v30 = vmul.f32 0.2, %v2969_v32 }
 0x485   :  { %v11240_v29 = vsel %vm2986_vm15, %v2969_v32, %v3002_v30 }
 0x486   :  { %10978 = dma.done.wait [#allocation7 + $0x4], 57344 }
 0x487   :  { %10979 = vsyncadd [#allocation7 + $0x4], 4294909952  ;;  %v8290_v41 = vld [vmem:[#allocation6 + $0x188] sm:$0xf]  ;;  %v10285_v42 = vld [vmem:[#allocation6 + $0x1a0] sm:$0xf0] }
 0x488   :  { %v8514_v43 = vld [vmem:[#allocation6 + $0x348] sm:$0xf]  ;;  %v8291_v18 = vor.u32 %v10285_v42, %v8290_v41  ;;  %v10341_v45 = vld [vmem:[#allocation6 + $0x360] sm:$0xf0]  ;;  %v8262_v50 = vld [vmem:[#allocation6 + $0x150] sm:$0xf] }
 0x489   :  { %v8962_v47 = vld [vmem:[#allocation6 + $0x6c8] sm:$0xf]  ;;  %v10453_v48 = vld [vmem:[#allocation6 + $0x6e0] sm:$0xf0]  ;;  %v8515_v17 = vor.u32 %v10341_v45, %v8514_v43  ;;  %v10278_v51 = vld [vmem:[#allocation6 + $0x168] sm:$0xf0] }
 0x48a   :  { %v8963_v3 = vor.u32 %v10453_v48, %v8962_v47  ;;  %v8738_v34 = vld [vmem:[#allocation6 + $0x508] sm:$0xf]  ;;  %v10397_v49 = vld [vmem:[#allocation6 + $0x520] sm:$0xf0]  ;;  %5863 = vmatpush.bf16.msra.mxu3 %v8291_v18  ;;  %v8486_v40 = vld [vmem:[#allocation6 + $0x310] sm:$0xf]  ;;  %v8263_v52 = vor.u32 %v10278_v51, %v8262_v50 }
 0x48b   :  { %v8739_v38 = vor.u32 %v10397_v49, %v8738_v34  ;;  %v10334_v39 = vld [vmem:[#allocation6 + $0x328] sm:$0xf0]  ;;  %5877 = vmatpush.bf16.msrb.mxu0 %v8515_v17  ;;  %v8934_v44 = vld [vmem:[#allocation6 + $0x690] sm:$0xf]  ;;  %v8234_v60 = vld [vmem:[#allocation6 + $0x118] sm:$0xf] }
 0x48c   :  { %5905 = vmatpush.bf16.msrb.mxu2 %v8963_v3  ;;  %v8487_v53 = vor.u32 %v10334_v39, %v8486_v40  ;;  %v10446_v55 = vld [vmem:[#allocation6 + $0x6a8] sm:$0xf0]  ;;  %v8710_v56 = vld [vmem:[#allocation6 + $0x4d0] sm:$0xf]  ;;  %v10271_v62 = vld [vmem:[#allocation6 + $0x130] sm:$0xf0] }
 0x48d   :  { %5891 = vmatpush.bf16.msrb.mxu1 %v8739_v38  ;;  %v8935_v27 = vor.u32 %v10446_v55, %v8934_v44  ;;  %v10390_v58 = vld [vmem:[#allocation6 + $0x4e8] sm:$0xf0]  ;;  %v8458_v0 = vld [vmem:[#allocation6 + $0x2d8] sm:$0xf]  ;;  %v10327_v1 = vld [vmem:[#allocation6 + $0x2f0] sm:$0xf0]  ;;  %v8235_v6 = vor.u32 %v10271_v62, %v8234_v60 }
 0x48e   :  { %v8711_v63 = vor.u32 %v10390_v58, %v8710_v56  ;;  %v8906_v4 = vld [vmem:[#allocation6 + $0x658] sm:$0xf]  ;;  %5864 = vmatpush.bf16.msra.mxu3 %v8263_v52  ;;  %v10439_v7 = vld [vmem:[#allocation6 + $0x670] sm:$0xf0]  ;;  %v8459_v12 = vor.u32 %v10327_v1, %v8458_v0  ;;  %v8206_v15 = vld [vmem:[#allocation6 + $0xe0] sm:$0xf] }
 0x48f   :  { %v8682_v8 = vld [vmem:[#allocation6 + $0x498] sm:$0xf]  ;;  %v10383_v11 = vld [vmem:[#allocation6 + $0x4b0] sm:$0xf0]  ;;  %5878 = vmatpush.bf16.msrb.mxu0 %v8487_v53  ;;  %v8907_v13 = vor.u32 %v10439_v7, %v8906_v4  ;;  %v10264_v16 = vld [vmem:[#allocation6 + $0xf8] sm:$0xf0] }
 0x490   :  { %5906 = vmatpush.bf16.msrb.mxu2 %v8935_v27  ;;  %v8430_v19 = vld [vmem:[#allocation6 + $0x2a0] sm:$0xf]  ;;  %v8683_v20 = vor.u32 %v10383_v11, %v8682_v8  ;;  %v10320_v21 = vld [vmem:[#allocation6 + $0x2b8] sm:$0xf0]  ;;  %v8207_v37 = vor.u32 %v10264_v16, %v8206_v15  ;;  %v8178_v30 = vld [vmem:[#allocation6 + $0xa8] sm:$0xf] }
 0x491   :  { %5892 = vmatpush.bf16.msrb.mxu1 %v8711_v63  ;;  %v8878_v24 = vld [vmem:[#allocation6 + $0x620] sm:$0xf]  ;;  %v10432_v25 = vld [vmem:[#allocation6 + $0x638] sm:$0xf0]  ;;  %v8431_v22 = vor.u32 %v10320_v21, %v8430_v19  ;;  %v10257_v41 = vld [vmem:[#allocation6 + $0xc0] sm:$0xf0] }
 0x492   :  { %v8654_v26 = vld [vmem:[#allocation6 + $0x460] sm:$0xf]  ;;  %v10376_v36 = vld [vmem:[#allocation6 + $0x478] sm:$0xf0]  ;;  %5865 = vmatpush.bf16.msra.mxu3 %v8235_v6  ;;  %v8879_v32 = vor.u32 %v10432_v25, %v8878_v24  ;;  %v8402_v42 = vld [vmem:[#allocation6 + $0x268] sm:$0xf]  ;;  %v8179_v3 = vor.u32 %v10257_v41, %v8178_v30 }
 0x493   :  { %5879 = vmatpush.bf16.msrb.mxu0 %v8459_v12  ;;  %v8655_v43 = vor.u32 %v10376_v36, %v8654_v26  ;;  %v10313_v18 = vld [vmem:[#allocation6 + $0x280] sm:$0xf0]  ;;  %v8850_v45 = vld [vmem:[#allocation6 + $0x5e8] sm:$0xf]  ;;  %v8150_v50 = vld [vmem:[#allocation6 + $0x70] sm:$0xf] }
 0x494   :  { %5907 = vmatpush.bf16.msrb.mxu2 %v8907_v13  ;;  %v10425_v47 = vld [vmem:[#allocation6 + $0x600] sm:$0xf0]  ;;  %v8626_v48 = vld [vmem:[#allocation6 + $0x428] sm:$0xf]  ;;  %v8403_v34 = vor.u32 %v10313_v18, %v8402_v42  ;;  %v10250_v38 = vld [vmem:[#allocation6 + $0x88] sm:$0xf0] }
 0x495   :  { %5893 = vmatpush.bf16.msrb.mxu1 %v8683_v20  ;;  %v10369_v17 = vld [vmem:[#allocation6 + $0x440] sm:$0xf0]  ;;  %v8851_v49 = vor.u32 %v10425_v47, %v8850_v45  ;;  %v8374_v51 = vld [vmem:[#allocation6 + $0x230] sm:$0xf]  ;;  %v10306_v39 = vld [vmem:[#allocation6 + $0x248] sm:$0xf0]  ;;  %v8151_v56 = vor.u32 %v10250_v38, %v8150_v50 }
 0x496   :  { %5866 = vmatpush.bf16.msra.mxu3 %v8207_v37  ;;  %v8627_v40 = vor.u32 %v10369_v17, %v8626_v48  ;;  %v8822_v52 = vld [vmem:[#allocation6 + $0x5b0] sm:$0xf]  ;;  %v10418_v53 = vld [vmem:[#allocation6 + $0x5c8] sm:$0xf0]  ;;  %v8375_v27 = vor.u32 %v10306_v39, %v8374_v51  ;;  %v8122_v60 = vld [vmem:[#allocation6 + $0x38] sm:$0xf] }
 0x497   :  { %5880 = vmatpush.bf16.msrb.mxu0 %v8431_v22  ;;  %v8598_v44 = vld [vmem:[#allocation6 + $0x3f0] sm:$0xf]  ;;  %v10362_v55 = vld [vmem:[#allocation6 + $0x408] sm:$0xf0]  ;;  %v8823_v58 = vor.u32 %v10418_v53, %v8822_v52  ;;  %v10243_v62 = vld [vmem:[#allocation6 + $0x50] sm:$0xf0] }
 0x498   :  { %5908 = vmatpush.bf16.msrb.mxu2 %v8879_v32  ;;  %v8346_v63 = vld [vmem:[#allocation6 + $0x1f8] sm:$0xf]  ;;  %v8599_v0 = vor.u32 %v10362_v55, %v8598_v44  ;;  %v10299_v1 = vld [vmem:[#allocation6 + $0x210] sm:$0xf0]  ;;  %v8123_v11 = vor.u32 %v10243_v62, %v8122_v60  ;;  %v8094_v12 = vld [vmem:[#allocation6] sm:$0xf]  ;;  %v11244_v44 = vpack.c.bf16 %v11192_v10, %v11187_v2 }
 0x499   :  { %5894 = vmatpush.bf16.msrb.mxu1 %v8655_v43  ;;  %v8794_v4 = vld [vmem:[#allocation6 + $0x578] sm:$0xf]  ;;  %v10411_v6 = vld [vmem:[#allocation6 + $0x590] sm:$0xf0]  ;;  %v10236_v13 = vld [vmem:[#allocation6 + $0x18] sm:$0xf0]  ;;  %v8347_v15 = vor.u32 %v10299_v1, %v8346_v63 }
 0x49a   :  { %5867 = vmatpush.bf16.msra.mxu3 %v8179_v3  ;;  %v8570_v7 = vld [vmem:[#allocation6 + $0x3b8] sm:$0xf]  ;;  %v10355_v8 = vld [vmem:[#allocation6 + $0x3d0] sm:$0xf0]  ;;  %v8795_v16 = vor.u32 %v10411_v6, %v8794_v4  ;;  %v8318_v19 = vld [vmem:[#allocation6 + $0x1c0] sm:$0xf]  ;;  %v8095_v30 = vor.u32 %v10236_v13, %v8094_v12  ;;  %v11256_v4 = vpack.c.bf16 %v11215_v46, %v11209_v31 }
 0x49b   :  { %5881 = vmatpush.bf16.msrb.mxu0 %v8403_v34  ;;  %v10292_v20 = vld [vmem:[#allocation6 + $0x1d8] sm:$0xf0]  ;;  %v8766_v21 = vld [vmem:[#allocation6 + $0x540] sm:$0xf]  ;;  %v8571_v24 = vor.u32 %v10355_v8, %v8570_v7  ;;  %v9186_v26 = vld [vmem:[#allocation6 + $0x888] sm:$0xf] }
 0x49c   :  { %5909 = vmatpush.bf16.msrb.mxu2 %v8851_v49  ;;  %v10404_v25 = vld [vmem:[#allocation6 + $0x558] sm:$0xf0]  ;;  %v10509_v36 = vld [vmem:[#allocation6 + $0x8a0] sm:$0xf0]  ;;  %v9410_v37 = vld [vmem:[#allocation6 + $0xa48] sm:$0xf]  ;;  %v8319_v18 = vor.u32 %v10292_v20, %v8318_v19 }
 0x49d   :  { %5895 = vmatpush.bf16.msrb.mxu1 %v8627_v40  ;;  %v10565_v22 = vld [vmem:[#allocation6 + $0xa60] sm:$0xf0]  ;;  %v9858_v32 = vld [vmem:[#allocation6 + $0xdc8] sm:$0xf]  ;;  %v8542_v42 = vld [vmem:[#allocation6 + $0x380] sm:$0xf]  ;;  %v8767_v45 = vor.u32 %v10404_v25, %v8766_v21  ;;  %v9187_v17 = vor.u32 %v10509_v36, %v9186_v26 }
 0x49e   :  { %5868 = vmatpush.bf16.msra.mxu3 %v8151_v56  ;;  %v10677_v41 = vld [vmem:[#allocation6 + $0xde0] sm:$0xf0]  ;;  %v10348_v43 = vld [vmem:[#allocation6 + $0x398] sm:$0xf0]  ;;  %v9634_v47 = vld [vmem:[#allocation6 + $0xc08] sm:$0xf]  ;;  %v9411_v3 = vor.u32 %v10565_v22, %v9410_v37 }
 0x49f   :  { %5882 = vmatpush.bf16.msrb.mxu0 %v8375_v27  ;;  %v10621_v48 = vld [vmem:[#allocation6 + $0xc20] sm:$0xf0]  ;;  %v9158_v34 = vld [vmem:[#allocation6 + $0x850] sm:$0xf]  ;;  %v9859_v49 = vor.u32 %v10677_v41, %v9858_v32  ;;  %v8543_v50 = vor.u32 %v10348_v43, %v8542_v42  ;;  %v10502_v38 = vld [vmem:[#allocation6 + $0x868] sm:$0xf0]  ;;  %v11248_v27 = vpack.c.bf16 %v11220_v59, %v11218_v54 }
 0x4a0   :  { %5910 = vmatpush.bf16.msrb.mxu2 %v8823_v58  ;;  %v9382_v51 = vld [vmem:[#allocation6 + $0xa10] sm:$0xf]  ;;  %v10558_v40 = vld [vmem:[#allocation6 + $0xa28] sm:$0xf0]  ;;  %v9635_v39 = vor.u32 %v10621_v48, %v9634_v47  ;;  %v11252_v58 = vpack.c.bf16 %v11205_v9, %v11200_v57  ;;  %v9159_v60 = vor.u32 %v10502_v38, %v9158_v34  ;;  %v9130_v63 = vld [vmem:[#allocation6 + $0x818] sm:$0xf] }
 0x4a1   :  { %5896 = vmatpush.bf16.msrb.mxu1 %v8599_v0  ;;  %v9830_v52 = vld [vmem:[#allocation6 + $0xd90] sm:$0xf]  ;;  %v10670_v53 = vld [vmem:[#allocation6 + $0xda8] sm:$0xf0]  ;;  %v9383_v62 = vor.u32 %v10558_v40, %v9382_v51  ;;  %v10495_v10 = vld [vmem:[#allocation6 + $0x830] sm:$0xf0] }
 0x4a2   :  { %5869 = vmatpush.bf16.msra.mxu3 %v8123_v11  ;;  %v9606_v55 = vld [vmem:[#allocation6 + $0xbd0] sm:$0xf]  ;;  %v10614_v56 = vld [vmem:[#allocation6 + $0xbe8] sm:$0xf0]  ;;  %v9831_v2 = vor.u32 %v10670_v53, %v9830_v52  ;;  %v9354_v0 = vld [vmem:[#allocation6 + $0x9d8] sm:$0xf]  ;;  %v9131_v7 = vor.u32 %v10495_v10, %v9130_v63 }
 0x4a3   :  { %5883 = vmatpush.bf16.msrb.mxu0 %v8347_v15  ;;  %v10551_v1 = vld [vmem:[#allocation6 + $0x9f0] sm:$0xf0]  ;;  %v9607_v54 = vor.u32 %v10614_v56, %v9606_v55  ;;  %v9802_v59 = vld [vmem:[#allocation6 + $0xd58] sm:$0xf]  ;;  %v9102_v11 = vld [vmem:[#allocation6 + $0x7e0] sm:$0xf] }
 0x4a4   :  { %5911 = vmatpush.bf16.msrb.mxu2 %v8795_v16  ;;  %v10663_v57 = vld [vmem:[#allocation6 + $0xd70] sm:$0xf0]  ;;  %v9578_v9 = vld [vmem:[#allocation6 + $0xb98] sm:$0xf]  ;;  %v9355_v8 = vor.u32 %v10551_v1, %v9354_v0  ;;  %v10488_v46 = vld [vmem:[#allocation6 + $0x7f8] sm:$0xf0] }
 0x4a5   :  { %5897 = vmatpush.bf16.msrb.mxu1 %v8571_v24  ;;  %v10607_v6 = vld [vmem:[#allocation6 + $0xbb0] sm:$0xf0]  ;;  %v9803_v31 = vor.u32 %v10663_v57, %v9802_v59  ;;  %v9326_v12 = vld [vmem:[#allocation6 + $0x9a0] sm:$0xf]  ;;  %v10544_v13 = vld [vmem:[#allocation6 + $0x9b8] sm:$0xf0]  ;;  %v9103_v24 = vor.u32 %v10488_v46, %v9102_v11 }
 0x4a6   :  { %5870 = vmatpush.bf16.msra.mxu3 %v8095_v30  ;;  %v9579_v15 = vor.u32 %v10607_v6, %v9578_v9  ;;  %v9774_v16 = vld [vmem:[#allocation6 + $0xd20] sm:$0xf]  ;;  %v10656_v19 = vld [vmem:[#allocation6 + $0xd38] sm:$0xf0]  ;;  %v9327_v25 = vor.u32 %v10544_v13, %v9326_v12  ;;  %v9074_v26 = vld [vmem:[#allocation6 + $0x7a8] sm:$0xf] }
 0x4a7   :  { %5884 = vmatpush.bf16.msrb.mxu0 %v8319_v18  ;;  %v9550_v20 = vld [vmem:[#allocation6 + $0xb60] sm:$0xf]  ;;  %v10600_v21 = vld [vmem:[#allocation6 + $0xb78] sm:$0xf0]  ;;  %v9775_v36 = vor.u32 %v10656_v19, %v9774_v16  ;;  %v10481_v37 = vld [vmem:[#allocation6 + $0x7c0] sm:$0xf0] }
 0x4a8   :  { %5912 = vmatpush.bf16.msrb.mxu2 %v8767_v45  ;;  %v9298_v22 = vld [vmem:[#allocation6 + $0x968] sm:$0xf]  ;;  %v10537_v32 = vld [vmem:[#allocation6 + $0x980] sm:$0xf0]  ;;  %v9551_v30 = vor.u32 %v10600_v21, %v9550_v20  ;;  %v9075_v45 = vor.u32 %v10481_v37, %v9074_v26  ;;  %v9046_v48 = vld [vmem:[#allocation6 + $0x770] sm:$0xf] }
 0x4a9   :  { %5898 = vmatpush.bf16.msrb.mxu1 %v8543_v50  ;;  %5871 = vmatmul.bf16.vlgmr.msra.gmra.mxu3 %v11244_v44  ;;  %v9746_v41 = vld [vmem:[#allocation6 + $0xce8] sm:$0xf]  ;;  %v10649_v42 = vld [vmem:[#allocation6 + $0xd00] sm:$0xf0]  ;;  %v9299_v47 = vor.u32 %v10537_v32, %v9298_v22  ;;  %v9270_v34 = vld [vmem:[#allocation6 + $0x930] sm:$0xf] }
 0x4aa   :  { %5919 = vmatpush.bf16.msrb.mxu3 %v9187_v17  ;;  %5885 = vmatmul.bf16.vlgmr.msrb.gmra.mxu0 %v11252_v58  ;;  %v9522_v43 = vld [vmem:[#allocation6 + $0xb28] sm:$0xf]  ;;  %v10593_v18 = vld [vmem:[#allocation6 + $0xb40] sm:$0xf0]  ;;  %v9747_v17 = vor.u32 %v10649_v42, %v9746_v41  ;;  %v9718_v38 = vld [vmem:[#allocation6 + $0xcb0] sm:$0xf] }
 0x4ab   :  { %5933 = vmatpush.bf16.msra.mxu0 %v9411_v3  ;;  %5913 = vmatmul.bf16.vlgmr.msrb.gmra.mxu2 %v11248_v27  ;;  %v10474_v3 = vld [vmem:[#allocation6 + $0x788] sm:$0xf0]  ;;  %v9523_v50 = vor.u32 %v10593_v18, %v9522_v43  ;;  %v9494_v40 = vld [vmem:[#allocation6 + $0xaf0] sm:$0xf]  ;;  %v9018_v55 = vld [vmem:[#allocation6 + $0x738] sm:$0xf] }
 0x4ac   :  { %5961 = vmatpush.bf16.msra.mxu2 %v9859_v49  ;;  %5899 = vmatmul.bf16.vlgmr.msrb.gmra.mxu1 %v11256_v4  ;;  %v10530_v49 = vld [vmem:[#allocation6 + $0x948] sm:$0xf0]  ;;  %v9047_v52 = vor.u32 %v10474_v3, %v9046_v48  ;;  %v10523_v63 = vld [vmem:[#allocation6 + $0x910] sm:$0xf0]  ;;  %v9690_v10 = vld [vmem:[#allocation6 + $0xc78] sm:$0xf]  ;;  %v11264_v48 = vpack.c.bf16 %v11225_v23, %v11223_v14 }
 0x4ad   :  { %5947 = vmatpush.bf16.msra.mxu1 %v9635_v39  ;;  %v10642_v51 = vld [vmem:[#allocation6 + $0xcc8] sm:$0xf0]  ;;  %v9271_v53 = vor.u32 %v10530_v49, %v9270_v34  ;;  %v10635_v0 = vld [vmem:[#allocation6 + $0xc90] sm:$0xf0]  ;;  %v9466_v1 = vld [vmem:[#allocation6 + $0xab8] sm:$0xf] }
 0x4ae   :  { %5920 = vmatpush.bf16.msrb.mxu3 %v9159_v60  ;;  %v10586_v39 = vld [vmem:[#allocation6 + $0xb08] sm:$0xf0]  ;;  %v9719_v56 = vor.u32 %v10642_v51, %v9718_v38  ;;  %v10467_v60 = vld [vmem:[#allocation6 + $0x750] sm:$0xf0]  ;;  %v8990_v9 = vld [vmem:[#allocation6 + $0x700] sm:$0xf] }
 0x4af   :  { %5934 = vmatpush.bf16.msra.mxu0 %v9383_v62  ;;  %v9242_v62 = vld [vmem:[#allocation6 + $0x8f8] sm:$0xf]  ;;  %v9019_v59 = vor.u32 %v10467_v60, %v9018_v55  ;;  %v10460_v6 = vld [vmem:[#allocation6 + $0x718] sm:$0xf0]  ;;  %v10282_v13 = vld [vmem:[#allocation6 + $0x18c] sm:$0xf]  ;;  %v11277_v60 = vpack.c.bf16 %v11235_v5, %v11233_v61 }
 0x4b0   :  { %5962 = vmatpush.bf16.msra.mxu2 %v9831_v2  ;;  %v9495_v2 = vor.u32 %v10586_v39, %v9494_v40  ;;  %v9243_v57 = vor.u32 %v10523_v63, %v9242_v62  ;;  %v10516_v11 = vld [vmem:[#allocation6 + $0x8d8] sm:$0xf0]  ;;  %v10338_v16 = vld [vmem:[#allocation6 + $0x34c] sm:$0xf]  ;;  %v8516_v19 = vld [vmem:[#allocation6 + $0x364] sm:$0xf0]  ;;  %v11272_v39 = vpack.c.bf16 %v11230_v33, %v11228_v35 }
 0x4b1   :  { %5948 = vmatpush.bf16.msra.mxu1 %v9607_v54  ;;  %v10579_v54 = vld [vmem:[#allocation6 + $0xad0] sm:$0xf0]  ;;  %v10628_v46 = vld [vmem:[#allocation6 + $0xc58] sm:$0xf0]  ;;  %v10450_v20 = vld [vmem:[#allocation6 + $0x6cc] sm:$0xf]  ;;  %v8519_v41 = vor.u32 %v10338_v16, %v8516_v19 }
 0x4b2   :  { %5921 = vmatpush.bf16.msrb.mxu3 %v9131_v7  ;;  %v9214_v7 = vld [vmem:[#allocation6 + $0x8c0] sm:$0xf]  ;;  %v9467_v12 = vor.u32 %v10579_v54, %v9466_v1  ;;  %v8964_v21 = vld [vmem:[#allocation6 + $0x6e4] sm:$0xf0]  ;;  %v10394_v32 = vld [vmem:[#allocation6 + $0x50c] sm:$0xf] }
 0x4b3   :  { %5935 = vmatpush.bf16.msra.mxu0 %v9355_v8  ;;  %v9691_v8 = vor.u32 %v10635_v0, %v9690_v10  ;;  %v9438_v26 = vld [vmem:[#allocation6 + $0xa80] sm:$0xf]  ;;  %v8967_v42 = vor.u32 %v10450_v20, %v8964_v21  ;;  %v10275_v43 = vld [vmem:[#allocation6 + $0x154] sm:$0xf]  ;;  %v8264_v18 = vld [vmem:[#allocation6 + $0x16c] sm:$0xf0] }
 0x4b4   :  { %5963 = vmatpush.bf16.msra.mxu2 %v9803_v31  ;;  %v9662_v31 = vld [vmem:[#allocation6 + $0xc40] sm:$0xf]  ;;  %v10443_v3 = vld [vmem:[#allocation6 + $0x694] sm:$0xf]  ;;  %v8936_v34 = vld [vmem:[#allocation6 + $0x6ac] sm:$0xf0]  ;;  %v8267_v38 = vor.u32 %v10275_v43, %v8264_v18 }
 0x4b5   :  { %5949 = vmatpush.bf16.msra.mxu1 %v9579_v15  ;;  %v8292_v15 = vld [vmem:[#allocation6 + $0x1a4] sm:$0xf0]  ;;  %v9663_v37 = vor.u32 %v10628_v46, %v9662_v31  ;;  %v10387_v51 = vld [vmem:[#allocation6 + $0x4d4] sm:$0xf]  ;;  %v8712_v40 = vld [vmem:[#allocation6 + $0x4ec] sm:$0xf0]  ;;  %v8939_v23 = vor.u32 %v10443_v3, %v8936_v34 }
 0x4b6   :  { %5922 = vmatpush.bf16.msrb.mxu3 %v9103_v24  ;;  %v8991_v24 = vor.u32 %v10460_v6, %v8990_v9  ;;  %v8295_v22 = vor.u32 %v10282_v13, %v8292_v15  ;;  %v10324_v55 = vld [vmem:[#allocation6 + $0x2dc] sm:$0xf]  ;;  %v8715_v35 = vor.u32 %v10387_v51, %v8712_v40  ;;  %v8684_v63 = vld [vmem:[#allocation6 + $0x4b4] sm:$0xf0]  ;;  %v10261_v0 = vld [vmem:[#allocation6 + $0xe4] sm:$0xf] }
 0x4b7   :  { %5936 = vmatpush.bf16.msra.mxu0 %v9327_v25  ;;  %v9215_v25 = vor.u32 %v10516_v11, %v9214_v7  ;;  %v10380_v62 = vld [vmem:[#allocation6 + $0x49c] sm:$0xf]  ;;  %v8208_v1 = vld [vmem:[#allocation6 + $0xfc] sm:$0xf0]  ;;  %v10317_v54 = vld [vmem:[#allocation6 + $0x2a4] sm:$0xf] }
 0x4b8   :  { %5964 = vmatpush.bf16.msra.mxu2 %v9775_v36  ;;  %v10572_v36 = vld [vmem:[#allocation6 + $0xa98] sm:$0xf0]  ;;  %v8432_v61 = vld [vmem:[#allocation6 + $0x2bc] sm:$0xf0]  ;;  %v10429_v5 = vld [vmem:[#allocation6 + $0x624] sm:$0xf]  ;;  %v8211_v9 = vor.u32 %v10261_v0, %v8208_v1 }
 0x4b9   :  { %5950 = vmatpush.bf16.msra.mxu1 %v9551_v30  ;;  %v8740_v30 = vld [vmem:[#allocation6 + $0x524] sm:$0xf0]  ;;  %v10373_v6 = vld [vmem:[#allocation6 + $0x464] sm:$0xf]  ;;  %v8656_v7 = vld [vmem:[#allocation6 + $0x47c] sm:$0xf0] }
 0x4ba   :  { %5923 = vmatpush.bf16.msrb.mxu3 %v9075_v45  ;;  %v10331_v45 = vld [vmem:[#allocation6 + $0x314] sm:$0xf]  ;;  %v8743_v49 = vor.u32 %v10394_v32, %v8740_v30  ;;  %v10254_v31 = vld [vmem:[#allocation6 + $0xac] sm:$0xf]  ;;  %v8180_v46 = vld [vmem:[#allocation6 + $0xc4] sm:$0xf0]  ;;  %v8659_v19 = vor.u32 %v10373_v6, %v8656_v7 }
 0x4bb   :  { %5937 = vmatpush.bf16.msra.mxu0 %v9299_v47  ;;  %v9439_v47 = vor.u32 %v10572_v36, %v9438_v26  ;;  %v8404_v13 = vld [vmem:[#allocation6 + $0x284] sm:$0xf0]  ;;  %v10422_v15 = vld [vmem:[#allocation6 + $0x5ec] sm:$0xf]  ;;  %v8183_v20 = vor.u32 %v10254_v31, %v8180_v46  ;;  %v10247_v36 = vld [vmem:[#allocation6 + $0x74] sm:$0xf] }
 0x4bc   :  { %5965 = vmatpush.bf16.msra.mxu2 %v9747_v17  ;;  %v8488_v17 = vld [vmem:[#allocation6 + $0x32c] sm:$0xf0]  ;;  %v8852_v16 = vld [vmem:[#allocation6 + $0x604] sm:$0xf0]  ;;  %v10366_v21 = vld [vmem:[#allocation6 + $0x42c] sm:$0xf] }
 0x4bd   :  { %5951 = vmatpush.bf16.msra.mxu1 %v9523_v50  ;;  %v11268_v50 = vpack.c.bf16 %v11240_v29, %v11238_v28  ;;  %v8491_v14 = vor.u32 %v10331_v45, %v8488_v17  ;;  %v8460_v28 = vld [vmem:[#allocation6 + $0x2f4] sm:$0xf0]  ;;  %v10436_v29 = vld [vmem:[#allocation6 + $0x65c] sm:$0xf]  ;;  %v8855_v26 = vor.u32 %v10422_v15, %v8852_v16  ;;  %v8376_v32 = vld [vmem:[#allocation6 + $0x24c] sm:$0xf0] }
 0x4be   :  { %5924 = vmatpush.bf16.msrb.mxu3 %v9047_v52  ;;  %v10268_v52 = vld [vmem:[#allocation6 + $0x11c] sm:$0xf]  ;;  %v10415_v30 = vld [vmem:[#allocation6 + $0x5b4] sm:$0xf]  ;;  %v8600_v45 = vld [vmem:[#allocation6 + $0x40c] sm:$0xf0] }
 0x4bf   :  { %5938 = vmatpush.bf16.msra.mxu0 %v9271_v53  ;;  %v8236_v53 = vld [vmem:[#allocation6 + $0x134] sm:$0xf0]  ;;  %v10359_v18 = vld [vmem:[#allocation6 + $0x3f4] sm:$0xf]  ;;  %v10240_v3 = vld [vmem:[#allocation6 + $0x3c] sm:$0xf] }
 0x4c0   :  { %5966 = vmatpush.bf16.msra.mxu2 %v9719_v56  ;;  %v8908_v56 = vld [vmem:[#allocation6 + $0x674] sm:$0xf0]  ;;  %v8239_v33 = vor.u32 %v10268_v52, %v8236_v53  ;;  %v10408_v51 = vld [vmem:[#allocation6 + $0x57c] sm:$0xf]  ;;  %v10562_v1 = vld [vmem:[#allocation6 + $0xa4c] sm:$0xf] }
 0x4c1   :  { %5952 = vmatpush.bf16.msra.mxu1 %v9495_v2  ;;  %v8463_v2 = vor.u32 %v10324_v55, %v8460_v28  ;;  %v8911_v10 = vor.u32 %v10436_v29, %v8908_v56  ;;  %v8124_v34 = vld [vmem:[#allocation6 + $0x54] sm:$0xf0]  ;;  %v10233_v55 = vld [vmem:[#allocation6 + $0x4] sm:$0xf]  ;;  %v8096_v28 = vld [vmem:[#allocation6 + $0x1c] sm:$0xf0] }
 0x4c2   :  { %5925 = vmatpush.bf16.msrb.mxu3 %v9019_v59  ;;  %v8880_v59 = vld [vmem:[#allocation6 + $0x63c] sm:$0xf0]  ;;  %v8796_v40 = vld [vmem:[#allocation6 + $0x594] sm:$0xf0]  ;;  %v8127_v52 = vor.u32 %v10240_v3, %v8124_v34  ;;  %v9160_v16 = vld [vmem:[#allocation6 + $0x86c] sm:$0xf0] }
 0x4c3   :  { %5939 = vmatpush.bf16.msra.mxu0 %v9243_v57  ;;  %v8687_v57 = vor.u32 %v10380_v62, %v8684_v63  ;;  %v8883_v11 = vor.u32 %v10429_v5, %v8880_v59  ;;  %v8572_v53 = vld [vmem:[#allocation6 + $0x3d4] sm:$0xf0]  ;;  %v8799_v56 = vor.u32 %v10408_v51, %v8796_v40  ;;  %v10401_v62 = vld [vmem:[#allocation6 + $0x544] sm:$0xf]  ;;  %v8768_v63 = vld [vmem:[#allocation6 + $0x55c] sm:$0xf0]  ;;  %v8099_v5 = vor.u32 %v10233_v55, %v8096_v28 }
 0x4c4   :  { %5967 = vmatpush.bf16.msra.mxu2 %v9691_v8  ;;  %v8435_v8 = vor.u32 %v10317_v54, %v8432_v61  ;;  %v9412_v54 = vld [vmem:[#allocation6 + $0xa64] sm:$0xf0]  ;;  %v10674_v61 = vld [vmem:[#allocation6 + $0xdcc] sm:$0xf]  ;;  %v8771_v7 = vor.u32 %v10401_v62, %v8768_v63  ;;  %v9580_v3 = vld [vmem:[#allocation6 + $0xbb4] sm:$0xf0] }
 0x4c5   :  { %5953 = vmatpush.bf16.msra.mxu1 %v9467_v12  ;;  %v10310_v12 = vld [vmem:[#allocation6 + $0x26c] sm:$0xf]  ;;  %v9860_v59 = vld [vmem:[#allocation6 + $0xde4] sm:$0xf0]  ;;  %v9415_v46 = vor.u32 %v10562_v1, %v9412_v54  ;;  %v9104_v40 = vld [vmem:[#allocation6 + $0x7fc] sm:$0xf0] }
 0x4c6   :  { %5926 = vmatpush.bf16.msrb.mxu3 %v8991_v24  ;;  %v8628_v24 = vld [vmem:[#allocation6 + $0x444] sm:$0xf0]  ;;  %v9776_v55 = vld [vmem:[#allocation6 + $0xd3c] sm:$0xf0]  ;;  %v10597_v28 = vld [vmem:[#allocation6 + $0xb64] sm:$0xf] }
 0x4c7   :  { %5940 = vmatpush.bf16.msra.mxu0 %v9215_v25  ;;  %v8407_v25 = vor.u32 %v10310_v12, %v8404_v13  ;;  %v10499_v12 = vld [vmem:[#allocation6 + $0x854] sm:$0xf]  ;;  %v9863_v13 = vor.u32 %v10674_v61, %v9860_v59  ;;  %v9076_v63 = vld [vmem:[#allocation6 + $0x7c4] sm:$0xf0]  ;;  %v10646_v1 = vld [vmem:[#allocation6 + $0xcec] sm:$0xf] }
 0x4c8   :  { %5968 = vmatpush.bf16.msra.mxu2 %v9663_v37  ;;  %v8152_v37 = vld [vmem:[#allocation6 + $0x8c] sm:$0xf0]  ;;  %v9748_v54 = vld [vmem:[#allocation6 + $0xd04] sm:$0xf0]  ;;  %v10590_v61 = vld [vmem:[#allocation6 + $0xb2c] sm:$0xf] }
 0x4c9   :  { %5954 = vmatpush.bf16.msra.mxu1 %v9439_v47  ;;  %5927 = vmatmul.bf16.vlgmr.msrb.gmra.mxu3 %v11264_v48  ;;  %v8155_v43 = vor.u32 %v10247_v36, %v8152_v37  ;;  %v9608_v36 = vld [vmem:[#allocation6 + $0xbec] sm:$0xf0]  ;;  %v9163_v37 = vor.u32 %v10499_v12, %v9160_v16 }
 0x4ca   :  { %5975 = vmatpush.bf16.msra.mxu3 %v8295_v22  ;;  %5941 = vmatmul.bf16.vlgmr.msra.gmra.mxu0 %v11272_v39  ;;  %v10303_v22 = vld [vmem:[#allocation6 + $0x234] sm:$0xf]  ;;  %v9720_v12 = vld [vmem:[#allocation6 + $0xccc] sm:$0xf0] }
 0x4cb   :  { %5989 = vmatpush.bf16.msrb.mxu0 %v8519_v41  ;;  %5969 = vmatmul.bf16.vlgmr.msra.gmra.mxu2 %v11268_v50  ;;  %v8824_v41 = vld [vmem:[#allocation6 + $0x5cc] sm:$0xf0]  ;;  %v8379_v47 = vor.u32 %v10303_v22, %v8376_v32  ;;  %v10492_v32 = vld [vmem:[#allocation6 + $0x81c] sm:$0xf] }
 0x4cc   :  { %6017 = vmatpush.bf16.msrb.mxu2 %v8967_v42  ;;  %5955 = vmatmul.bf16.vlgmr.msra.gmra.mxu1 %v11277_v60  ;;  %v8631_v42 = vor.u32 %v10366_v21, %v8628_v24  ;;  %v8827_v17 = vor.u32 %v10415_v30, %v8824_v41  ;;  %v10667_v24 = vld [vmem:[#allocation6 + $0xd94] sm:$0xf]  ;;  %v9132_v41 = vld [vmem:[#allocation6 + $0x834] sm:$0xf0] }
 0x4cd   :  { %6003 = vmatpush.bf16.msrb.mxu1 %v8743_v49  ;;  %v10296_v49 = vld [vmem:[#allocation6 + $0x1fc] sm:$0xf]  ;;  %v9135_v34 = vor.u32 %v10492_v32, %v9132_v41 }
 0x4ce   :  { %5976 = vmatpush.bf16.msra.mxu3 %v8267_v38  ;;  %v8348_v38 = vld [vmem:[#allocation6 + $0x214] sm:$0xf0]  ;;  %v10576_v32 = vld [vmem:[#allocation6 + $0xabc] sm:$0xf] }
 0x4cf   :  { %5990 = vmatpush.bf16.msrb.mxu0 %v8491_v14  ;;  %v8603_v14 = vor.u32 %v10359_v18, %v8600_v45  ;;  %v8351_v29 = vor.u32 %v10296_v49, %v8348_v38  ;;  %v10660_v45 = vld [vmem:[#allocation6 + $0xd5c] sm:$0xf]  ;;  %v10485_v38 = vld [vmem:[#allocation6 + $0x7e4] sm:$0xf] }
 0x4d0   :  { %6018 = vmatpush.bf16.msrb.mxu2 %v8939_v23  ;;  %v10352_v23 = vld [vmem:[#allocation6 + $0x3bc] sm:$0xf] }
 0x4d1   :  { %6004 = vmatpush.bf16.msrb.mxu1 %v8715_v35  ;;  %v10289_v35 = vld [vmem:[#allocation6 + $0x1c4] sm:$0xf]  ;;  %v8575_v0 = vor.u32 %v10352_v23, %v8572_v53  ;;  %v9328_v23 = vld [vmem:[#allocation6 + $0x9bc] sm:$0xf0] }
 0x4d2   :  { %5977 = vmatpush.bf16.msra.mxu3 %v8239_v33  ;;  %v8320_v33 = vld [vmem:[#allocation6 + $0x1dc] sm:$0xf0]  ;;  %v10653_v53 = vld [vmem:[#allocation6 + $0xd24] sm:$0xf] }
 0x4d3   :  { %5991 = vmatpush.bf16.msrb.mxu0 %v8463_v2  ;;  %v10506_v2 = vld [vmem:[#allocation6 + $0x88c] sm:$0xf]  ;;  %v8323_v6 = vor.u32 %v10289_v35, %v8320_v33  ;;  %v9779_v62 = vor.u32 %v10653_v53, %v9776_v55 }
 0x4d4   :  { %6019 = vmatpush.bf16.msrb.mxu2 %v8911_v10  ;;  %v9188_v10 = vld [vmem:[#allocation6 + $0x8a4] sm:$0xf0]  ;;  %v10478_v33 = vld [vmem:[#allocation6 + $0x7ac] sm:$0xf] }
 0x4d5   :  { %6005 = vmatpush.bf16.msrb.mxu1 %v8687_v57  ;;  %v10345_v57 = vld [vmem:[#allocation6 + $0x384] sm:$0xf]  ;;  %v9191_v31 = vor.u32 %v10506_v2, %v9188_v10  ;;  %v10534_v2 = vld [vmem:[#allocation6 + $0x96c] sm:$0xf]  ;;  %v9300_v10 = vld [vmem:[#allocation6 + $0x984] sm:$0xf0]  ;;  %v9079_v59 = vor.u32 %v10478_v33, %v9076_v63 }
 0x4d6   :  { %5978 = vmatpush.bf16.msra.mxu3 %v8211_v9  ;;  %v8544_v9 = vld [vmem:[#allocation6 + $0x39c] sm:$0xf0]  ;;  %v8746_v33 = vld [vmem:[#allocation6 + $0x510] sm:$0xf] }
 0x4d7   :  { %5992 = vmatpush.bf16.msrb.mxu0 %v8435_v8  ;;  %v10618_v8 = vld [vmem:[#allocation6 + $0xc0c] sm:$0xf]  ;;  %v8547_v15 = vor.u32 %v10345_v57, %v8544_v9  ;;  %v9303_v57 = vor.u32 %v10534_v2, %v9300_v10  ;;  %v10471_v9 = vld [vmem:[#allocation6 + $0x774] sm:$0xf]  ;;  %v8270_v10 = vld [vmem:[#allocation6 + $0x158] sm:$0xf] }
 0x4d8   :  { %6020 = vmatpush.bf16.msrb.mxu2 %v8883_v11  ;;  %v9636_v11 = vld [vmem:[#allocation6 + $0xc24] sm:$0xf0] }
 0x4d9   :  { %6006 = vmatpush.bf16.msrb.mxu1 %v8659_v19  ;;  %v10555_v19 = vld [vmem:[#allocation6 + $0xa14] sm:$0xf]  ;;  %v9639_v21 = vor.u32 %v10618_v8, %v9636_v11  ;;  %v9272_v11 = vld [vmem:[#allocation6 + $0x94c] sm:$0xf0] }
 0x4da   :  { %5979 = vmatpush.bf16.msra.mxu3 %v8183_v20  ;;  %v9384_v20 = vld [vmem:[#allocation6 + $0xa2c] sm:$0xf0]  ;;  %v10527_v8 = vld [vmem:[#allocation6 + $0x934] sm:$0xf] }
 0x4db   :  { %5993 = vmatpush.bf16.msrb.mxu0 %v8407_v25  ;;  %v9832_v25 = vld [vmem:[#allocation6 + $0xdac] sm:$0xf0]  ;;  %v9387_v22 = vor.u32 %v10555_v19, %v9384_v20  ;;  %v9275_v19 = vor.u32 %v10527_v8, %v9272_v11  ;;  %v10464_v20 = vld [vmem:[#allocation6 + $0x73c] sm:$0xf] }
 0x4dc   :  { %6021 = vmatpush.bf16.msrb.mxu2 %v8855_v26  ;;  %v10611_v26 = vld [vmem:[#allocation6 + $0xbd4] sm:$0xf]  ;;  %v9835_v30 = vor.u32 %v10667_v24, %v9832_v25  ;;  %v9020_v24 = vld [vmem:[#allocation6 + $0x754] sm:$0xf0]  ;;  %v10520_v25 = vld [vmem:[#allocation6 + $0x8fc] sm:$0xf] }
 0x4dd   :  { %6007 = vmatpush.bf16.msrb.mxu1 %v8631_v42  ;;  %v10548_v42 = vld [vmem:[#allocation6 + $0x9dc] sm:$0xf]  ;;  %v9611_v18 = vor.u32 %v10611_v26, %v9608_v36  ;;  %v9244_v26 = vld [vmem:[#allocation6 + $0x914] sm:$0xf0]  ;;  %v9023_v41 = vor.u32 %v10464_v20, %v9020_v24 }
 0x4de   :  { %5980 = vmatpush.bf16.msra.mxu3 %v8155_v43  ;;  %v9356_v43 = vld [vmem:[#allocation6 + $0x9f4] sm:$0xf0]  ;;  %v10384_v24 = vld [vmem:[#allocation6 + $0x4b8] sm:$0xf0] }
 0x4df   :  { %5994 = vmatpush.bf16.msrb.mxu0 %v8379_v47  ;;  %v9804_v47 = vld [vmem:[#allocation6 + $0xd74] sm:$0xf0]  ;;  %v9359_v49 = vor.u32 %v10548_v42, %v9356_v43  ;;  %v9247_v42 = vor.u32 %v10520_v25, %v9244_v26  ;;  %v10457_v43 = vld [vmem:[#allocation6 + $0x704] sm:$0xf] }
 0x4e0   :  { %6022 = vmatpush.bf16.msrb.mxu2 %v8827_v17  ;;  %v10604_v17 = vld [vmem:[#allocation6 + $0xb9c] sm:$0xf]  ;;  %v9807_v51 = vor.u32 %v10660_v45, %v9804_v47  ;;  %v10513_v45 = vld [vmem:[#allocation6 + $0x8c4] sm:$0xf] }
 0x4e1   :  { %6008 = vmatpush.bf16.msrb.mxu1 %v8603_v14  ;;  %v10541_v14 = vld [vmem:[#allocation6 + $0x9a4] sm:$0xf] }
 0x4e2   :  { %5981 = vmatpush.bf16.msra.mxu3 %v8127_v52  ;;  %v9583_v52 = vor.u32 %v10604_v17, %v9580_v3  ;;  %v9331_v35 = vor.u32 %v10541_v14, %v9328_v23  ;;  %v9216_v17 = vld [vmem:[#allocation6 + $0x8dc] sm:$0xf0]  ;;  %v10625_v3 = vld [vmem:[#allocation6 + $0xc44] sm:$0xf]  ;;  %v10342_v14 = vld [vmem:[#allocation6 + $0x368] sm:$0xf0] }
 0x4e3   :  { %5995 = vmatpush.bf16.msrb.mxu0 %v8351_v29  ;;  %v9552_v29 = vld [vmem:[#allocation6 + $0xb7c] sm:$0xf0]  ;;  %v8970_v23 = vld [vmem:[#allocation6 + $0x6d0] sm:$0xf]  ;;  %v9219_v55 = vor.u32 %v10513_v45, %v9216_v17  ;;  %v10377_v45 = vld [vmem:[#allocation6 + $0x480] sm:$0xf0] }
 0x4e4   :  { %6023 = vmatpush.bf16.msrb.mxu2 %v8799_v56  ;;  %v9107_v56 = vor.u32 %v10485_v38, %v9104_v40  ;;  %v8298_v38 = vld [vmem:[#allocation6 + $0x190] sm:$0xf] }
 0x4e5   :  { %6009 = vmatpush.bf16.msrb.mxu1 %v8575_v0  ;;  %v9555_v0 = vor.u32 %v10597_v28, %v9552_v29  ;;  %v8522_v40 = vld [vmem:[#allocation6 + $0x350] sm:$0xf]  ;;  %v10569_v28 = vld [vmem:[#allocation6 + $0xa84] sm:$0xf]  ;;  %v9440_v29 = vld [vmem:[#allocation6 + $0xa9c] sm:$0xf0] }
 0x4e6   :  { %5982 = vmatpush.bf16.msra.mxu3 %v8099_v5  ;;  %v9524_v5 = vld [vmem:[#allocation6 + $0xb44] sm:$0xf0]  ;;  %v8523_v63 = vor.u32 %v10342_v14, %v8522_v40  ;;  %v10426_v40 = vld [vmem:[#allocation6 + $0x608] sm:$0xf0] }
 0x4e7   :  { %5996 = vmatpush.bf16.msrb.mxu0 %v8323_v6  ;;  %v9751_v6 = vor.u32 %v10646_v1, %v9748_v54  ;;  %v8494_v1 = vld [vmem:[#allocation6 + $0x318] sm:$0xf]  ;;  %v9443_v54 = vor.u32 %v10569_v28, %v9440_v29 }
 0x4e8   :  { %6024 = vmatpush.bf16.msrb.mxu2 %v8771_v7  ;;  %v9048_v7 = vld [vmem:[#allocation6 + $0x78c] sm:$0xf0]  ;;  %v8158_v29 = vld [vmem:[#allocation6 + $0x78] sm:$0xf] }
 0x4e9   :  { %6010 = vmatpush.bf16.msrb.mxu1 %v8547_v15  ;;  %5983 = vmatmul.bf16.vlgmr.msra.gmra.mxu3 %v11244_v44  ;;  %v9496_v15 = vld [vmem:[#allocation6 + $0xb0c] sm:$0xf0]  ;;  %v9051_v16 = vor.u32 %v10471_v9, %v9048_v7  ;;  %v10391_v7 = vld [vmem:[#allocation6 + $0x4f0] sm:$0xf0] }
 0x4ea   :  { %6031 = vmatpush.bf16.msrb.mxu3 %v9191_v31  ;;  %5997 = vmatmul.bf16.vlgmr.msrb.gmra.mxu0 %v11252_v58  ;;  %v9527_v31 = vor.u32 %v10590_v61, %v9524_v5  ;;  %v10335_v61 = vld [vmem:[#allocation6 + $0x330] sm:$0xf0]  ;;  %v8942_v5 = vld [vmem:[#allocation6 + $0x698] sm:$0xf] }
 0x4eb   :  { %6045 = vmatpush.bf16.msra.mxu0 %v9415_v46  ;;  %6025 = vmatmul.bf16.vlgmr.msrb.gmra.mxu2 %v11248_v27  ;;  %v10639_v46 = vld [vmem:[#allocation6 + $0xcb4] sm:$0xf]  ;;  %v8495_v8 = vor.u32 %v10335_v61, %v8494_v1 }
 0x4ec   :  { %6073 = vmatpush.bf16.msra.mxu2 %v9863_v13  ;;  %6011 = vmatmul.bf16.vlgmr.msrb.gmra.mxu1 %v11256_v4  ;;  %v10583_v13 = vld [vmem:[#allocation6 + $0xaf4] sm:$0xf] }
 0x4ed   :  { %6059 = vmatpush.bf16.msra.mxu1 %v9639_v21  ;;  %v9723_v21 = vor.u32 %v10639_v46, %v9720_v12  ;;  %v9499_v36 = vor.u32 %v10583_v13, %v9496_v15  ;;  %v10272_v46 = vld [vmem:[#allocation6 + $0x138] sm:$0xf0]  ;;  %v8466_v12 = vld [vmem:[#allocation6 + $0x2e0] sm:$0xf]  ;;  %v10363_v1 = vld [vmem:[#allocation6 + $0x410] sm:$0xf0] }
 0x4ee   :  { %6032 = vmatpush.bf16.msrb.mxu3 %v9163_v37  ;;  %v10632_v37 = vld [vmem:[#allocation6 + $0xc7c] sm:$0xf]  ;;  %v8914_v15 = vld [vmem:[#allocation6 + $0x660] sm:$0xf] }
 0x4ef   :  { %6046 = vmatpush.bf16.msra.mxu0 %v9387_v22  ;;  %v9692_v22 = vld [vmem:[#allocation6 + $0xc94] sm:$0xf0]  ;;  %v10328_v13 = vld [vmem:[#allocation6 + $0x2f8] sm:$0xf0] }
 0x4f0   :  { %6074 = vmatpush.bf16.msra.mxu2 %v9835_v30  ;;  %v9468_v30 = vld [vmem:[#allocation6 + $0xad4] sm:$0xf0]  ;;  %v9695_v47 = vor.u32 %v10632_v37, %v9692_v22  ;;  %v8467_v25 = vor.u32 %v10328_v13, %v8466_v12  ;;  %v10265_v37 = vld [vmem:[#allocation6 + $0x100] sm:$0xf0]  ;;  %v8438_v22 = vld [vmem:[#allocation6 + $0x2a8] sm:$0xf] }
 0x4f1   :  { %6060 = vmatpush.bf16.msra.mxu1 %v9611_v18  ;;  %v8992_v18 = vld [vmem:[#allocation6 + $0x71c] sm:$0xf0]  ;;  %v8102_v12 = vld [vmem:[#allocation6 + $0x8] sm:$0xf]  ;;  %v10237_v13 = vld [vmem:[#allocation6 + $0x20] sm:$0xf0] }
 0x4f2   :  { %6033 = vmatpush.bf16.msrb.mxu3 %v9135_v34  ;;  %v9664_v34 = vld [vmem:[#allocation6 + $0xc5c] sm:$0xf0]  ;;  %v8995_v53 = vor.u32 %v10457_v43, %v8992_v18  ;;  %v8662_v18 = vld [vmem:[#allocation6 + $0x468] sm:$0xf] }
 0x4f3   :  { %6047 = vmatpush.bf16.msra.mxu0 %v9359_v49  ;;  %v9471_v49 = vor.u32 %v10576_v32, %v9468_v30  ;;  %v10321_v32 = vld [vmem:[#allocation6 + $0x2c0] sm:$0xf0]  ;;  %v8886_v30 = vld [vmem:[#allocation6 + $0x628] sm:$0xf]  ;;  %v8663_v14 = vor.u32 %v10377_v45, %v8662_v18 }
 0x4f4   :  { %6075 = vmatpush.bf16.msra.mxu2 %v9807_v51  ;;  %v10286_v51 = vld [vmem:[#allocation6 + $0x1a8] sm:$0xf0] }
 0x4f5   :  { %6061 = vmatpush.bf16.msra.mxu1 %v9583_v52  ;;  %v10454_v52 = vld [vmem:[#allocation6 + $0x6e8] sm:$0xf0] }
 0x4f6   :  { %6034 = vmatpush.bf16.msrb.mxu3 %v9107_v56  ;;  %v9667_v56 = vor.u32 %v10625_v3, %v9664_v34  ;;  %v8971_v2 = vor.u32 %v10454_v52, %v8970_v23  ;;  %v8186_v3 = vld [vmem:[#allocation6 + $0xb0] sm:$0xf]  ;;  %v10258_v34 = vld [vmem:[#allocation6 + $0xc8] sm:$0xf0] }
 0x4f7   :  { %6048 = vmatpush.bf16.msra.mxu0 %v9331_v35  ;;  %v8299_v35 = vor.u32 %v10286_v51, %v8298_v38  ;;  %v10314_v38 = vld [vmem:[#allocation6 + $0x288] sm:$0xf0]  ;;  %v8858_v51 = vld [vmem:[#allocation6 + $0x5f0] sm:$0xf]  ;;  %v8187_v23 = vor.u32 %v10258_v34, %v8186_v3 }
 0x4f8   :  { %6076 = vmatpush.bf16.msra.mxu2 %v9779_v62  ;;  %v10398_v62 = vld [vmem:[#allocation6 + $0x528] sm:$0xf0]  ;;  %v8634_v52 = vld [vmem:[#allocation6 + $0x430] sm:$0xf]  ;;  %v8859_v28 = vor.u32 %v10426_v40, %v8858_v51  ;;  %v10503_v40 = vld [vmem:[#allocation6 + $0x870] sm:$0xf0] }
 0x4f9   :  { %6062 = vmatpush.bf16.msra.mxu1 %v9555_v0  ;;  %v10279_v0 = vld [vmem:[#allocation6 + $0x170] sm:$0xf0] }
 0x4fa   :  { %6035 = vmatpush.bf16.msrb.mxu3 %v9079_v59  ;;  %v10447_v59 = vld [vmem:[#allocation6 + $0x6b0] sm:$0xf0]  ;;  %v8271_v9 = vor.u32 %v10279_v0, %v8270_v10  ;;  %v8606_v0 = vld [vmem:[#allocation6 + $0x3f8] sm:$0xf] }
 0x4fb   :  { %6049 = vmatpush.bf16.msra.mxu0 %v9303_v57  ;;  %v8747_v57 = vor.u32 %v10398_v62, %v8746_v33  ;;  %v8943_v11 = vor.u32 %v10447_v59, %v8942_v5  ;;  %v10307_v33 = vld [vmem:[#allocation6 + $0x250] sm:$0xf0]  ;;  %v8830_v62 = vld [vmem:[#allocation6 + $0x5b8] sm:$0xf]  ;;  %v8130_v5 = vld [vmem:[#allocation6 + $0x40] sm:$0xf] }
 0x4fc   :  { %6077 = vmatpush.bf16.msra.mxu2 %v9751_v6  ;;  %v8718_v6 = vld [vmem:[#allocation6 + $0x4d8] sm:$0xf]  ;;  %v10244_v59 = vld [vmem:[#allocation6 + $0x58] sm:$0xf0] }
 0x4fd   :  { %6063 = vmatpush.bf16.msra.mxu1 %v9527_v31  ;;  %v8242_v31 = vld [vmem:[#allocation6 + $0x120] sm:$0xf] }
 0x4fe   :  { %6036 = vmatpush.bf16.msrb.mxu3 %v9051_v16  ;;  %v10440_v16 = vld [vmem:[#allocation6 + $0x678] sm:$0xf0]  ;;  %v8243_v20 = vor.u32 %v10272_v46, %v8242_v31  ;;  %v8131_v31 = vor.u32 %v10244_v59, %v8130_v5 }
 0x4ff   :  { %6050 = vmatpush.bf16.msra.mxu0 %v9275_v19  ;;  %v8719_v19 = vor.u32 %v10391_v7, %v8718_v6  ;;  %v8915_v26 = vor.u32 %v10440_v16, %v8914_v15  ;;  %v8802_v6 = vld [vmem:[#allocation6 + $0x580] sm:$0xf]  ;;  %v10412_v7 = vld [vmem:[#allocation6 + $0x598] sm:$0xf0] }
 0x500   :  { %6078 = vmatpush.bf16.msra.mxu2 %v9723_v21  ;;  %v8690_v21 = vld [vmem:[#allocation6 + $0x4a0] sm:$0xf]  ;;  %v10356_v46 = vld [vmem:[#allocation6 + $0x3d8] sm:$0xf0]  ;;  %v8803_v16 = vor.u32 %v10412_v7, %v8802_v6  ;;  %v10489_v7 = vld [vmem:[#allocation6 + $0x800] sm:$0xf0] }
 0x501   :  { %6064 = vmatpush.bf16.msra.mxu1 %v9499_v36  ;;  %v8214_v36 = vld [vmem:[#allocation6 + $0xe8] sm:$0xf]  ;;  %v10608_v5 = vld [vmem:[#allocation6 + $0xbb8] sm:$0xf0] }
 0x502   :  { %6037 = vmatpush.bf16.msrb.mxu3 %v9023_v41  ;;  %v10433_v41 = vld [vmem:[#allocation6 + $0x640] sm:$0xf0]  ;;  %v8215_v43 = vor.u32 %v10265_v37, %v8214_v36  ;;  %v9418_v37 = vld [vmem:[#allocation6 + $0xa50] sm:$0xf] }
 0x503   :  { %6051 = vmatpush.bf16.msra.mxu0 %v9247_v42  ;;  %v8691_v42 = vor.u32 %v10384_v24, %v8690_v21  ;;  %v8887_v17 = vor.u32 %v10433_v41, %v8886_v30  ;;  %v8774_v21 = vld [vmem:[#allocation6 + $0x548] sm:$0xf]  ;;  %v10405_v24 = vld [vmem:[#allocation6 + $0x560] sm:$0xf0]  ;;  %v8103_v30 = vor.u32 %v10237_v13, %v8102_v12  ;;  %v10678_v41 = vld [vmem:[#allocation6 + $0xde8] sm:$0xf0] }
 0x504   :  { %6079 = vmatpush.bf16.msra.mxu2 %v9695_v47  ;;  %v8439_v47 = vor.u32 %v10321_v32, %v8438_v22  ;;  %v10566_v22 = vld [vmem:[#allocation6 + $0xa68] sm:$0xf0]  ;;  %v9866_v32 = vld [vmem:[#allocation6 + $0xdd0] sm:$0xf]  ;;  %v8775_v45 = vor.u32 %v10405_v24, %v8774_v21  ;;  %v10657_v12 = vld [vmem:[#allocation6 + $0xd40] sm:$0xf0] }
 0x505   :  { %6065 = vmatpush.bf16.msra.mxu1 %v9471_v49  ;;  %v8410_v49 = vld [vmem:[#allocation6 + $0x270] sm:$0xf]  ;;  %v9419_v34 = vor.u32 %v10566_v22, %v9418_v37  ;;  %v9558_v13 = vld [vmem:[#allocation6 + $0xb68] sm:$0xf]  ;;  %v10482_v24 = vld [vmem:[#allocation6 + $0x7c8] sm:$0xf0] }
 0x506   :  { %6038 = vmatpush.bf16.msrb.mxu3 %v8995_v53  ;;  %v10370_v53 = vld [vmem:[#allocation6 + $0x448] sm:$0xf0]  ;;  %v9754_v37 = vld [vmem:[#allocation6 + $0xcf0] sm:$0xf] }
 0x507   :  { %6052 = vmatpush.bf16.msra.mxu0 %v9219_v55  ;;  %v8411_v55 = vor.u32 %v10314_v38, %v8410_v49  ;;  %v9166_v49 = vld [vmem:[#allocation6 + $0x858] sm:$0xf]  ;;  %v9867_v38 = vor.u32 %v10678_v41, %v9866_v32  ;;  %v10650_v22 = vld [vmem:[#allocation6 + $0xd08] sm:$0xf0]  ;;  %v9530_v32 = vld [vmem:[#allocation6 + $0xb30] sm:$0xf] }
 0x508   :  { %6080 = vmatpush.bf16.msra.mxu2 %v9667_v56  ;;  %v10251_v56 = vld [vmem:[#allocation6 + $0x90] sm:$0xf0] }
 0x509   :  { %6066 = vmatpush.bf16.msra.mxu1 %v9443_v54  ;;  %6039 = vmatmul.bf16.vlgmr.msrb.gmra.mxu3 %v11264_v48  ;;  %v8159_v10 = vor.u32 %v10251_v56, %v8158_v29  ;;  %v10615_v29 = vld [vmem:[#allocation6 + $0xbf0] sm:$0xf0]  ;;  %v9167_v56 = vor.u32 %v10503_v40, %v9166_v49 }
 0x50a   :  { %6087 = vmatpush.bf16.msra.mxu3 %v8299_v35  ;;  %6053 = vmatmul.bf16.vlgmr.msra.gmra.mxu0 %v11272_v39  ;;  %v8382_v35 = vld [vmem:[#allocation6 + $0x238] sm:$0xf]  ;;  %v10643_v49 = vld [vmem:[#allocation6 + $0xcd0] sm:$0xf0] }
 0x50b   :  { %6101 = vmatpush.bf16.msrb.mxu0 %v8523_v63  ;;  %6081 = vmatmul.bf16.vlgmr.msra.gmra.mxu2 %v11268_v50  ;;  %v10419_v63 = vld [vmem:[#allocation6 + $0x5d0] sm:$0xf0]  ;;  %v8383_v54 = vor.u32 %v10307_v33, %v8382_v35  ;;  %v9138_v33 = vld [vmem:[#allocation6 + $0x820] sm:$0xf] }
 0x50c   :  { %6129 = vmatpush.bf16.msrb.mxu2 %v8971_v2  ;;  %6067 = vmatmul.bf16.vlgmr.msra.gmra.mxu1 %v11277_v60  ;;  %v8635_v2 = vor.u32 %v10370_v53, %v8634_v52  ;;  %v8831_v61 = vor.u32 %v10419_v63, %v8830_v62  ;;  %v9838_v53 = vld [vmem:[#allocation6 + $0xd98] sm:$0xf]  ;;  %v10496_v63 = vld [vmem:[#allocation6 + $0x838] sm:$0xf0] }
 0x50d   :  { %6115 = vmatpush.bf16.msrb.mxu1 %v8747_v57  ;;  %v8354_v57 = vld [vmem:[#allocation6 + $0x200] sm:$0xf]  ;;  %v9139_v59 = vor.u32 %v10496_v63, %v9138_v33  ;;  %v8998_v63 = vld [vmem:[#allocation6 + $0x708] sm:$0xf] }
 0x50e   :  { %6088 = vmatpush.bf16.msra.mxu3 %v8271_v9  ;;  %v10300_v9 = vld [vmem:[#allocation6 + $0x218] sm:$0xf0]  ;;  %v9474_v33 = vld [vmem:[#allocation6 + $0xac0] sm:$0xf] }
 0x50f   :  { %6102 = vmatpush.bf16.msrb.mxu0 %v8495_v8  ;;  %v8607_v8 = vor.u32 %v10363_v1, %v8606_v0  ;;  %v8355_v15 = vor.u32 %v10300_v9, %v8354_v57  ;;  %v9810_v1 = vld [vmem:[#allocation6 + $0xd60] sm:$0xf]  ;;  %v9110_v9 = vld [vmem:[#allocation6 + $0x7e8] sm:$0xf] }
 0x510   :  { %6130 = vmatpush.bf16.msrb.mxu2 %v8943_v11  ;;  %v8578_v11 = vld [vmem:[#allocation6 + $0x3c0] sm:$0xf] }
 0x511   :  { %6116 = vmatpush.bf16.msrb.mxu1 %v8719_v19  ;;  %v8326_v19 = vld [vmem:[#allocation6 + $0x1c8] sm:$0xf]  ;;  %v8579_v36 = vor.u32 %v10356_v46, %v8578_v11  ;;  %v10545_v11 = vld [vmem:[#allocation6 + $0x9c0] sm:$0xf0] }
 0x512   :  { %6089 = vmatpush.bf16.msra.mxu3 %v8243_v20  ;;  %v10293_v20 = vld [vmem:[#allocation6 + $0x1e0] sm:$0xf0]  ;;  %v9782_v46 = vld [vmem:[#allocation6 + $0xd28] sm:$0xf] }
 0x513   :  { %6103 = vmatpush.bf16.msrb.mxu0 %v8467_v25  ;;  %v9194_v25 = vld [vmem:[#allocation6 + $0x890] sm:$0xf]  ;;  %v8327_v18 = vor.u32 %v10293_v20, %v8326_v19  ;;  %v9783_v21 = vor.u32 %v10657_v12, %v9782_v46  ;;  %v10451_v46 = vld [vmem:[#allocation6 + $0x6d4] sm:$0xf] }
 0x514   :  { %6131 = vmatpush.bf16.msrb.mxu2 %v8915_v26  ;;  %v10510_v26 = vld [vmem:[#allocation6 + $0x8a8] sm:$0xf0]  ;;  %v9082_v20 = vld [vmem:[#allocation6 + $0x7b0] sm:$0xf] }
 0x515   :  { %6117 = vmatpush.bf16.msrb.mxu1 %v8691_v42  ;;  %v8550_v42 = vld [vmem:[#allocation6 + $0x388] sm:$0xf]  ;;  %v9195_v3 = vor.u32 %v10510_v26, %v9194_v25  ;;  %v9306_v25 = vld [vmem:[#allocation6 + $0x970] sm:$0xf]  ;;  %v10538_v26 = vld [vmem:[#allocation6 + $0x988] sm:$0xf0]  ;;  %v9083_v41 = vor.u32 %v10482_v24, %v9082_v20 }
 0x516   :  { %6090 = vmatpush.bf16.msra.mxu3 %v8215_v43  ;;  %v10349_v43 = vld [vmem:[#allocation6 + $0x3a0] sm:$0xf0]  ;;  %v8972_v12 = vld [vmem:[#allocation6 + $0x6ec] sm:$0xf0] }
 0x517   :  { %6104 = vmatpush.bf16.msrb.mxu0 %v8439_v47  ;;  %v9642_v47 = vld [vmem:[#allocation6 + $0xc10] sm:$0xf]  ;;  %v8551_v51 = vor.u32 %v10349_v43, %v8550_v42  ;;  %v9307_v42 = vor.u32 %v10538_v26, %v9306_v25  ;;  %v9054_v43 = vld [vmem:[#allocation6 + $0x778] sm:$0xf]  ;;  %v10573_v20 = vld [vmem:[#allocation6 + $0xaa0] sm:$0xf0] }
 0x518   :  { %6132 = vmatpush.bf16.msrb.mxu2 %v8887_v17  ;;  %v10622_v17 = vld [vmem:[#allocation6 + $0xc28] sm:$0xf0] }
 0x519   :  { %6118 = vmatpush.bf16.msrb.mxu1 %v8663_v14  ;;  %v9390_v14 = vld [vmem:[#allocation6 + $0xa18] sm:$0xf]  ;;  %v9643_v52 = vor.u32 %v10622_v17, %v9642_v47  ;;  %v10531_v17 = vld [vmem:[#allocation6 + $0x950] sm:$0xf0] }
 0x51a   :  { %6091 = vmatpush.bf16.msra.mxu3 %v8187_v23  ;;  %v10559_v23 = vld [vmem:[#allocation6 + $0xa30] sm:$0xf0]  ;;  %v9278_v47 = vld [vmem:[#allocation6 + $0x938] sm:$0xf] }
 0x51b   :  { %6105 = vmatpush.bf16.msrb.mxu0 %v8411_v55  ;;  %v10671_v55 = vld [vmem:[#allocation6 + $0xdb0] sm:$0xf0]  ;;  %v9391_v35 = vor.u32 %v10559_v23, %v9390_v14  ;;  %v9279_v14 = vor.u32 %v10531_v17, %v9278_v47  ;;  %v9026_v23 = vld [vmem:[#allocation6 + $0x740] sm:$0xf]  ;;  %v10444_v47 = vld [vmem:[#allocation6 + $0x69c] sm:$0xf] }
 0x51c   :  { %6133 = vmatpush.bf16.msrb.mxu2 %v8859_v28  ;;  %v9614_v28 = vld [vmem:[#allocation6 + $0xbd8] sm:$0xf]  ;;  %v9839_v62 = vor.u32 %v10671_v55, %v9838_v53  ;;  %v10468_v53 = vld [vmem:[#allocation6 + $0x758] sm:$0xf0]  ;;  %v9250_v55 = vld [vmem:[#allocation6 + $0x900] sm:$0xf] }
 0x51d   :  { %6119 = vmatpush.bf16.msrb.mxu1 %v8635_v2  ;;  %v9362_v2 = vld [vmem:[#allocation6 + $0x9e0] sm:$0xf]  ;;  %v9615_v0 = vor.u32 %v10615_v29, %v9614_v28  ;;  %v10524_v28 = vld [vmem:[#allocation6 + $0x918] sm:$0xf0]  ;;  %v8944_v17 = vld [vmem:[#allocation6 + $0x6b4] sm:$0xf0] }
 0x51e   :  { %6092 = vmatpush.bf16.msra.mxu3 %v8159_v10  ;;  %v10552_v10 = vld [vmem:[#allocation6 + $0x9f8] sm:$0xf0] }
 0x51f   :  { %6106 = vmatpush.bf16.msrb.mxu0 %v8383_v54  ;;  %v10664_v54 = vld [vmem:[#allocation6 + $0xd78] sm:$0xf0]  ;;  %v9363_v57 = vor.u32 %v10552_v10, %v9362_v2  ;;  %v9027_v2 = vor.u32 %v10468_v53, %v9026_v23  ;;  %v9251_v10 = vor.u32 %v10524_v28, %v9250_v55  ;;  %v10269_v23 = vld [vmem:[#allocation6 + $0x124] sm:$0xf]  ;;  %v8468_v55 = vld [vmem:[#allocation6 + $0x2fc] sm:$0xf0] }
 0x520   :  { %6134 = vmatpush.bf16.msrb.mxu2 %v8831_v61  ;;  %v9586_v61 = vld [vmem:[#allocation6 + $0xba0] sm:$0xf]  ;;  %v9811_v6 = vor.u32 %v10664_v54, %v9810_v1  ;;  %v9222_v1 = vld [vmem:[#allocation6 + $0x8c8] sm:$0xf]  ;;  %v10517_v54 = vld [vmem:[#allocation6 + $0x8e0] sm:$0xf0] }
 0x521   :  { %6120 = vmatpush.bf16.msrb.mxu1 %v8607_v8  ;;  %v9334_v8 = vld [vmem:[#allocation6 + $0x9a8] sm:$0xf]  ;;  %v10325_v53 = vld [vmem:[#allocation6 + $0x2e4] sm:$0xf] }
 0x522   :  { %6093 = vmatpush.bf16.msra.mxu3 %v8131_v31  ;;  %v9587_v31 = vor.u32 %v10608_v5, %v9586_v61  ;;  %v9335_v19 = vor.u32 %v10545_v11, %v9334_v8  ;;  %v9670_v5 = vld [vmem:[#allocation6 + $0xc48] sm:$0xf]  ;;  %v11294_v8 = vld [vmem:[#allocation15] sm:$0xff]  ;;  %v10437_v28 = vld [vmem:[#allocation6 + $0x664] sm:$0xf] }
 0x523   :  { %6107 = vmatpush.bf16.msrb.mxu0 %v8355_v15  ;;  %v10601_v15 = vld [vmem:[#allocation6 + $0xb80] sm:$0xf0]  ;;  %v3545_v26 = vperm.slane %v11294_v8, 0 }
 0x524   :  { %6135 = vmatpush.bf16.msrb.mxu2 %v8803_v16  ;;  %v9111_v16 = vor.u32 %v10489_v7, %v9110_v9  ;;  %v10339_v7 = vld [vmem:[#allocation6 + $0x354] sm:$0xf] }
 0x525   :  { %6121 = vmatpush.bf16.msrb.mxu1 %v8579_v36  ;;  %v9559_v36 = vor.u32 %v10601_v15, %v9558_v13  ;;  %v9223_v15 = vor.u32 %v10517_v54, %v9222_v1  ;;  %v10262_v54 = vld [vmem:[#allocation6 + $0xec] sm:$0xf] }
 0x526   :  { %6094 = vmatpush.bf16.msra.mxu3 %v8103_v30  ;;  %v10594_v30 = vld [vmem:[#allocation6 + $0xb48] sm:$0xf0] }
 0x527   :  { %6108 = vmatpush.bf16.msrb.mxu0 %v8327_v18  ;;  %v9755_v18 = vor.u32 %v10650_v22, %v9754_v37  ;;  %v5886_v11 = vpop.f32.mrf.mxu0  ;;  %v8748_v37 = vld [vmem:[#allocation6 + $0x52c] sm:$0xf0] }
 0x528   :  { %6136 = vmatpush.bf16.msrb.mxu2 %v8775_v45  ;;  %v10475_v45 = vld [vmem:[#allocation6 + $0x790] sm:$0xf0] }
 0x529   :  { %6122 = vmatpush.bf16.msrb.mxu1 %v8551_v51  ;;  %6095 = vmatmul.bf16.vlgmr.msra.gmra.mxu3 %v11244_v44  ;;  %v10587_v51 = vld [vmem:[#allocation6 + $0xb10] sm:$0xf0]  ;;  %v9055_v40 = vor.u32 %v10475_v45, %v9054_v43  ;;  %v8496_v45 = vld [vmem:[#allocation6 + $0x334] sm:$0xf0] }
 0x52a   :  { %6143 = vmatpush.bf16.msrb.mxu3 %v9195_v3  ;;  %6109 = vmatmul.bf16.vlgmr.msrb.gmra.mxu0 %v11252_v58  ;;  %v9531_v3 = vor.u32 %v10594_v30, %v9530_v32  ;;  %v8975_v32 = vor.u32 %v10451_v46, %v8972_v12  ;;  %v10276_v30 = vld [vmem:[#allocation6 + $0x15c] sm:$0xf]  ;;  %v10374_v12 = vld [vmem:[#allocation6 + $0x46c] sm:$0xf] }
 0x52b   :  { %6157 = vmatpush.bf16.msra.mxu0 %v9419_v34  ;;  %6137 = vmatmul.bf16.vlgmr.msrb.gmra.mxu2 %v11248_v27  ;;  %v9726_v34 = vld [vmem:[#allocation6 + $0xcb8] sm:$0xf] }
 0x52c   :  { %6185 = vmatpush.bf16.msra.mxu2 %v9867_v38  ;;  %6123 = vmatmul.bf16.vlgmr.msrb.gmra.mxu1 %v11256_v4  ;;  %v9502_v38 = vld [vmem:[#allocation6 + $0xaf8] sm:$0xf] }
 0x52d   :  { %6171 = vmatpush.bf16.msra.mxu1 %v9643_v52  ;;  %v9727_v52 = vor.u32 %v10643_v49, %v9726_v34  ;;  %v9503_v29 = vor.u32 %v10587_v51, %v9502_v38  ;;  %v10388_v38 = vld [vmem:[#allocation6 + $0x4dc] sm:$0xf]  ;;  %v8720_v51 = vld [vmem:[#allocation6 + $0x4f4] sm:$0xf0] }
 0x52e   :  { %6144 = vmatpush.bf16.msrb.mxu3 %v9167_v56  ;;  %v9698_v56 = vld [vmem:[#allocation6 + $0xc80] sm:$0xf]  ;;  %v11299_v43 = vpop.f32.mrf.mxu2 }
 0x52f   :  { %6158 = vmatpush.bf16.msra.mxu0 %v9391_v35  ;;  %v10636_v35 = vld [vmem:[#allocation6 + $0xc98] sm:$0xf0] }
 0x530   :  { %6186 = vmatpush.bf16.msra.mxu2 %v9839_v62  ;;  %v10580_v62 = vld [vmem:[#allocation6 + $0xad8] sm:$0xf0]  ;;  %v9699_v61 = vor.u32 %v10636_v35, %v9698_v56  ;;  %v8723_v56 = vor.u32 %v10388_v38, %v8720_v51  ;;  %v5888_v35 = vpop.f32.mrf.mxu0  ;;  %v8832_v51 = vld [vmem:[#allocation6 + $0x5d4] sm:$0xf0] }
 0x531   :  { %6172 = vmatpush.bf16.msra.mxu1 %v9615_v0  ;;  %v10461_v0 = vld [vmem:[#allocation6 + $0x720] sm:$0xf0]  ;;  %v9475_v9 = vor.u32 %v10580_v62, %v9474_v33  ;;  %v10416_v38 = vld [vmem:[#allocation6 + $0x5bc] sm:$0xf] }
 0x532   :  { %6145 = vmatpush.bf16.msrb.mxu3 %v9139_v59  ;;  %v10629_v59 = vld [vmem:[#allocation6 + $0xc60] sm:$0xf0]  ;;  %v8999_v13 = vor.u32 %v10461_v0, %v8998_v63 }
 0x533   :  { %6159 = vmatpush.bf16.msra.mxu0 %v9363_v57  ;;  %v10283_v57 = vld [vmem:[#allocation6 + $0x194] sm:$0xf]  ;;  %v9671_v24 = vor.u32 %v10629_v59, %v9670_v5  ;;  %v10381_v63 = vld [vmem:[#allocation6 + $0x4a4] sm:$0xf]  ;;  %v10318_v5 = vld [vmem:[#allocation6 + $0x2ac] sm:$0xf] }
 0x534   :  { %6187 = vmatpush.bf16.msra.mxu2 %v9811_v6  ;;  %v8300_v6 = vld [vmem:[#allocation6 + $0x1ac] sm:$0xf0] }
 0x535   :  { %6173 = vmatpush.bf16.msra.mxu1 %v9587_v31  ;;  %v8524_v31 = vld [vmem:[#allocation6 + $0x36c] sm:$0xf0]  ;;  %v8303_v25 = vor.u32 %v10283_v57, %v8300_v6  ;;  %v8440_v57 = vld [vmem:[#allocation6 + $0x2c4] sm:$0xf0] }
 0x536   :  { %6146 = vmatpush.bf16.msrb.mxu3 %v9111_v16  ;;  %v5872_v16 = vpop.f32.mrf.mxu3  ;;  %v8527_v22 = vor.u32 %v10339_v7, %v8524_v31  ;;  %v8888_v6 = vld [vmem:[#allocation6 + $0x644] sm:$0xf0] }
 0x537   :  { %6160 = vmatpush.bf16.msra.mxu0 %v9335_v19  ;;  %v9446_v19 = vld [vmem:[#allocation6 + $0xa88] sm:$0xf]  ;;  %v5873_v34 = vadd.f32 %v5872_v16, %v3545_v26 }
 0x538   :  { %6188 = vmatpush.bf16.msra.mxu2 %v9783_v21  ;;  %v11296_v21 = vpop.f32.mrf.mxu1 }
 0x539   :  { %6174 = vmatpush.bf16.msra.mxu1 %v9559_v36  ;;  %v10395_v36 = vld [vmem:[#allocation6 + $0x514] sm:$0xf]  ;;  %v5887_v33 = vadd.f32 %v5886_v11, %v5873_v34  ;;  %v11307_v11 = vpop.f32.mrf.mxu2  ;;  %v10304_v34 = vld [vmem:[#allocation6 + $0x23c] sm:$0xf] }
 0x53a   :  { %6147 = vmatpush.bf16.msrb.mxu3 %v9083_v41  ;;  %v8272_v41 = vld [vmem:[#allocation6 + $0x174] sm:$0xf0] }
 0x53b   :  { %6161 = vmatpush.bf16.msra.mxu0 %v9307_v42  ;;  %v10332_v42 = vld [vmem:[#allocation6 + $0x31c] sm:$0xf]  ;;  %v8275_v49 = vor.u32 %v10276_v30, %v8272_v41  ;;  %v5901_v31 = vadd.f32 %v11296_v21, %v5887_v33  ;;  %v10367_v41 = vld [vmem:[#allocation6 + $0x434] sm:$0xf]  ;;  %v10241_v33 = vld [vmem:[#allocation6 + $0x44] sm:$0xf] }
 0x53c   :  { %6189 = vmatpush.bf16.msra.mxu2 %v9755_v18  ;;  %v9447_v18 = vor.u32 %v10573_v20, %v9446_v19  ;;  %v10255_v19 = vld [vmem:[#allocation6 + $0xb4] sm:$0xf]  ;;  %v8188_v20 = vld [vmem:[#allocation6 + $0xcc] sm:$0xf0] }
 0x53d   :  { %6175 = vmatpush.bf16.msra.mxu1 %v9531_v3  ;;  %v8751_v3 = vor.u32 %v10395_v36, %v8748_v37  ;;  %v8412_v36 = vld [vmem:[#allocation6 + $0x28c] sm:$0xf0]  ;;  %v10423_v37 = vld [vmem:[#allocation6 + $0x5f4] sm:$0xf]  ;;  %v5915_v21 = vadd.f32 %v11299_v43, %v5901_v31  ;;  %v8191_v30 = vor.u32 %v10255_v19, %v8188_v20  ;;  %v8776_v19 = vld [vmem:[#allocation6 + $0x564] sm:$0xf0] }
 0x53e   :  { %6148 = vmatpush.bf16.msrb.mxu3 %v9055_v40  ;;  %v8499_v40 = vor.u32 %v10332_v42, %v8496_v45  ;;  %v5874_v1 = vpop.f32.mrf.mxu3  ;;  %v8636_v42 = vld [vmem:[#allocation6 + $0x44c] sm:$0xf0]  ;;  %v10507_v20 = vld [vmem:[#allocation6 + $0x894] sm:$0xf] }
 0x53f   :  { %6162 = vmatpush.bf16.msra.mxu0 %v9279_v14  ;;  %v8947_v14 = vor.u32 %v10444_v47, %v8944_v17  ;;  %v10248_v17 = vld [vmem:[#allocation6 + $0x7c] sm:$0xf] }
 0x540   :  { %6190 = vmatpush.bf16.msra.mxu2 %v9727_v52  ;;  %v8244_v52 = vld [vmem:[#allocation6 + $0x13c] sm:$0xf0]  ;;  %v5902_v59 = vpop.f32.mrf.mxu1 }
 0x541   :  { %6176 = vmatpush.bf16.msra.mxu1 %v9503_v29  ;;  %v8916_v29 = vld [vmem:[#allocation6 + $0x67c] sm:$0xf0]  ;;  %v8247_v62 = vor.u32 %v10269_v23, %v8244_v52 }
 0x542   :  { %6149 = vmatpush.bf16.msrb.mxu3 %v9027_v2  ;;  %v8692_v2 = vld [vmem:[#allocation6 + $0x4bc] sm:$0xf0]  ;;  %v8919_v0 = vor.u32 %v10437_v28, %v8916_v29  ;;  %v8835_v29 = vor.u32 %v10416_v38, %v8832_v51  ;;  %v10500_v51 = vld [vmem:[#allocation6 + $0x85c] sm:$0xf] }
 0x543   :  { %6163 = vmatpush.bf16.msra.mxu0 %v9251_v10  ;;  %v8471_v10 = vor.u32 %v10325_v53, %v8468_v55  ;;  %v8695_v7 = vor.u32 %v10381_v63, %v8692_v2  ;;  %v10360_v53 = vld [vmem:[#allocation6 + $0x3fc] sm:$0xf]  ;;  %v8608_v55 = vld [vmem:[#allocation6 + $0x414] sm:$0xf0] }
 0x544   :  { %6191 = vmatpush.bf16.msra.mxu2 %v9699_v61  ;;  %v8216_v61 = vld [vmem:[#allocation6 + $0x104] sm:$0xf0] }
 0x545   :  { %6177 = vmatpush.bf16.msra.mxu1 %v9475_v9  ;;  %v10430_v9 = vld [vmem:[#allocation6 + $0x62c] sm:$0xf]  ;;  %v8219_v46 = vor.u32 %v10262_v54, %v8216_v61  ;;  %v8611_v54 = vor.u32 %v10360_v53, %v8608_v55  ;;  %v10353_v61 = vld [vmem:[#allocation6 + $0x3c4] sm:$0xf]  ;;  %v9392_v53 = vld [vmem:[#allocation6 + $0xa34] sm:$0xf0] }
 0x546   :  { %6150 = vmatpush.bf16.msrb.mxu3 %v8999_v13  ;;  %v8664_v13 = vld [vmem:[#allocation6 + $0x484] sm:$0xf0]  ;;  %v8891_v16 = vor.u32 %v10430_v9, %v8888_v6  ;;  %v8580_v9 = vld [vmem:[#allocation6 + $0x3dc] sm:$0xf0]  ;;  %v10234_v6 = vld [vmem:[#allocation6 + $0xc] sm:$0xf] }
 0x547   :  { %6164 = vmatpush.bf16.msra.mxu0 %v9223_v15  ;;  %v8443_v15 = vor.u32 %v10318_v5, %v8440_v57  ;;  %v5942_v47 = vpop.f32.mrf.mxu0 }
 0x548   :  { %6192 = vmatpush.bf16.msra.mxu2 %v9671_v24  ;;  %v10311_v24 = vld [vmem:[#allocation6 + $0x274] sm:$0xf] }
 0x549   :  { %6178 = vmatpush.bf16.msra.mxu1 %v9447_v18  ;;  %6151 = vmatmul.bf16.vlgmr.msrb.gmra.mxu3 %v11264_v48  ;;  %v8415_v18 = vor.u32 %v10311_v24, %v8412_v36  ;;  %v5956_v43 = vpop.f32.mrf.mxu1  ;;  %v9196_v24 = vld [vmem:[#allocation6 + $0x8ac] sm:$0xf0]  ;;  %v8583_v36 = vor.u32 %v10353_v61, %v8580_v9  ;;  %v10549_v61 = vld [vmem:[#allocation6 + $0x9e4] sm:$0xf] }
 0x54a   :  { %6199 = vmatpush.bf16.msra.mxu3 %v8303_v25  ;;  %6165 = vmatmul.bf16.vlgmr.msra.gmra.mxu0 %v11272_v39  ;;  %v5875_v25 = vadd.f32 %v5874_v1, %v3545_v26  ;;  %v8804_v1 = vld [vmem:[#allocation6 + $0x59c] sm:$0xf0]  ;;  %v10661_v9 = vld [vmem:[#allocation6 + $0xd64] sm:$0xf] }
 0x54b   :  { %6213 = vmatpush.bf16.msrb.mxu0 %v8527_v22  ;;  %6193 = vmatmul.bf16.vlgmr.msra.gmra.mxu2 %v11268_v50  ;;  %v8860_v22 = vld [vmem:[#allocation6 + $0x60c] sm:$0xf0] }
 0x54c   :  { %6241 = vmatpush.bf16.msrb.mxu2 %v8975_v32  ;;  %6179 = vmatmul.bf16.vlgmr.msra.gmra.mxu1 %v11277_v60  ;;  %v8667_v32 = vor.u32 %v10374_v12, %v8664_v13  ;;  %v8863_v45 = vor.u32 %v10423_v37, %v8860_v22  ;;  %v5889_v26 = vadd.f32 %v5888_v35, %v5875_v25  ;;  %v10297_v35 = vld [vmem:[#allocation6 + $0x204] sm:$0xf]  ;;  %v10290_v12 = vld [vmem:[#allocation6 + $0x1cc] sm:$0xf]  ;;  %v8328_v13 = vld [vmem:[#allocation6 + $0x1e4] sm:$0xf0] }
 0x54d   :  { %6227 = vmatpush.bf16.msrb.mxu1 %v8751_v3  ;;  %v8160_v3 = vld [vmem:[#allocation6 + $0x94] sm:$0xf0]  ;;  %v10563_v22 = vld [vmem:[#allocation6 + $0xa54] sm:$0xf] }
 0x54e   :  { %6200 = vmatpush.bf16.msra.mxu3 %v8275_v49  ;;  %v8384_v49 = vld [vmem:[#allocation6 + $0x254] sm:$0xf0]  ;;  %v8163_v52 = vor.u32 %v10248_v17, %v8160_v3  ;;  %v5903_v63 = vadd.f32 %v5902_v59, %v5889_v26  ;;  %v10402_v59 = vld [vmem:[#allocation6 + $0x54c] sm:$0xf]  ;;  %v10619_v3 = vld [vmem:[#allocation6 + $0xc14] sm:$0xf] }
 0x54f   :  { %6214 = vmatpush.bf16.msrb.mxu0 %v8499_v40  ;;  %v5928_v40 = vpop.f32.mrf.mxu3  ;;  %v8387_v28 = vor.u32 %v10304_v34, %v8384_v49  ;;  %v5944_v37 = vpop.f32.mrf.mxu0  ;;  %v9644_v34 = vld [vmem:[#allocation6 + $0xc2c] sm:$0xf0]  ;;  %v9199_v49 = vor.u32 %v10507_v20, %v9196_v24  ;;  %v10654_v24 = vld [vmem:[#allocation6 + $0xd2c] sm:$0xf] }
 0x550   :  { %6242 = vmatpush.bf16.msrb.mxu2 %v8947_v14  ;;  %v8639_v14 = vor.u32 %v10367_v41, %v8636_v42  ;;  %v5929_v23 = vadd.f32 %v5928_v40, %v5915_v21  ;;  %v10675_v21 = vld [vmem:[#allocation6 + $0xdd4] sm:$0xf]  ;;  %v9868_v42 = vld [vmem:[#allocation6 + $0xdec] sm:$0xf0] }
 0x551   :  { %6228 = vmatpush.bf16.msrb.mxu1 %v8723_v56  ;;  %v5970_v56 = vpop.f32.mrf.mxu2  ;;  %v5958_v17 = vpop.f32.mrf.mxu1  ;;  %v9871_v40 = vor.u32 %v10675_v21, %v9868_v42 }
 0x552   :  { %6201 = vmatpush.bf16.msra.mxu3 %v8247_v62  ;;  %v8132_v62 = vld [vmem:[#allocation6 + $0x5c] sm:$0xf0]  ;;  %v5943_v2 = vadd.f32 %v5942_v47, %v5929_v23  ;;  %v8779_v47 = vor.u32 %v10402_v59, %v8776_v19  ;;  %v9168_v23 = vld [vmem:[#allocation6 + $0x874] sm:$0xf0]  ;;  %v9336_v19 = vld [vmem:[#allocation6 + $0x9c4] sm:$0xf0] }
 0x553   :  { %6215 = vmatpush.bf16.msrb.mxu0 %v8471_v10  ;;  %v8356_v10 = vld [vmem:[#allocation6 + $0x21c] sm:$0xf0]  ;;  %v8135_v57 = vor.u32 %v10241_v33, %v8132_v62  ;;  %v10612_v33 = vld [vmem:[#allocation6 + $0xbdc] sm:$0xf]  ;;  %v9616_v62 = vld [vmem:[#allocation6 + $0xbf4] sm:$0xf0] }
 0x554   :  { %6243 = vmatpush.bf16.msrb.mxu2 %v8919_v0  ;;  %v10409_v0 = vld [vmem:[#allocation6 + $0x584] sm:$0xf]  ;;  %v5957_v5 = vadd.f32 %v5956_v43, %v5943_v2  ;;  %v8359_v31 = vor.u32 %v10297_v35, %v8356_v10  ;;  %v9171_v2 = vor.u32 %v10500_v51, %v9168_v23 }
 0x555   :  { %6229 = vmatpush.bf16.msrb.mxu1 %v8695_v7  ;;  %v8104_v7 = vld [vmem:[#allocation6 + $0x24] sm:$0xf0] }
 0x556   :  { %6202 = vmatpush.bf16.msra.mxu3 %v8219_v46  ;;  %v8807_v46 = vor.u32 %v10409_v0, %v8804_v1  ;;  %v8107_v41 = vor.u32 %v10234_v6, %v8104_v7  ;;  %v10493_v0 = vld [vmem:[#allocation6 + $0x824] sm:$0xf]  ;;  %v9812_v6 = vld [vmem:[#allocation6 + $0xd7c] sm:$0xf0] }
 0x557   :  { %6216 = vmatpush.bf16.msrb.mxu0 %v8443_v15  ;;  %v5917_v15 = vadd.f32 %v11307_v11, %v5903_v63  ;;  %v5930_v25 = vpop.f32.mrf.mxu3  ;;  %v8331_v11 = vor.u32 %v10290_v12, %v8328_v13  ;;  %v10605_v7 = vld [vmem:[#allocation6 + $0xba4] sm:$0xf]  ;;  %v10486_v13 = vld [vmem:[#allocation6 + $0x7ec] sm:$0xf]  ;;  %v9815_v59 = vor.u32 %v10661_v9, %v9812_v6  ;;  %v9000_v6 = vld [vmem:[#allocation6 + $0x724] sm:$0xf0] }
 0x558   :  { %6244 = vmatpush.bf16.msrb.mxu2 %v8891_v16  ;;  %v5971_v16 = vadd.f32 %v5970_v56, %v5957_v5  ;;  %v9840_v56 = vld [vmem:[#allocation6 + $0xdb4] sm:$0xf0]  ;;  %v9364_v5 = vld [vmem:[#allocation6 + $0x9fc] sm:$0xf0]  ;;  %v10458_v9 = vld [vmem:[#allocation6 + $0x70c] sm:$0xf] }
 0x559   :  { %6230 = vmatpush.bf16.msrb.mxu1 %v8667_v32  ;;  %v9420_v32 = vld [vmem:[#allocation6 + $0xa6c] sm:$0xf0]  ;;  %v5972_v43 = vpop.f32.mrf.mxu2  ;;  %v9367_v12 = vor.u32 %v10549_v61, %v9364_v5  ;;  %v9476_v61 = vld [vmem:[#allocation6 + $0xadc] sm:$0xf0] }
 0x55a   :  { %6203 = vmatpush.bf16.msra.mxu3 %v8191_v30  ;;  %10694 = vtanh.f32 %v5971_v16  ;;  %v5931_v30 = vadd.f32 %v5930_v25, %v5917_v15  ;;  %v9423_v38 = vor.u32 %v10563_v22, %v9420_v32  ;;  %v9112_v15 = vld [vmem:[#allocation6 + $0x804] sm:$0xf0]  ;;  %v10542_v16 = vld [vmem:[#allocation6 + $0x9ac] sm:$0xf] }
 0x55b   :  { %6217 = vmatpush.bf16.msrb.mxu0 %v8415_v18  ;;  %v10346_v18 = vld [vmem:[#allocation6 + $0x38c] sm:$0xf]  ;;  %v9784_v25 = vld [vmem:[#allocation6 + $0xd44] sm:$0xf0]  ;;  %v9115_v32 = vor.u32 %v10486_v13, %v9112_v15  ;;  %v9339_v21 = vor.u32 %v10542_v16, %v9336_v19  ;;  %v8306_v15 = vld [vmem:[#allocation6 + $0x198] sm:$0xf] }
 0x55c   :  { %6245 = vmatpush.bf16.msrb.mxu2 %v8863_v45  ;;  %v8552_v45 = vld [vmem:[#allocation6 + $0x3a4] sm:$0xf0]  ;;  %v5945_v26 = vadd.f32 %v5944_v37, %v5931_v30  ;;  %v10479_v30 = vld [vmem:[#allocation6 + $0x7b4] sm:$0xf]  ;;  %v9787_v42 = vor.u32 %v10654_v24, %v9784_v25  ;;  %v8530_v19 = vld [vmem:[#allocation6 + $0x358] sm:$0xf] }
 0x55d   :  { %6231 = vmatpush.bf16.msrb.mxu1 %v8639_v14  ;;  %v8555_v14 = vor.u32 %v10346_v18, %v8552_v45  ;;  %v9560_v37 = vld [vmem:[#allocation6 + $0xb84] sm:$0xf0]  ;;  %v10535_v18 = vld [vmem:[#allocation6 + $0x974] sm:$0xf]  ;;  %v9308_v45 = vld [vmem:[#allocation6 + $0x98c] sm:$0xf0] }
 0x55e   :  { %6204 = vmatpush.bf16.msra.mxu3 %v8163_v52  ;;  %v10556_v52 = vld [vmem:[#allocation6 + $0xa1c] sm:$0xf]  ;;  %v5959_v55 = vadd.f32 %v5958_v17, %v5945_v26  ;;  %v9756_v17 = vld [vmem:[#allocation6 + $0xd0c] sm:$0xf0]  ;;  %v9672_v13 = vld [vmem:[#allocation6 + $0xc64] sm:$0xf0] }
 0x55f   :  { %6218 = vmatpush.bf16.msrb.mxu0 %v8387_v28  ;;  %v9647_v28 = vor.u32 %v10619_v3, %v9644_v34  ;;  %v9395_v10 = vor.u32 %v10556_v52, %v9392_v53  ;;  %v10591_v3 = vld [vmem:[#allocation6 + $0xb34] sm:$0xf]  ;;  %v9532_v34 = vld [vmem:[#allocation6 + $0xb4c] sm:$0xf0]  ;;  %v10640_v52 = vld [vmem:[#allocation6 + $0xcbc] sm:$0xf] }
 0x560   :  { %6246 = vmatpush.bf16.msrb.mxu2 %v8835_v29  ;;  %v10668_v29 = vld [vmem:[#allocation6 + $0xd9c] sm:$0xf]  ;;  %v10695_v35 = vpop.eup %10694  ;;  %v5973_v63 = vadd.f32 %v5972_v43, %v5959_v55  ;;  %v9280_v43 = vld [vmem:[#allocation6 + $0x954] sm:$0xf0]  ;;  %v9535_v23 = vor.u32 %v10591_v3, %v9532_v34  ;;  %v10287_v16 = vld [vmem:[#allocation6 + $0x1b0] sm:$0xf0] }
 0x561   :  { %6232 = vmatpush.bf16.msrb.mxu1 %v8611_v54  ;;  %6661 = vst [vmem:[%s11449_s12] sm:$0xff] %v10695_v35  ;;  %v9843_v1 = vor.u32 %v10668_v29, %v9840_v56  ;;  %v9140_v54 = vld [vmem:[#allocation6 + $0x83c] sm:$0xf0]  ;;  %v9728_v53 = vld [vmem:[#allocation6 + $0xcd4] sm:$0xf0]  ;;  %v10584_v55 = vld [vmem:[#allocation6 + $0xafc] sm:$0xf] }
 0x562   :  { %6205 = vmatpush.bf16.msra.mxu3 %v8135_v57  ;;  %10696 = vtanh.f32 %v5973_v63  ;;  %v9619_v57 = vor.u32 %v10612_v33, %v9616_v62  ;;  %v10465_v33 = vld [vmem:[#allocation6 + $0x744] sm:$0xf]  ;;  %v9731_v62 = vor.u32 %v10640_v52, %v9728_v53  ;;  %v9028_v35 = vld [vmem:[#allocation6 + $0x75c] sm:$0xf0]  ;;  %v10343_v24 = vld [vmem:[#allocation6 + $0x370] sm:$0xf0] }
 0x563   :  { %6219 = vmatpush.bf16.msrb.mxu0 %v8359_v31  ;;  %v9588_v31 = vld [vmem:[#allocation6 + $0xbbc] sm:$0xf0]  ;;  %v10521_v63 = vld [vmem:[#allocation6 + $0x904] sm:$0xf]  ;;  %v9031_v5 = vor.u32 %v10465_v33, %v9028_v35  ;;  %v8978_v25 = vld [vmem:[#allocation6 + $0x6d8] sm:$0xf] }
 0x564   :  { %6247 = vmatpush.bf16.msrb.mxu2 %v8807_v46  ;;  %v9143_v46 = vor.u32 %v10493_v0, %v9140_v54  ;;  %v9591_v20 = vor.u32 %v10605_v7, %v9588_v31  ;;  %v10633_v0 = vld [vmem:[#allocation6 + $0xc84] sm:$0xf]  ;;  %v10514_v7 = vld [vmem:[#allocation6 + $0x8cc] sm:$0xf]  ;;  %v8278_v34 = vld [vmem:[#allocation6 + $0x160] sm:$0xf] }
 0x565   :  { %6233 = vmatpush.bf16.msrb.mxu1 %v8583_v36  ;;  %v10598_v36 = vld [vmem:[#allocation6 + $0xb6c] sm:$0xf]  ;;  %v10577_v54 = vld [vmem:[#allocation6 + $0xac4] sm:$0xf]  ;;  %v8250_v33 = vld [vmem:[#allocation6 + $0x128] sm:$0xf] }
 0x566   :  { %6206 = vmatpush.bf16.msra.mxu3 %v8107_v41  ;;  %v9084_v41 = vld [vmem:[#allocation6 + $0x7cc] sm:$0xf0]  ;;  %v8474_v35 = vld [vmem:[#allocation6 + $0x2e8] sm:$0xf] }
 0x567   :  { %6220 = vmatpush.bf16.msrb.mxu0 %v8331_v11  ;;  %v9563_v11 = vor.u32 %v10598_v36, %v9560_v37  ;;  %v9087_v26 = vor.u32 %v10479_v30, %v9084_v41  ;;  %v10455_v36 = vld [vmem:[#allocation6 + $0x6f0] sm:$0xf0]  ;;  %v9003_v37 = vor.u32 %v10458_v9, %v9000_v6  ;;  %v9448_v30 = vld [vmem:[#allocation6 + $0xaa4] sm:$0xf0] }
 0x568   :  { %6248 = vmatpush.bf16.msrb.mxu2 %v8779_v47  ;;  %v10697_v22 = vpop.eup %10696  ;;  %v10647_v47 = vld [vmem:[#allocation6 + $0xcf4] sm:$0xf]  ;;  %v8979_v3 = vor.u32 %v10455_v36, %v8978_v25  ;;  %v8670_v36 = vld [vmem:[#allocation6 + $0x470] sm:$0xf] }
 0x569   :  { %6234 = vmatpush.bf16.msrb.mxu1 %v8555_v14  ;;  %6207 = vmatmul.bf16.vlgmr.msra.gmra.mxu3 %v11244_v44  ;;  %6668 = vst [vmem:[%s11449_s12 + $0x38] sm:$0xff] %v10697_v22  ;;  %v9759_v51 = vor.u32 %v10647_v47, %v9756_v17  ;;  %v10528_v14 = vld [vmem:[#allocation6 + $0x93c] sm:$0xf]  ;;  %v11324_v41 = vpop.f32.mrf.mxu1  ;;  %v10399_v47 = vld [vmem:[#allocation6 + $0x530] sm:$0xf0]  ;;  %v8531_v17 = vor.u32 %v10343_v24, %v8530_v19 }
 0x56a   :  { %6255 = vmatpush.bf16.msrb.mxu3 %v9199_v49  ;;  %6221 = vmatmul.bf16.vlgmr.msrb.gmra.mxu0 %v11252_v58  ;;  %v9311_v49 = vor.u32 %v10535_v18, %v9308_v45  ;;  %v9283_v56 = vor.u32 %v10528_v14, %v9280_v43  ;;  %v8307_v18 = vor.u32 %v10287_v16, %v8306_v15  ;;  %v3546_v45 = vperm.slane %v11294_v8, 1  ;;  %v8950_v14 = vld [vmem:[#allocation6 + $0x6a0] sm:$0xf]  ;;  %v10448_v43 = vld [vmem:[#allocation6 + $0x6b8] sm:$0xf0] }
 0x56b   :  { %6269 = vmatpush.bf16.msra.mxu0 %v9423_v38  ;;  %6249 = vmatmul.bf16.vlgmr.msrb.gmra.mxu2 %v11248_v27  ;;  %v10472_v38 = vld [vmem:[#allocation6 + $0x77c] sm:$0xf]  ;;  %v8894_v15 = vld [vmem:[#allocation6 + $0x630] sm:$0xf]  ;;  %v10434_v16 = vld [vmem:[#allocation6 + $0x648] sm:$0xf0] }
 0x56c   :  { %6297 = vmatpush.bf16.msra.mxu2 %v9871_v40  ;;  %6235 = vmatmul.bf16.vlgmr.msrb.gmra.mxu1 %v11256_v4  ;;  %v9056_v40 = vld [vmem:[#allocation6 + $0x794] sm:$0xf0]  ;;  %v8390_v8 = vld [vmem:[#allocation6 + $0x240] sm:$0xf] }
 0x56d   :  { %6283 = vmatpush.bf16.msra.mxu1 %v9647_v28  ;;  %v9504_v28 = vld [vmem:[#allocation6 + $0xb14] sm:$0xf0]  ;;  %v9059_v29 = vor.u32 %v10472_v38, %v9056_v40  ;;  %v10336_v40 = vld [vmem:[#allocation6 + $0x338] sm:$0xf0] }
 0x56e   :  { %6256 = vmatpush.bf16.msrb.mxu3 %v9171_v2  ;;  %v9252_v2 = vld [vmem:[#allocation6 + $0x91c] sm:$0xf0]  ;;  %v11327_v38 = vpop.f32.mrf.mxu2 }
 0x56f   :  { %6270 = vmatpush.bf16.msra.mxu0 %v9395_v10  ;;  %v9507_v10 = vor.u32 %v10584_v55, %v9504_v28  ;;  %v8726_v55 = vld [vmem:[#allocation6 + $0x4e0] sm:$0xf]  ;;  %v10392_v28 = vld [vmem:[#allocation6 + $0x4f8] sm:$0xf0] }
 0x570   :  { %6298 = vmatpush.bf16.msra.mxu2 %v9843_v1  ;;  %v9700_v1 = vld [vmem:[#allocation6 + $0xc9c] sm:$0xf0] }
 0x571   :  { %6284 = vmatpush.bf16.msra.mxu1 %v9619_v57  ;;  %v9255_v57 = vor.u32 %v10521_v63, %v9252_v2  ;;  %v9703_v31 = vor.u32 %v10633_v0, %v9700_v1  ;;  %v10329_v63 = vld [vmem:[#allocation6 + $0x300] sm:$0xf0]  ;;  %v8922_v2 = vld [vmem:[#allocation6 + $0x668] sm:$0xf]  ;;  %v8727_v0 = vor.u32 %v10392_v28, %v8726_v55  ;;  %v10420_v55 = vld [vmem:[#allocation6 + $0x5d8] sm:$0xf0] }
 0x572   :  { %6257 = vmatpush.bf16.msrb.mxu3 %v9143_v46  ;;  %v9224_v46 = vld [vmem:[#allocation6 + $0x8e4] sm:$0xf0]  ;;  %v8475_v9 = vor.u32 %v10329_v63, %v8474_v35  ;;  %v10364_v35 = vld [vmem:[#allocation6 + $0x418] sm:$0xf0] }
 0x573   :  { %6271 = vmatpush.bf16.msra.mxu0 %v9367_v12  ;;  %v10626_v12 = vld [vmem:[#allocation6 + $0xc4c] sm:$0xf]  ;;  %v9227_v22 = vor.u32 %v10514_v7, %v9224_v46 }
 0x574   :  { %6299 = vmatpush.bf16.msra.mxu2 %v9815_v59  ;;  %v9479_v59 = vor.u32 %v10577_v54, %v9476_v61  ;;  %v10266_v46 = vld [vmem:[#allocation6 + $0x108] sm:$0xf0] }
 0x575   :  { %6285 = vmatpush.bf16.msra.mxu1 %v9591_v20  ;;  %v5998_v20 = vpop.f32.mrf.mxu0 }
 0x576   :  { %6258 = vmatpush.bf16.msrb.mxu3 %v9115_v32  ;;  %v5984_v32 = vpop.f32.mrf.mxu3 }
 0x577   :  { %6272 = vmatpush.bf16.msra.mxu0 %v9339_v21  ;;  %v10570_v21 = vld [vmem:[#allocation6 + $0xa8c] sm:$0xf]  ;;  %v5985_v52 = vadd.f32 %v5984_v32, %v3546_v45  ;;  %v8895_v32 = vor.u32 %v10434_v16, %v8894_v15  ;;  %v8110_v15 = vld [vmem:[#allocation6 + $0x10] sm:$0xf] }
 0x578   :  { %6300 = vmatpush.bf16.msra.mxu2 %v9787_v42  ;;  %v9675_v42 = vor.u32 %v10626_v12, %v9672_v13  ;;  %v8446_v12 = vld [vmem:[#allocation6 + $0x2b0] sm:$0xf]  ;;  %v6014_v13 = vpop.f32.mrf.mxu1  ;;  %v10238_v16 = vld [vmem:[#allocation6 + $0x28] sm:$0xf0] }
 0x579   :  { %6286 = vmatpush.bf16.msra.mxu1 %v9563_v11  ;;  %v8754_v11 = vld [vmem:[#allocation6 + $0x518] sm:$0xf]  ;;  %v5999_v54 = vadd.f32 %v5998_v20, %v5985_v52  ;;  %v11335_v20 = vpop.f32.mrf.mxu2  ;;  %v10308_v52 = vld [vmem:[#allocation6 + $0x258] sm:$0xf0] }
 0x57a   :  { %6259 = vmatpush.bf16.msrb.mxu3 %v9087_v26  ;;  %v10280_v26 = vld [vmem:[#allocation6 + $0x178] sm:$0xf0]  ;;  %v8391_v63 = vor.u32 %v10308_v52, %v8390_v8 }
 0x57b   :  { %6273 = vmatpush.bf16.msra.mxu0 %v9311_v49  ;;  %v8502_v49 = vld [vmem:[#allocation6 + $0x320] sm:$0xf]  ;;  %v8279_v53 = vor.u32 %v10280_v26, %v8278_v34  ;;  %v6013_v24 = vadd.f32 %v11324_v41, %v5999_v54  ;;  %v8642_v26 = vld [vmem:[#allocation6 + $0x438] sm:$0xf]  ;;  %v10245_v54 = vld [vmem:[#allocation6 + $0x60] sm:$0xf0] }
 0x57c   :  { %6301 = vmatpush.bf16.msra.mxu2 %v9759_v51  ;;  %v9451_v51 = vor.u32 %v10570_v21, %v9448_v30  ;;  %v8194_v21 = vld [vmem:[#allocation6 + $0xb8] sm:$0xf]  ;;  %v10259_v30 = vld [vmem:[#allocation6 + $0xd0] sm:$0xf0] }
 0x57d   :  { %6287 = vmatpush.bf16.msra.mxu1 %v9535_v23  ;;  %v8755_v23 = vor.u32 %v10399_v47, %v8754_v11  ;;  %v6000_v1 = vpop.f32.mrf.mxu0  ;;  %v10315_v11 = vld [vmem:[#allocation6 + $0x290] sm:$0xf0]  ;;  %v8866_v47 = vld [vmem:[#allocation6 + $0x5f8] sm:$0xf]  ;;  %v6027_v41 = vadd.f32 %v11327_v38, %v6013_v24  ;;  %v8195_v34 = vor.u32 %v10259_v30, %v8194_v21 }
 0x57e   :  { %6260 = vmatpush.bf16.msrb.mxu3 %v9059_v29  ;;  %v8503_v29 = vor.u32 %v10336_v40, %v8502_v49  ;;  %v5986_v7 = vpop.f32.mrf.mxu3  ;;  %v10371_v49 = vld [vmem:[#allocation6 + $0x450] sm:$0xf0]  ;;  %v9202_v21 = vld [vmem:[#allocation6 + $0x898] sm:$0xf] }
 0x57f   :  { %6274 = vmatpush.bf16.msra.mxu0 %v9283_v56  ;;  %v8951_v56 = vor.u32 %v10448_v43, %v8950_v14  ;;  %v8166_v43 = vld [vmem:[#allocation6 + $0x80] sm:$0xf]  ;;  %v10511_v30 = vld [vmem:[#allocation6 + $0x8b0] sm:$0xf0] }
 0x580   :  { %6302 = vmatpush.bf16.msra.mxu2 %v9731_v62  ;;  %v10273_v62 = vld [vmem:[#allocation6 + $0x140] sm:$0xf0] }
 0x581   :  { %6288 = vmatpush.bf16.msra.mxu1 %v9507_v10  ;;  %v10441_v10 = vld [vmem:[#allocation6 + $0x680] sm:$0xf0]  ;;  %v8251_v61 = vor.u32 %v10273_v62, %v8250_v33  ;;  %v8614_v62 = vld [vmem:[#allocation6 + $0x400] sm:$0xf] }
 0x582   :  { %6261 = vmatpush.bf16.msrb.mxu3 %v9031_v5  ;;  %v8698_v5 = vld [vmem:[#allocation6 + $0x4a8] sm:$0xf]  ;;  %v8923_v6 = vor.u32 %v10441_v10, %v8922_v2 }
 0x583   :  { %6275 = vmatpush.bf16.msra.mxu0 %v9255_v57  ;;  %v10385_v57 = vld [vmem:[#allocation6 + $0x4c0] sm:$0xf0] }
 0x584   :  { %6303 = vmatpush.bf16.msra.mxu2 %v9703_v31  ;;  %v8222_v31 = vld [vmem:[#allocation6 + $0xf0] sm:$0xf]  ;;  %v8699_v19 = vor.u32 %v10385_v57, %v8698_v5  ;;  %v10301_v57 = vld [vmem:[#allocation6 + $0x220] sm:$0xf0] }
 0x585   :  { %6289 = vmatpush.bf16.msra.mxu1 %v9479_v59  ;;  %v10322_v59 = vld [vmem:[#allocation6 + $0x2c8] sm:$0xf0]  ;;  %v8223_v25 = vor.u32 %v10266_v46, %v8222_v31  ;;  %v8586_v31 = vld [vmem:[#allocation6 + $0x3c8] sm:$0xf] }
 0x586   :  { %6262 = vmatpush.bf16.msrb.mxu3 %v9003_v37  ;;  %v10378_v37 = vld [vmem:[#allocation6 + $0x488] sm:$0xf0] }
 0x587   :  { %6276 = vmatpush.bf16.msra.mxu0 %v9227_v22  ;;  %v8447_v22 = vor.u32 %v10322_v59, %v8446_v12  ;;  %v6054_v14 = vpop.f32.mrf.mxu0  ;;  %v10357_v59 = vld [vmem:[#allocation6 + $0x3e0] sm:$0xf0] }
 0x588   :  { %6304 = vmatpush.bf16.msra.mxu2 %v9675_v42  ;;  %v8418_v42 = vld [vmem:[#allocation6 + $0x278] sm:$0xf] }
 0x589   :  { %6290 = vmatpush.bf16.msra.mxu1 %v9451_v51  ;;  %6263 = vmatmul.bf16.vlgmr.msrb.gmra.mxu3 %v11264_v48  ;;  %v8419_v51 = vor.u32 %v10315_v11, %v8418_v42  ;;  %v6068_v38 = vpop.f32.mrf.mxu1 }
 0x58a   :  { %6311 = vmatpush.bf16.msra.mxu3 %v8307_v18  ;;  %6277 = vmatmul.bf16.vlgmr.msra.gmra.mxu0 %v11272_v39  ;;  %v5987_v18 = vadd.f32 %v5986_v7, %v3546_v45  ;;  %v8615_v7 = vor.u32 %v10364_v35, %v8614_v62 }
 0x58b   :  { %6325 = vmatpush.bf16.msrb.mxu0 %v8531_v17  ;;  %6305 = vmatmul.bf16.vlgmr.msra.gmra.mxu2 %v11268_v50  ;;  %v10427_v17 = vld [vmem:[#allocation6 + $0x610] sm:$0xf0] }
 0x58c   :  { %6353 = vmatpush.bf16.msrb.mxu2 %v8979_v3  ;;  %6291 = vmatmul.bf16.vlgmr.msra.gmra.mxu1 %v11277_v60  ;;  %v8671_v3 = vor.u32 %v10378_v37, %v8670_v36  ;;  %v8867_v40 = vor.u32 %v10427_v17, %v8866_v47  ;;  %v6001_v45 = vadd.f32 %v6000_v1, %v5987_v18  ;;  %v6040_v28 = vpop.f32.mrf.mxu3  ;;  %v8362_v1 = vld [vmem:[#allocation6 + $0x208] sm:$0xf]  ;;  %v10294_v36 = vld [vmem:[#allocation6 + $0x1e8] sm:$0xf0]  ;;  %v9426_v47 = vld [vmem:[#allocation6 + $0xa58] sm:$0xf] }
 0x58d   :  { %6339 = vmatpush.bf16.msrb.mxu1 %v8755_v23  ;;  %v10252_v23 = vld [vmem:[#allocation6 + $0x98] sm:$0xf0]  ;;  %v8587_v18 = vor.u32 %v10357_v59, %v8586_v31  ;;  %v10567_v17 = vld [vmem:[#allocation6 + $0xa70] sm:$0xf0]  ;;  %v10553_v31 = vld [vmem:[#allocation6 + $0xa00] sm:$0xf0] }
 0x58e   :  { %6312 = vmatpush.bf16.msra.mxu3 %v8279_v53  ;;  %v8838_v53 = vld [vmem:[#allocation6 + $0x5c0] sm:$0xf]  ;;  %v8167_v33 = vor.u32 %v10252_v23, %v8166_v43  ;;  %v6082_v10 = vpop.f32.mrf.mxu2  ;;  %v9650_v43 = vld [vmem:[#allocation6 + $0xc18] sm:$0xf]  ;;  %v10623_v23 = vld [vmem:[#allocation6 + $0xc30] sm:$0xf0]  ;;  %v9427_v52 = vor.u32 %v10567_v17, %v9426_v47 }
 0x58f   :  { %6326 = vmatpush.bf16.msrb.mxu0 %v8503_v29  ;;  %v8643_v29 = vor.u32 %v10371_v49, %v8642_v26  ;;  %v8839_v2 = vor.u32 %v10420_v55, %v8838_v53  ;;  %v6056_v11 = vpop.f32.mrf.mxu0  ;;  %v10679_v26 = vld [vmem:[#allocation6 + $0xdf0] sm:$0xf0]  ;;  %v8558_v49 = vld [vmem:[#allocation6 + $0x390] sm:$0xf]  ;;  %v9174_v53 = vld [vmem:[#allocation6 + $0x860] sm:$0xf]  ;;  %v9651_v35 = vor.u32 %v10623_v23, %v9650_v43 }
 0x590   :  { %6354 = vmatpush.bf16.msrb.mxu2 %v8951_v56  ;;  %v6041_v56 = vadd.f32 %v6040_v28, %v6027_v41  ;;  %v10665_v59 = vld [vmem:[#allocation6 + $0xd80] sm:$0xf0]  ;;  %v10595_v43 = vld [vmem:[#allocation6 + $0xb50] sm:$0xf0] }
 0x591   :  { %6340 = vmatpush.bf16.msrb.mxu1 %v8727_v0  ;;  %v8138_v0 = vld [vmem:[#allocation6 + $0x48] sm:$0xf] }
 0x592   :  { %6313 = vmatpush.bf16.msra.mxu3 %v8251_v61  ;;  %v6015_v61 = vadd.f32 %v6014_v13, %v6001_v45  ;;  %v6055_v5 = vadd.f32 %v6054_v14, %v6041_v56  ;;  %v8139_v12 = vor.u32 %v10245_v54, %v8138_v0  ;;  %v8782_v13 = vld [vmem:[#allocation6 + $0x550] sm:$0xf]  ;;  %v6070_v14 = vpop.f32.mrf.mxu1  ;;  %v9203_v45 = vor.u32 %v10511_v30, %v9202_v21  ;;  %v9398_v56 = vld [vmem:[#allocation6 + $0xa20] sm:$0xf]  ;;  %v10616_v0 = vld [vmem:[#allocation6 + $0xbf8] sm:$0xf0] }
 0x593   :  { %6327 = vmatpush.bf16.msrb.mxu0 %v8475_v9  ;;  %v8810_v9 = vld [vmem:[#allocation6 + $0x588] sm:$0xf]  ;;  %v9790_v21 = vld [vmem:[#allocation6 + $0xd30] sm:$0xf]  ;;  %v10658_v30 = vld [vmem:[#allocation6 + $0xd48] sm:$0xf0] }
 0x594   :  { %6355 = vmatpush.bf16.msrb.mxu2 %v8923_v6  ;;  %v10413_v6 = vld [vmem:[#allocation6 + $0x5a0] sm:$0xf0]  ;;  %v6069_v46 = vadd.f32 %v6068_v38, %v6055_v5  ;;  %v6029_v37 = vadd.f32 %v11335_v20, %v6015_v61  ;;  %v6042_v42 = vpop.f32.mrf.mxu3  ;;  %v10504_v38 = vld [vmem:[#allocation6 + $0x878] sm:$0xf0] }
 0x595   :  { %6341 = vmatpush.bf16.msrb.mxu1 %v8699_v19  ;;  %v8363_v19 = vor.u32 %v10301_v57, %v8362_v1  ;;  %v8811_v24 = vor.u32 %v10413_v6, %v8810_v9  ;;  %v9175_v61 = vor.u32 %v10504_v38, %v9174_v53  ;;  %v9146_v57 = vld [vmem:[#allocation6 + $0x828] sm:$0xf]  ;;  %v10497_v9 = vld [vmem:[#allocation6 + $0x840] sm:$0xf0]  ;;  %v10476_v53 = vld [vmem:[#allocation6 + $0x798] sm:$0xf0] }
 0x596   :  { %6314 = vmatpush.bf16.msra.mxu3 %v8223_v25  ;;  %v8334_v25 = vld [vmem:[#allocation6 + $0x1d0] sm:$0xf]  ;;  %v6043_v41 = vadd.f32 %v6042_v42, %v6029_v37  ;;  %v9734_v38 = vld [vmem:[#allocation6 + $0xcc0] sm:$0xf] }
 0x597   :  { %6328 = vmatpush.bf16.msrb.mxu0 %v8447_v22  ;;  %v6083_v22 = vadd.f32 %v6082_v10, %v6069_v46  ;;  %v8335_v20 = vor.u32 %v10294_v36, %v8334_v25  ;;  %v9622_v10 = vld [vmem:[#allocation6 + $0xbe0] sm:$0xf]  ;;  %v9118_v25 = vld [vmem:[#allocation6 + $0x7f0] sm:$0xf] }
 0x598   :  { %6356 = vmatpush.bf16.msrb.mxu2 %v8895_v32  ;;  %v10406_v32 = vld [vmem:[#allocation6 + $0x568] sm:$0xf0]  ;;  %v6057_v8 = vadd.f32 %v6056_v11, %v6043_v41  ;;  %v9623_v46 = vor.u32 %v10616_v0, %v9622_v10  ;;  %v9342_v37 = vld [vmem:[#allocation6 + $0x9b0] sm:$0xf]  ;;  %v10483_v41 = vld [vmem:[#allocation6 + $0x7d0] sm:$0xf0] }
 0x599   :  { %6342 = vmatpush.bf16.msrb.mxu1 %v8671_v3  ;;  %v9874_v3 = vld [vmem:[#allocation6 + $0xdd8] sm:$0xf]  ;;  %10698 = vtanh.f32 %v6083_v22  ;;  %v10546_v22 = vld [vmem:[#allocation6 + $0x9c8] sm:$0xf0]  ;;  %v9566_v42 = vld [vmem:[#allocation6 + $0xb70] sm:$0xf] }
 0x59a   :  { %6315 = vmatpush.bf16.msra.mxu3 %v8195_v34  ;;  %v8111_v34 = vor.u32 %v10238_v16, %v8110_v15  ;;  %v9875_v55 = vor.u32 %v10679_v26, %v9874_v3  ;;  %v6071_v62 = vadd.f32 %v6070_v14, %v6057_v8  ;;  %v9594_v15 = vld [vmem:[#allocation6 + $0xba8] sm:$0xf]  ;;  %v10609_v16 = vld [vmem:[#allocation6 + $0xbc0] sm:$0xf0]  ;;  %v9343_v17 = vor.u32 %v10546_v22, %v9342_v37  ;;  %v9090_v3 = vld [vmem:[#allocation6 + $0x7b8] sm:$0xf] }
 0x59b   :  { %6329 = vmatpush.bf16.msrb.mxu0 %v8419_v51  ;;  %v10350_v51 = vld [vmem:[#allocation6 + $0x3a8] sm:$0xf0]  ;;  %v9314_v26 = vld [vmem:[#allocation6 + $0x978] sm:$0xf]  ;;  %v9091_v23 = vor.u32 %v10483_v41, %v9090_v3  ;;  %v10469_v0 = vld [vmem:[#allocation6 + $0x760] sm:$0xf0] }
 0x59c   :  { %6357 = vmatpush.bf16.msrb.mxu2 %v8867_v40  ;;  %v8783_v40 = vor.u32 %v10406_v32, %v8782_v13  ;;  %v8559_v28 = vor.u32 %v10350_v51, %v8558_v49  ;;  %v10490_v13 = vld [vmem:[#allocation6 + $0x808] sm:$0xf0]  ;;  %v9595_v32 = vor.u32 %v10609_v16, %v9594_v15  ;;  %v10539_v49 = vld [vmem:[#allocation6 + $0x990] sm:$0xf0]  ;;  %v9538_v14 = vld [vmem:[#allocation6 + $0xb38] sm:$0xf] }
 0x59d   :  { %6343 = vmatpush.bf16.msrb.mxu1 %v8643_v29  ;;  %v6084_v29 = vpop.f32.mrf.mxu2  ;;  %v9119_v47 = vor.u32 %v10490_v13, %v9118_v25  ;;  %v9315_v8 = vor.u32 %v10539_v49, %v9314_v26  ;;  %v10518_v16 = vld [vmem:[#allocation6 + $0x8e8] sm:$0xf0]  ;;  %v8308_v13 = vld [vmem:[#allocation6 + $0x1b4] sm:$0xf0]  ;;  %v10340_v37 = vld [vmem:[#allocation6 + $0x35c] sm:$0xf] }
 0x59e   :  { %6316 = vmatpush.bf16.msra.mxu3 %v8167_v33  ;;  %v10560_v33 = vld [vmem:[#allocation6 + $0xa38] sm:$0xf0]  ;;  %v6085_v1 = vadd.f32 %v6084_v29, %v6071_v62  ;;  %v9539_v29 = vor.u32 %v10595_v43, %v9538_v14  ;;  %v11354_v26 = vld [vmem:[#allocation15] sm:$0xff]  ;;  %v10277_v43 = vld [vmem:[#allocation6 + $0x164] sm:$0xf] }
 0x59f   :  { %6330 = vmatpush.bf16.msrb.mxu0 %v8391_v63  ;;  %v9846_v63 = vld [vmem:[#allocation6 + $0xda0] sm:$0xf]  ;;  %v10699_v54 = vpop.eup %10698  ;;  %v9399_v5 = vor.u32 %v10560_v33, %v9398_v56  ;;  %v10644_v56 = vld [vmem:[#allocation6 + $0xcd8] sm:$0xf0]  ;;  %v3547_v49 = vperm.slane %v11354_v26, 2 }
 0x5a0   :  { %6358 = vmatpush.bf16.msrb.mxu2 %v8839_v2  ;;  %v10672_v2 = vld [vmem:[#allocation6 + $0xdb8] sm:$0xf0]  ;;  %6662 = vst [vmem:[%s11449_s12 + $0x8] sm:$0xff] %v10699_v54  ;;  %10700 = vtanh.f32 %v6085_v1  ;;  %v9510_v33 = vld [vmem:[#allocation6 + $0xb00] sm:$0xf]  ;;  %v9735_v10 = vor.u32 %v10644_v56, %v9734_v38 }
 0x5a1   :  { %6344 = vmatpush.bf16.msrb.mxu1 %v8615_v7  ;;  %v9847_v6 = vor.u32 %v10672_v2, %v9846_v63  ;;  %v9370_v7 = vld [vmem:[#allocation6 + $0x9e8] sm:$0xf]  ;;  %v10588_v62 = vld [vmem:[#allocation6 + $0xb18] sm:$0xf0]  ;;  %v10525_v1 = vld [vmem:[#allocation6 + $0x920] sm:$0xf0] }
 0x5a2   :  { %6317 = vmatpush.bf16.msra.mxu3 %v8139_v12  ;;  %v9818_v12 = vld [vmem:[#allocation6 + $0xd68] sm:$0xf] }
 0x5a3   :  { %6331 = vmatpush.bf16.msrb.mxu0 %v8363_v19  ;;  %v9147_v19 = vor.u32 %v10497_v9, %v9146_v57  ;;  %v9819_v36 = vor.u32 %v10665_v59, %v9818_v12  ;;  %v9034_v2 = vld [vmem:[#allocation6 + $0x748] sm:$0xf]  ;;  %v10637_v57 = vld [vmem:[#allocation6 + $0xca0] sm:$0xf0]  ;;  %v10462_v12 = vld [vmem:[#allocation6 + $0x728] sm:$0xf0] }
 0x5a4   :  { %6359 = vmatpush.bf16.msrb.mxu2 %v8811_v24  ;;  %v9371_v24 = vor.u32 %v10553_v31, %v9370_v7  ;;  %v9258_v54 = vld [vmem:[#allocation6 + $0x908] sm:$0xf]  ;;  %v9035_v7 = vor.u32 %v10469_v0, %v9034_v2  ;;  %v9230_v59 = vld [vmem:[#allocation6 + $0x8d0] sm:$0xf]  ;;  %v10270_v2 = vld [vmem:[#allocation6 + $0x12c] sm:$0xf] }
 0x5a5   :  { %6345 = vmatpush.bf16.msrb.mxu1 %v8587_v18  ;;  %v10602_v18 = vld [vmem:[#allocation6 + $0xb88] sm:$0xf0]  ;;  %v9482_v9 = vld [vmem:[#allocation6 + $0xac8] sm:$0xf]  ;;  %v9259_v31 = vor.u32 %v10525_v1, %v9258_v54 }
 0x5a6   :  { %6318 = vmatpush.bf16.msra.mxu3 %v8111_v34  ;;  %v10701_v11 = vpop.eup %10700  ;;  %v9791_v34 = vor.u32 %v10658_v30, %v9790_v21  ;;  %v9567_v51 = vor.u32 %v10602_v18, %v9566_v42  ;;  %v10452_v21 = vld [vmem:[#allocation6 + $0x6dc] sm:$0xf]  ;;  %v8980_v30 = vld [vmem:[#allocation6 + $0x6f4] sm:$0xf0]  ;;  %v9231_v18 = vor.u32 %v10518_v16, %v9230_v59  ;;  %v10326_v0 = vld [vmem:[#allocation6 + $0x2ec] sm:$0xf] }
 0x5a7   :  { %6332 = vmatpush.bf16.msrb.mxu0 %v8335_v20  ;;  %6669 = vst [vmem:[%s11449_s12 + $0x40] sm:$0xff] %v10701_v11  ;;  %v9762_v20 = vld [vmem:[#allocation6 + $0xcf8] sm:$0xf]  ;;  %v6110_v22 = vpop.f32.mrf.mxu0  ;;  %v8983_v14 = vor.u32 %v10452_v21, %v8980_v30  ;;  %v8476_v54 = vld [vmem:[#allocation6 + $0x304] sm:$0xf0] }
 0x5a8   :  { %6360 = vmatpush.bf16.msrb.mxu2 %v8783_v40  ;;  %v10651_v40 = vld [vmem:[#allocation6 + $0xd10] sm:$0xf0]  ;;  %v10438_v1 = vld [vmem:[#allocation6 + $0x66c] sm:$0xf]  ;;  %v8224_v16 = vld [vmem:[#allocation6 + $0x10c] sm:$0xf0] }
 0x5a9   :  { %6346 = vmatpush.bf16.msrb.mxu1 %v8559_v28  ;;  %6319 = vmatmul.bf16.vlgmr.msra.gmra.mxu3 %v11244_v44  ;;  %v10532_v28 = vld [vmem:[#allocation6 + $0x958] sm:$0xf0]  ;;  %v11352_v3 = vpop.f32.mrf.mxu1  ;;  %v10375_v30 = vld [vmem:[#allocation6 + $0x474] sm:$0xf] }
 0x5aa   :  { %6367 = vmatpush.bf16.msrb.mxu3 %v9203_v45  ;;  %6333 = vmatmul.bf16.vlgmr.msrb.gmra.mxu0 %v11252_v58  ;;  %v9062_v45 = vld [vmem:[#allocation6 + $0x780] sm:$0xf] }
 0x5ab   :  { %6381 = vmatpush.bf16.msra.mxu0 %v9427_v52  ;;  %6361 = vmatmul.bf16.vlgmr.msrb.gmra.mxu2 %v11248_v27  ;;  %v9763_v52 = vor.u32 %v10651_v40, %v9762_v20  ;;  %v8756_v20 = vld [vmem:[#allocation6 + $0x534] sm:$0xf0] }
 0x5ac   :  { %6409 = vmatpush.bf16.msra.mxu2 %v9875_v55  ;;  %6347 = vmatmul.bf16.vlgmr.msrb.gmra.mxu1 %v11256_v4  ;;  %v9286_v55 = vld [vmem:[#allocation6 + $0x940] sm:$0xf]  ;;  %v6096_v11 = vpop.f32.mrf.mxu3 }
 0x5ad   :  { %6395 = vmatpush.bf16.msra.mxu1 %v9651_v35  ;;  %v9063_v35 = vor.u32 %v10476_v53, %v9062_v45  ;;  %v9287_v63 = vor.u32 %v10532_v28, %v9286_v55  ;;  %v8504_v53 = vld [vmem:[#allocation6 + $0x33c] sm:$0xf0]  ;;  %v10445_v55 = vld [vmem:[#allocation6 + $0x6a4] sm:$0xf]  ;;  %v6097_v38 = vadd.f32 %v6096_v11, %v3547_v49 }
 0x5ae   :  { %6368 = vmatpush.bf16.msrb.mxu3 %v9175_v61  ;;  %v9511_v61 = vor.u32 %v10588_v62, %v9510_v33  ;;  %v11357_v45 = vpop.f32.mrf.mxu2  ;;  %v8952_v28 = vld [vmem:[#allocation6 + $0x6bc] sm:$0xf0]  ;;  %v10389_v33 = vld [vmem:[#allocation6 + $0x4e4] sm:$0xf] }
 0x5af   :  { %6382 = vmatpush.bf16.msra.mxu0 %v9399_v5  ;;  %v9706_v5 = vld [vmem:[#allocation6 + $0xc88] sm:$0xf]  ;;  %v8728_v62 = vld [vmem:[#allocation6 + $0x4fc] sm:$0xf0] }
 0x5b0   :  { %6410 = vmatpush.bf16.msra.mxu2 %v9847_v6  ;;  %v10581_v6 = vld [vmem:[#allocation6 + $0xae0] sm:$0xf0]  ;;  %v9707_v15 = vor.u32 %v10637_v57, %v9706_v5  ;;  %v8731_v5 = vor.u32 %v10389_v33, %v8728_v62  ;;  %v6112_v57 = vpop.f32.mrf.mxu0  ;;  %v8840_v62 = vld [vmem:[#allocation6 + $0x5dc] sm:$0xf0] }
 0x5b1   :  { %6396 = vmatpush.bf16.msra.mxu1 %v9623_v46  ;;  %v9006_v46 = vld [vmem:[#allocation6 + $0x710] sm:$0xf]  ;;  %v9483_v25 = vor.u32 %v10581_v6, %v9482_v9  ;;  %v6111_v9 = vadd.f32 %v6110_v22, %v6097_v38  ;;  %v10305_v38 = vld [vmem:[#allocation6 + $0x244] sm:$0xf] }
 0x5b2   :  { %6369 = vmatpush.bf16.msrb.mxu3 %v9147_v19  ;;  %v9678_v19 = vld [vmem:[#allocation6 + $0xc50] sm:$0xf]  ;;  %v9007_v42 = vor.u32 %v10462_v12, %v9006_v46  ;;  %v8479_v46 = vor.u32 %v10326_v0, %v8476_v54  ;;  %v10417_v33 = vld [vmem:[#allocation6 + $0x5c4] sm:$0xf]  ;;  %v8616_v54 = vld [vmem:[#allocation6 + $0x41c] sm:$0xf0] }
 0x5b3   :  { %6383 = vmatpush.bf16.msra.mxu0 %v9371_v24  ;;  %v10630_v24 = vld [vmem:[#allocation6 + $0xc68] sm:$0xf0]  ;;  %v10361_v0 = vld [vmem:[#allocation6 + $0x404] sm:$0xf] }
 0x5b4   :  { %6411 = vmatpush.bf16.msra.mxu2 %v9819_v36  ;;  %v10284_v36 = vld [vmem:[#allocation6 + $0x19c] sm:$0xf]  ;;  %v9679_v41 = vor.u32 %v10630_v24, %v9678_v19  ;;  %v6098_v59 = vpop.f32.mrf.mxu3  ;;  %v10319_v19 = vld [vmem:[#allocation6 + $0x2b4] sm:$0xf]  ;;  %v6126_v24 = vpop.f32.mrf.mxu1 }
 0x5b5   :  { %6397 = vmatpush.bf16.msra.mxu1 %v9595_v32  ;;  %v8532_v32 = vld [vmem:[#allocation6 + $0x374] sm:$0xf0] }
 0x5b6   :  { %6370 = vmatpush.bf16.msrb.mxu3 %v9119_v47  ;;  %v9454_v47 = vld [vmem:[#allocation6 + $0xa90] sm:$0xf]  ;;  %v8535_v40 = vor.u32 %v10340_v37, %v8532_v32  ;;  %v11365_v22 = vpop.f32.mrf.mxu2  ;;  %v6125_v32 = vadd.f32 %v11352_v3, %v6111_v9  ;;  %v10242_v9 = vld [vmem:[#allocation6 + $0x4c] sm:$0xf] }
 0x5b7   :  { %6384 = vmatpush.bf16.msra.mxu0 %v9343_v17  ;;  %v10574_v17 = vld [vmem:[#allocation6 + $0xaa8] sm:$0xf0] }
 0x5b8   :  { %6412 = vmatpush.bf16.msra.mxu2 %v9791_v34  ;;  %v8311_v34 = vor.u32 %v10284_v36, %v8308_v13  ;;  %v10431_v36 = vld [vmem:[#allocation6 + $0x634] sm:$0xf]  ;;  %v8896_v13 = vld [vmem:[#allocation6 + $0x64c] sm:$0xf0]  ;;  %v6139_v3 = vadd.f32 %v11357_v45, %v6125_v32 }
 0x5b9   :  { %6398 = vmatpush.bf16.msra.mxu1 %v9567_v51  ;;  %v10396_v51 = vld [vmem:[#allocation6 + $0x51c] sm:$0xf]  ;;  %v8899_v11 = vor.u32 %v10431_v36, %v8896_v13  ;;  %v8588_v36 = vld [vmem:[#allocation6 + $0x3e4] sm:$0xf0]  ;;  %v10235_v13 = vld [vmem:[#allocation6 + $0x14] sm:$0xf] }
 0x5ba   :  { %6371 = vmatpush.bf16.msrb.mxu3 %v9091_v23  ;;  %v8280_v23 = vld [vmem:[#allocation6 + $0x17c] sm:$0xf0] }
 0x5bb   :  { %6385 = vmatpush.bf16.msra.mxu0 %v9315_v8  ;;  %v10333_v8 = vld [vmem:[#allocation6 + $0x324] sm:$0xf]  ;;  %v8283_v56 = vor.u32 %v10277_v43, %v8280_v23  ;;  %v10368_v23 = vld [vmem:[#allocation6 + $0x43c] sm:$0xf] }
 0x5bc   :  { %6413 = vmatpush.bf16.msra.mxu2 %v9763_v52  ;;  %v9455_v52 = vor.u32 %v10574_v17, %v9454_v47  ;;  %v10256_v47 = vld [vmem:[#allocation6 + $0xbc] sm:$0xf]  ;;  %v8196_v17 = vld [vmem:[#allocation6 + $0xd4] sm:$0xf0] }
 0x5bd   :  { %6399 = vmatpush.bf16.msra.mxu1 %v9539_v29  ;;  %v8759_v29 = vor.u32 %v10396_v51, %v8756_v20  ;;  %v8420_v51 = vld [vmem:[#allocation6 + $0x294] sm:$0xf0]  ;;  %v10424_v20 = vld [vmem:[#allocation6 + $0x5fc] sm:$0xf]  ;;  %v8199_v43 = vor.u32 %v10256_v47, %v8196_v17  ;;  %v8784_v47 = vld [vmem:[#allocation6 + $0x56c] sm:$0xf0] }
 0x5be   :  { %6372 = vmatpush.bf16.msrb.mxu3 %v9063_v35  ;;  %v8507_v35 = vor.u32 %v10333_v8, %v8504_v53  ;;  %v8644_v8 = vld [vmem:[#allocation6 + $0x454] sm:$0xf0]  ;;  %v10508_v17 = vld [vmem:[#allocation6 + $0x89c] sm:$0xf] }
 0x5bf   :  { %6386 = vmatpush.bf16.msra.mxu0 %v9287_v63  ;;  %v8955_v63 = vor.u32 %v10445_v55, %v8952_v28  ;;  %v10249_v28 = vld [vmem:[#allocation6 + $0x84] sm:$0xf] }
 0x5c0   :  { %6414 = vmatpush.bf16.msra.mxu2 %v9735_v10  ;;  %v8252_v10 = vld [vmem:[#allocation6 + $0x144] sm:$0xf0] }
 0x5c1   :  { %6400 = vmatpush.bf16.msra.mxu1 %v9511_v61  ;;  %v8924_v61 = vld [vmem:[#allocation6 + $0x684] sm:$0xf0]  ;;  %v8255_v6 = vor.u32 %v10270_v2, %v8252_v10 }
 0x5c2   :  { %6373 = vmatpush.bf16.msrb.mxu3 %v9035_v7  ;;  %v10382_v7 = vld [vmem:[#allocation6 + $0x4ac] sm:$0xf]  ;;  %v8927_v12 = vor.u32 %v10438_v1, %v8924_v61  ;;  %v8843_v61 = vor.u32 %v10417_v33, %v8840_v62  ;;  %v10501_v62 = vld [vmem:[#allocation6 + $0x864] sm:$0xf] }
 0x5c3   :  { %6387 = vmatpush.bf16.msra.mxu0 %v9259_v31  ;;  %v8700_v31 = vld [vmem:[#allocation6 + $0x4c4] sm:$0xf0] }
 0x5c4   :  { %6415 = vmatpush.bf16.msra.mxu2 %v9707_v15  ;;  %v10263_v15 = vld [vmem:[#allocation6 + $0xf4] sm:$0xf]  ;;  %v8703_v37 = vor.u32 %v10382_v7, %v8700_v31 }
 0x5c5   :  { %6401 = vmatpush.bf16.msra.mxu1 %v9483_v25  ;;  %v8448_v25 = vld [vmem:[#allocation6 + $0x2cc] sm:$0xf0]  ;;  %v8227_v21 = vor.u32 %v10263_v15, %v8224_v16  ;;  %v8619_v15 = vor.u32 %v10361_v0, %v8616_v54  ;;  %v10354_v16 = vld [vmem:[#allocation6 + $0x3cc] sm:$0xf]  ;;  %v9400_v0 = vld [vmem:[#allocation6 + $0xa3c] sm:$0xf0] }
 0x5c6   :  { %6374 = vmatpush.bf16.msrb.mxu3 %v9007_v42  ;;  %v8672_v42 = vld [vmem:[#allocation6 + $0x48c] sm:$0xf0] }
 0x5c7   :  { %6388 = vmatpush.bf16.msra.mxu0 %v9231_v18  ;;  %v8451_v18 = vor.u32 %v10319_v19, %v8448_v25  ;;  %v6166_v55 = vpop.f32.mrf.mxu0 }
 0x5c8   :  { %6416 = vmatpush.bf16.msra.mxu2 %v9679_v41  ;;  %v10312_v41 = vld [vmem:[#allocation6 + $0x27c] sm:$0xf] }
 0x5c9   :  { %6402 = vmatpush.bf16.msra.mxu1 %v9455_v52  ;;  %6375 = vmatmul.bf16.vlgmr.msrb.gmra.mxu3 %v11264_v48  ;;  %v8423_v52 = vor.u32 %v10312_v41, %v8420_v51  ;;  %v6180_v45 = vpop.f32.mrf.mxu1  ;;  %v9204_v41 = vld [vmem:[#allocation6 + $0x8b4] sm:$0xf0]  ;;  %v8591_v51 = vor.u32 %v10354_v16, %v8588_v36  ;;  %v10550_v16 = vld [vmem:[#allocation6 + $0x9ec] sm:$0xf] }
 0x5ca   :  { %6423 = vmatpush.bf16.msra.mxu3 %v8311_v34  ;;  %6389 = vmatmul.bf16.vlgmr.msra.gmra.mxu0 %v11272_v39  ;;  %v6099_v34 = vadd.f32 %v6098_v59, %v3547_v49  ;;  %v8812_v59 = vld [vmem:[#allocation6 + $0x5a4] sm:$0xf0]  ;;  %v10662_v36 = vld [vmem:[#allocation6 + $0xd6c] sm:$0xf] }
 0x5cb   :  { %6437 = vmatpush.bf16.msrb.mxu0 %v8535_v40  ;;  %6417 = vmatmul.bf16.vlgmr.msra.gmra.mxu2 %v11268_v50  ;;  %v8868_v40 = vld [vmem:[#allocation6 + $0x614] sm:$0xf0] }
 0x5cc   :  { %6465 = vmatpush.bf16.msrb.mxu2 %v8983_v14  ;;  %6403 = vmatmul.bf16.vlgmr.msra.gmra.mxu1 %v11277_v60  ;;  %v8675_v14 = vor.u32 %v10375_v30, %v8672_v42  ;;  %v8871_v53 = vor.u32 %v10424_v20, %v8868_v40  ;;  %v6113_v49 = vadd.f32 %v6112_v57, %v6099_v34  ;;  %v10298_v57 = vld [vmem:[#allocation6 + $0x20c] sm:$0xf]  ;;  %v10291_v30 = vld [vmem:[#allocation6 + $0x1d4] sm:$0xf]  ;;  %v8336_v42 = vld [vmem:[#allocation6 + $0x1ec] sm:$0xf0] }
 0x5cd   :  { %6451 = vmatpush.bf16.msrb.mxu1 %v8759_v29  ;;  %v8168_v29 = vld [vmem:[#allocation6 + $0x9c] sm:$0xf0]  ;;  %v10564_v40 = vld [vmem:[#allocation6 + $0xa5c] sm:$0xf] }
 0x5ce   :  { %6424 = vmatpush.bf16.msra.mxu3 %v8283_v56  ;;  %v8392_v56 = vld [vmem:[#allocation6 + $0x25c] sm:$0xf0]  ;;  %v8171_v10 = vor.u32 %v10249_v28, %v8168_v29  ;;  %v6127_v7 = vadd.f32 %v6126_v24, %v6113_v49  ;;  %v10403_v24 = vld [vmem:[#allocation6 + $0x554] sm:$0xf]  ;;  %v10620_v29 = vld [vmem:[#allocation6 + $0xc1c] sm:$0xf] }
 0x5cf   :  { %6438 = vmatpush.bf16.msrb.mxu0 %v8507_v35  ;;  %v6152_v35 = vpop.f32.mrf.mxu3  ;;  %v8395_v1 = vor.u32 %v10305_v38, %v8392_v56  ;;  %v6168_v20 = vpop.f32.mrf.mxu0  ;;  %v9652_v38 = vld [vmem:[#allocation6 + $0xc34] sm:$0xf0]  ;;  %v9207_v56 = vor.u32 %v10508_v17, %v9204_v41  ;;  %v10655_v41 = vld [vmem:[#allocation6 + $0xd34] sm:$0xf] }
 0x5d0   :  { %6466 = vmatpush.bf16.msrb.mxu2 %v8955_v63  ;;  %v8647_v63 = vor.u32 %v10368_v23, %v8644_v8  ;;  %v6153_v2 = vadd.f32 %v6152_v35, %v6139_v3  ;;  %v10676_v3 = vld [vmem:[#allocation6 + $0xddc] sm:$0xf]  ;;  %v9876_v8 = vld [vmem:[#allocation6 + $0xdf4] sm:$0xf0] }
 0x5d1   :  { %6452 = vmatpush.bf16.msrb.mxu1 %v8731_v5  ;;  %v6194_v5 = vpop.f32.mrf.mxu2  ;;  %v6182_v28 = vpop.f32.mrf.mxu1  ;;  %v9879_v35 = vor.u32 %v10676_v3, %v9876_v8 }
 0x5d2   :  { %6425 = vmatpush.bf16.msra.mxu3 %v8255_v6  ;;  %v8140_v6 = vld [vmem:[#allocation6 + $0x64] sm:$0xf0]  ;;  %v6167_v31 = vadd.f32 %v6166_v55, %v6153_v2  ;;  %v8787_v55 = vor.u32 %v10403_v24, %v8784_v47  ;;  %v9176_v2 = vld [vmem:[#allocation6 + $0x87c] sm:$0xf0]  ;;  %v9344_v47 = vld [vmem:[#allocation6 + $0x9cc] sm:$0xf0] }
 0x5d3   :  { %6439 = vmatpush.bf16.msrb.mxu0 %v8479_v46  ;;  %v8364_v46 = vld [vmem:[#allocation6 + $0x224] sm:$0xf0]  ;;  %v8143_v25 = vor.u32 %v10242_v9, %v8140_v6  ;;  %v10613_v9 = vld [vmem:[#allocation6 + $0xbe4] sm:$0xf]  ;;  %v9624_v6 = vld [vmem:[#allocation6 + $0xbfc] sm:$0xf0] }
 0x5d4   :  { %6467 = vmatpush.bf16.msrb.mxu2 %v8927_v12  ;;  %v10410_v12 = vld [vmem:[#allocation6 + $0x58c] sm:$0xf]  ;;  %v6181_v19 = vadd.f32 %v6180_v45, %v6167_v31  ;;  %v8367_v32 = vor.u32 %v10298_v57, %v8364_v46  ;;  %v9179_v31 = vor.u32 %v10501_v62, %v9176_v2 }
 0x5d5   :  { %6453 = vmatpush.bf16.msrb.mxu1 %v8703_v37  ;;  %v8112_v37 = vld [vmem:[#allocation6 + $0x2c] sm:$0xf0] }
 0x5d6   :  { %6426 = vmatpush.bf16.msra.mxu3 %v8227_v21  ;;  %v8815_v21 = vor.u32 %v10410_v12, %v8812_v59  ;;  %v8115_v23 = vor.u32 %v10235_v13, %v8112_v37  ;;  %v10494_v12 = vld [vmem:[#allocation6 + $0x82c] sm:$0xf]  ;;  %v9148_v59 = vld [vmem:[#allocation6 + $0x844] sm:$0xf0] }
 0x5d7   :  { %6440 = vmatpush.bf16.msrb.mxu0 %v8451_v18  ;;  %v6141_v18 = vadd.f32 %v11365_v22, %v6127_v7  ;;  %v6154_v34 = vpop.f32.mrf.mxu3  ;;  %v8339_v22 = vor.u32 %v10291_v30, %v8336_v42  ;;  %v9820_v13 = vld [vmem:[#allocation6 + $0xd84] sm:$0xf0]  ;;  %v10606_v37 = vld [vmem:[#allocation6 + $0xbac] sm:$0xf]  ;;  %v10487_v42 = vld [vmem:[#allocation6 + $0x7f4] sm:$0xf] }
 0x5d8   :  { %6468 = vmatpush.bf16.msrb.mxu2 %v8899_v11  ;;  %v6195_v11 = vadd.f32 %v6194_v5, %v6181_v19  ;;  %v9848_v5 = vld [vmem:[#allocation6 + $0xdbc] sm:$0xf0]  ;;  %v9372_v19 = vld [vmem:[#allocation6 + $0xa04] sm:$0xf0]  ;;  %v9823_v24 = vor.u32 %v10662_v36, %v9820_v13  ;;  %v10459_v36 = vld [vmem:[#allocation6 + $0x714] sm:$0xf] }
 0x5d9   :  { %6454 = vmatpush.bf16.msrb.mxu1 %v8675_v14  ;;  %v9428_v14 = vld [vmem:[#allocation6 + $0xa74] sm:$0xf0]  ;;  %v6196_v45 = vpop.f32.mrf.mxu2  ;;  %v9375_v30 = vor.u32 %v10550_v16, %v9372_v19  ;;  %v9484_v16 = vld [vmem:[#allocation6 + $0xae4] sm:$0xf0]  ;;  %v9008_v13 = vld [vmem:[#allocation6 + $0x72c] sm:$0xf0] }
 0x5da   :  { %6427 = vmatpush.bf16.msra.mxu3 %v8199_v43  ;;  %10702 = vtanh.f32 %v6195_v11  ;;  %v6155_v43 = vadd.f32 %v6154_v34, %v6141_v18  ;;  %v9431_v33 = vor.u32 %v10564_v40, %v9428_v14  ;;  %v9120_v18 = vld [vmem:[#allocation6 + $0x80c] sm:$0xf0]  ;;  %v10543_v11 = vld [vmem:[#allocation6 + $0x9b4] sm:$0xf] }
 0x5db   :  { %6441 = vmatpush.bf16.msrb.mxu0 %v8423_v52  ;;  %v10347_v52 = vld [vmem:[#allocation6 + $0x394] sm:$0xf]  ;;  %v9792_v34 = vld [vmem:[#allocation6 + $0xd4c] sm:$0xf0]  ;;  %v9123_v14 = vor.u32 %v10487_v42, %v9120_v18  ;;  %v9347_v3 = vor.u32 %v10543_v11, %v9344_v47  ;;  %v8314_v18 = vld [vmem:[#allocation6 + $0x1a0] sm:$0xf] }
 0x5dc   :  { %6469 = vmatpush.bf16.msrb.mxu2 %v8871_v53  ;;  %v8560_v53 = vld [vmem:[#allocation6 + $0x3ac] sm:$0xf0]  ;;  %v6169_v49 = vadd.f32 %v6168_v20, %v6155_v43  ;;  %v10480_v43 = vld [vmem:[#allocation6 + $0x7bc] sm:$0xf]  ;;  %v9795_v8 = vor.u32 %v10655_v41, %v9792_v34  ;;  %v8538_v47 = vld [vmem:[#allocation6 + $0x360] sm:$0xf] }
 0x5dd   :  { %6455 = vmatpush.bf16.msrb.mxu1 %v8647_v63  ;;  %v8563_v63 = vor.u32 %v10347_v52, %v8560_v53  ;;  %v9568_v20 = vld [vmem:[#allocation6 + $0xb8c] sm:$0xf0]  ;;  %v10536_v52 = vld [vmem:[#allocation6 + $0x97c] sm:$0xf]  ;;  %v9316_v53 = vld [vmem:[#allocation6 + $0x994] sm:$0xf0] }
 0x5de   :  { %6428 = vmatpush.bf16.msra.mxu3 %v8171_v10  ;;  %v10557_v10 = vld [vmem:[#allocation6 + $0xa24] sm:$0xf]  ;;  %v6183_v54 = vadd.f32 %v6182_v28, %v6169_v49  ;;  %v9764_v28 = vld [vmem:[#allocation6 + $0xd14] sm:$0xf0]  ;;  %v9680_v42 = vld [vmem:[#allocation6 + $0xc6c] sm:$0xf0] }
 0x5df   :  { %6442 = vmatpush.bf16.msrb.mxu0 %v8395_v1  ;;  %v9655_v1 = vor.u32 %v10620_v29, %v9652_v38  ;;  %v9403_v46 = vor.u32 %v10557_v10, %v9400_v0  ;;  %v10592_v29 = vld [vmem:[#allocation6 + $0xb3c] sm:$0xf]  ;;  %v9540_v38 = vld [vmem:[#allocation6 + $0xb54] sm:$0xf0]  ;;  %v10641_v10 = vld [vmem:[#allocation6 + $0xcc4] sm:$0xf] }
 0x5e0   :  { %6470 = vmatpush.bf16.msrb.mxu2 %v8843_v61  ;;  %v10669_v61 = vld [vmem:[#allocation6 + $0xda4] sm:$0xf]  ;;  %v10703_v57 = vpop.eup %10702  ;;  %v6197_v7 = vadd.f32 %v6196_v45, %v6183_v54  ;;  %v9288_v45 = vld [vmem:[#allocation6 + $0x95c] sm:$0xf0]  ;;  %v9543_v2 = vor.u32 %v10592_v29, %v9540_v38  ;;  %v10288_v11 = vld [vmem:[#allocation6 + $0x1b8] sm:$0xf0] }
 0x5e1   :  { %6456 = vmatpush.bf16.msrb.mxu1 %v8619_v15  ;;  %6663 = vst [vmem:[%s11449_s12 + $0x10] sm:$0xff] %v10703_v57  ;;  %v9851_v15 = vor.u32 %v10669_v61, %v9848_v5  ;;  %v9736_v0 = vld [vmem:[#allocation6 + $0xcdc] sm:$0xf0]  ;;  %v10585_v54 = vld [vmem:[#allocation6 + $0xb04] sm:$0xf] }
 0x5e2   :  { %6429 = vmatpush.bf16.msra.mxu3 %v8143_v25  ;;  %10704 = vtanh.f32 %v6197_v7  ;;  %v9627_v25 = vor.u32 %v10613_v9, %v9624_v6  ;;  %v10466_v9 = vld [vmem:[#allocation6 + $0x74c] sm:$0xf]  ;;  %v9739_v6 = vor.u32 %v10641_v10, %v9736_v0  ;;  %v9036_v57 = vld [vmem:[#allocation6 + $0x764] sm:$0xf0]  ;;  %v10344_v41 = vld [vmem:[#allocation6 + $0x378] sm:$0xf0] }
 0x5e3   :  { %6443 = vmatpush.bf16.msrb.mxu0 %v8367_v32  ;;  %v9596_v32 = vld [vmem:[#allocation6 + $0xbc4] sm:$0xf0]  ;;  %v10522_v7 = vld [vmem:[#allocation6 + $0x90c] sm:$0xf]  ;;  %v9039_v19 = vor.u32 %v10466_v9, %v9036_v57  ;;  %v8986_v34 = vld [vmem:[#allocation6 + $0x6e0] sm:$0xf] }
 0x5e4   :  { %6471 = vmatpush.bf16.msrb.mxu2 %v8815_v21  ;;  %v9151_v21 = vor.u32 %v10494_v12, %v9148_v59  ;;  %v9599_v17 = vor.u32 %v10606_v37, %v9596_v32  ;;  %v10634_v12 = vld [vmem:[#allocation6 + $0xc8c] sm:$0xf]  ;;  %v9708_v59 = vld [vmem:[#allocation6 + $0xca4] sm:$0xf0]  ;;  %v10515_v37 = vld [vmem:[#allocation6 + $0x8d4] sm:$0xf] }
 0x5e5   :  { %6457 = vmatpush.bf16.msrb.mxu1 %v8591_v51  ;;  %v10599_v51 = vld [vmem:[#allocation6 + $0xb74] sm:$0xf]  ;;  %v9711_v32 = vor.u32 %v10634_v12, %v9708_v59  ;;  %v8286_v38 = vld [vmem:[#allocation6 + $0x168] sm:$0xf]  ;;  %v8258_v9 = vld [vmem:[#allocation6 + $0x130] sm:$0xf] }
 0x5e6   :  { %6430 = vmatpush.bf16.msra.mxu3 %v8115_v23  ;;  %v9092_v23 = vld [vmem:[#allocation6 + $0x7d4] sm:$0xf0]  ;;  %v8482_v57 = vld [vmem:[#allocation6 + $0x2f0] sm:$0xf] }
 0x5e7   :  { %6444 = vmatpush.bf16.msrb.mxu0 %v8339_v22  ;;  %v9571_v22 = vor.u32 %v10599_v51, %v9568_v20  ;;  %v9095_v49 = vor.u32 %v10480_v43, %v9092_v23  ;;  %v10456_v51 = vld [vmem:[#allocation6 + $0x6f8] sm:$0xf0]  ;;  %v9011_v20 = vor.u32 %v10459_v36, %v9008_v13  ;;  %v9456_v43 = vld [vmem:[#allocation6 + $0xaac] sm:$0xf0] }
 0x5e8   :  { %6472 = vmatpush.bf16.msrb.mxu2 %v8787_v55  ;;  %v10705_v40 = vpop.eup %10704  ;;  %v10648_v55 = vld [vmem:[#allocation6 + $0xcfc] sm:$0xf]  ;;  %v8987_v29 = vor.u32 %v10456_v51, %v8986_v34  ;;  %v8678_v51 = vld [vmem:[#allocation6 + $0x478] sm:$0xf] }
 0x5e9   :  { %6458 = vmatpush.bf16.msrb.mxu1 %v8563_v63  ;;  %6431 = vmatmul.bf16.vlgmr.msra.gmra.mxu3 %v11244_v44  ;;  %6670 = vst [vmem:[%s11449_s12 + $0x48] sm:$0xff] %v10705_v40  ;;  %v9767_v62 = vor.u32 %v10648_v55, %v9764_v28  ;;  %v10529_v63 = vld [vmem:[#allocation6 + $0x944] sm:$0xf]  ;;  %v11382_v23 = vpop.f32.mrf.mxu1  ;;  %v10400_v55 = vld [vmem:[#allocation6 + $0x538] sm:$0xf0]  ;;  %v8539_v28 = vor.u32 %v10344_v41, %v8538_v47 }
 0x5ea   :  { %6479 = vmatpush.bf16.msrb.mxu3 %v9207_v56  ;;  %6445 = vmatmul.bf16.vlgmr.msrb.gmra.mxu0 %v11252_v58  ;;  %v9319_v56 = vor.u32 %v10536_v52, %v9316_v53  ;;  %v9291_v5 = vor.u32 %v10529_v63, %v9288_v45  ;;  %v8315_v52 = vor.u32 %v10288_v11, %v8314_v18  ;;  %v3548_v53 = vperm.slane %v11354_v26, 3  ;;  %v8958_v63 = vld [vmem:[#allocation6 + $0x6a8] sm:$0xf]  ;;  %v10449_v45 = vld [vmem:[#allocation6 + $0x6c0] sm:$0xf0] }
 0x5eb   :  { %6493 = vmatpush.bf16.msra.mxu0 %v9431_v33  ;;  %6473 = vmatmul.bf16.vlgmr.msrb.gmra.mxu2 %v11248_v27  ;;  %v10473_v33 = vld [vmem:[#allocation6 + $0x784] sm:$0xf]  ;;  %v8902_v18 = vld [vmem:[#allocation6 + $0x638] sm:$0xf]  ;;  %v10435_v11 = vld [vmem:[#allocation6 + $0x650] sm:$0xf0] }
 0x5ec   :  { %6521 = vmatpush.bf16.msra.mxu2 %v9879_v35  ;;  %6459 = vmatmul.bf16.vlgmr.msrb.gmra.mxu1 %v11256_v4  ;;  %v9064_v35 = vld [vmem:[#allocation6 + $0x79c] sm:$0xf0]  ;;  %v8398_v26 = vld [vmem:[#allocation6 + $0x248] sm:$0xf] }
 0x5ed   :  { %6507 = vmatpush.bf16.msra.mxu1 %v9655_v1  ;;  %v9512_v1 = vld [vmem:[#allocation6 + $0xb1c] sm:$0xf0]  ;;  %v9067_v61 = vor.u32 %v10473_v33, %v9064_v35  ;;  %v10337_v35 = vld [vmem:[#allocation6 + $0x340] sm:$0xf0] }
 0x5ee   :  { %6480 = vmatpush.bf16.msrb.mxu3 %v9179_v31  ;;  %v9260_v31 = vld [vmem:[#allocation6 + $0x924] sm:$0xf0]  ;;  %v11385_v33 = vpop.f32.mrf.mxu2 }
 0x5ef   :  { %6494 = vmatpush.bf16.msra.mxu0 %v9403_v46  ;;  %v9515_v46 = vor.u32 %v10585_v54, %v9512_v1  ;;  %v8734_v54 = vld [vmem:[#allocation6 + $0x4e8] sm:$0xf]  ;;  %v10393_v1 = vld [vmem:[#allocation6 + $0x500] sm:$0xf0] }
 0x5f0   :  { %6522 = vmatpush.bf16.msra.mxu2 %v9851_v15  ;;  %v10578_v15 = vld [vmem:[#allocation6 + $0xacc] sm:$0xf]  ;;  %v8735_v12 = vor.u32 %v10393_v1, %v8734_v54  ;;  %v10421_v54 = vld [vmem:[#allocation6 + $0x5e0] sm:$0xf0] }
 0x5f1   :  { %6508 = vmatpush.bf16.msra.mxu1 %v9627_v25  ;;  %v9263_v25 = vor.u32 %v10522_v7, %v9260_v31  ;;  %v10330_v7 = vld [vmem:[#allocation6 + $0x308] sm:$0xf0]  ;;  %v8930_v31 = vld [vmem:[#allocation6 + $0x670] sm:$0xf] }
 0x5f2   :  { %6481 = vmatpush.bf16.msrb.mxu3 %v9151_v21  ;;  %v9232_v21 = vld [vmem:[#allocation6 + $0x8ec] sm:$0xf0]  ;;  %v8483_v36 = vor.u32 %v10330_v7, %v8482_v57  ;;  %v10365_v57 = vld [vmem:[#allocation6 + $0x420] sm:$0xf0] }
 0x5f3   :  { %6495 = vmatpush.bf16.msra.mxu0 %v9375_v30  ;;  %v10627_v30 = vld [vmem:[#allocation6 + $0xc54] sm:$0xf]  ;;  %v9235_v40 = vor.u32 %v10515_v37, %v9232_v21 }
 0x5f4   :  { %6523 = vmatpush.bf16.msra.mxu2 %v9823_v24  ;;  %v9487_v24 = vor.u32 %v10578_v15, %v9484_v16  ;;  %v10267_v21 = vld [vmem:[#allocation6 + $0x110] sm:$0xf0] }
 0x5f5   :  { %6509 = vmatpush.bf16.msra.mxu1 %v9599_v17  ;;  %v6222_v17 = vpop.f32.mrf.mxu0 }
 0x5f6   :  { %6482 = vmatpush.bf16.msrb.mxu3 %v9123_v14  ;;  %v6208_v14 = vpop.f32.mrf.mxu3 }
 0x5f7   :  { %6496 = vmatpush.bf16.msra.mxu0 %v9347_v3  ;;  %v10571_v3 = vld [vmem:[#allocation6 + $0xa94] sm:$0xf]  ;;  %v6209_v10 = vadd.f32 %v6208_v14, %v3548_v53  ;;  %v8903_v14 = vor.u32 %v10435_v11, %v8902_v18  ;;  %v8118_v18 = vld [vmem:[#allocation6 + $0x18] sm:$0xf] }
 0x5f8   :  { %6524 = vmatpush.bf16.msra.mxu2 %v9795_v8  ;;  %v9683_v8 = vor.u32 %v10627_v30, %v9680_v42  ;;  %v8454_v30 = vld [vmem:[#allocation6 + $0x2b8] sm:$0xf]  ;;  %v6238_v42 = vpop.f32.mrf.mxu1  ;;  %v10239_v11 = vld [vmem:[#allocation6 + $0x30] sm:$0xf0] }
 0x5f9   :  { %6510 = vmatpush.bf16.msra.mxu1 %v9571_v22  ;;  %v8762_v22 = vld [vmem:[#allocation6 + $0x520] sm:$0xf]  ;;  %v6223_v15 = vadd.f32 %v6222_v17, %v6209_v10  ;;  %v11393_v17 = vpop.f32.mrf.mxu2  ;;  %v10309_v10 = vld [vmem:[#allocation6 + $0x260] sm:$0xf0] }
 0x5fa   :  { %6483 = vmatpush.bf16.msrb.mxu3 %v9095_v49  ;;  %v10281_v49 = vld [vmem:[#allocation6 + $0x180] sm:$0xf0]  ;;  %v8399_v7 = vor.u32 %v10309_v10, %v8398_v26 }
 0x5fb   :  { %6497 = vmatpush.bf16.msra.mxu0 %v9319_v56  ;;  %v8510_v56 = vld [vmem:[#allocation6 + $0x328] sm:$0xf]  ;;  %v8287_v0 = vor.u32 %v10281_v49, %v8286_v38  ;;  %v6237_v41 = vadd.f32 %v11382_v23, %v6223_v15  ;;  %v8650_v49 = vld [vmem:[#allocation6 + $0x440] sm:$0xf]  ;;  %v10246_v15 = vld [vmem:[#allocation6 + $0x68] sm:$0xf0] }
 0x5fc   :  { %6525 = vmatpush.bf16.msra.mxu2 %v9767_v62  ;;  %v9459_v62 = vor.u32 %v10571_v3, %v9456_v43  ;;  %v8202_v3 = vld [vmem:[#allocation6 + $0xc0] sm:$0xf]  ;;  %v10260_v43 = vld [vmem:[#allocation6 + $0xd8] sm:$0xf0] }
 0x5fd   :  { %6511 = vmatpush.bf16.msra.mxu1 %v9543_v2  ;;  %v8763_v2 = vor.u32 %v10400_v55, %v8762_v22  ;;  %v6224_v59 = vpop.f32.mrf.mxu0  ;;  %v10316_v22 = vld [vmem:[#allocation6 + $0x298] sm:$0xf0]  ;;  %v8874_v55 = vld [vmem:[#allocation6 + $0x600] sm:$0xf]  ;;  %v6251_v23 = vadd.f32 %v11385_v33, %v6237_v41  ;;  %v8203_v38 = vor.u32 %v10260_v43, %v8202_v3 }
 0x5fe   :  { %6484 = vmatpush.bf16.msrb.mxu3 %v9067_v61  ;;  %v8511_v61 = vor.u32 %v10337_v35, %v8510_v56  ;;  %v6210_v37 = vpop.f32.mrf.mxu3  ;;  %v10372_v56 = vld [vmem:[#allocation6 + $0x458] sm:$0xf0]  ;;  %v9210_v3 = vld [vmem:[#allocation6 + $0x8a0] sm:$0xf] }
 0x5ff   :  { %6498 = vmatpush.bf16.msra.mxu0 %v9291_v5  ;;  %v8959_v5 = vor.u32 %v10449_v45, %v8958_v63  ;;  %v8174_v45 = vld [vmem:[#allocation6 + $0x88] sm:$0xf]  ;;  %v10512_v43 = vld [vmem:[#allocation6 + $0x8b8] sm:$0xf0] }
 0x600   :  { %6526 = vmatpush.bf16.msra.mxu2 %v9739_v6  ;;  %v10274_v6 = vld [vmem:[#allocation6 + $0x148] sm:$0xf0] }
 0x601   :  { %6512 = vmatpush.bf16.msra.mxu1 %v9515_v46  ;;  %v10442_v46 = vld [vmem:[#allocation6 + $0x688] sm:$0xf0]  ;;  %v8259_v16 = vor.u32 %v10274_v6, %v8258_v9  ;;  %v8622_v6 = vld [vmem:[#allocation6 + $0x408] sm:$0xf] }
 0x602   :  { %6485 = vmatpush.bf16.msrb.mxu3 %v9039_v19  ;;  %v8706_v19 = vld [vmem:[#allocation6 + $0x4b0] sm:$0xf]  ;;  %v8931_v13 = vor.u32 %v10442_v46, %v8930_v31 }
 0x603   :  { %6499 = vmatpush.bf16.msra.mxu0 %v9263_v25  ;;  %v10386_v25 = vld [vmem:[#allocation6 + $0x4c8] sm:$0xf0] }
 0x604   :  { %6527 = vmatpush.bf16.msra.mxu2 %v9711_v32  ;;  %v8230_v32 = vld [vmem:[#allocation6 + $0xf8] sm:$0xf]  ;;  %v8707_v47 = vor.u32 %v10386_v25, %v8706_v19  ;;  %v10302_v25 = vld [vmem:[#allocation6 + $0x228] sm:$0xf0] }
 0x605   :  { %6513 = vmatpush.bf16.msra.mxu1 %v9487_v24  ;;  %v10323_v24 = vld [vmem:[#allocation6 + $0x2d0] sm:$0xf0]  ;;  %v8231_v34 = vor.u32 %v10267_v21, %v8230_v32  ;;  %v8594_v32 = vld [vmem:[#allocation6 + $0x3d0] sm:$0xf] }
 0x606   :  { %6486 = vmatpush.bf16.msrb.mxu3 %v9011_v20  ;;  %v10379_v20 = vld [vmem:[#allocation6 + $0x490] sm:$0xf0] }
 0x607   :  { %6500 = vmatpush.bf16.msra.mxu0 %v9235_v40  ;;  %v8455_v40 = vor.u32 %v10323_v24, %v8454_v30  ;;  %v6278_v63 = vpop.f32.mrf.mxu0  ;;  %v10358_v24 = vld [vmem:[#allocation6 + $0x3e8] sm:$0xf0] }
 0x608   :  { %6528 = vmatpush.bf16.msra.mxu2 %v9683_v8  ;;  %v8426_v8 = vld [vmem:[#allocation6 + $0x280] sm:$0xf] }
 0x609   :  { %6514 = vmatpush.bf16.msra.mxu1 %v9459_v62  ;;  %6487 = vmatmul.bf16.vlgmr.msrb.gmra.mxu3 %v11264_v48  ;;  %v8427_v62 = vor.u32 %v10316_v22, %v8426_v8  ;;  %v6292_v33 = vpop.f32.mrf.mxu1 }
 0x60a   :  { %6535 = vmatpush.bf16.msra.mxu3 %v8315_v52  ;;  %6501 = vmatmul.bf16.vlgmr.msra.gmra.mxu0 %v11272_v39  ;;  %v6211_v52 = vadd.f32 %v6210_v37, %v3548_v53  ;;  %v8623_v37 = vor.u32 %v10365_v57, %v8622_v6 }
 0x60b   :  { %6549 = vmatpush.bf16.msrb.mxu0 %v8539_v28  ;;  %6529 = vmatmul.bf16.vlgmr.msra.gmra.mxu2 %v11268_v50  ;;  %v10428_v28 = vld [vmem:[#allocation6 + $0x618] sm:$0xf0] }
 0x60c   :  { %6577 = vmatpush.bf16.msrb.mxu2 %v8987_v29  ;;  %6515 = vmatmul.bf16.vlgmr.msra.gmra.mxu1 %v11277_v60  ;;  %v8679_v29 = vor.u32 %v10379_v20, %v8678_v51  ;;  %v8875_v35 = vor.u32 %v10428_v28, %v8874_v55  ;;  %v6225_v53 = vadd.f32 %v6224_v59, %v6211_v52  ;;  %v6264_v1 = vpop.f32.mrf.mxu3  ;;  %v8370_v59 = vld [vmem:[#allocation6 + $0x210] sm:$0xf]  ;;  %v10295_v51 = vld [vmem:[#allocation6 + $0x1f0] sm:$0xf0]  ;;  %v9434_v55 = vld [vmem:[#allocation6 + $0xa60] sm:$0xf] }
 0x60d   :  { %6563 = vmatpush.bf16.msrb.mxu1 %v8763_v2  ;;  %v10253_v2 = vld [vmem:[#allocation6 + $0xa0] sm:$0xf0]  ;;  %v8595_v52 = vor.u32 %v10358_v24, %v8594_v32  ;;  %v10568_v28 = vld [vmem:[#allocation6 + $0xa78] sm:$0xf0]  ;;  %v10554_v32 = vld [vmem:[#allocation6 + $0xa08] sm:$0xf0] }
 0x60e   :  { %6536 = vmatpush.bf16.msra.mxu3 %v8287_v0  ;;  %v8846_v0 = vld [vmem:[#allocation6 + $0x5c8] sm:$0xf]  ;;  %v8175_v9 = vor.u32 %v10253_v2, %v8174_v45  ;;  %v6306_v46 = vpop.f32.mrf.mxu2  ;;  %v9658_v45 = vld [vmem:[#allocation6 + $0xc20] sm:$0xf]  ;;  %v10624_v2 = vld [vmem:[#allocation6 + $0xc38] sm:$0xf0]  ;;  %v9435_v10 = vor.u32 %v10568_v28, %v9434_v55 }
 0x60f   :  { %6550 = vmatpush.bf16.msrb.mxu0 %v8511_v61  ;;  %v8651_v61 = vor.u32 %v10372_v56, %v8650_v49  ;;  %v8847_v31 = vor.u32 %v10421_v54, %v8846_v0  ;;  %v6280_v22 = vpop.f32.mrf.mxu0  ;;  %v10680_v49 = vld [vmem:[#allocation6 + $0xdf8] sm:$0xf0]  ;;  %v8566_v56 = vld [vmem:[#allocation6 + $0x398] sm:$0xf]  ;;  %v9182_v0 = vld [vmem:[#allocation6 + $0x868] sm:$0xf]  ;;  %v9659_v57 = vor.u32 %v10624_v2, %v9658_v45 }
 0x610   :  { %6578 = vmatpush.bf16.msrb.mxu2 %v8959_v5  ;;  %v6265_v5 = vadd.f32 %v6264_v1, %v6251_v23  ;;  %v10666_v24 = vld [vmem:[#allocation6 + $0xd88] sm:$0xf0]  ;;  %v10484_v55 = vld [vmem:[#allocation6 + $0x7d8] sm:$0xf0]  ;;  %v10477_v2 = vld [vmem:[#allocation6 + $0x7a0] sm:$0xf0] }
 0x611   :  { %6564 = vmatpush.bf16.msrb.mxu1 %v8735_v12  ;;  %v8146_v12 = vld [vmem:[#allocation6 + $0x50] sm:$0xf] }
 0x612   :  { %6537 = vmatpush.bf16.msra.mxu3 %v8259_v16  ;;  %v6239_v16 = vadd.f32 %v6238_v42, %v6225_v53  ;;  %v6279_v19 = vadd.f32 %v6278_v63, %v6265_v5  ;;  %v8147_v30 = vor.u32 %v10246_v15, %v8146_v12  ;;  %v8790_v42 = vld [vmem:[#allocation6 + $0x558] sm:$0xf]  ;;  %v6294_v63 = vpop.f32.mrf.mxu1  ;;  %v9211_v53 = vor.u32 %v10512_v43, %v9210_v3  ;;  %v9406_v5 = vld [vmem:[#allocation6 + $0xa28] sm:$0xf]  ;;  %v10617_v12 = vld [vmem:[#allocation6 + $0xc00] sm:$0xf0] }
 0x613   :  { %6551 = vmatpush.bf16.msrb.mxu0 %v8483_v36  ;;  %v8818_v36 = vld [vmem:[#allocation6 + $0x590] sm:$0xf]  ;;  %v10659_v3 = vld [vmem:[#allocation6 + $0xd50] sm:$0xf0]  ;;  %v9574_v43 = vld [vmem:[#allocation6 + $0xb78] sm:$0xf] }
 0x614   :  { %6579 = vmatpush.bf16.msrb.mxu2 %v8931_v13  ;;  %v10414_v13 = vld [vmem:[#allocation6 + $0x5a8] sm:$0xf0]  ;;  %v6293_v21 = vadd.f32 %v6292_v33, %v6279_v19  ;;  %v6253_v20 = vadd.f32 %v11393_v17, %v6239_v16  ;;  %v6266_v8 = vpop.f32.mrf.mxu3  ;;  %v10505_v33 = vld [vmem:[#allocation6 + $0x880] sm:$0xf0] }
 0x615   :  { %6565 = vmatpush.bf16.msrb.mxu1 %v8707_v47  ;;  %v8371_v47 = vor.u32 %v10302_v25, %v8370_v59  ;;  %v8819_v41 = vor.u32 %v10414_v13, %v8818_v36  ;;  %v9183_v16 = vor.u32 %v10505_v33, %v9182_v0  ;;  %v9154_v25 = vld [vmem:[#allocation6 + $0x830] sm:$0xf]  ;;  %v10498_v36 = vld [vmem:[#allocation6 + $0x848] sm:$0xf0]  ;;  %v9742_v0 = vld [vmem:[#allocation6 + $0xcc8] sm:$0xf] }
 0x616   :  { %6538 = vmatpush.bf16.msra.mxu3 %v8231_v34  ;;  %v8342_v34 = vld [vmem:[#allocation6 + $0x1d8] sm:$0xf]  ;;  %v6267_v23 = vadd.f32 %v6266_v8, %v6253_v20 }
 0x617   :  { %6552 = vmatpush.bf16.msrb.mxu0 %v8455_v40  ;;  %v6307_v40 = vadd.f32 %v6306_v46, %v6293_v21  ;;  %v8343_v17 = vor.u32 %v10295_v51, %v8342_v34  ;;  %v9630_v46 = vld [vmem:[#allocation6 + $0xbe8] sm:$0xf]  ;;  %v9126_v34 = vld [vmem:[#allocation6 + $0x7f8] sm:$0xf] }
 0x618   :  { %6580 = vmatpush.bf16.msrb.mxu2 %v8903_v14  ;;  %v10407_v14 = vld [vmem:[#allocation6 + $0x570] sm:$0xf0]  ;;  %v6281_v26 = vadd.f32 %v6280_v22, %v6267_v23  ;;  %v9631_v21 = vor.u32 %v10617_v12, %v9630_v46  ;;  %v9350_v20 = vld [vmem:[#allocation6 + $0x9b8] sm:$0xf]  ;;  %v9098_v22 = vld [vmem:[#allocation6 + $0x7c0] sm:$0xf] }
 0x619   :  { %6566 = vmatpush.bf16.msrb.mxu1 %v8679_v29  ;;  %v9882_v29 = vld [vmem:[#allocation6 + $0xde0] sm:$0xf]  ;;  %10706 = vtanh.f32 %v6307_v40  ;;  %v10547_v40 = vld [vmem:[#allocation6 + $0x9d0] sm:$0xf0]  ;;  %v9714_v12 = vld [vmem:[#allocation6 + $0xc90] sm:$0xf] }
 0x61a   :  { %6539 = vmatpush.bf16.msra.mxu3 %v8203_v38  ;;  %v8119_v38 = vor.u32 %v10239_v11, %v8118_v18  ;;  %v9883_v54 = vor.u32 %v10680_v49, %v9882_v29  ;;  %v6295_v6 = vadd.f32 %v6294_v63, %v6281_v26  ;;  %v9602_v18 = vld [vmem:[#allocation6 + $0xbb0] sm:$0xf]  ;;  %v10610_v11 = vld [vmem:[#allocation6 + $0xbc8] sm:$0xf0]  ;;  %v10540_v29 = vld [vmem:[#allocation6 + $0x998] sm:$0xf0] }
 0x61b   :  { %6553 = vmatpush.bf16.msrb.mxu0 %v8427_v62  ;;  %v10351_v62 = vld [vmem:[#allocation6 + $0x3b0] sm:$0xf0]  ;;  %v10652_v49 = vld [vmem:[#allocation6 + $0xd18] sm:$0xf0]  ;;  %v9070_v63 = vld [vmem:[#allocation6 + $0x788] sm:$0xf] }
 0x61c   :  { %6581 = vmatpush.bf16.msrb.mxu2 %v8875_v35  ;;  %v8791_v35 = vor.u32 %v10407_v14, %v8790_v42  ;;  %v8567_v1 = vor.u32 %v10351_v62, %v8566_v56  ;;  %v10491_v42 = vld [vmem:[#allocation6 + $0x810] sm:$0xf0]  ;;  %v9798_v14 = vld [vmem:[#allocation6 + $0xd38] sm:$0xf]  ;;  %v9546_v56 = vld [vmem:[#allocation6 + $0xb40] sm:$0xf]  ;;  %v9071_v33 = vor.u32 %v10477_v2, %v9070_v63 }
 0x61d   :  { %6567 = vmatpush.bf16.msrb.mxu1 %v8651_v61  ;;  %v6308_v61 = vpop.f32.mrf.mxu2  ;;  %v9799_v28 = vor.u32 %v10659_v3, %v9798_v14  ;;  %v10596_v62 = vld [vmem:[#allocation6 + $0xb58] sm:$0xf0]  ;;  %v9294_v26 = vld [vmem:[#allocation6 + $0x948] sm:$0xf] }
 0x61e   :  { %6540 = vmatpush.bf16.msra.mxu3 %v8175_v9  ;;  %v10561_v9 = vld [vmem:[#allocation6 + $0xa40] sm:$0xf0]  ;;  %v6309_v59 = vadd.f32 %v6308_v61, %v6295_v6 }
 0x61f   :  { %6554 = vmatpush.bf16.msrb.mxu0 %v8399_v7  ;;  %v9854_v7 = vld [vmem:[#allocation6 + $0xda8] sm:$0xf]  ;;  %v10707_v15 = vpop.eup %10706  ;;  %v9407_v19 = vor.u32 %v10561_v9, %v9406_v5  ;;  %v10589_v61 = vld [vmem:[#allocation6 + $0xb20] sm:$0xf0]  ;;  %v9042_v9 = vld [vmem:[#allocation6 + $0x750] sm:$0xf] }
 0x620   :  { %6582 = vmatpush.bf16.msrb.mxu2 %v8847_v31  ;;  %v10673_v31 = vld [vmem:[#allocation6 + $0xdc0] sm:$0xf0]  ;;  %6664 = vst [vmem:[%s11449_s12 + $0x18] sm:$0xff] %v10707_v15  ;;  %10708 = vtanh.f32 %v6309_v59  ;;  %v10638_v15 = vld [vmem:[#allocation6 + $0xca8] sm:$0xf0] }
 0x621   :  { %6568 = vmatpush.bf16.msrb.mxu1 %v8623_v37  ;;  %v9855_v13 = vor.u32 %v10673_v31, %v9854_v7  ;;  %v9378_v37 = vld [vmem:[#allocation6 + $0x9f0] sm:$0xf]  ;;  %v10526_v31 = vld [vmem:[#allocation6 + $0x928] sm:$0xf0] }
 0x622   :  { %6541 = vmatpush.bf16.msra.mxu3 %v8147_v30  ;;  %v9826_v30 = vld [vmem:[#allocation6 + $0xd70] sm:$0xf] }
 0x623   :  { %6555 = vmatpush.bf16.msrb.mxu0 %v8371_v47  ;;  %v9155_v47 = vor.u32 %v10498_v36, %v9154_v25  ;;  %v9827_v51 = vor.u32 %v10666_v24, %v9826_v30  ;;  %v9266_v7 = vld [vmem:[#allocation6 + $0x910] sm:$0xf]  ;;  %v9014_v36 = vld [vmem:[#allocation6 + $0x718] sm:$0xf] }
 0x624   :  { %6583 = vmatpush.bf16.msrb.mxu2 %v8819_v41  ;;  %v9379_v41 = vor.u32 %v10554_v32, %v9378_v37  ;;  %v9490_v59 = vld [vmem:[#allocation6 + $0xad0] sm:$0xf]  ;;  %v9267_v25 = vor.u32 %v10526_v31, %v9266_v7  ;;  %v10463_v37 = vld [vmem:[#allocation6 + $0x730] sm:$0xf0]  ;;  %v9238_v32 = vld [vmem:[#allocation6 + $0x8d8] sm:$0xf] }
 0x625   :  { %6569 = vmatpush.bf16.msrb.mxu1 %v8595_v52  ;;  %v9351_v52 = vor.u32 %v10547_v40, %v9350_v20  ;;  %v9686_v24 = vld [vmem:[#allocation6 + $0xc58] sm:$0xf] }
 0x626   :  { %6542 = vmatpush.bf16.msra.mxu3 %v8119_v38  ;;  %v10709_v8 = vpop.eup %10708  ;;  %v9770_v38 = vld [vmem:[#allocation6 + $0xd00] sm:$0xf] }
 0x627   :  { %6556 = vmatpush.bf16.msrb.mxu0 %v8343_v17  ;;  %6671 = vst [vmem:[%s11449_s12 + $0x50] sm:$0xff] %v10709_v8  ;;  %v9099_v17 = vor.u32 %v10484_v55, %v9098_v22  ;;  %v9771_v45 = vor.u32 %v10652_v49, %v9770_v38 }
 0x628   :  { %6584 = vmatpush.bf16.msrb.mxu2 %v8791_v35 }
 0x629   :  { %6570 = vmatpush.bf16.msrb.mxu1 %v8567_v1  ;;  %6543 = vmatmul.bf16.vlgmr.msra.gmra.mxu3 %v11244_v44  ;;  %v9603_v44 = vor.u32 %v10610_v11, %v9602_v18  ;;  %v9518_v1 = vld [vmem:[#allocation6 + $0xb08] sm:$0xf]  ;;  %v10631_v18 = vld [vmem:[#allocation6 + $0xc70] sm:$0xf0]  ;;  %v6334_v11 = vpop.f32.mrf.mxu0  ;;  %v6348_v20 = vpop.f32.mrf.mxu1 }
 0x62a   :  { %6591 = vmatpush.bf16.msrb.mxu3 %v9211_v53  ;;  %6557 = vmatmul.bf16.vlgmr.msrb.gmra.mxu0 %v11252_v58  ;;  %v9127_v58 = vor.u32 %v10491_v42, %v9126_v34  ;;  %v10533_v53 = vld [vmem:[#allocation6 + $0x960] sm:$0xf0]  ;;  %v9519_v46 = vor.u32 %v10589_v61, %v9518_v1  ;;  %v9015_v34 = vor.u32 %v10463_v37, %v9014_v36 }
 0x62b   :  { %6605 = vmatpush.bf16.msra.mxu0 %v9435_v10  ;;  %6585 = vmatmul.bf16.vlgmr.msrb.gmra.mxu2 %v11248_v27  ;;  %v10603_v27 = vld [vmem:[#allocation6 + $0xb90] sm:$0xf0]  ;;  %v9547_v10 = vor.u32 %v10596_v62, %v9546_v56  ;;  %v9295_v5 = vor.u32 %v10533_v53, %v9294_v26  ;;  %v9687_v40 = vor.u32 %v10631_v18, %v9686_v24 }
 0x62c   :  { %6633 = vmatpush.bf16.msra.mxu2 %v9883_v54  ;;  %6571 = vmatmul.bf16.vlgmr.msrb.gmra.mxu1 %v11256_v4  ;;  %v9322_v4 = vld [vmem:[#allocation6 + $0x980] sm:$0xf]  ;;  %v9575_v23 = vor.u32 %v10603_v27, %v9574_v43  ;;  %v10645_v54 = vld [vmem:[#allocation6 + $0xce0] sm:$0xf0]  ;;  %v6320_v42 = vpop.f32.mrf.mxu3 }
 0x62d   :  { %6619 = vmatpush.bf16.msra.mxu1 %v9659_v57  ;;  %v9323_v35 = vor.u32 %v10540_v29, %v9322_v4  ;;  %v9743_v6 = vor.u32 %v10645_v54, %v9742_v0  ;;  %v10470_v57 = vld [vmem:[#allocation6 + $0x768] sm:$0xf0] }
 0x62e   :  { %6592 = vmatpush.bf16.msrb.mxu3 %v9183_v16  ;;  %v10582_v16 = vld [vmem:[#allocation6 + $0xae8] sm:$0xf0]  ;;  %v6362_v43 = vpop.f32.mrf.mxu2 }
 0x62f   :  { %6606 = vmatpush.bf16.msra.mxu0 %v9407_v19  ;;  %v9043_v19 = vor.u32 %v10470_v57, %v9042_v9  ;;  %v9491_v30 = vor.u32 %v10582_v16, %v9490_v59 }
 0x630   :  { %6634 = vmatpush.bf16.msra.mxu2 %v9855_v13  ;;  %v9715_v13 = vor.u32 %v10638_v15, %v9714_v12 }
 0x631   :  { %6620 = vmatpush.bf16.msra.mxu1 %v9631_v21  ;;  %v10519_v21 = vld [vmem:[#allocation6 + $0x8f0] sm:$0xf0]  ;;  %v6336_v8 = vpop.f32.mrf.mxu0  ;;  %v6350_v22 = vpop.f32.mrf.mxu1 }
 0x632   :  { %6593 = vmatpush.bf16.msrb.mxu3 %v9155_v47  ;;  %v9462_v47 = vld [vmem:[#allocation6 + $0xa98] sm:$0xf] }
 0x633   :  { %6607 = vmatpush.bf16.msra.mxu0 %v9379_v41  ;;  %v10575_v41 = vld [vmem:[#allocation6 + $0xab0] sm:$0xf0] }
 0x634   :  { %6635 = vmatpush.bf16.msra.mxu2 %v9827_v51  ;;  %v9239_v51 = vor.u32 %v10519_v21, %v9238_v32  ;;  %v9463_v3 = vor.u32 %v10575_v41, %v9462_v47 }
 0x635   :  { %6621 = vmatpush.bf16.msra.mxu1 %v9603_v44  ;;  %v11410_v44 = vld [vmem:[#allocation15] sm:$0xff] }
 0x636   :  { %6594 = vmatpush.bf16.msrb.mxu3 %v9127_v58  ;;  %v3549_v14 = vperm.slane %v11410_v44, 4  ;;  %v6364_v55 = vpop.f32.mrf.mxu2 }
 0x637   :  { %6608 = vmatpush.bf16.msra.mxu0 %v9351_v52  ;;  %v6322_v52 = vpop.f32.mrf.mxu3 }
 0x638   :  { %6636 = vmatpush.bf16.msra.mxu2 %v9799_v28  ;;  %v6321_v27 = vadd.f32 %v6320_v42, %v3549_v14  ;;  %v6323_v4 = vadd.f32 %v6322_v52, %v3549_v14 }
 0x639   :  { %6622 = vmatpush.bf16.msra.mxu1 %v9575_v23 }
 0x63a   :  { %6595 = vmatpush.bf16.msrb.mxu3 %v9099_v17  ;;  %v6335_v58 = vadd.f32 %v6334_v11, %v6321_v27  ;;  %v6337_v38 = vadd.f32 %v6336_v8, %v6323_v4 }
 0x63b   :  { %6609 = vmatpush.bf16.msra.mxu0 %v9323_v35 }
 0x63c   :  { %6637 = vmatpush.bf16.msra.mxu2 %v9771_v45  ;;  %v6349_v28 = vadd.f32 %v6348_v20, %v6335_v58  ;;  %v6351_v17 = vadd.f32 %v6350_v22, %v6337_v38 }
 0x63d   :  { %6623 = vmatpush.bf16.msra.mxu1 %v9547_v10 }
 0x63e   :  { %6596 = vmatpush.bf16.msrb.mxu3 %v9071_v33  ;;  %v6363_v29 = vadd.f32 %v6362_v43, %v6349_v28 }
 0x63f   :  { %6610 = vmatpush.bf16.msra.mxu0 %v9295_v5 }
 0x640   :  { %6638 = vmatpush.bf16.msra.mxu2 %v9743_v6  ;;  %v3550_v6 = vperm.slane %v11410_v44, 5 }
 0x641   :  { %6624 = vmatpush.bf16.msra.mxu1 %v9519_v46 }
 0x642   :  { %6597 = vmatpush.bf16.msrb.mxu3 %v9043_v19 }
 0x643   :  { %6611 = vmatpush.bf16.msra.mxu0 %v9267_v25 }
 0x644   :  { %6639 = vmatpush.bf16.msra.mxu2 %v9715_v13 }
 0x645   :  { %6625 = vmatpush.bf16.msra.mxu1 %v9491_v30 }
 0x646   :  { %6598 = vmatpush.bf16.msrb.mxu3 %v9015_v34 }
 0x647   :  { %6612 = vmatpush.bf16.msra.mxu0 %v9239_v51  ;;  %v6390_v23 = vpop.f32.mrf.mxu0 }
 0x648   :  { %6640 = vmatpush.bf16.msra.mxu2 %v9687_v40 }
 0x649   :  { %6626 = vmatpush.bf16.msra.mxu1 %v9463_v3  ;;  %6599 = vmatmul.bf16.vlgmr.msrb.gmra.mxu3 %v11264_v48  ;;  %v6404_v56 = vpop.f32.mrf.mxu1 }
 0x64a   :  { %6613 = vmatmul.bf16.vlgmr.msra.gmra.mxu0 %v11272_v39 }
 0x64b   :  { %6641 = vmatmul.bf16.vlgmr.msra.gmra.mxu2 %v11268_v50  ;;  %v6365_v50 = vadd.f32 %v6364_v55, %v6351_v17  ;;  %v3551_v55 = vperm.slane %v11410_v44, 6 }
 0x64c   :  { %6627 = vmatmul.bf16.vlgmr.msra.gmra.mxu1 %v11277_v60  ;;  %v6376_v49 = vpop.f32.mrf.mxu3 }
 0x64d   :  { %v6377_v62 = vadd.f32 %v6376_v49, %v6363_v29 }
 0x64e   :  { %v6418_v48 = vpop.f32.mrf.mxu2 }
 0x64f   :  { %v6391_v39 = vadd.f32 %v6390_v23, %v6377_v62  ;;  %v6392_v2 = vpop.f32.mrf.mxu0 }
 0x651   :  { %v6405_v35 = vadd.f32 %v6404_v56, %v6391_v39  ;;  %v6406_v26 = vpop.f32.mrf.mxu1 }
 0x653   :  { %v6419_v63 = vadd.f32 %v6418_v48, %v6405_v35 }
 0x654   :  { %v6378_v45 = vpop.f32.mrf.mxu3 }
 0x655   :  { %10710 = vtanh.f32 %v6419_v63  ;;  %v6379_v60 = vadd.f32 %v6378_v45, %v6365_v50 }
 0x656   :  { %v6420_v10 = vpop.f32.mrf.mxu2 }
 0x657   :  { %v6393_v53 = vadd.f32 %v6392_v2, %v6379_v60 }
 0x659   :  { %v6407_v0 = vadd.f32 %v6406_v26, %v6393_v53 }
 0x65b   :  { %v10711_v54 = vpop.eup %10710  ;;  %v6421_v1 = vadd.f32 %v6420_v10, %v6407_v0 }
 0x65c   :  { %6665 = vst [vmem:[%s11449_s12 + $0x20] sm:$0xff] %v10711_v54 }
 0x65d   :  { %10712 = vtanh.f32 %v6421_v1 }
 0x663   :  { %v10713_v61 = vpop.eup %10712 }
 0x664   :  { %6672 = vst [vmem:[%s11449_s12 + $0x58] sm:$0xff] %v10713_v61 }
 0x667   :  { %v6446_v33 = vpop.f32.mrf.mxu0 }
 0x669   :  { %v6460_v9 = vpop.f32.mrf.mxu1 }
 0x66c   :  { %v6432_v5 = vpop.f32.mrf.mxu3 }
 0x66d   :  { %v6433_v7 = vadd.f32 %v6432_v5, %v3550_v6 }
 0x66e   :  { %v6474_v57 = vpop.f32.mrf.mxu2 }
 0x66f   :  { %v6448_v31 = vpop.f32.mrf.mxu0  ;;  %v6447_v46 = vadd.f32 %v6446_v33, %v6433_v7 }
 0x671   :  { %v6462_v15 = vpop.f32.mrf.mxu1  ;;  %v6461_v16 = vadd.f32 %v6460_v9, %v6447_v46 }
 0x673   :  { %v6475_v25 = vadd.f32 %v6474_v57, %v6461_v16 }
 0x674   :  { %v6434_v12 = vpop.f32.mrf.mxu3 }
 0x675   :  { %v6435_v19 = vadd.f32 %v6434_v12, %v3550_v6 }
 0x676   :  { %v6476_v59 = vpop.f32.mrf.mxu2 }
 0x677   :  { %v6449_v13 = vadd.f32 %v6448_v31, %v6435_v19 }
 0x679   :  { %v6463_v24 = vadd.f32 %v6462_v15, %v6449_v13 }
 0x67b   :  { %v6477_v47 = vadd.f32 %v6476_v59, %v6463_v24 }
 0x687   :  { %v6502_v36 = vpop.f32.mrf.mxu0 }
 0x689   :  { %v6516_v32 = vpop.f32.mrf.mxu1 }
 0x68c   :  { %v6488_v37 = vpop.f32.mrf.mxu3 }
 0x68d   :  { %v6489_v21 = vadd.f32 %v6488_v37, %v6475_v25 }
 0x68e   :  { %v6530_v30 = vpop.f32.mrf.mxu2 }
 0x68f   :  { %v6503_v18 = vadd.f32 %v6502_v36, %v6489_v21  ;;  %v6504_v51 = vpop.f32.mrf.mxu0 }
 0x691   :  { %v6517_v11 = vadd.f32 %v6516_v32, %v6503_v18  ;;  %v6518_v20 = vpop.f32.mrf.mxu1 }
 0x693   :  { %v6531_v41 = vadd.f32 %v6530_v30, %v6517_v11 }
 0x694   :  { %v6490_v34 = vpop.f32.mrf.mxu3 }
 0x695   :  { %10714 = vtanh.f32 %v6531_v41  ;;  %v6491_v42 = vadd.f32 %v6490_v34, %v6477_v47 }
 0x696   :  { %v6532_v14 = vpop.f32.mrf.mxu2 }
 0x697   :  { %v6505_v40 = vadd.f32 %v6504_v51, %v6491_v42 }
 0x699   :  { %v6519_v3 = vadd.f32 %v6518_v20, %v6505_v40 }
 0x69b   :  { %v10715_v43 = vpop.eup %10714  ;;  %v6533_v27 = vadd.f32 %v6532_v14, %v6519_v3 }
 0x69c   :  { %6666 = vst [vmem:[%s11449_s12 + $0x28] sm:$0xff] %v10715_v43 }
 0x69d   :  { %10716 = vtanh.f32 %v6533_v27 }
 0x6a3   :  { %v10717_v8 = vpop.eup %10716 }
 0x6a4   :  { %6673 = vst [vmem:[%s11449_s12 + $0x60] sm:$0xff] %v10717_v8 }
 0x6a7   :  { %v6558_v58 = vpop.f32.mrf.mxu0 }
 0x6a9   :  { %v6572_v22 = vpop.f32.mrf.mxu1 }
 0x6ac   :  { %v6544_v52 = vpop.f32.mrf.mxu3 }
 0x6ad   :  { %v6545_v4 = vadd.f32 %v6544_v52, %v3551_v55 }
 0x6ae   :  { %v6586_v28 = vpop.f32.mrf.mxu2 }
 0x6af   :  { %v6560_v29 = vpop.f32.mrf.mxu0  ;;  %v6559_v23 = vadd.f32 %v6558_v58, %v6545_v4 }
 0x6b1   :  { %v6574_v49 = vpop.f32.mrf.mxu1  ;;  %v6573_v56 = vadd.f32 %v6572_v22, %v6559_v23 }
 0x6b3   :  { %v6587_v17 = vadd.f32 %v6586_v28, %v6573_v56 }
 0x6b4   :  { %v6546_v38 = vpop.f32.mrf.mxu3 }
 0x6b5   :  { %v6547_v62 = vadd.f32 %v6546_v38, %v3551_v55 }
 0x6b6   :  { %v6588_v48 = vpop.f32.mrf.mxu2 }
 0x6b7   :  { %v6561_v39 = vadd.f32 %v6560_v29, %v6547_v62 }
 0x6b9   :  { %v6575_v2 = vadd.f32 %v6574_v49, %v6561_v39 }
 0x6bb   :  { %v6589_v44 = vadd.f32 %v6588_v48, %v6575_v2 }
 0x6c7   :  { %v6614_v35 = vpop.f32.mrf.mxu0 }
 0x6c9   :  { %v6628_v45 = vpop.f32.mrf.mxu1 }
 0x6cc   :  { %v6600_v50 = vpop.f32.mrf.mxu3 }
 0x6cd   :  { %v6601_v63 = vadd.f32 %v6600_v50, %v6587_v17 }
 0x6ce   :  { %v6642_v26 = vpop.f32.mrf.mxu2 }
 0x6cf   :  { %v6615_v60 = vadd.f32 %v6614_v35, %v6601_v63  ;;  %v6616_v1 = vpop.f32.mrf.mxu0 }
 0x6d1   :  { %v6629_v53 = vadd.f32 %v6628_v45, %v6615_v60  ;;  %v6630_v33 = vpop.f32.mrf.mxu1 }
 0x6d3   :  { %v6643_v10 = vadd.f32 %v6642_v26, %v6629_v53 }
 0x6d4   :  { %v6602_v0 = vpop.f32.mrf.mxu3 }
 0x6d5   :  { %10718 = vtanh.f32 %v6643_v10  ;;  %v6603_v54 = vadd.f32 %v6602_v0, %v6589_v44 }
 0x6d6   :  { %v6644_v9 = vpop.f32.mrf.mxu2 }
 0x6d7   :  { %v6617_v61 = vadd.f32 %v6616_v1, %v6603_v54 }
 0x6d9   :  { %v6631_v5 = vadd.f32 %v6630_v33, %v6617_v61 }
 0x6db   :  { %v10719_v6 = vpop.eup %10718  ;;  %v6645_v57 = vadd.f32 %v6644_v9, %v6631_v5 }
 0x6dc   :  { %6667 = vst [vmem:[%s11449_s12 + $0x30] sm:$0xff] %v10719_v6 }
 0x6dd   :  { %10720 = vtanh.f32 %v6645_v57 }
 0x6e3   :  { %v10721_v7 = vpop.eup %10720 }
 0x6e4   :  { %6674 = vst [vmem:[%s11449_s12 + $0x68] sm:$0xff] %v10721_v7 }
 0x6e5   :  { %6679 = vsyncpa [#allocation9], 1 }
 0x6e6   :  { %6680 = vsyncpa [#allocation11], 1 }
 0x6e7   :  { %6681 = vsyncpa [#allocation14], 1 }
 0x6e8   :  { %6682 = vsyncmov [#allocation7] }
 0x6eb   :  { %s6683_s6 = vpop.sfrf %6682 }
 0x6ec   :  { %p9884_p0 = scmp.ne.s32.totalorder %s6683_s6, 0 }
 0x6ee   :  { %6687 = shalt.err (%p9884_p0)  }
 0x6ef   :  { %6689 = vsyncmov [#allocation7 + $0x1] }
 0x6f2   :  { %s6690_s11 = vpop.sfrf %6689 }
 0x6f3   :  { %p9885_p1 = scmp.ne.s32.totalorder %s6690_s11, 0 }
 0x6f5   :  { %6694 = shalt.err (%p9885_p1)  }
 0x6f6   :  { %6696 = vsyncmov [#allocation7 + $0x2] }
 0x6f9   :  { %s6697_s1 = vpop.sfrf %6696 }
 0x6fa   :  { %p9886_p2 = scmp.ne.s32.totalorder %s6697_s1, 0 }
 0x6fc   :  { %6701 = shalt.err (%p9886_p2)  }
 0x6fd   :  { %6703 = vsyncmov [#allocation7 + $0x3] }
 0x700   :  { %s6704_s27 = vpop.sfrf %6703 }
 0x701   :  { %p9887_p3 = scmp.ne.s32.totalorder %s6704_s27, 0 }
 0x703   :  { %6708 = shalt.err (%p9887_p3)  }
 0x704   :  { %6710 = vsyncmov [#allocation7 + $0x4] }
 0x707   :  { %s6711_s12 = vpop.sfrf %6710 }
 0x708   :  { %p9888_p4 = scmp.ne.s32.totalorder %s6711_s12, 0 }
 0x70a   :  { %6715 = shalt.err (%p9888_p4)  }

</bundles_post_ra>
